<compile_context>
chip_gen: v5e
topology: v5e:2x2
jax: 0.10.0
libtpu: 0.0.40
codegen_flags: <defaults>
</compile_context>

<pallas_src>
import functools

import numpy as np

import jax
import jax.numpy as jnp
from jax import lax
from jax.experimental import pallas as pl
from jax.experimental.pallas import tpu as pltpu

_BN_EPS = 1e-5


# ----------------------------------------------------------------------------
# Fused whole-network kernel
# ----------------------------------------------------------------------------
def _build_kernel(plan, num_pads):
    """Builds the fused forward kernel for the static network `plan`."""

    def conv3x3(pad_ref, w_ref, b_ref, hout, stride, relu, residual=None):
        # pad_ref: (Hin+2, Win*Cin) bf16 row-padded input, lane index = w*Cin + ci.
        # w_ref:   (3, Win*Cin, Wout*Cout) bf16 (kw-shift / W-stride / BN scale folded in).
        # b_ref:   (1, Wout*Cout) f32 folded BatchNorm bias.
        hrows = hout if stride == 1 else stride * (hout - 1) + 1
        acc = None
        for kh in range(3):
            lhs = pad_ref[pl.ds(kh, hrows), :]                       # contiguous slice
            part = jnp.dot(lhs, w_ref[kh], preferred_element_type=jnp.float32)
            acc = part if acc is None else acc + part
        if stride != 1:
            # Row decimation (keep every `stride`-th row) as a tiny 0/1 matmul; keeps all
            # VMEM accesses contiguous and the extra work rides in MXU slack.
            r = lax.broadcasted_iota(jnp.int32, (hout, hrows), 0)
            c = lax.broadcasted_iota(jnp.int32, (hout, hrows), 1)
            dec = (c == stride * r).astype(jnp.float32)
            acc = jnp.dot(dec, acc, preferred_element_type=jnp.float32)
        y = acc + b_ref[...]                                         # folded BN bias (f32)
        if residual is not None:
            y = y + residual
        if relu:
            y = jnp.maximum(y, 0.0)
        return y                                                     # (Hout, Wout*Cout) f32

    def kernel(*refs):
        it = iter(refs)
        x_ref = next(it)
        stem_w, stem_b = next(it), next(it)
        block_refs = []
        for blk in plan["blocks"]:
            n = 6 if blk["has_ds"] else 4
            block_refs.append([next(it) for _ in range(n)])
        fcw_ref, fcb_ref = next(it), next(it)
        out_ref = next(it)
        pads = [next(it) for _ in range(num_pads)]

        # Zero the padded-activation scratch buffers (keeps halo rows at zero; interiors
        # are fully overwritten before every use).
        for p in pads:
            p[...] = jnp.zeros(p.shape, jnp.bfloat16)

        def to_pad(pad_ref, val, hin):
            # Store an (Hin, Win*Cin) f32 activation into rows 1..Hin as bf16 operands.
            pad_ref[pl.ds(1, hin), :] = val.astype(jnp.bfloat16)

        # --- stem: conv3x3(3->16) + BN + ReLU --------------------------------------------
        st = plan["stem"]
        to_pad(pads[st["pad"]], x_ref[0], st["Hin"])
        act = conv3x3(pads[st["pad"]], stem_w, stem_b, st["Hout"], st["stride"], True)

        # --- residual blocks -------------------------------------------------------------
        for blk, brefs in zip(plan["blocks"], block_refs):
            if blk["has_ds"]:
                w1, b1, wd, bd, w2, b2 = brefs
            else:
                w1, b1, w2, b2 = brefs
            p_in, p_mid = pads[blk["pad_in"]], pads[blk["pad_mid"]]

            to_pad(p_in, act, blk["Hin"])
            h = conv3x3(p_in, w1, b1, blk["Hout"], blk["stride"], True)
            if blk["has_ds"]:
                res = conv3x3(p_in, wd, bd, blk["Hout"], blk["stride"], False)
            else:
                res = act                                            # identity skip (f32)
            to_pad(p_mid, h, blk["Hout"])
            act = conv3x3(p_mid, w2, b2, blk["Hout"], 1, True, residual=res)

        # --- head: global average pool + fully-connected (fused epilogue) ----------------
        hd = plan["head"]
        csum = act[:, 0:hd["C"]]
        for w in range(1, hd["W"]):
            csum = csum + act[:, w * hd["C"]:(w + 1) * hd["C"]]
        pooled = jnp.sum(csum, axis=0, keepdims=True) * (1.0 / (hd["H"] * hd["W"]))
        logits = jnp.dot(pooled, fcw_ref[...], preferred_element_type=jnp.float32)
        out_ref[0] = logits + fcb_ref[...]

    return kernel


# ----------------------------------------------------------------------------
# Parameter preparation (BN folding + conv weight expansion) -- runs once, outside the jit
# ----------------------------------------------------------------------------
def _expand_conv(w_hwio, bn_scale, bn_bias, hin, win, stride):
    """Fold BN scale into the conv weight and expand to per-kh matmul matrices:
       Wbig[kh, w*Cin+ci, wo*Cout+co] = (w*scale)[kh, kw, ci, co]  with kw = w + 1 - stride*wo
    (zero outside 0..2), baking the kw shift, the W stride and the column zero-padding of a
    padding=1 conv into the matrix."""
    _, _, cin, cout = w_hwio.shape
    hout = (hin - 1) // stride + 1
    wout = (win - 1) // stride + 1
    wf = w_hwio * bn_scale[None, None, None, :]
    sel = np.zeros((3, win, wout), np.float32)
    for wo in range(wout):
        for kw in range(3):
            wi = stride * wo + kw - 1
            if 0 <= wi < win:
                sel[kw, wi, wo] = 1.0
    big = jnp.einsum("kwv,hkio->hwivo", jnp.asarray(sel), wf)        # (3, Win, Cin, Wout, Cout)
    w_big = big.reshape(3, win * cin, wout * cout).astype(jnp.bfloat16)
    b_big = jnp.tile(bn_bias, wout).reshape(1, wout * cout).astype(jnp.float32)
    return w_big, b_big, hout, wout


def prepare_network(params, hin=16, win=16, cin=3):
    """Builds (static plan, flat operand list) for the fused kernel."""
    pad_shapes, pad_index = [], {}

    def get_pad(h, w, c):
        key = (h + 2, w * c)
        if key not in pad_index:
            pad_index[key] = len(pad_shapes)
            pad_shapes.append(key)
        return pad_index[key]

    tensors = []
    scale, bias = params["stem_bn"]
    w_big, b_big, hout, wout = _expand_conv(params["stem_w"], scale, bias, hin, win, 1)
    cout = params["stem_w"].shape[-1]
    stem = dict(Hin=hin, Win=win, Cin=cin, Cout=cout, stride=1,
                Hout=hout, Wout=wout, pad=get_pad(hin, win, cin))
    tensors += [w_big, b_big]
    h, w, c = hout, wout, cout

    blocks = []
    for stage in params["stages"]:
        for blk in stage:
            s = blk["stride"]
            cout = blk["conv1_w"].shape[-1]
            w1, b1, hout, wout = _expand_conv(blk["conv1_w"], *blk["bn1"], h, w, s)
            entry = dict(Hin=h, Win=w, Cin=c, Cout=cout, stride=s, Hout=hout, Wout=wout,
                         has_ds="ds_w" in blk,
                         pad_in=get_pad(h, w, c), pad_mid=get_pad(hout, wout, cout))
            tensors += [w1, b1]
            if entry["has_ds"]:
                wd, bd, _, _ = _expand_conv(blk["ds_w"], *blk["ds_bn"], h, w, s)
                tensors += [wd, bd]
            w2, b2, _, _ = _expand_conv(blk["conv2_w"], *blk["bn2"], hout, wout, 1)
            tensors += [w2, b2]
            blocks.append(entry)
            h, w, c = hout, wout, cout

    tensors += [params["fc_w"].astype(jnp.float32),
                params["fc_b"].reshape(1, -1).astype(jnp.float32)]
    plan = dict(stem=stem, blocks=blocks,
                head=dict(H=h, W=w, C=c, num_classes=params["fc_w"].shape[-1]),
                pad_shapes=pad_shapes)
    return plan, tensors


# ----------------------------------------------------------------------------
# Forward pass (single pallas_call)
# ----------------------------------------------------------------------------
def resnet_forward(plan, tensors, x_nchw):
    """x_nchw: (N, 3, H, W) float32 (PyTorch layout) -> logits (N, num_classes)."""
    n = x_nchw.shape[0]
    st = plan["stem"]
    num_classes = plan["head"]["num_classes"]

    # NCHW -> lane-dense (N, H, W*C) layout (one-time glue on a tiny input).
    x = jnp.transpose(x_nchw, (0, 2, 3, 1)).astype(jnp.float32)
    x = x.reshape(n, st["Hin"], st["Win"] * st["Cin"])

    in_specs = [pl.BlockSpec((1, st["Hin"], st["Win"] * st["Cin"]), lambda i: (i, 0, 0))]
    for t in tensors:
        if t.ndim == 3:
            in_specs.append(pl.BlockSpec(t.shape, lambda i: (0, 0, 0)))
        else:
            in_specs.append(pl.BlockSpec(t.shape, lambda i: (0, 0)))

    out = pl.pallas_call(
        _build_kernel(plan, len(plan["pad_shapes"])),
        out_shape=jax.ShapeDtypeStruct((n, 1, num_classes), jnp.float32),
        grid=(n,),
        in_specs=in_specs,
        out_specs=pl.BlockSpec((1, 1, num_classes), lambda i: (i, 0, 0)),
        scratch_shapes=[pltpu.VMEM(s, jnp.bfloat16) for s in plan["pad_shapes"]],
        compiler_params=pltpu.CompilerParams(
            dimension_semantics=("parallel",),      # v7x: one image per TensorCore
            vmem_limit_bytes=32 * 1024 * 1024,      # ~9 MiB actually used; safe on v5e/v6e/v7x
        ),
    )(x, *tensors)
    return out.reshape(n, num_classes)


# ----------------------------------------------------------------------------
# Deterministic synthetic parameters
# ----------------------------------------------------------------------------
def _conv_w(key, cin, cout):
    return jax.random.normal(key, (3, 3, cin, cout), jnp.float32) / jnp.sqrt(9.0 * cin)


def _bn_params(key, c):
    k1, k2, k3, k4 = jax.random.split(key, 4)
    gamma = 1.0 + 0.1 * jax.random.normal(k1, (c,), jnp.float32)
    beta = 0.1 * jax.random.normal(k2, (c,), jnp.float32)
    running_mean = 0.1 * jax.random.normal(k3, (c,), jnp.float32)
    running_var = 1.0 + 0.1 * jnp.abs(jax.random.normal(k4, (c,), jnp.float32))
    scale = gamma / jnp.sqrt(running_var + _BN_EPS)    # eval-mode BN fold
    bias = beta - running_mean * scale
    return scale, bias


def init_resnet_params(key, layers=(1, 1, 1, 1), num_classes=10):
    keys = iter(jax.random.split(key, 256))
    params = {"stem_w": _conv_w(next(keys), 3, 16), "stem_bn": _bn_params(next(keys), 16)}
    in_c = 16
    stages = []
    for out_c, n_blocks, stage_stride in zip((16, 32, 64, 128), layers, (1, 2, 2, 2)):
        blocks = []
        for bidx in range(n_blocks):
            s = stage_stride if bidx == 0 else 1
            blk = {
                "stride": s,
                "conv1_w": _conv_w(next(keys), in_c, out_c),
                "bn1": _bn_params(next(keys), out_c),
                "conv2_w": _conv_w(next(keys), out_c, out_c),
                "bn2": _bn_params(next(keys), out_c),
            }
            if s != 1 or in_c != out_c:
                blk["ds_w"] = _conv_w(next(keys), in_c, out_c)
                blk["ds_bn"] = _bn_params(next(keys), out_c)
            blocks.append(blk)
            in_c = out_c
        stages.append(blocks)
    params["stages"] = stages
    params["fc_w"] = jax.random.normal(next(keys), (128, num_classes), jnp.float32) / jnp.sqrt(128.0)
    params["fc_b"] = 0.01 * jax.random.normal(next(keys), (num_classes,), jnp.float32)
    return params


# ----------------------------------------------------------------------------
# Pure-JAX reference (same bf16-operand / f32-accumulate quantization) for verification
# ----------------------------------------------------------------------------
def reference_forward(params, x_nchw):
    def conv_bn(x, wgt, scale, bias, stride, relu, residual=None):
        y = lax.conv_general_dilated(
            x.astype(jnp.bfloat16),
            (wgt * scale[None, None, None, :]).astype(jnp.bfloat16),
            window_strides=(stride, stride),
            padding=((1, 1), (1, 1)),
            dimension_numbers=("NHWC", "HWIO", "NHWC"),
            preferred_element_type=jnp.float32,
        )
        y = y + bias
        if residual is not None:
            y = y + residual
        if relu:
            y = jnp.maximum(y, 0.0)
        return y

    x = jnp.transpose(x_nchw, (0, 2, 3, 1)).astype(jnp.float32)
    scale, bias = params["stem_bn"]
    act = conv_bn(x, params["stem_w"], scale, bias, 1, True)
    for stage in params["stages"]:
        for blk in stage:
            s = blk["stride"]
            h = conv_bn(act, blk["conv1_w"], *blk["bn1"], s, True)
            if "ds_w" in blk:
                res = conv_bn(act, blk["ds_w"], *blk["ds_bn"], s, False)
            else:
                res = act
            act = conv_bn(h, blk["conv2_w"], *blk["bn2"], 1, True, residual=res)
    pooled = jnp.mean(act, axis=(1, 2))
    return jnp.dot(pooled, params["fc_w"]) + params["fc_b"]


# ----------------------------------------------------------------------------
# Main
# ----------------------------------------------------------------------------
if __name__ == "__main__":
    key = jax.random.PRNGKey(0)
    pkey, xkey = jax.random.split(key)

    # ResNet(block=ResidualBlock, layers=[1, 1, 1, 1], num_classes=10), NCHW input.
    params = init_resnet_params(pkey, layers=(1, 1, 1, 1), num_classes=10)
    x = jax.random.normal(xkey, (2, 3, 16, 16), jnp.float32)

    plan, tensors = prepare_network(params)
    fwd = jax.jit(functools.partial(resnet_forward, plan))
    logits = fwd(tensors, x)
    jax.block_until_ready(logits)

    assert logits.shape == (2, 10), logits.shape
    assert bool(jnp.all(jnp.isfinite(logits)))

    # Numerical check against a pure-JAX reference with matching quantization.
    ref = jax.jit(functools.partial(reference_forward, params))(x)
    jax.block_until_ready(ref)
    err = float(jnp.max(jnp.abs(logits - ref)))
    assert err < 2e-2, f"kernel/reference mismatch: max abs err = {err}"

    print("KERNEL_OK")
</pallas_src>

<mosaic_0001>
module attributes {stable_mosaic.version = 11 : i64} {
  func.func @kernel(%arg0: i32, %arg1: memref<1x16x48xf32, #tpu.memory_space<vmem>>, %arg2: memref<3x48x256xbf16, #tpu.memory_space<vmem>>, %arg3: memref<1x256xf32, #tpu.memory_space<vmem>>, %arg4: memref<3x256x256xbf16, #tpu.memory_space<vmem>>, %arg5: memref<1x256xf32, #tpu.memory_space<vmem>>, %arg6: memref<3x256x256xbf16, #tpu.memory_space<vmem>>, %arg7: memref<1x256xf32, #tpu.memory_space<vmem>>, %arg8: memref<3x256x256xbf16, #tpu.memory_space<vmem>>, %arg9: memref<1x256xf32, #tpu.memory_space<vmem>>, %arg10: memref<3x256x256xbf16, #tpu.memory_space<vmem>>, %arg11: memref<1x256xf32, #tpu.memory_space<vmem>>, %arg12: memref<3x256x256xbf16, #tpu.memory_space<vmem>>, %arg13: memref<1x256xf32, #tpu.memory_space<vmem>>, %arg14: memref<3x256x256xbf16, #tpu.memory_space<vmem>>, %arg15: memref<1x256xf32, #tpu.memory_space<vmem>>, %arg16: memref<3x256x256xbf16, #tpu.memory_space<vmem>>, %arg17: memref<1x256xf32, #tpu.memory_space<vmem>>, %arg18: memref<3x256x256xbf16, #tpu.memory_space<vmem>>, %arg19: memref<1x256xf32, #tpu.memory_space<vmem>>, %arg20: memref<3x256x256xbf16, #tpu.memory_space<vmem>>, %arg21: memref<1x256xf32, #tpu.memory_space<vmem>>, %arg22: memref<3x256x256xbf16, #tpu.memory_space<vmem>>, %arg23: memref<1x256xf32, #tpu.memory_space<vmem>>, %arg24: memref<3x256x256xbf16, #tpu.memory_space<vmem>>, %arg25: memref<1x256xf32, #tpu.memory_space<vmem>>, %arg26: memref<128x10xf32, #tpu.memory_space<vmem>>, %arg27: memref<1x10xf32, #tpu.memory_space<vmem>>, %arg28: memref<1x1x10xf32, #tpu.memory_space<vmem>>, %arg29: memref<18x48xbf16, #tpu.memory_space<vmem>>, %arg30: memref<18x256xbf16, #tpu.memory_space<vmem>>, %arg31: memref<10x256xbf16, #tpu.memory_space<vmem>>, %arg32: memref<6x256xbf16, #tpu.memory_space<vmem>>, %arg33: memref<4x256xbf16, #tpu.memory_space<vmem>>) attributes {dimension_semantics = [#tpu.dimension_semantics<parallel>], iteration_bounds = array<i64: 2>, scalar_prefetch = 0 : i64, scratch_operands = 5 : i64, tpu.core_type = #tpu.core_type<tc>, window_params = [{transform_indices = @transform_0, window_bounds = array<i64: 1, 16, 48>}, {pipeline_mode = #tpu.pipeline_mode<synchronous>, transform_indices = @transform_1, window_bounds = array<i64: 3, 48, 256>}, {pipeline_mode = #tpu.pipeline_mode<synchronous>, transform_indices = @transform_2, window_bounds = array<i64: 1, 256>}, {pipeline_mode = #tpu.pipeline_mode<synchronous>, transform_indices = @transform_3, window_bounds = array<i64: 3, 256, 256>}, {pipeline_mode = #tpu.pipeline_mode<synchronous>, transform_indices = @transform_4, window_bounds = array<i64: 1, 256>}, {pipeline_mode = #tpu.pipeline_mode<synchronous>, transform_indices = @transform_5, window_bounds = array<i64: 3, 256, 256>}, {pipeline_mode = #tpu.pipeline_mode<synchronous>, transform_indices = @transform_6, window_bounds = array<i64: 1, 256>}, {pipeline_mode = #tpu.pipeline_mode<synchronous>, transform_indices = @transform_7, window_bounds = array<i64: 3, 256, 256>}, {pipeline_mode = #tpu.pipeline_mode<synchronous>, transform_indices = @transform_8, window_bounds = array<i64: 1, 256>}, {pipeline_mode = #tpu.pipeline_mode<synchronous>, transform_indices = @transform_9, window_bounds = array<i64: 3, 256, 256>}, {pipeline_mode = #tpu.pipeline_mode<synchronous>, transform_indices = @transform_10, window_bounds = array<i64: 1, 256>}, {pipeline_mode = #tpu.pipeline_mode<synchronous>, transform_indices = @transform_11, window_bounds = array<i64: 3, 256, 256>}, {pipeline_mode = #tpu.pipeline_mode<synchronous>, transform_indices = @transform_12, window_bounds = array<i64: 1, 256>}, {pipeline_mode = #tpu.pipeline_mode<synchronous>, transform_indices = @transform_13, window_bounds = array<i64: 3, 256, 256>}, {pipeline_mode = #tpu.pipeline_mode<synchronous>, transform_indices = @transform_14, window_bounds = array<i64: 1, 256>}, {pipeline_mode = #tpu.pipeline_mode<synchronous>, transform_indices = @transform_15, window_bounds = array<i64: 3, 256, 256>}, {pipeline_mode = #tpu.pipeline_mode<synchronous>, transform_indices = @transform_16, window_bounds = array<i64: 1, 256>}, {pipeline_mode = #tpu.pipeline_mode<synchronous>, transform_indices = @transform_17, window_bounds = array<i64: 3, 256, 256>}, {pipeline_mode = #tpu.pipeline_mode<synchronous>, transform_indices = @transform_18, window_bounds = array<i64: 1, 256>}, {pipeline_mode = #tpu.pipeline_mode<synchronous>, transform_indices = @transform_19, window_bounds = array<i64: 3, 256, 256>}, {pipeline_mode = #tpu.pipeline_mode<synchronous>, transform_indices = @transform_20, window_bounds = array<i64: 1, 256>}, {pipeline_mode = #tpu.pipeline_mode<synchronous>, transform_indices = @transform_21, window_bounds = array<i64: 3, 256, 256>}, {pipeline_mode = #tpu.pipeline_mode<synchronous>, transform_indices = @transform_22, window_bounds = array<i64: 1, 256>}, {pipeline_mode = #tpu.pipeline_mode<synchronous>, transform_indices = @transform_23, window_bounds = array<i64: 3, 256, 256>}, {pipeline_mode = #tpu.pipeline_mode<synchronous>, transform_indices = @transform_24, window_bounds = array<i64: 1, 256>}, {pipeline_mode = #tpu.pipeline_mode<synchronous>, transform_indices = @transform_25, window_bounds = array<i64: 128, 10>}, {pipeline_mode = #tpu.pipeline_mode<synchronous>, transform_indices = @transform_26, window_bounds = array<i64: 1, 10>}, {transform_indices = @transform_27, window_bounds = array<i64: 1, 1, 10>}]} {
    %cst = arith.constant 0.000000e+00 : bf16
    %0 = vector.broadcast %cst : bf16 to vector<18x48xbf16>
    %c0 = arith.constant 0 : index
    %c0_0 = arith.constant 0 : index
    %1 = vector.load %arg29[%c0, %c0_0] : memref<18x48xbf16, #tpu.memory_space<vmem>>, vector<18x48xbf16>
    tpu.vector_store %arg29[%c0, %c0_0], %0 {strides = array<i32>} : memref<18x48xbf16, #tpu.memory_space<vmem>>, vector<18x48xbf16>,
    %cst_1 = arith.constant 0.000000e+00 : bf16
    %2 = vector.broadcast %cst_1 : bf16 to vector<18x256xbf16>
    %c0_2 = arith.constant 0 : index
    %c0_3 = arith.constant 0 : index
    %3 = vector.load %arg30[%c0_2, %c0_3] : memref<18x256xbf16, #tpu.memory_space<vmem>>, vector<18x256xbf16>
    tpu.vector_store %arg30[%c0_2, %c0_3], %2 {strides = array<i32>} : memref<18x256xbf16, #tpu.memory_space<vmem>>, vector<18x256xbf16>,
    %cst_4 = arith.constant 0.000000e+00 : bf16
    %4 = vector.broadcast %cst_4 : bf16 to vector<10x256xbf16>
    %c0_5 = arith.constant 0 : index
    %c0_6 = arith.constant 0 : index
    %5 = vector.load %arg31[%c0_5, %c0_6] : memref<10x256xbf16, #tpu.memory_space<vmem>>, vector<10x256xbf16>
    tpu.vector_store %arg31[%c0_5, %c0_6], %4 {strides = array<i32>} : memref<10x256xbf16, #tpu.memory_space<vmem>>, vector<10x256xbf16>,
    %cst_7 = arith.constant 0.000000e+00 : bf16
    %6 = vector.broadcast %cst_7 : bf16 to vector<6x256xbf16>
    %c0_8 = arith.constant 0 : index
    %c0_9 = arith.constant 0 : index
    %7 = vector.load %arg32[%c0_8, %c0_9] : memref<6x256xbf16, #tpu.memory_space<vmem>>, vector<6x256xbf16>
    tpu.vector_store %arg32[%c0_8, %c0_9], %6 {strides = array<i32>} : memref<6x256xbf16, #tpu.memory_space<vmem>>, vector<6x256xbf16>,
    %cst_10 = arith.constant 0.000000e+00 : bf16
    %8 = vector.broadcast %cst_10 : bf16 to vector<4x256xbf16>
    %c0_11 = arith.constant 0 : index
    %c0_12 = arith.constant 0 : index
    %9 = vector.load %arg33[%c0_11, %c0_12] : memref<4x256xbf16, #tpu.memory_space<vmem>>, vector<4x256xbf16>
    tpu.vector_store %arg33[%c0_11, %c0_12], %8 {strides = array<i32>} : memref<4x256xbf16, #tpu.memory_space<vmem>>, vector<4x256xbf16>,
    %c0_13 = arith.constant 0 : index
    %c0_14 = arith.constant 0 : index
    %c0_15 = arith.constant 0 : index
    %10 = vector.load %arg1[%c0_13, %c0_14, %c0_15] : memref<1x16x48xf32, #tpu.memory_space<vmem>>, vector<1x16x48xf32>
    %11 = vector.shape_cast %10 : vector<1x16x48xf32> to vector<16x48xf32>
    %12 = arith.truncf %11 : vector<16x48xf32> to vector<16x48xbf16>
    %c1 = arith.constant 1 : index
    %c0_16 = arith.constant 0 : index
    %13 = vector.load %arg29[%c1, %c0_16] : memref<18x48xbf16, #tpu.memory_space<vmem>>, vector<16x48xbf16>
    tpu.vector_store %arg29[%c1, %c0_16], %12 {strides = array<i32>} : memref<18x48xbf16, #tpu.memory_space<vmem>>, vector<16x48xbf16>,
    %c0_17 = arith.constant 0 : index
    %c0_18 = arith.constant 0 : index
    %14 = vector.load %arg29[%c0_17, %c0_18] : memref<18x48xbf16, #tpu.memory_space<vmem>>, vector<16x48xbf16>
    %c0_19 = arith.constant 0 : index
    %c0_20 = arith.constant 0 : index
    %c0_21 = arith.constant 0 : index
    %15 = vector.load %arg2[%c0_19, %c0_20, %c0_21] : memref<3x48x256xbf16, #tpu.memory_space<vmem>>, vector<1x48x256xbf16>
    %16 = vector.shape_cast %15 : vector<1x48x256xbf16> to vector<48x256xbf16>
    %cst_22 = arith.constant dense<0.000000e+00> : vector<16x256xf32>
    %17 = tpu.matmul %14, %16, %cst_22 {dimension_numbers = #tpu.dot_dimension_numbers<[1], [0], [0], [1], [0, 0, 1, 1], [], []>} : vector<16x48xbf16>, vector<48x256xbf16>, vector<16x256xf32> -> vector<16x256xf32>
    %c1_23 = arith.constant 1 : index
    %c0_24 = arith.constant 0 : index
    %18 = vector.load %arg29[%c1_23, %c0_24] : memref<18x48xbf16, #tpu.memory_space<vmem>>, vector<16x48xbf16>
    %c1_25 = arith.constant 1 : index
    %c0_26 = arith.constant 0 : index
    %c0_27 = arith.constant 0 : index
    %19 = vector.load %arg2[%c1_25, %c0_26, %c0_27] : memref<3x48x256xbf16, #tpu.memory_space<vmem>>, vector<1x48x256xbf16>
    %20 = vector.shape_cast %19 : vector<1x48x256xbf16> to vector<48x256xbf16>
    %cst_28 = arith.constant dense<0.000000e+00> : vector<16x256xf32>
    %21 = tpu.matmul %18, %20, %cst_28 {dimension_numbers = #tpu.dot_dimension_numbers<[1], [0], [0], [1], [0, 0, 1, 1], [], []>} : vector<16x48xbf16>, vector<48x256xbf16>, vector<16x256xf32> -> vector<16x256xf32>
    %22 = arith.addf %17, %21 : vector<16x256xf32>
    %c2 = arith.constant 2 : index
    %c0_29 = arith.constant 0 : index
    %23 = vector.load %arg29[%c2, %c0_29] : memref<18x48xbf16, #tpu.memory_space<vmem>>, vector<16x48xbf16>
    %c2_30 = arith.constant 2 : index
    %c0_31 = arith.constant 0 : index
    %c0_32 = arith.constant 0 : index
    %24 = vector.load %arg2[%c2_30, %c0_31, %c0_32] : memref<3x48x256xbf16, #tpu.memory_space<vmem>>, vector<1x48x256xbf16>
    %25 = vector.shape_cast %24 : vector<1x48x256xbf16> to vector<48x256xbf16>
    %cst_33 = arith.constant dense<0.000000e+00> : vector<16x256xf32>
    %26 = tpu.matmul %23, %25, %cst_33 {dimension_numbers = #tpu.dot_dimension_numbers<[1], [0], [0], [1], [0, 0, 1, 1], [], []>} : vector<16x48xbf16>, vector<48x256xbf16>, vector<16x256xf32> -> vector<16x256xf32>
    %27 = arith.addf %22, %26 : vector<16x256xf32>
    %c0_34 = arith.constant 0 : index
    %c0_35 = arith.constant 0 : index
    %28 = vector.load %arg3[%c0_34, %c0_35] : memref<1x256xf32, #tpu.memory_space<vmem>>, vector<1x256xf32>
    %29 = vector.broadcast %28 : vector<1x256xf32> to vector<16x256xf32>
    %30 = arith.addf %27, %29 : vector<16x256xf32>
    %cst_36 = arith.constant 0.000000e+00 : f32
    %31 = vector.broadcast %cst_36 : f32 to vector<16x256xf32>
    %32 = arith.maximumf %30, %31 : vector<16x256xf32>
    %33 = arith.truncf %32 : vector<16x256xf32> to vector<16x256xbf16>
    %c1_37 = arith.constant 1 : index
    %c0_38 = arith.constant 0 : index
    %34 = vector.load %arg30[%c1_37, %c0_38] : memref<18x256xbf16, #tpu.memory_space<vmem>>, vector<16x256xbf16>
    tpu.vector_store %arg30[%c1_37, %c0_38], %33 {strides = array<i32>} : memref<18x256xbf16, #tpu.memory_space<vmem>>, vector<16x256xbf16>,
    %c0_39 = arith.constant 0 : index
    %c0_40 = arith.constant 0 : index
    %35 = vector.load %arg30[%c0_39, %c0_40] : memref<18x256xbf16, #tpu.memory_space<vmem>>, vector<16x256xbf16>
    %c0_41 = arith.constant 0 : index
    %c0_42 = arith.constant 0 : index
    %c0_43 = arith.constant 0 : index
    %36 = vector.load %arg4[%c0_41, %c0_42, %c0_43] : memref<3x256x256xbf16, #tpu.memory_space<vmem>>, vector<1x256x256xbf16>
    %37 = vector.shape_cast %36 : vector<1x256x256xbf16> to vector<256x256xbf16>
    %cst_44 = arith.constant dense<0.000000e+00> : vector<16x256xf32>
    %38 = tpu.matmul %35, %37, %cst_44 {dimension_numbers = #tpu.dot_dimension_numbers<[1], [0], [0], [1], [0, 0, 1, 1], [], []>} : vector<16x256xbf16>, vector<256x256xbf16>, vector<16x256xf32> -> vector<16x256xf32>
    %c1_45 = arith.constant 1 : index
    %c0_46 = arith.constant 0 : index
    %39 = vector.load %arg30[%c1_45, %c0_46] : memref<18x256xbf16, #tpu.memory_space<vmem>>, vector<16x256xbf16>
    %c1_47 = arith.constant 1 : index
    %c0_48 = arith.constant 0 : index
    %c0_49 = arith.constant 0 : index
    %40 = vector.load %arg4[%c1_47, %c0_48, %c0_49] : memref<3x256x256xbf16, #tpu.memory_space<vmem>>, vector<1x256x256xbf16>
    %41 = vector.shape_cast %40 : vector<1x256x256xbf16> to vector<256x256xbf16>
    %cst_50 = arith.constant dense<0.000000e+00> : vector<16x256xf32>
    %42 = tpu.matmul %39, %41, %cst_50 {dimension_numbers = #tpu.dot_dimension_numbers<[1], [0], [0], [1], [0, 0, 1, 1], [], []>} : vector<16x256xbf16>, vector<256x256xbf16>, vector<16x256xf32> -> vector<16x256xf32>
    %43 = arith.addf %38, %42 : vector<16x256xf32>
    %c2_51 = arith.constant 2 : index
    %c0_52 = arith.constant 0 : index
    %44 = vector.load %arg30[%c2_51, %c0_52] : memref<18x256xbf16, #tpu.memory_space<vmem>>, vector<16x256xbf16>
    %c2_53 = arith.constant 2 : index
    %c0_54 = arith.constant 0 : index
    %c0_55 = arith.constant 0 : index
    %45 = vector.load %arg4[%c2_53, %c0_54, %c0_55] : memref<3x256x256xbf16, #tpu.memory_space<vmem>>, vector<1x256x256xbf16>
    %46 = vector.shape_cast %45 : vector<1x256x256xbf16> to vector<256x256xbf16>
    %cst_56 = arith.constant dense<0.000000e+00> : vector<16x256xf32>
    %47 = tpu.matmul %44, %46, %cst_56 {dimension_numbers = #tpu.dot_dimension_numbers<[1], [0], [0], [1], [0, 0, 1, 1], [], []>} : vector<16x256xbf16>, vector<256x256xbf16>, vector<16x256xf32> -> vector<16x256xf32>
    %48 = arith.addf %43, %47 : vector<16x256xf32>
    %c0_57 = arith.constant 0 : index
    %c0_58 = arith.constant 0 : index
    %49 = vector.load %arg5[%c0_57, %c0_58] : memref<1x256xf32, #tpu.memory_space<vmem>>, vector<1x256xf32>
    %50 = vector.broadcast %49 : vector<1x256xf32> to vector<16x256xf32>
    %51 = arith.addf %48, %50 : vector<16x256xf32>
    %cst_59 = arith.constant 0.000000e+00 : f32
    %52 = vector.broadcast %cst_59 : f32 to vector<16x256xf32>
    %53 = arith.maximumf %51, %52 : vector<16x256xf32>
    %54 = arith.truncf %53 : vector<16x256xf32> to vector<16x256xbf16>
    %c1_60 = arith.constant 1 : index
    %c0_61 = arith.constant 0 : index
    %55 = vector.load %arg30[%c1_60, %c0_61] : memref<18x256xbf16, #tpu.memory_space<vmem>>, vector<16x256xbf16>
    tpu.vector_store %arg30[%c1_60, %c0_61], %54 {strides = array<i32>} : memref<18x256xbf16, #tpu.memory_space<vmem>>, vector<16x256xbf16>,
    %c0_62 = arith.constant 0 : index
    %c0_63 = arith.constant 0 : index
    %56 = vector.load %arg30[%c0_62, %c0_63] : memref<18x256xbf16, #tpu.memory_space<vmem>>, vector<16x256xbf16>
    %c0_64 = arith.constant 0 : index
    %c0_65 = arith.constant 0 : index
    %c0_66 = arith.constant 0 : index
    %57 = vector.load %arg6[%c0_64, %c0_65, %c0_66] : memref<3x256x256xbf16, #tpu.memory_space<vmem>>, vector<1x256x256xbf16>
    %58 = vector.shape_cast %57 : vector<1x256x256xbf16> to vector<256x256xbf16>
    %cst_67 = arith.constant dense<0.000000e+00> : vector<16x256xf32>
    %59 = tpu.matmul %56, %58, %cst_67 {dimension_numbers = #tpu.dot_dimension_numbers<[1], [0], [0], [1], [0, 0, 1, 1], [], []>} : vector<16x256xbf16>, vector<256x256xbf16>, vector<16x256xf32> -> vector<16x256xf32>
    %c1_68 = arith.constant 1 : index
    %c0_69 = arith.constant 0 : index
    %60 = vector.load %arg30[%c1_68, %c0_69] : memref<18x256xbf16, #tpu.memory_space<vmem>>, vector<16x256xbf16>
    %c1_70 = arith.constant 1 : index
    %c0_71 = arith.constant 0 : index
    %c0_72 = arith.constant 0 : index
    %61 = vector.load %arg6[%c1_70, %c0_71, %c0_72] : memref<3x256x256xbf16, #tpu.memory_space<vmem>>, vector<1x256x256xbf16>
    %62 = vector.shape_cast %61 : vector<1x256x256xbf16> to vector<256x256xbf16>
    %cst_73 = arith.constant dense<0.000000e+00> : vector<16x256xf32>
    %63 = tpu.matmul %60, %62, %cst_73 {dimension_numbers = #tpu.dot_dimension_numbers<[1], [0], [0], [1], [0, 0, 1, 1], [], []>} : vector<16x256xbf16>, vector<256x256xbf16>, vector<16x256xf32> -> vector<16x256xf32>
    %64 = arith.addf %59, %63 : vector<16x256xf32>
    %c2_74 = arith.constant 2 : index
    %c0_75 = arith.constant 0 : index
    %65 = vector.load %arg30[%c2_74, %c0_75] : memref<18x256xbf16, #tpu.memory_space<vmem>>, vector<16x256xbf16>
    %c2_76 = arith.constant 2 : index
    %c0_77 = arith.constant 0 : index
    %c0_78 = arith.constant 0 : index
    %66 = vector.load %arg6[%c2_76, %c0_77, %c0_78] : memref<3x256x256xbf16, #tpu.memory_space<vmem>>, vector<1x256x256xbf16>
    %67 = vector.shape_cast %66 : vector<1x256x256xbf16> to vector<256x256xbf16>
    %cst_79 = arith.constant dense<0.000000e+00> : vector<16x256xf32>
    %68 = tpu.matmul %65, %67, %cst_79 {dimension_numbers = #tpu.dot_dimension_numbers<[1], [0], [0], [1], [0, 0, 1, 1], [], []>} : vector<16x256xbf16>, vector<256x256xbf16>, vector<16x256xf32> -> vector<16x256xf32>
    %69 = arith.addf %64, %68 : vector<16x256xf32>
    %c0_80 = arith.constant 0 : index
    %c0_81 = arith.constant 0 : index
    %70 = vector.load %arg7[%c0_80, %c0_81] : memref<1x256xf32, #tpu.memory_space<vmem>>, vector<1x256xf32>
    %71 = vector.broadcast %70 : vector<1x256xf32> to vector<16x256xf32>
    %72 = arith.addf %69, %71 : vector<16x256xf32>
    %73 = arith.addf %72, %32 : vector<16x256xf32>
    %cst_82 = arith.constant 0.000000e+00 : f32
    %74 = vector.broadcast %cst_82 : f32 to vector<16x256xf32>
    %75 = arith.maximumf %73, %74 : vector<16x256xf32>
    %76 = arith.truncf %75 : vector<16x256xf32> to vector<16x256xbf16>
    %c1_83 = arith.constant 1 : index
    %c0_84 = arith.constant 0 : index
    %77 = vector.load %arg30[%c1_83, %c0_84] : memref<18x256xbf16, #tpu.memory_space<vmem>>, vector<16x256xbf16>
    tpu.vector_store %arg30[%c1_83, %c0_84], %76 {strides = array<i32>} : memref<18x256xbf16, #tpu.memory_space<vmem>>, vector<16x256xbf16>,
    %c0_85 = arith.constant 0 : index
    %c0_86 = arith.constant 0 : index
    %78 = vector.load %arg30[%c0_85, %c0_86] : memref<18x256xbf16, #tpu.memory_space<vmem>>, vector<15x256xbf16>
    %c0_87 = arith.constant 0 : index
    %c0_88 = arith.constant 0 : index
    %c0_89 = arith.constant 0 : index
    %79 = vector.load %arg8[%c0_87, %c0_88, %c0_89] : memref<3x256x256xbf16, #tpu.memory_space<vmem>>, vector<1x256x256xbf16>
    %80 = vector.shape_cast %79 : vector<1x256x256xbf16> to vector<256x256xbf16>
    %cst_90 = arith.constant dense<0.000000e+00> : vector<15x256xf32>
    %81 = tpu.matmul %78, %80, %cst_90 {dimension_numbers = #tpu.dot_dimension_numbers<[1], [0], [0], [1], [0, 0, 1, 1], [], []>} : vector<15x256xbf16>, vector<256x256xbf16>, vector<15x256xf32> -> vector<15x256xf32>
    %c1_91 = arith.constant 1 : index
    %c0_92 = arith.constant 0 : index
    %82 = vector.load %arg30[%c1_91, %c0_92] : memref<18x256xbf16, #tpu.memory_space<vmem>>, vector<15x256xbf16>
    %c1_93 = arith.constant 1 : index
    %c0_94 = arith.constant 0 : index
    %c0_95 = arith.constant 0 : index
    %83 = vector.load %arg8[%c1_93, %c0_94, %c0_95] : memref<3x256x256xbf16, #tpu.memory_space<vmem>>, vector<1x256x256xbf16>
    %84 = vector.shape_cast %83 : vector<1x256x256xbf16> to vector<256x256xbf16>
    %cst_96 = arith.constant dense<0.000000e+00> : vector<15x256xf32>
    %85 = tpu.matmul %82, %84, %cst_96 {dimension_numbers = #tpu.dot_dimension_numbers<[1], [0], [0], [1], [0, 0, 1, 1], [], []>} : vector<15x256xbf16>, vector<256x256xbf16>, vector<15x256xf32> -> vector<15x256xf32>
    %86 = arith.addf %81, %85 : vector<15x256xf32>
    %c2_97 = arith.constant 2 : index
    %c0_98 = arith.constant 0 : index
    %87 = vector.load %arg30[%c2_97, %c0_98] : memref<18x256xbf16, #tpu.memory_space<vmem>>, vector<15x256xbf16>
    %c2_99 = arith.constant 2 : index
    %c0_100 = arith.constant 0 : index
    %c0_101 = arith.constant 0 : index
    %88 = vector.load %arg8[%c2_99, %c0_100, %c0_101] : memref<3x256x256xbf16, #tpu.memory_space<vmem>>, vector<1x256x256xbf16>
    %89 = vector.shape_cast %88 : vector<1x256x256xbf16> to vector<256x256xbf16>
    %cst_102 = arith.constant dense<0.000000e+00> : vector<15x256xf32>
    %90 = tpu.matmul %87, %89, %cst_102 {dimension_numbers = #tpu.dot_dimension_numbers<[1], [0], [0], [1], [0, 0, 1, 1], [], []>} : vector<15x256xbf16>, vector<256x256xbf16>, vector<15x256xf32> -> vector<15x256xf32>
    %91 = arith.addf %86, %90 : vector<15x256xf32>
    %92 = tpu.iota {dimensions = array<i32: 0>} : vector<8x15xi32>
    %93 = tpu.iota {dimensions = array<i32: 1>} : vector<8x15xi32>
    %c2_i32 = arith.constant 2 : i32
    %94 = vector.broadcast %c2_i32 : i32 to vector<8x15xi32>
    %95 = arith.muli %94, %92 : vector<8x15xi32>
    %96 = arith.cmpi eq, %93, %95 : vector<8x15xi32>
    %97 = arith.extui %96 : vector<8x15xi1> to vector<8x15xi32>
    %98 = arith.sitofp %97 : vector<8x15xi32> to vector<8x15xf32>
    %cst_103 = arith.constant dense<0.000000e+00> : vector<8x256xf32>
    %99 = tpu.matmul %98, %91, %cst_103 {dimension_numbers = #tpu.dot_dimension_numbers<[1], [0], [0], [1], [0, 0, 1, 1], [], []>} : vector<8x15xf32>, vector<15x256xf32>, vector<8x256xf32> -> vector<8x256xf32>
    %c0_104 = arith.constant 0 : index
    %c0_105 = arith.constant 0 : index
    %100 = vector.load %arg9[%c0_104, %c0_105] : memref<1x256xf32, #tpu.memory_space<vmem>>, vector<1x256xf32>
    %101 = vector.broadcast %100 : vector<1x256xf32> to vector<8x256xf32>
    %102 = arith.addf %99, %101 : vector<8x256xf32>
    %cst_106 = arith.constant 0.000000e+00 : f32
    %103 = vector.broadcast %cst_106 : f32 to vector<8x256xf32>
    %104 = arith.maximumf %102, %103 : vector<8x256xf32>
    %c0_107 = arith.constant 0 : index
    %c0_108 = arith.constant 0 : index
    %105 = vector.load %arg30[%c0_107, %c0_108] : memref<18x256xbf16, #tpu.memory_space<vmem>>, vector<15x256xbf16>
    %c0_109 = arith.constant 0 : index
    %c0_110 = arith.constant 0 : index
    %c0_111 = arith.constant 0 : index
    %106 = vector.load %arg10[%c0_109, %c0_110, %c0_111] : memref<3x256x256xbf16, #tpu.memory_space<vmem>>, vector<1x256x256xbf16>
    %107 = vector.shape_cast %106 : vector<1x256x256xbf16> to vector<256x256xbf16>
    %cst_112 = arith.constant dense<0.000000e+00> : vector<15x256xf32>
    %108 = tpu.matmul %105, %107, %cst_112 {dimension_numbers = #tpu.dot_dimension_numbers<[1], [0], [0], [1], [0, 0, 1, 1], [], []>} : vector<15x256xbf16>, vector<256x256xbf16>, vector<15x256xf32> -> vector<15x256xf32>
    %c1_113 = arith.constant 1 : index
    %c0_114 = arith.constant 0 : index
    %109 = vector.load %arg30[%c1_113, %c0_114] : memref<18x256xbf16, #tpu.memory_space<vmem>>, vector<15x256xbf16>
    %c1_115 = arith.constant 1 : index
    %c0_116 = arith.constant 0 : index
    %c0_117 = arith.constant 0 : index
    %110 = vector.load %arg10[%c1_115, %c0_116, %c0_117] : memref<3x256x256xbf16, #tpu.memory_space<vmem>>, vector<1x256x256xbf16>
    %111 = vector.shape_cast %110 : vector<1x256x256xbf16> to vector<256x256xbf16>
    %cst_118 = arith.constant dense<0.000000e+00> : vector<15x256xf32>
    %112 = tpu.matmul %109, %111, %cst_118 {dimension_numbers = #tpu.dot_dimension_numbers<[1], [0], [0], [1], [0, 0, 1, 1], [], []>} : vector<15x256xbf16>, vector<256x256xbf16>, vector<15x256xf32> -> vector<15x256xf32>
    %113 = arith.addf %108, %112 : vector<15x256xf32>
    %c2_119 = arith.constant 2 : index
    %c0_120 = arith.constant 0 : index
    %114 = vector.load %arg30[%c2_119, %c0_120] : memref<18x256xbf16, #tpu.memory_space<vmem>>, vector<15x256xbf16>
    %c2_121 = arith.constant 2 : index
    %c0_122 = arith.constant 0 : index
    %c0_123 = arith.constant 0 : index
    %115 = vector.load %arg10[%c2_121, %c0_122, %c0_123] : memref<3x256x256xbf16, #tpu.memory_space<vmem>>, vector<1x256x256xbf16>
    %116 = vector.shape_cast %115 : vector<1x256x256xbf16> to vector<256x256xbf16>
    %cst_124 = arith.constant dense<0.000000e+00> : vector<15x256xf32>
    %117 = tpu.matmul %114, %116, %cst_124 {dimension_numbers = #tpu.dot_dimension_numbers<[1], [0], [0], [1], [0, 0, 1, 1], [], []>} : vector<15x256xbf16>, vector<256x256xbf16>, vector<15x256xf32> -> vector<15x256xf32>
    %118 = arith.addf %113, %117 : vector<15x256xf32>
    %119 = tpu.iota {dimensions = array<i32: 0>} : vector<8x15xi32>
    %120 = tpu.iota {dimensions = array<i32: 1>} : vector<8x15xi32>
    %c2_i32_125 = arith.constant 2 : i32
    %121 = vector.broadcast %c2_i32_125 : i32 to vector<8x15xi32>
    %122 = arith.muli %121, %119 : vector<8x15xi32>
    %123 = arith.cmpi eq, %120, %122 : vector<8x15xi32>
    %124 = arith.extui %123 : vector<8x15xi1> to vector<8x15xi32>
    %125 = arith.sitofp %124 : vector<8x15xi32> to vector<8x15xf32>
    %cst_126 = arith.constant dense<0.000000e+00> : vector<8x256xf32>
    %126 = tpu.matmul %125, %118, %cst_126 {dimension_numbers = #tpu.dot_dimension_numbers<[1], [0], [0], [1], [0, 0, 1, 1], [], []>} : vector<8x15xf32>, vector<15x256xf32>, vector<8x256xf32> -> vector<8x256xf32>
    %c0_127 = arith.constant 0 : index
    %c0_128 = arith.constant 0 : index
    %127 = vector.load %arg11[%c0_127, %c0_128] : memref<1x256xf32, #tpu.memory_space<vmem>>, vector<1x256xf32>
    %128 = vector.broadcast %127 : vector<1x256xf32> to vector<8x256xf32>
    %129 = arith.addf %126, %128 : vector<8x256xf32>
    %130 = arith.truncf %104 : vector<8x256xf32> to vector<8x256xbf16>
    %c1_129 = arith.constant 1 : index
    %c0_130 = arith.constant 0 : index
    %131 = vector.load %arg31[%c1_129, %c0_130] : memref<10x256xbf16, #tpu.memory_space<vmem>>, vector<8x256xbf16>
    tpu.vector_store %arg31[%c1_129, %c0_130], %130 {strides = array<i32>} : memref<10x256xbf16, #tpu.memory_space<vmem>>, vector<8x256xbf16>,
    %c0_131 = arith.constant 0 : index
    %c0_132 = arith.constant 0 : index
    %132 = vector.load %arg31[%c0_131, %c0_132] : memref<10x256xbf16, #tpu.memory_space<vmem>>, vector<8x256xbf16>
    %c0_133 = arith.constant 0 : index
    %c0_134 = arith.constant 0 : index
    %c0_135 = arith.constant 0 : index
    %133 = vector.load %arg12[%c0_133, %c0_134, %c0_135] : memref<3x256x256xbf16, #tpu.memory_space<vmem>>, vector<1x256x256xbf16>
    %134 = vector.shape_cast %133 : vector<1x256x256xbf16> to vector<256x256xbf16>
    %cst_136 = arith.constant dense<0.000000e+00> : vector<8x256xf32>
    %135 = tpu.matmul %132, %134, %cst_136 {dimension_numbers = #tpu.dot_dimension_numbers<[1], [0], [0], [1], [0, 0, 1, 1], [], []>} : vector<8x256xbf16>, vector<256x256xbf16>, vector<8x256xf32> -> vector<8x256xf32>
    %c1_137 = arith.constant 1 : index
    %c0_138 = arith.constant 0 : index
    %136 = vector.load %arg31[%c1_137, %c0_138] : memref<10x256xbf16, #tpu.memory_space<vmem>>, vector<8x256xbf16>
    %c1_139 = arith.constant 1 : index
    %c0_140 = arith.constant 0 : index
    %c0_141 = arith.constant 0 : index
    %137 = vector.load %arg12[%c1_139, %c0_140, %c0_141] : memref<3x256x256xbf16, #tpu.memory_space<vmem>>, vector<1x256x256xbf16>
    %138 = vector.shape_cast %137 : vector<1x256x256xbf16> to vector<256x256xbf16>
    %cst_142 = arith.constant dense<0.000000e+00> : vector<8x256xf32>
    %139 = tpu.matmul %136, %138, %cst_142 {dimension_numbers = #tpu.dot_dimension_numbers<[1], [0], [0], [1], [0, 0, 1, 1], [], []>} : vector<8x256xbf16>, vector<256x256xbf16>, vector<8x256xf32> -> vector<8x256xf32>
    %140 = arith.addf %135, %139 : vector<8x256xf32>
    %c2_143 = arith.constant 2 : index
    %c0_144 = arith.constant 0 : index
    %141 = vector.load %arg31[%c2_143, %c0_144] : memref<10x256xbf16, #tpu.memory_space<vmem>>, vector<8x256xbf16>
    %c2_145 = arith.constant 2 : index
    %c0_146 = arith.constant 0 : index
    %c0_147 = arith.constant 0 : index
    %142 = vector.load %arg12[%c2_145, %c0_146, %c0_147] : memref<3x256x256xbf16, #tpu.memory_space<vmem>>, vector<1x256x256xbf16>
    %143 = vector.shape_cast %142 : vector<1x256x256xbf16> to vector<256x256xbf16>
    %cst_148 = arith.constant dense<0.000000e+00> : vector<8x256xf32>
    %144 = tpu.matmul %141, %143, %cst_148 {dimension_numbers = #tpu.dot_dimension_numbers<[1], [0], [0], [1], [0, 0, 1, 1], [], []>} : vector<8x256xbf16>, vector<256x256xbf16>, vector<8x256xf32> -> vector<8x256xf32>
    %145 = arith.addf %140, %144 : vector<8x256xf32>
    %c0_149 = arith.constant 0 : index
    %c0_150 = arith.constant 0 : index
    %146 = vector.load %arg13[%c0_149, %c0_150] : memref<1x256xf32, #tpu.memory_space<vmem>>, vector<1x256xf32>
    %147 = vector.broadcast %146 : vector<1x256xf32> to vector<8x256xf32>
    %148 = arith.addf %145, %147 : vector<8x256xf32>
    %149 = arith.addf %148, %129 : vector<8x256xf32>
    %cst_151 = arith.constant 0.000000e+00 : f32
    %150 = vector.broadcast %cst_151 : f32 to vector<8x256xf32>
    %151 = arith.maximumf %149, %150 : vector<8x256xf32>
    %152 = arith.truncf %151 : vector<8x256xf32> to vector<8x256xbf16>
    %c1_152 = arith.constant 1 : index
    %c0_153 = arith.constant 0 : index
    %153 = vector.load %arg31[%c1_152, %c0_153] : memref<10x256xbf16, #tpu.memory_space<vmem>>, vector<8x256xbf16>
    tpu.vector_store %arg31[%c1_152, %c0_153], %152 {strides = array<i32>} : memref<10x256xbf16, #tpu.memory_space<vmem>>, vector<8x256xbf16>,
    %c0_154 = arith.constant 0 : index
    %c0_155 = arith.constant 0 : index
    %154 = vector.load %arg31[%c0_154, %c0_155] : memref<10x256xbf16, #tpu.memory_space<vmem>>, vector<7x256xbf16>
    %c0_156 = arith.constant 0 : index
    %c0_157 = arith.constant 0 : index
    %c0_158 = arith.constant 0 : index
    %155 = vector.load %arg14[%c0_156, %c0_157, %c0_158] : memref<3x256x256xbf16, #tpu.memory_space<vmem>>, vector<1x256x256xbf16>
    %156 = vector.shape_cast %155 : vector<1x256x256xbf16> to vector<256x256xbf16>
    %cst_159 = arith.constant dense<0.000000e+00> : vector<7x256xf32>
    %157 = tpu.matmul %154, %156, %cst_159 {dimension_numbers = #tpu.dot_dimension_numbers<[1], [0], [0], [1], [0, 0, 1, 1], [], []>} : vector<7x256xbf16>, vector<256x256xbf16>, vector<7x256xf32> -> vector<7x256xf32>
    %c1_160 = arith.constant 1 : index
    %c0_161 = arith.constant 0 : index
    %158 = vector.load %arg31[%c1_160, %c0_161] : memref<10x256xbf16, #tpu.memory_space<vmem>>, vector<7x256xbf16>
    %c1_162 = arith.constant 1 : index
    %c0_163 = arith.constant 0 : index
    %c0_164 = arith.constant 0 : index
    %159 = vector.load %arg14[%c1_162, %c0_163, %c0_164] : memref<3x256x256xbf16, #tpu.memory_space<vmem>>, vector<1x256x256xbf16>
    %160 = vector.shape_cast %159 : vector<1x256x256xbf16> to vector<256x256xbf16>
    %cst_165 = arith.constant dense<0.000000e+00> : vector<7x256xf32>
    %161 = tpu.matmul %158, %160, %cst_165 {dimension_numbers = #tpu.dot_dimension_numbers<[1], [0], [0], [1], [0, 0, 1, 1], [], []>} : vector<7x256xbf16>, vector<256x256xbf16>, vector<7x256xf32> -> vector<7x256xf32>
    %162 = arith.addf %157, %161 : vector<7x256xf32>
    %c2_166 = arith.constant 2 : index
    %c0_167 = arith.constant 0 : index
    %163 = vector.load %arg31[%c2_166, %c0_167] : memref<10x256xbf16, #tpu.memory_space<vmem>>, vector<7x256xbf16>
    %c2_168 = arith.constant 2 : index
    %c0_169 = arith.constant 0 : index
    %c0_170 = arith.constant 0 : index
    %164 = vector.load %arg14[%c2_168, %c0_169, %c0_170] : memref<3x256x256xbf16, #tpu.memory_space<vmem>>, vector<1x256x256xbf16>
    %165 = vector.shape_cast %164 : vector<1x256x256xbf16> to vector<256x256xbf16>
    %cst_171 = arith.constant dense<0.000000e+00> : vector<7x256xf32>
    %166 = tpu.matmul %163, %165, %cst_171 {dimension_numbers = #tpu.dot_dimension_numbers<[1], [0], [0], [1], [0, 0, 1, 1], [], []>} : vector<7x256xbf16>, vector<256x256xbf16>, vector<7x256xf32> -> vector<7x256xf32>
    %167 = arith.addf %162, %166 : vector<7x256xf32>
    %168 = tpu.iota {dimensions = array<i32: 0>} : vector<4x7xi32>
    %169 = tpu.iota {dimensions = array<i32: 1>} : vector<4x7xi32>
    %c2_i32_172 = arith.constant 2 : i32
    %170 = vector.broadcast %c2_i32_172 : i32 to vector<4x7xi32>
    %171 = arith.muli %170, %168 : vector<4x7xi32>
    %172 = arith.cmpi eq, %169, %171 : vector<4x7xi32>
    %173 = arith.extui %172 : vector<4x7xi1> to vector<4x7xi32>
    %174 = arith.sitofp %173 : vector<4x7xi32> to vector<4x7xf32>
    %cst_173 = arith.constant dense<0.000000e+00> : vector<4x256xf32>
    %175 = tpu.matmul %174, %167, %cst_173 {dimension_numbers = #tpu.dot_dimension_numbers<[1], [0], [0], [1], [0, 0, 1, 1], [], []>} : vector<4x7xf32>, vector<7x256xf32>, vector<4x256xf32> -> vector<4x256xf32>
    %c0_174 = arith.constant 0 : index
    %c0_175 = arith.constant 0 : index
    %176 = vector.load %arg15[%c0_174, %c0_175] : memref<1x256xf32, #tpu.memory_space<vmem>>, vector<1x256xf32>
    %177 = vector.broadcast %176 : vector<1x256xf32> to vector<4x256xf32>
    %178 = arith.addf %175, %177 : vector<4x256xf32>
    %cst_176 = arith.constant 0.000000e+00 : f32
    %179 = vector.broadcast %cst_176 : f32 to vector<4x256xf32>
    %180 = arith.maximumf %178, %179 : vector<4x256xf32>
    %c0_177 = arith.constant 0 : index
    %c0_178 = arith.constant 0 : index
    %181 = vector.load %arg31[%c0_177, %c0_178] : memref<10x256xbf16, #tpu.memory_space<vmem>>, vector<7x256xbf16>
    %c0_179 = arith.constant 0 : index
    %c0_180 = arith.constant 0 : index
    %c0_181 = arith.constant 0 : index
    %182 = vector.load %arg16[%c0_179, %c0_180, %c0_181] : memref<3x256x256xbf16, #tpu.memory_space<vmem>>, vector<1x256x256xbf16>
    %183 = vector.shape_cast %182 : vector<1x256x256xbf16> to vector<256x256xbf16>
    %cst_182 = arith.constant dense<0.000000e+00> : vector<7x256xf32>
    %184 = tpu.matmul %181, %183, %cst_182 {dimension_numbers = #tpu.dot_dimension_numbers<[1], [0], [0], [1], [0, 0, 1, 1], [], []>} : vector<7x256xbf16>, vector<256x256xbf16>, vector<7x256xf32> -> vector<7x256xf32>
    %c1_183 = arith.constant 1 : index
    %c0_184 = arith.constant 0 : index
    %185 = vector.load %arg31[%c1_183, %c0_184] : memref<10x256xbf16, #tpu.memory_space<vmem>>, vector<7x256xbf16>
    %c1_185 = arith.constant 1 : index
    %c0_186 = arith.constant 0 : index
    %c0_187 = arith.constant 0 : index
    %186 = vector.load %arg16[%c1_185, %c0_186, %c0_187] : memref<3x256x256xbf16, #tpu.memory_space<vmem>>, vector<1x256x256xbf16>
    %187 = vector.shape_cast %186 : vector<1x256x256xbf16> to vector<256x256xbf16>
    %cst_188 = arith.constant dense<0.000000e+00> : vector<7x256xf32>
    %188 = tpu.matmul %185, %187, %cst_188 {dimension_numbers = #tpu.dot_dimension_numbers<[1], [0], [0], [1], [0, 0, 1, 1], [], []>} : vector<7x256xbf16>, vector<256x256xbf16>, vector<7x256xf32> -> vector<7x256xf32>
    %189 = arith.addf %184, %188 : vector<7x256xf32>
    %c2_189 = arith.constant 2 : index
    %c0_190 = arith.constant 0 : index
    %190 = vector.load %arg31[%c2_189, %c0_190] : memref<10x256xbf16, #tpu.memory_space<vmem>>, vector<7x256xbf16>
    %c2_191 = arith.constant 2 : index
    %c0_192 = arith.constant 0 : index
    %c0_193 = arith.constant 0 : index
    %191 = vector.load %arg16[%c2_191, %c0_192, %c0_193] : memref<3x256x256xbf16, #tpu.memory_space<vmem>>, vector<1x256x256xbf16>
    %192 = vector.shape_cast %191 : vector<1x256x256xbf16> to vector<256x256xbf16>
    %cst_194 = arith.constant dense<0.000000e+00> : vector<7x256xf32>
    %193 = tpu.matmul %190, %192, %cst_194 {dimension_numbers = #tpu.dot_dimension_numbers<[1], [0], [0], [1], [0, 0, 1, 1], [], []>} : vector<7x256xbf16>, vector<256x256xbf16>, vector<7x256xf32> -> vector<7x256xf32>
    %194 = arith.addf %189, %193 : vector<7x256xf32>
    %195 = tpu.iota {dimensions = array<i32: 0>} : vector<4x7xi32>
    %196 = tpu.iota {dimensions = array<i32: 1>} : vector<4x7xi32>
    %c2_i32_195 = arith.constant 2 : i32
    %197 = vector.broadcast %c2_i32_195 : i32 to vector<4x7xi32>
    %198 = arith.muli %197, %195 : vector<4x7xi32>
    %199 = arith.cmpi eq, %196, %198 : vector<4x7xi32>
    %200 = arith.extui %199 : vector<4x7xi1> to vector<4x7xi32>
    %201 = arith.sitofp %200 : vector<4x7xi32> to vector<4x7xf32>
    %cst_196 = arith.constant dense<0.000000e+00> : vector<4x256xf32>
    %202 = tpu.matmul %201, %194, %cst_196 {dimension_numbers = #tpu.dot_dimension_numbers<[1], [0], [0], [1], [0, 0, 1, 1], [], []>} : vector<4x7xf32>, vector<7x256xf32>, vector<4x256xf32> -> vector<4x256xf32>
    %c0_197 = arith.constant 0 : index
    %c0_198 = arith.constant 0 : index
    %203 = vector.load %arg17[%c0_197, %c0_198] : memref<1x256xf32, #tpu.memory_space<vmem>>, vector<1x256xf32>
    %204 = vector.broadcast %203 : vector<1x256xf32> to vector<4x256xf32>
    %205 = arith.addf %202, %204 : vector<4x256xf32>
    %206 = arith.truncf %180 : vector<4x256xf32> to vector<4x256xbf16>
    %c1_199 = arith.constant 1 : index
    %c0_200 = arith.constant 0 : index
    %207 = vector.load %arg32[%c1_199, %c0_200] : memref<6x256xbf16, #tpu.memory_space<vmem>>, vector<4x256xbf16>
    tpu.vector_store %arg32[%c1_199, %c0_200], %206 {strides = array<i32>} : memref<6x256xbf16, #tpu.memory_space<vmem>>, vector<4x256xbf16>,
    %c0_201 = arith.constant 0 : index
    %c0_202 = arith.constant 0 : index
    %208 = vector.load %arg32[%c0_201, %c0_202] : memref<6x256xbf16, #tpu.memory_space<vmem>>, vector<4x256xbf16>
    %c0_203 = arith.constant 0 : index
    %c0_204 = arith.constant 0 : index
    %c0_205 = arith.constant 0 : index
    %209 = vector.load %arg18[%c0_203, %c0_204, %c0_205] : memref<3x256x256xbf16, #tpu.memory_space<vmem>>, vector<1x256x256xbf16>
    %210 = vector.shape_cast %209 : vector<1x256x256xbf16> to vector<256x256xbf16>
    %cst_206 = arith.constant dense<0.000000e+00> : vector<4x256xf32>
    %211 = tpu.matmul %208, %210, %cst_206 {dimension_numbers = #tpu.dot_dimension_numbers<[1], [0], [0], [1], [0, 0, 1, 1], [], []>} : vector<4x256xbf16>, vector<256x256xbf16>, vector<4x256xf32> -> vector<4x256xf32>
    %c1_207 = arith.constant 1 : index
    %c0_208 = arith.constant 0 : index
    %212 = vector.load %arg32[%c1_207, %c0_208] : memref<6x256xbf16, #tpu.memory_space<vmem>>, vector<4x256xbf16>
    %c1_209 = arith.constant 1 : index
    %c0_210 = arith.constant 0 : index
    %c0_211 = arith.constant 0 : index
    %213 = vector.load %arg18[%c1_209, %c0_210, %c0_211] : memref<3x256x256xbf16, #tpu.memory_space<vmem>>, vector<1x256x256xbf16>
    %214 = vector.shape_cast %213 : vector<1x256x256xbf16> to vector<256x256xbf16>
    %cst_212 = arith.constant dense<0.000000e+00> : vector<4x256xf32>
    %215 = tpu.matmul %212, %214, %cst_212 {dimension_numbers = #tpu.dot_dimension_numbers<[1], [0], [0], [1], [0, 0, 1, 1], [], []>} : vector<4x256xbf16>, vector<256x256xbf16>, vector<4x256xf32> -> vector<4x256xf32>
    %216 = arith.addf %211, %215 : vector<4x256xf32>
    %c2_213 = arith.constant 2 : index
    %c0_214 = arith.constant 0 : index
    %217 = vector.load %arg32[%c2_213, %c0_214] : memref<6x256xbf16, #tpu.memory_space<vmem>>, vector<4x256xbf16>
    %c2_215 = arith.constant 2 : index
    %c0_216 = arith.constant 0 : index
    %c0_217 = arith.constant 0 : index
    %218 = vector.load %arg18[%c2_215, %c0_216, %c0_217] : memref<3x256x256xbf16, #tpu.memory_space<vmem>>, vector<1x256x256xbf16>
    %219 = vector.shape_cast %218 : vector<1x256x256xbf16> to vector<256x256xbf16>
    %cst_218 = arith.constant dense<0.000000e+00> : vector<4x256xf32>
    %220 = tpu.matmul %217, %219, %cst_218 {dimension_numbers = #tpu.dot_dimension_numbers<[1], [0], [0], [1], [0, 0, 1, 1], [], []>} : vector<4x256xbf16>, vector<256x256xbf16>, vector<4x256xf32> -> vector<4x256xf32>
    %221 = arith.addf %216, %220 : vector<4x256xf32>
    %c0_219 = arith.constant 0 : index
    %c0_220 = arith.constant 0 : index
    %222 = vector.load %arg19[%c0_219, %c0_220] : memref<1x256xf32, #tpu.memory_space<vmem>>, vector<1x256xf32>
    %223 = vector.broadcast %222 : vector<1x256xf32> to vector<4x256xf32>
    %224 = arith.addf %221, %223 : vector<4x256xf32>
    %225 = arith.addf %224, %205 : vector<4x256xf32>
    %cst_221 = arith.constant 0.000000e+00 : f32
    %226 = vector.broadcast %cst_221 : f32 to vector<4x256xf32>
    %227 = arith.maximumf %225, %226 : vector<4x256xf32>
    %228 = arith.truncf %227 : vector<4x256xf32> to vector<4x256xbf16>
    %c1_222 = arith.constant 1 : index
    %c0_223 = arith.constant 0 : index
    %229 = vector.load %arg32[%c1_222, %c0_223] : memref<6x256xbf16, #tpu.memory_space<vmem>>, vector<4x256xbf16>
    tpu.vector_store %arg32[%c1_222, %c0_223], %228 {strides = array<i32>} : memref<6x256xbf16, #tpu.memory_space<vmem>>, vector<4x256xbf16>,
    %c0_224 = arith.constant 0 : index
    %c0_225 = arith.constant 0 : index
    %230 = vector.load %arg32[%c0_224, %c0_225] : memref<6x256xbf16, #tpu.memory_space<vmem>>, vector<3x256xbf16>
    %c0_226 = arith.constant 0 : index
    %c0_227 = arith.constant 0 : index
    %c0_228 = arith.constant 0 : index
    %231 = vector.load %arg20[%c0_226, %c0_227, %c0_228] : memref<3x256x256xbf16, #tpu.memory_space<vmem>>, vector<1x256x256xbf16>
    %232 = vector.shape_cast %231 : vector<1x256x256xbf16> to vector<256x256xbf16>
    %cst_229 = arith.constant dense<0.000000e+00> : vector<3x256xf32>
    %233 = tpu.matmul %230, %232, %cst_229 {dimension_numbers = #tpu.dot_dimension_numbers<[1], [0], [0], [1], [0, 0, 1, 1], [], []>} : vector<3x256xbf16>, vector<256x256xbf16>, vector<3x256xf32> -> vector<3x256xf32>
    %c1_230 = arith.constant 1 : index
    %c0_231 = arith.constant 0 : index
    %234 = vector.load %arg32[%c1_230, %c0_231] : memref<6x256xbf16, #tpu.memory_space<vmem>>, vector<3x256xbf16>
    %c1_232 = arith.constant 1 : index
    %c0_233 = arith.constant 0 : index
    %c0_234 = arith.constant 0 : index
    %235 = vector.load %arg20[%c1_232, %c0_233, %c0_234] : memref<3x256x256xbf16, #tpu.memory_space<vmem>>, vector<1x256x256xbf16>
    %236 = vector.shape_cast %235 : vector<1x256x256xbf16> to vector<256x256xbf16>
    %cst_235 = arith.constant dense<0.000000e+00> : vector<3x256xf32>
    %237 = tpu.matmul %234, %236, %cst_235 {dimension_numbers = #tpu.dot_dimension_numbers<[1], [0], [0], [1], [0, 0, 1, 1], [], []>} : vector<3x256xbf16>, vector<256x256xbf16>, vector<3x256xf32> -> vector<3x256xf32>
    %238 = arith.addf %233, %237 : vector<3x256xf32>
    %c2_236 = arith.constant 2 : index
    %c0_237 = arith.constant 0 : index
    %239 = vector.load %arg32[%c2_236, %c0_237] : memref<6x256xbf16, #tpu.memory_space<vmem>>, vector<3x256xbf16>
    %c2_238 = arith.constant 2 : index
    %c0_239 = arith.constant 0 : index
    %c0_240 = arith.constant 0 : index
    %240 = vector.load %arg20[%c2_238, %c0_239, %c0_240] : memref<3x256x256xbf16, #tpu.memory_space<vmem>>, vector<1x256x256xbf16>
    %241 = vector.shape_cast %240 : vector<1x256x256xbf16> to vector<256x256xbf16>
    %cst_241 = arith.constant dense<0.000000e+00> : vector<3x256xf32>
    %242 = tpu.matmul %239, %241, %cst_241 {dimension_numbers = #tpu.dot_dimension_numbers<[1], [0], [0], [1], [0, 0, 1, 1], [], []>} : vector<3x256xbf16>, vector<256x256xbf16>, vector<3x256xf32> -> vector<3x256xf32>
    %243 = arith.addf %238, %242 : vector<3x256xf32>
    %244 = tpu.iota {dimensions = array<i32: 0>} : vector<2x3xi32>
    %245 = tpu.iota {dimensions = array<i32: 1>} : vector<2x3xi32>
    %c2_i32_242 = arith.constant 2 : i32
    %246 = vector.broadcast %c2_i32_242 : i32 to vector<2x3xi32>
    %247 = arith.muli %246, %244 : vector<2x3xi32>
    %248 = arith.cmpi eq, %245, %247 : vector<2x3xi32>
    %249 = arith.extui %248 : vector<2x3xi1> to vector<2x3xi32>
    %250 = arith.sitofp %249 : vector<2x3xi32> to vector<2x3xf32>
    %cst_243 = arith.constant dense<0.000000e+00> : vector<2x256xf32>
    %251 = tpu.matmul %250, %243, %cst_243 {dimension_numbers = #tpu.dot_dimension_numbers<[1], [0], [0], [1], [0, 0, 1, 1], [], []>} : vector<2x3xf32>, vector<3x256xf32>, vector<2x256xf32> -> vector<2x256xf32>
    %c0_244 = arith.constant 0 : index
    %c0_245 = arith.constant 0 : index
    %252 = vector.load %arg21[%c0_244, %c0_245] : memref<1x256xf32, #tpu.memory_space<vmem>>, vector<1x256xf32>
    %253 = vector.broadcast %252 : vector<1x256xf32> to vector<2x256xf32>
    %254 = arith.addf %251, %253 : vector<2x256xf32>
    %cst_246 = arith.constant 0.000000e+00 : f32
    %255 = vector.broadcast %cst_246 : f32 to vector<2x256xf32>
    %256 = arith.maximumf %254, %255 : vector<2x256xf32>
    %c0_247 = arith.constant 0 : index
    %c0_248 = arith.constant 0 : index
    %257 = vector.load %arg32[%c0_247, %c0_248] : memref<6x256xbf16, #tpu.memory_space<vmem>>, vector<3x256xbf16>
    %c0_249 = arith.constant 0 : index
    %c0_250 = arith.constant 0 : index
    %c0_251 = arith.constant 0 : index
    %258 = vector.load %arg22[%c0_249, %c0_250, %c0_251] : memref<3x256x256xbf16, #tpu.memory_space<vmem>>, vector<1x256x256xbf16>
    %259 = vector.shape_cast %258 : vector<1x256x256xbf16> to vector<256x256xbf16>
    %cst_252 = arith.constant dense<0.000000e+00> : vector<3x256xf32>
    %260 = tpu.matmul %257, %259, %cst_252 {dimension_numbers = #tpu.dot_dimension_numbers<[1], [0], [0], [1], [0, 0, 1, 1], [], []>} : vector<3x256xbf16>, vector<256x256xbf16>, vector<3x256xf32> -> vector<3x256xf32>
    %c1_253 = arith.constant 1 : index
    %c0_254 = arith.constant 0 : index
    %261 = vector.load %arg32[%c1_253, %c0_254] : memref<6x256xbf16, #tpu.memory_space<vmem>>, vector<3x256xbf16>
    %c1_255 = arith.constant 1 : index
    %c0_256 = arith.constant 0 : index
    %c0_257 = arith.constant 0 : index
    %262 = vector.load %arg22[%c1_255, %c0_256, %c0_257] : memref<3x256x256xbf16, #tpu.memory_space<vmem>>, vector<1x256x256xbf16>
    %263 = vector.shape_cast %262 : vector<1x256x256xbf16> to vector<256x256xbf16>
    %cst_258 = arith.constant dense<0.000000e+00> : vector<3x256xf32>
    %264 = tpu.matmul %261, %263, %cst_258 {dimension_numbers = #tpu.dot_dimension_numbers<[1], [0], [0], [1], [0, 0, 1, 1], [], []>} : vector<3x256xbf16>, vector<256x256xbf16>, vector<3x256xf32> -> vector<3x256xf32>
    %265 = arith.addf %260, %264 : vector<3x256xf32>
    %c2_259 = arith.constant 2 : index
    %c0_260 = arith.constant 0 : index
    %266 = vector.load %arg32[%c2_259, %c0_260] : memref<6x256xbf16, #tpu.memory_space<vmem>>, vector<3x256xbf16>
    %c2_261 = arith.constant 2 : index
    %c0_262 = arith.constant 0 : index
    %c0_263 = arith.constant 0 : index
    %267 = vector.load %arg22[%c2_261, %c0_262, %c0_263] : memref<3x256x256xbf16, #tpu.memory_space<vmem>>, vector<1x256x256xbf16>
    %268 = vector.shape_cast %267 : vector<1x256x256xbf16> to vector<256x256xbf16>
    %cst_264 = arith.constant dense<0.000000e+00> : vector<3x256xf32>
    %269 = tpu.matmul %266, %268, %cst_264 {dimension_numbers = #tpu.dot_dimension_numbers<[1], [0], [0], [1], [0, 0, 1, 1], [], []>} : vector<3x256xbf16>, vector<256x256xbf16>, vector<3x256xf32> -> vector<3x256xf32>
    %270 = arith.addf %265, %269 : vector<3x256xf32>
    %271 = tpu.iota {dimensions = array<i32: 0>} : vector<2x3xi32>
    %272 = tpu.iota {dimensions = array<i32: 1>} : vector<2x3xi32>
    %c2_i32_265 = arith.constant 2 : i32
    %273 = vector.broadcast %c2_i32_265 : i32 to vector<2x3xi32>
    %274 = arith.muli %273, %271 : vector<2x3xi32>
    %275 = arith.cmpi eq, %272, %274 : vector<2x3xi32>
    %276 = arith.extui %275 : vector<2x3xi1> to vector<2x3xi32>
    %277 = arith.sitofp %276 : vector<2x3xi32> to vector<2x3xf32>
    %cst_266 = arith.constant dense<0.000000e+00> : vector<2x256xf32>
    %278 = tpu.matmul %277, %270, %cst_266 {dimension_numbers = #tpu.dot_dimension_numbers<[1], [0], [0], [1], [0, 0, 1, 1], [], []>} : vector<2x3xf32>, vector<3x256xf32>, vector<2x256xf32> -> vector<2x256xf32>
    %c0_267 = arith.constant 0 : index
    %c0_268 = arith.constant 0 : index
    %279 = vector.load %arg23[%c0_267, %c0_268] : memref<1x256xf32, #tpu.memory_space<vmem>>, vector<1x256xf32>
    %280 = vector.broadcast %279 : vector<1x256xf32> to vector<2x256xf32>
    %281 = arith.addf %278, %280 : vector<2x256xf32>
    %282 = arith.truncf %256 : vector<2x256xf32> to vector<2x256xbf16>
    %c1_269 = arith.constant 1 : index
    %c0_270 = arith.constant 0 : index
    %283 = vector.load %arg33[%c1_269, %c0_270] : memref<4x256xbf16, #tpu.memory_space<vmem>>, vector<2x256xbf16>
    tpu.vector_store %arg33[%c1_269, %c0_270], %282 {strides = array<i32>} : memref<4x256xbf16, #tpu.memory_space<vmem>>, vector<2x256xbf16>,
    %c0_271 = arith.constant 0 : index
    %c0_272 = arith.constant 0 : index
    %284 = vector.load %arg33[%c0_271, %c0_272] : memref<4x256xbf16, #tpu.memory_space<vmem>>, vector<2x256xbf16>
    %c0_273 = arith.constant 0 : index
    %c0_274 = arith.constant 0 : index
    %c0_275 = arith.constant 0 : index
    %285 = vector.load %arg24[%c0_273, %c0_274, %c0_275] : memref<3x256x256xbf16, #tpu.memory_space<vmem>>, vector<1x256x256xbf16>
    %286 = vector.shape_cast %285 : vector<1x256x256xbf16> to vector<256x256xbf16>
    %cst_276 = arith.constant dense<0.000000e+00> : vector<2x256xf32>
    %287 = tpu.matmul %284, %286, %cst_276 {dimension_numbers = #tpu.dot_dimension_numbers<[1], [0], [0], [1], [0, 0, 1, 1], [], []>} : vector<2x256xbf16>, vector<256x256xbf16>, vector<2x256xf32> -> vector<2x256xf32>
    %c1_277 = arith.constant 1 : index
    %c0_278 = arith.constant 0 : index
    %288 = vector.load %arg33[%c1_277, %c0_278] : memref<4x256xbf16, #tpu.memory_space<vmem>>, vector<2x256xbf16>
    %c1_279 = arith.constant 1 : index
    %c0_280 = arith.constant 0 : index
    %c0_281 = arith.constant 0 : index
    %289 = vector.load %arg24[%c1_279, %c0_280, %c0_281] : memref<3x256x256xbf16, #tpu.memory_space<vmem>>, vector<1x256x256xbf16>
    %290 = vector.shape_cast %289 : vector<1x256x256xbf16> to vector<256x256xbf16>
    %cst_282 = arith.constant dense<0.000000e+00> : vector<2x256xf32>
    %291 = tpu.matmul %288, %290, %cst_282 {dimension_numbers = #tpu.dot_dimension_numbers<[1], [0], [0], [1], [0, 0, 1, 1], [], []>} : vector<2x256xbf16>, vector<256x256xbf16>, vector<2x256xf32> -> vector<2x256xf32>
    %292 = arith.addf %287, %291 : vector<2x256xf32>
    %c2_283 = arith.constant 2 : index
    %c0_284 = arith.constant 0 : index
    %293 = vector.load %arg33[%c2_283, %c0_284] : memref<4x256xbf16, #tpu.memory_space<vmem>>, vector<2x256xbf16>
    %c2_285 = arith.constant 2 : index
    %c0_286 = arith.constant 0 : index
    %c0_287 = arith.constant 0 : index
    %294 = vector.load %arg24[%c2_285, %c0_286, %c0_287] : memref<3x256x256xbf16, #tpu.memory_space<vmem>>, vector<1x256x256xbf16>
    %295 = vector.shape_cast %294 : vector<1x256x256xbf16> to vector<256x256xbf16>
    %cst_288 = arith.constant dense<0.000000e+00> : vector<2x256xf32>
    %296 = tpu.matmul %293, %295, %cst_288 {dimension_numbers = #tpu.dot_dimension_numbers<[1], [0], [0], [1], [0, 0, 1, 1], [], []>} : vector<2x256xbf16>, vector<256x256xbf16>, vector<2x256xf32> -> vector<2x256xf32>
    %297 = arith.addf %292, %296 : vector<2x256xf32>
    %c0_289 = arith.constant 0 : index
    %c0_290 = arith.constant 0 : index
    %298 = vector.load %arg25[%c0_289, %c0_290] : memref<1x256xf32, #tpu.memory_space<vmem>>, vector<1x256xf32>
    %299 = vector.broadcast %298 : vector<1x256xf32> to vector<2x256xf32>
    %300 = arith.addf %297, %299 : vector<2x256xf32>
    %301 = arith.addf %300, %281 : vector<2x256xf32>
    %cst_291 = arith.constant 0.000000e+00 : f32
    %302 = vector.broadcast %cst_291 : f32 to vector<2x256xf32>
    %303 = arith.maximumf %301, %302 : vector<2x256xf32>
    %304 = vector.extract_strided_slice %303 {offsets = [0, 0], sizes = [2, 128], strides = [1, 1]} : vector<2x256xf32> to vector<2x128xf32>
    %305 = vector.extract_strided_slice %303 {offsets = [0, 128], sizes = [2, 128], strides = [1, 1]} : vector<2x256xf32> to vector<2x128xf32>
    %306 = arith.addf %304, %305 : vector<2x128xf32>
    %cst_292 = arith.constant dense<0.000000e+00> : vector<128xf32>
    %307 = vector.multi_reduction <add>, %306, %cst_292 [0] : vector<2x128xf32> to vector<128xf32>
    %308 = vector.shape_cast %307 : vector<128xf32> to vector<1x128xf32>
    %cst_293 = arith.constant 2.500000e-01 : f32
    %309 = vector.broadcast %cst_293 : f32 to vector<1x128xf32>
    %310 = arith.mulf %308, %309 : vector<1x128xf32>
    %c0_294 = arith.constant 0 : index
    %c0_295 = arith.constant 0 : index
    %311 = vector.load %arg26[%c0_294, %c0_295] : memref<128x10xf32, #tpu.memory_space<vmem>>, vector<128x10xf32>
    %cst_296 = arith.constant dense<0.000000e+00> : vector<1x10xf32>
    %312 = tpu.matmul %310, %311, %cst_296 {dimension_numbers = #tpu.dot_dimension_numbers<[1], [0], [0], [1], [0, 0, 1, 1], [], []>} : vector<1x128xf32>, vector<128x10xf32>, vector<1x10xf32> -> vector<1x10xf32>
    %c0_297 = arith.constant 0 : index
    %c0_298 = arith.constant 0 : index
    %313 = vector.load %arg27[%c0_297, %c0_298] : memref<1x10xf32, #tpu.memory_space<vmem>>, vector<1x10xf32>
    %314 = arith.addf %312, %313 : vector<1x10xf32>
    %c0_299 = arith.constant 0 : index
    %c0_300 = arith.constant 0 : index
    %c0_301 = arith.constant 0 : index
    %315 = vector.load %arg28[%c0_299, %c0_300, %c0_301] : memref<1x1x10xf32, #tpu.memory_space<vmem>>, vector<1x1x10xf32>
    %316 = vector.shape_cast %315 : vector<1x1x10xf32> to vector<1x10xf32>
    %317 = vector.shape_cast %314 : vector<1x10xf32> to vector<1x1x10xf32>
    tpu.vector_store %arg28[%c0_299, %c0_300, %c0_301], %317 {strides = array<i32>} : memref<1x1x10xf32, #tpu.memory_space<vmem>>, vector<1x1x10xf32>,
    return
  }
  func.func @transform_0(%arg0: i32) -> (i32, i32, i32) {
    %c0_i32 = arith.constant 0 : i32
    %c0_i32_0 = arith.constant 0 : i32
    %c0_i32_1 = arith.constant 0 : i32
    return %arg0, %c0_i32, %c0_i32_0 : i32, i32, i32
  }
  func.func @transform_1(%arg0: i32) -> (i32, i32, i32) {
    %c0_i32 = arith.constant 0 : i32
    %c0_i32_0 = arith.constant 0 : i32
    %c0_i32_1 = arith.constant 0 : i32
    %c0_i32_2 = arith.constant 0 : i32
    return %c0_i32, %c0_i32_0, %c0_i32_1 : i32, i32, i32
  }
  func.func @transform_2(%arg0: i32) -> (i32, i32) {
    %c0_i32 = arith.constant 0 : i32
    %c0_i32_0 = arith.constant 0 : i32
    %c0_i32_1 = arith.constant 0 : i32
    return %c0_i32, %c0_i32_0 : i32, i32
  }
  func.func @transform_3(%arg0: i32) -> (i32, i32, i32) {
    %c0_i32 = arith.constant 0 : i32
    %c0_i32_0 = arith.constant 0 : i32
    %c0_i32_1 = arith.constant 0 : i32
    %c0_i32_2 = arith.constant 0 : i32
    return %c0_i32, %c0_i32_0, %c0_i32_1 : i32, i32, i32
  }
  func.func @transform_4(%arg0: i32) -> (i32, i32) {
    %c0_i32 = arith.constant 0 : i32
    %c0_i32_0 = arith.constant 0 : i32
    %c0_i32_1 = arith.constant 0 : i32
    return %c0_i32, %c0_i32_0 : i32, i32
  }
  func.func @transform_5(%arg0: i32) -> (i32, i32, i32) {
    %c0_i32 = arith.constant 0 : i32
    %c0_i32_0 = arith.constant 0 : i32
    %c0_i32_1 = arith.constant 0 : i32
    %c0_i32_2 = arith.constant 0 : i32
    return %c0_i32, %c0_i32_0, %c0_i32_1 : i32, i32, i32
  }
  func.func @transform_6(%arg0: i32) -> (i32, i32) {
    %c0_i32 = arith.constant 0 : i32
    %c0_i32_0 = arith.constant 0 : i32
    %c0_i32_1 = arith.constant 0 : i32
    return %c0_i32, %c0_i32_0 : i32, i32
  }
  func.func @transform_7(%arg0: i32) -> (i32, i32, i32) {
    %c0_i32 = arith.constant 0 : i32
    %c0_i32_0 = arith.constant 0 : i32
    %c0_i32_1 = arith.constant 0 : i32
    %c0_i32_2 = arith.constant 0 : i32
    return %c0_i32, %c0_i32_0, %c0_i32_1 : i32, i32, i32
  }
  func.func @transform_8(%arg0: i32) -> (i32, i32) {
    %c0_i32 = arith.constant 0 : i32
    %c0_i32_0 = arith.constant 0 : i32
    %c0_i32_1 = arith.constant 0 : i32
    return %c0_i32, %c0_i32_0 : i32, i32
  }
  func.func @transform_9(%arg0: i32) -> (i32, i32, i32) {
    %c0_i32 = arith.constant 0 : i32
    %c0_i32_0 = arith.constant 0 : i32
    %c0_i32_1 = arith.constant 0 : i32
    %c0_i32_2 = arith.constant 0 : i32
    return %c0_i32, %c0_i32_0, %c0_i32_1 : i32, i32, i32
  }
  func.func @transform_10(%arg0: i32) -> (i32, i32) {
    %c0_i32 = arith.constant 0 : i32
    %c0_i32_0 = arith.constant 0 : i32
    %c0_i32_1 = arith.constant 0 : i32
    return %c0_i32, %c0_i32_0 : i32, i32
  }
  func.func @transform_11(%arg0: i32) -> (i32, i32, i32) {
    %c0_i32 = arith.constant 0 : i32
    %c0_i32_0 = arith.constant 0 : i32
    %c0_i32_1 = arith.constant 0 : i32
    %c0_i32_2 = arith.constant 0 : i32
    return %c0_i32, %c0_i32_0, %c0_i32_1 : i32, i32, i32
  }
  func.func @transform_12(%arg0: i32) -> (i32, i32) {
    %c0_i32 = arith.constant 0 : i32
    %c0_i32_0 = arith.constant 0 : i32
    %c0_i32_1 = arith.constant 0 : i32
    return %c0_i32, %c0_i32_0 : i32, i32
  }
  func.func @transform_13(%arg0: i32) -> (i32, i32, i32) {
    %c0_i32 = arith.constant 0 : i32
    %c0_i32_0 = arith.constant 0 : i32
    %c0_i32_1 = arith.constant 0 : i32
    %c0_i32_2 = arith.constant 0 : i32
    return %c0_i32, %c0_i32_0, %c0_i32_1 : i32, i32, i32
  }
  func.func @transform_14(%arg0: i32) -> (i32, i32) {
    %c0_i32 = arith.constant 0 : i32
    %c0_i32_0 = arith.constant 0 : i32
    %c0_i32_1 = arith.constant 0 : i32
    return %c0_i32, %c0_i32_0 : i32, i32
  }
  func.func @transform_15(%arg0: i32) -> (i32, i32, i32) {
    %c0_i32 = arith.constant 0 : i32
    %c0_i32_0 = arith.constant 0 : i32
    %c0_i32_1 = arith.constant 0 : i32
    %c0_i32_2 = arith.constant 0 : i32
    return %c0_i32, %c0_i32_0, %c0_i32_1 : i32, i32, i32
  }
  func.func @transform_16(%arg0: i32) -> (i32, i32) {
    %c0_i32 = arith.constant 0 : i32
    %c0_i32_0 = arith.constant 0 : i32
    %c0_i32_1 = arith.constant 0 : i32
    return %c0_i32, %c0_i32_0 : i32, i32
  }
  func.func @transform_17(%arg0: i32) -> (i32, i32, i32) {
    %c0_i32 = arith.constant 0 : i32
    %c0_i32_0 = arith.constant 0 : i32
    %c0_i32_1 = arith.constant 0 : i32
    %c0_i32_2 = arith.constant 0 : i32
    return %c0_i32, %c0_i32_0, %c0_i32_1 : i32, i32, i32
  }
  func.func @transform_18(%arg0: i32) -> (i32, i32) {
    %c0_i32 = arith.constant 0 : i32
    %c0_i32_0 = arith.constant 0 : i32
    %c0_i32_1 = arith.constant 0 : i32
    return %c0_i32, %c0_i32_0 : i32, i32
  }
  func.func @transform_19(%arg0: i32) -> (i32, i32, i32) {
    %c0_i32 = arith.constant 0 : i32
    %c0_i32_0 = arith.constant 0 : i32
    %c0_i32_1 = arith.constant 0 : i32
    %c0_i32_2 = arith.constant 0 : i32
    return %c0_i32, %c0_i32_0, %c0_i32_1 : i32, i32, i32
  }
  func.func @transform_20(%arg0: i32) -> (i32, i32) {
    %c0_i32 = arith.constant 0 : i32
    %c0_i32_0 = arith.constant 0 : i32
    %c0_i32_1 = arith.constant 0 : i32
    return %c0_i32, %c0_i32_0 : i32, i32
  }
  func.func @transform_21(%arg0: i32) -> (i32, i32, i32) {
    %c0_i32 = arith.constant 0 : i32
    %c0_i32_0 = arith.constant 0 : i32
    %c0_i32_1 = arith.constant 0 : i32
    %c0_i32_2 = arith.constant 0 : i32
    return %c0_i32, %c0_i32_0, %c0_i32_1 : i32, i32, i32
  }
  func.func @transform_22(%arg0: i32) -> (i32, i32) {
    %c0_i32 = arith.constant 0 : i32
    %c0_i32_0 = arith.constant 0 : i32
    %c0_i32_1 = arith.constant 0 : i32
    return %c0_i32, %c0_i32_0 : i32, i32
  }
  func.func @transform_23(%arg0: i32) -> (i32, i32, i32) {
    %c0_i32 = arith.constant 0 : i32
    %c0_i32_0 = arith.constant 0 : i32
    %c0_i32_1 = arith.constant 0 : i32
    %c0_i32_2 = arith.constant 0 : i32
    return %c0_i32, %c0_i32_0, %c0_i32_1 : i32, i32, i32
  }
  func.func @transform_24(%arg0: i32) -> (i32, i32) {
    %c0_i32 = arith.constant 0 : i32
    %c0_i32_0 = arith.constant 0 : i32
    %c0_i32_1 = arith.constant 0 : i32
    return %c0_i32, %c0_i32_0 : i32, i32
  }
  func.func @transform_25(%arg0: i32) -> (i32, i32) {
    %c0_i32 = arith.constant 0 : i32
    %c0_i32_0 = arith.constant 0 : i32
    %c0_i32_1 = arith.constant 0 : i32
    return %c0_i32, %c0_i32_0 : i32, i32
  }
  func.func @transform_26(%arg0: i32) -> (i32, i32) {
    %c0_i32 = arith.constant 0 : i32
    %c0_i32_0 = arith.constant 0 : i32
    %c0_i32_1 = arith.constant 0 : i32
    return %c0_i32, %c0_i32_0 : i32, i32
  }
  func.func @transform_27(%arg0: i32) -> (i32, i32, i32) {
    %c0_i32 = arith.constant 0 : i32
    %c0_i32_0 = arith.constant 0 : i32
    %c0_i32_1 = arith.constant 0 : i32
    return %arg0, %c0_i32, %c0_i32_0 : i32, i32, i32
  }
}

</mosaic_0001>

<bundles_post_ra>
// kernel: resnet_forward.1
= control target key start
LH: loop header
LB: loop body
LE: loop exit
PB: predicated region body
PF: predicated region fallthrough
CT: control target
= control target key end

     0   :  { %s17974_s0 = inlined_call_operand.vmem [shape: f32[2,16,48], index: 0, kind: input, shape index: {}]   ;;  %s17975_s1 = inlined_call_operand.vmem [shape: bf16[3,48,256], index: 1, kind: input, shape index: {}]   ;;  %s17976_s2 = inlined_call_operand.vmem [shape: f32[1,256], index: 2, kind: input, shape index: {}]   ;;  %s17977_s3 = inlined_call_operand.hbm [shape: bf16[3,256,256], index: 3, kind: input, shape index: {}]   ;;  %s17978_s4 = inlined_call_operand.vmem [shape: f32[1,256], index: 4, kind: input, shape index: {}]   ;;  %s17979_s5 = inlined_call_operand.hbm [shape: bf16[3,256,256], index: 5, kind: input, shape index: {}]   ;;  %s17980_s6 = inlined_call_operand.vmem [shape: f32[1,256], index: 6, kind: input, shape index: {}]   ;;  %s17981_s7 = inlined_call_operand.hbm [shape: bf16[3,256,256], index: 7, kind: input, shape index: {}]   ;;  %s17982_s8 = inlined_call_operand.vmem [shape: f32[1,256], index: 8, kind: input, shape index: {}]   ;;  %s17983_s9 = inlined_call_operand.hbm [shape: bf16[3,256,256], index: 9, kind: input, shape index: {}]   ;;  %s17984_s10 = inlined_call_operand.vmem [shape: f32[1,256], index: 10, kind: input, shape index: {}]   ;;  %s17985_s11 = inlined_call_operand.hbm [shape: bf16[3,256,256], index: 11, kind: input, shape index: {}]   ;;  %s17986_s12 = inlined_call_operand.vmem [shape: f32[1,256], index: 12, kind: input, shape index: {}]   ;;  %s17987_s13 = inlined_call_operand.hbm [shape: bf16[3,256,256], index: 13, kind: input, shape index: {}]   ;;  %s17988_s14 = inlined_call_operand.vmem [shape: f32[1,256], index: 14, kind: input, shape index: {}]   ;;  %s17989_s15 = inlined_call_operand.hbm [shape: bf16[3,256,256], index: 15, kind: input, shape index: {}]   ;;  %s17990_s16 = inlined_call_operand.vmem [shape: f32[1,256], index: 16, kind: input, shape index: {}]   ;;  %s17991_s17 = inlined_call_operand.hbm [shape: bf16[3,256,256], index: 17, kind: input, shape index: {}]   ;;  %s17992_s18 = inlined_call_operand.vmem [shape: f32[1,256], index: 18, kind: input, shape index: {}]   ;;  %s17993_s19 = inlined_call_operand.hbm [shape: bf16[3,256,256], index: 19, kind: input, shape index: {}]   ;;  %s17994_s20 = inlined_call_operand.vmem [shape: f32[1,256], index: 20, kind: input, shape index: {}]   ;;  %s17995_s21 = inlined_call_operand.hbm [shape: bf16[3,256,256], index: 21, kind: input, shape index: {}]   ;;  %s17996_s22 = inlined_call_operand.vmem [shape: f32[1,256], index: 22, kind: input, shape index: {}]   ;;  %s17997_s23 = inlined_call_operand.hbm [shape: bf16[3,256,256], index: 23, kind: input, shape index: {}]   ;;  %s17998_s24 = inlined_call_operand.vmem [shape: f32[1,256], index: 24, kind: input, shape index: {}]   ;;  %s17999_s25 = inlined_call_operand.vmem [shape: f32[128,10], index: 25, kind: input, shape index: {}]   ;;  %s18000_s26 = inlined_call_operand.vmem [shape: f32[1,10], index: 26, kind: input, shape index: {}]   ;;  %s18001_s27 = inlined_call_operand.hbm [shape: f32[2,1,10], index: 27, kind: output, shape index: {}]  }
   0x1   :  { %18013 = sst [smem:[#allocation41_spill]] %s17974_s0 }
   0x2   :  { %18014 = sst [smem:[#allocation42_spill]] %s17975_s1 }
   0x3   :  { %18015 = sst [smem:[#allocation43_spill]] %s17976_s2 }
   0x4   :  { %18016 = sst [smem:[#allocation44_spill]] %s17977_s3 }
   0x5   :  { %18017 = sst [smem:[#allocation45_spill]] %s17978_s4 }
   0x6   :  { %18018 = sst [smem:[#allocation46_spill]] %s17979_s5 }
   0x7   :  { %18019 = sst [smem:[#allocation47_spill]] %s17980_s6 }
   0x8   :  { %18020 = sst [smem:[#allocation48_spill]] %s17981_s7 }
   0x9   :  { %18021 = sst [smem:[#allocation49_spill]] %s17982_s8 }
   0xa   :  { %18022 = sst [smem:[#allocation50_spill]] %s17983_s9 }
   0xb   :  { %18023 = sst [smem:[#allocation51_spill]] %s17984_s10 }
   0xc   :  { %18024 = sst [smem:[#allocation52_spill]] %s17985_s11 }
   0xd   :  { %18025 = sst [smem:[#allocation53_spill]] %s17987_s13 }
   0xe   :  { %18026 = sst [smem:[#allocation54_spill]] %s17991_s17 }
   0xf   :  { %18027 = sst [smem:[#allocation55_spill]] %s18000_s26 }
  0x10   :  { %18028 = sst [smem:[#allocation56_spill]] %s18001_s27 }
  0x11   :  { %32 = vsyncpa [#allocation8], 0 }
  0x12   :  { %33 = vsyncpa [#allocation11], 0 }
  0x13   :  { %34 = vsyncpa [#allocation14], 0 }
  0x14   :  { %35 = vsyncpa [#allocation17], 0 }
  0x15   :  { %36 = vsyncpa [#allocation20], 0 }
  0x16   :  { %37 = vsyncpa [#allocation23], 0 }
  0x17   :  { %38 = vsyncpa [#allocation9], 0 }
  0x18   :  { %40 = vsyncpa [#allocation9 + $0x1], 0  ;;  %s16835_s7 = smov 0   ;;  %s16837_s4 = smov 0  }
  0x19   :  { %s16839_s8 = smov 0   ;;  %s16841_s30 = smov 0  }
  0x1a LB: > { %18029 = sst [smem:[#allocation33_spill]] %s16666_s7  ;;  %s16856_s9 = sadd.s32 4294967295, %s16678_s30   ;;  %s16678_s30 = sphi %s16841_s30, %s18083_s30   ;;  %s16674_s8 = sphi %s16839_s8, %s18086_s8   ;;  %s16670_s4 = sphi %s16837_s4, %s18085_s4   ;;  %s16666_s7 = sphi %s16835_s7, %s18084_s7  }
  0x1b   : > { %18030 = sst [smem:[#allocation34_spill]] %s16670_s4  ;;  %s10625_s5 = sadd.s32 4294967294, %s16678_s30  }
  0x1c   : > { %18031 = sst [smem:[#allocation35_spill]] %s16674_s8  ;;  %s16860_s28 = sadd.s32 1, %s16678_s30  }
  0x1d   : > { %18032 = sst [smem:[#allocation36_spill]] %s16678_s30  ;;  %s625_s0 = sadd.s32 1, %s16674_s8 }
  0x1e   : > { %18033 = sst [smem:[#allocation37_spill]] %s16860_s28  ;;  %s622_s10 = ssub.s32 %s16678_s30, %s16860_s28 }
  0x1f   : > { %p635_p0 = scmp.ne.s32.totalorder %s16674_s8, %s16670_s4  ;;  %p623_p1 = scmp.eq.s32.totalorder %s622_s10, 0 }
  0x20   : > { %p636_p2 = scmp.eq.s32.totalorder %s16856_s9, 1  ;;  %p641_p3 = scmp.ne.s32.totalorder %s16670_s4, %s16666_s7 }
  0x21   : > { %p642_p4 = scmp.eq.s32.totalorder %s10625_s5, 1  ;;  %p10626_p7 = scmp.ge.s32.totalorder %s16678_s30, 1 }
  0x22   : > { %s16871_s29 = scalar_select %p623_p1, %s16674_s8, %s625_s0  }
  0x23   : > { %p16873_p5 = por %p636_p2, %p635_p0  ;;  %p16877_p6 = por %p642_p4, %p641_p3 }
  0x24   : > { %18034 = sst [smem:[#allocation38_spill]] %s16871_s29  ;;  %p649_p8 = scmp.lt.s32.totalorder %s16678_s30, 3 }
  0x25   : > { %s18035_s1 = scalar_select %p16873_p5, 1, 0 }
  0x26   : > { %s18037_s6 = scalar_select %p16877_p6, 1, 0 }
  0x27   : > { %18036 = sst [smem:[#allocation39_spill]] %s18035_s1  ;;  %p16190_p9 = scmp.eq.s32.totalorder %s16856_s9, 0 }
  0x28   : > { %18038 = sst [smem:[#allocation40_spill]] %s18037_s6  ;;  %p16884_p10 = pnand %p10626_p7, %p649_p8 }
  0x29   : > { %s18040_s5 = sld [smem:[#allocation46_spill]]  ;;  %s16680_s7 = smov [#allocation10]  }
  0x2a   : > { %p16152_p11 = pneg %p16884_p10  ;;  %s18041_s8 = sld [smem:[#allocation50_spill]] }
  0x2b   : > { %s685_s30 = sshll.u32 %s16680_s7, 4  ;;  %s16681_s2 = smov 128   ;;  %s686_s30 = int_to_ptr.vmem [resolvable:$true] %s685_s30 }
  0x2c   : > { %p16898_p12 = pnand %p16190_p9, %p16152_p11  ;;  %s16682_s3 = smov 8  }
  0x2d   : > { %s18043_s13 = sld [smem:[#allocation53_spill]]  ;;  %s16684_s4 = smov [#allocation16]  }
  0x2e   : > { %s18044_s17 = sld [smem:[#allocation54_spill]] }
  0x2f   : > { %s683_s0 = sshll.u32 %s18040_s5, 4  ;;  %s18047_s26 = sld [smem:[#allocation52_spill]]  ;;  %s684_s0 = int_to_ptr.hbm [resolvable:$true] %s683_s0 }
  0x30   : > { %s717_s28 = sshll.u32 %s18041_s8, 4  ;;  %s16683_s8 = smov [#allocation13]   ;;  %s718_s28 = int_to_ptr.hbm [resolvable:$true] %s717_s28 }
  0x31   : > { %16158 = dma.hbm_to_vmem [thread:$0]  (!%p16898_p12), %s684_s0, 12288, %s686_s30, [#allocation11], %s16681_s2, %s16681_s2, %s16682_s3  }
  0x32   : > { %s719_s29 = sshll.u32 %s16683_s8, 4  ;;  %s753_s30 = sshll.u32 %s16684_s4, 4  ;;  %s720_s29 = int_to_ptr.vmem [resolvable:$true] %s719_s29  ;;  %s754_s30 = int_to_ptr.vmem [resolvable:$true] %s753_s30 }
  0x33   : > { %s751_s1 = sshll.u32 %s18043_s13, 4  ;;  %s16685_s0 = smov [#allocation19]   ;;  %s752_s1 = int_to_ptr.hbm [resolvable:$true] %s751_s1 }
  0x34   : > { %16164 = dma.hbm_to_vmem [thread:$0]  (!%p16898_p12), %s718_s28, 12288, %s720_s29, [#allocation14], %s16681_s2, %s16681_s2, %s16682_s3  }
  0x35   : > { %s785_s27 = sshll.u32 %s18044_s17, 4  ;;  %s787_s8 = sshll.u32 %s16685_s0, 4  ;;  %s786_s27 = int_to_ptr.hbm [resolvable:$true] %s785_s27  ;;  %s788_s8 = int_to_ptr.vmem [resolvable:$true] %s787_s8 }
  0x36   : > { %16170 = dma.hbm_to_vmem [thread:$0]  (!%p16898_p12), %s752_s1, 12288, %s754_s30, [#allocation17], %s16681_s2, %s16681_s2, %s16682_s3  }
  0x37   : > { %s819_s28 = sshll.u32 %s17995_s21, 4  ;;  %s18045_s29 = sld [smem:[#allocation44_spill]]  ;;  %s820_s28 = int_to_ptr.hbm [resolvable:$true] %s819_s28 }
  0x38   : > { %16176 = dma.hbm_to_vmem [thread:$0]  (!%p16898_p12), %s786_s27, 12288, %s788_s8, [#allocation20], %s16681_s2, %s16681_s2, %s16682_s3  }
  0x39   : > { %s16686_s13 = smov [#allocation22]   ;;  %s16687_s30 = smov [#allocation7]  }
  0x3a   : > { %s821_s1 = sshll.u32 %s16686_s13, 4  ;;  %s668_s0 = sshll.u32 %s16687_s30, 4  ;;  %s822_s1 = int_to_ptr.vmem [resolvable:$true] %s821_s1  ;;  %s669_s0 = int_to_ptr.vmem [resolvable:$true] %s668_s0 }
  0x3b   : > { %16182 = dma.hbm_to_vmem [thread:$0]  (!%p16898_p12), %s820_s28, 12288, %s822_s1, [#allocation23], %s16681_s2, %s16681_s2, %s16682_s3  }
  0x3c   : > { %s18046_s17 = sld [smem:[#allocation48_spill]]  ;;  %s734_s4 = sshll.u32 %s18047_s26, 4  ;;  %s735_s4 = int_to_ptr.hbm [resolvable:$true] %s734_s4 }
  0x3d   : > { %s666_s7 = sshll.u32 %s18045_s29, 4  ;;  %s16688_s29 = smov [#allocation12]   ;;  %s667_s7 = int_to_ptr.hbm [resolvable:$true] %s666_s7 }
  0x3e   : > { %16155 = dma.hbm_to_vmem [thread:$0]  (!%p16898_p12), %s667_s7, 12288, %s669_s0, [#allocation8], %s16681_s2, %s16681_s2, %s16682_s3  }
  0x3f   : > { %s702_s28 = sshll.u32 %s16688_s29, 4  ;;  %s768_s7 = sshll.u32 %s17989_s15, 4  ;;  %s703_s28 = int_to_ptr.vmem [resolvable:$true] %s702_s28  ;;  %s769_s7 = int_to_ptr.hbm [resolvable:$true] %s768_s7 }
  0x40   : > { %s802_s13 = sshll.u32 %s17993_s19, 4  ;;  %s16691_s26 = smov [#allocation21]   ;;  %s803_s13 = int_to_ptr.hbm [resolvable:$true] %s802_s13 }
  0x41   : > { %s804_s29 = sshll.u32 %s16691_s26, 4  ;;  %s805_s29 = int_to_ptr.vmem [resolvable:$true] %s804_s29 }
  0x42   : > { %s700_s27 = sshll.u32 %s18046_s17, 4  ;;  %s16689_s17 = smov [#allocation15]   ;;  %s701_s27 = int_to_ptr.hbm [resolvable:$true] %s700_s27 }
  0x43   : > { %16161 = dma.hbm_to_vmem [thread:$0]  (!%p16898_p12), %s701_s27, 12288, %s703_s28, [#allocation11], %s16681_s2, %s16681_s2, %s16682_s3  }
  0x44   : > { %s736_s1 = sshll.u32 %s16689_s17, 4  ;;  %s16690_s27 = smov [#allocation18]   ;;  %s737_s1 = int_to_ptr.vmem [resolvable:$true] %s736_s1 }
  0x45   : > { %16167 = dma.hbm_to_vmem [thread:$0]  (!%p16898_p12), %s735_s4, 12288, %s737_s1, [#allocation14], %s16681_s2, %s16681_s2, %s16682_s3  }
  0x46   : > { %s770_s8 = sshll.u32 %s16690_s27, 4  ;;  %s836_s4 = sshll.u32 %s17997_s23, 4  ;;  %s771_s8 = int_to_ptr.vmem [resolvable:$true] %s770_s8  ;;  %s837_s4 = int_to_ptr.hbm [resolvable:$true] %s836_s4 }
  0x47   : > { %16173 = dma.hbm_to_vmem [thread:$0]  (!%p16898_p12), %s769_s7, 12288, %s771_s8, [#allocation17], %s16681_s2, %s16681_s2, %s16682_s3  }
  0x48   : > { %16179 = dma.hbm_to_vmem [thread:$0]  (!%p16898_p12), %s803_s13, 12288, %s805_s29, [#allocation20], %s16681_s2, %s16681_s2, %s16682_s3  }
  0x49   : > { %s16692_s1 = smov [#allocation24]   ;;  %871 = sbr.rel (%p16884_p10) target bundleno = 2869 (0xb35), region = 128 }
  0x4a   : > { %s838_s30 = sshll.u32 %s16692_s1, 4  ;;  %s839_s30 = int_to_ptr.vmem [resolvable:$true] %s838_s30 }
  0x4b   : > { %16185 = dma.hbm_to_vmem [thread:$0]  (!%p16898_p12), %s837_s4, 12288, %s839_s30, [#allocation23], %s16681_s2, %s16681_s2, %s16682_s3  }
  0x4e   : > { %16637 = dma.done.wait (%p16190_p9), [#allocation8], 12288  }
  0x4f   : > { %16639 = vsyncadd (%p16190_p9), [#allocation8], 4294955008 }
  0x50   : > { %16641 = dma.done.wait (%p16190_p9), [#allocation11], 24576  }
  0x51   : > { %16643 = vsyncadd (%p16190_p9), [#allocation11], 4294942720 }
  0x52   : > { %16645 = dma.done.wait (%p16190_p9), [#allocation14], 24576  }
  0x53   : > { %16647 = vsyncadd (%p16190_p9), [#allocation14], 4294942720 }
  0x54   : > { %16649 = dma.done.wait (%p16190_p9), [#allocation17], 24576  }
  0x55   : > { %16651 = vsyncadd (%p16190_p9), [#allocation17], 4294942720 }
  0x56   : > { %16653 = dma.done.wait (%p16190_p9), [#allocation20], 24576  }
  0x57   : > { %16655 = vsyncadd (%p16190_p9), [#allocation20], 4294942720 }
  0x58   : > { %16657 = dma.done.wait (%p16190_p9), [#allocation23], 24576  }
  0x59   : > { %16659 = vsyncadd (%p16190_p9), [#allocation23], 4294942720  ;;  %p993_p13 = scmp.lt.s32.totalorder %s16856_s9, 1  ;;  %vm999_vm0 = vcmask 388096   ;;  %v16693_v0 = vmov 0   ;;  %s18048_s5 = sld [smem:[#allocation42_spill]] }
  0x5a   : > { %1000 = vst.msk [vmem:[#allocation2] sm:$0xf] %vm999_vm0, %v16693_v0  ;;  %vm1016_vm1 = vsmask.f32 4368  ;;  %vm1015_vm2 = vsmask.f32 256 }
  0x5b   : > { %s17013_s6 = scalar_select %p993_p13, %s16856_s9, 1  ;;  %1001 = vst.msk [vmem:[#allocation2 + $0x4] sm:$0xf] %vm999_vm0, %v16693_v0  ;;  %vm1002_vm3 = vcmask 385024   ;;  %vm1039_vm4 = vsmask.f32 7938  ;;  %vm17122_vm6 = vmor %vm1015_vm2, %vm1016_vm1 }
  0x5c   : > { %1006 = vst [vmem:[#allocation3 + $0x10] sm:$0x11] %v16693_v0  ;;  %s18049_s2 = sld [smem:[#allocation41_spill]]  ;;  %vm17110_vm5 = vmand %vm999_vm0, %vm1039_vm4  ;;  %vm1117_vm8 = vcmask 392192   ;;  %vm1074_vm9 = vsmask.f32 7424 }
  0x5d   : > { %1008 = vst [vmem:[#allocation4 + $0x8] sm:$0x11] %v16693_v0  ;;  %s15018_s11 = sshll.u32 %s17013_s6, 4  ;;  %vm1046_vm7 = vmand %vm1002_vm3, %vm1015_vm2  ;;  %vm1220_vm10 = vcmask 1046528   ;;  %v15080_v54 = vld [vmem:[#allocation7 + $0x154] sm:$0xf0] }
  0x5e   : > { %1009 = vst [vmem:[#allocation5] sm:$0x77] %v16693_v0  ;;  %s18054_s17 = sld [smem:[#allocation43_spill]]  ;;  %vm1325_vm11 = vcmask 1043456   ;;  %vm1327_vm13 = vcmask 1047556   ;;  %vm1335_vm1 = vcmask 1040384  }
  0x5f   : > { %1010 = vst [vmem:[#allocation6] sm:$0xf] %v16693_v0  ;;  %v10703_v1 = vld [vmem:[%s18048_s5 + $0x20] sm:$0xf]  ;;  %v15024_v2 = vld [vmem:[%s18048_s5 + $0x24] sm:$0xf0]  ;;  %vm17184_vm12 = vmand %vm1325_vm11, %vm1039_vm4 }
  0x60   : > { %v15023_v3 = vld [vmem:[%s18048_s5 + $0x24] sm:$0xf]  ;;  %v10704_v4 = vor.u32 %v15024_v2, %v10703_v1  ;;  %v10705_v5 = vld [vmem:[%s18048_s5 + $0x28] sm:$0xf0]  ;;  %v10695_v6 = vld [vmem:[%s18048_s5 + $0x10] sm:$0xf] }
  0x61   : > { %v15022_v7 = vld [vmem:[%s18048_s5 + $0x14] sm:$0xf0]  ;;  %v10708_v8 = vor.u32 %v15023_v3, %v10705_v5  ;;  %v15021_v9 = vld [vmem:[%s18048_s5 + $0x14] sm:$0xf]  ;;  %v10697_v10 = vld [vmem:[%s18048_s5 + $0x18] sm:$0xf0] }
  0x62   : > { %v10677_v11 = vld [vmem:[%s18048_s5 + $0x50] sm:$0xf]  ;;  %1186 = vmatpush.bf16.msra.mxu2 %v10704_v4  ;;  %v10696_v12 = vor.u32 %v15022_v7, %v10695_v6  ;;  %v15030_v13 = vld [vmem:[%s18048_s5 + $0x54] sm:$0xf0]  ;;  %v15029_v14 = vld [vmem:[%s18048_s5 + $0x54] sm:$0xf]  ;;  %v10700_v16 = vor.u32 %v15021_v9, %v10697_v10  ;;  %s997_s3 = scalar_lea.vmem %s18049_s2, %s15018_s11 }
  0x63   : > { %v10679_v15 = vld [vmem:[%s18048_s5 + $0x58] sm:$0xf0]  ;;  %1200 = vmatpush.bf16.msra.mxu3 %v10708_v8  ;;  %v10678_v17 = vor.u32 %v15030_v13, %v10677_v11  ;;  %v10687_v19 = vld [vmem:[%s18048_s5] sm:$0xf]  ;;  %v15020_v20 = vld [vmem:[%s18048_s5 + $0x4] sm:$0xf0] }
  0x64   : > { %v10682_v18 = vor.u32 %v15029_v14, %v10679_v15  ;;  %v15019_v21 = vld [vmem:[%s18048_s5 + $0x4] sm:$0xf]  ;;  %v10689_v22 = vld [vmem:[%s18048_s5 + $0x8] sm:$0xf0]  ;;  %v10669_v23 = vld [vmem:[%s18048_s5 + $0x40] sm:$0xf]  ;;  %v10688_v29 = vor.u32 %v15020_v20, %v10687_v19 }
  0x65   : > { %v15028_v24 = vld [vmem:[%s18048_s5 + $0x44] sm:$0xf0]  ;;  %1126 = vmatpush.bf16.msra.mxu0 %v10678_v17  ;;  %v15027_v26 = vld [vmem:[%s18048_s5 + $0x44] sm:$0xf]  ;;  %v10671_v27 = vld [vmem:[%s18048_s5 + $0x48] sm:$0xf0]  ;;  %v10692_v34 = vor.u32 %v15019_v21, %v10689_v22 }
  0x66   : > { %1140 = vmatpush.bf16.msra.mxu1 %v10682_v18  ;;  %v10670_v25 = vor.u32 %v15028_v24, %v10669_v23  ;;  %v1011_v28 = vld [vmem:[%s997_s3] sm:$0xff]  ;;  %1187 = vmatpush.bf16.msra.mxu2 %v10696_v12  ;;  %v10674_v30 = vor.u32 %v15027_v26, %v10671_v27  ;;  %v1012_v31 = vld [vmem:[%s997_s3 + $0x8] sm:$0xff]  ;;  %v10661_v33 = vld [vmem:[%s18048_s5 + $0x30] sm:$0xf]  ;;  %1003 = vst.msk [vmem:[#allocation2 + $0x8] sm:$0x1] %vm1002_vm3, %v16693_v0 }
  0x67   : > { %v1013_v32 = vpack.c.bf16 %v1011_v28, %v1011_v28  ;;  %1201 = vmatpush.bf16.msra.mxu3 %v10700_v16  ;;  %v1014_v35 = vpack.c.bf16 %v1012_v31, %v1012_v31  ;;  %v15026_v36 = vld [vmem:[%s18048_s5 + $0x34] sm:$0xf0]  ;;  %v15025_v37 = vld [vmem:[%s18048_s5 + $0x34] sm:$0xf]  ;;  %v10663_v38 = vld [vmem:[%s18048_s5 + $0x38] sm:$0xf0] }
  0x68   : > { %v10735_v41 = vld [vmem:[%s18048_s5 + $0x80] sm:$0xf]  ;;  %v1041_v44 = vld [vmem:[#allocation2] sm:$0xf]  ;;  %v10662_v45 = vor.u32 %v15026_v36, %v10661_v33  ;;  %v10666_v46 = vor.u32 %v15025_v37, %v10663_v38  ;;  %v15035_v48 = vld [vmem:[%s18048_s5 + $0x84] sm:$0xf] }
  0x69   : > { %v1019_v39 = vshrl.u32 %v1013_v32, 16  ;;  %v1022_v40 = vshll.u32 %v1013_v32, 16  ;;  %1127 = vmatpush.bf16.msra.mxu0 %v10670_v25  ;;  %v1027_v42 = vshrl.u32 %v1014_v35, 16  ;;  %v1030_v43 = vshll.u32 %v1014_v35, 16  ;;  %v15036_v47 = vld [vmem:[%s18048_s5 + $0x84] sm:$0xf0] }
  0x6a   : > { %1141 = vmatpush.bf16.msra.mxu1 %v10674_v30  ;;  %1188 = vmatpush.bf16.msra.mxu2 %v10688_v29  ;;  %v10736_v50 = vor.u32 %v15036_v47, %v10735_v41  ;;  %v10737_v51 = vld [vmem:[%s18048_s5 + $0x88] sm:$0xf0]  ;;  %v10727_v52 = vld [vmem:[%s18048_s5 + $0x70] sm:$0xf]  ;;  %v15034_v56 = vld [vmem:[%s18048_s5 + $0x74] sm:$0xf0] }
  0x6b   : > { %v1021_v49 = vrot.slane %v1019_v39, 7  ;;  %1202 = vmatpush.bf16.msra.mxu3 %v10692_v34  ;;  %v1029_v53 = vrot.slane %v1027_v42, 7  ;;  %v10740_v55 = vor.u32 %v15035_v48, %v10737_v51  ;;  %v15033_v57 = vld [vmem:[%s18048_s5 + $0x74] sm:$0xf]  ;;  %v10729_v61 = vld [vmem:[%s18048_s5 + $0x78] sm:$0xf0]  ;;  %v10728_v1 = vor.u32 %v15034_v56, %v10727_v52 }
  0x6c   : > { %v10732_v2 = vor.u32 %v15033_v57, %v10729_v61  ;;  %v10719_v3 = vld [vmem:[%s18048_s5 + $0x60] sm:$0xf]  ;;  %v15032_v4 = vld [vmem:[%s18048_s5 + $0x64] sm:$0xf0]  ;;  %v15031_v5 = vld [vmem:[%s18048_s5 + $0x64] sm:$0xf] }
  0x6d   : > { %v1024_v59 = vor.u32 %v1022_v40, %v1021_v49  ;;  %v1025_v60 = vrot.slane %v1021_v49, 4  ;;  %v1032_v62 = vor.u32 %v1030_v43, %v1029_v53  ;;  %v1034_v63 = vrot.slane %v1029_v53, 4  ;;  %1128 = vmatpush.bf16.msra.mxu0 %v10662_v45  ;;  %v1047_v7 = vld [vmem:[#allocation2 + $0x8] sm:$0x1]  ;;  %v10721_v8 = vld [vmem:[%s18048_s5 + $0x68] sm:$0xf0] }
  0x6e   : > { %1142 = vmatpush.bf16.msra.mxu1 %v10666_v46  ;;  %v10720_v10 = vor.u32 %v15032_v4, %v10719_v3  ;;  %v10724_v11 = vor.u32 %v15031_v5, %v10721_v8  ;;  %v10801_v29 = vld [vmem:[#allocation7 + $0x170] sm:$0xf]  ;;  %v15084_v30 = vld [vmem:[#allocation7 + $0x174] sm:$0xf0]  ;;  %v15083_v34 = vld [vmem:[#allocation7 + $0x174] sm:$0xf] }
  0x6f   : > { %v1042_v0 = vsel %vm17110_vm5, %v1024_v59, %v1041_v44  ;;  %v1033_v6 = vsel %vm17122_vm6, %v1025_v60, %v1032_v62  ;;  %v1048_v9 = vsel %vm1046_vm7, %v1034_v63, %v1047_v7  ;;  %v10865_v31 = vld [vmem:[#allocation7 + $0x1f0] sm:$0xf]  ;;  %v10802_v32 = vor.u32 %v15084_v30, %v10801_v29  ;;  %v15100_v33 = vld [vmem:[#allocation7 + $0x1f4] sm:$0xf0]  ;;  %v10803_v35 = vld [vmem:[#allocation7 + $0x178] sm:$0xf0] }
  0x70   : > { %1043 = vst [vmem:[#allocation2] sm:$0xf] %v1042_v0  ;;  %v10866_v36 = vor.u32 %v15100_v33, %v10865_v31  ;;  %v10806_v37 = vor.u32 %v15083_v34, %v10803_v35  ;;  %v15099_v38 = vld [vmem:[#allocation7 + $0x1f4] sm:$0xf]  ;;  %v10867_v39 = vld [vmem:[#allocation7 + $0x1f8] sm:$0xf0]  ;;  %vm1336_vm5 = vmand %vm1335_vm1, %vm1015_vm2 }
  0x71   : > { %1262 = vmatpush.bf16.msrb.mxu0 %v10736_v50  ;;  %1044 = vst.msk [vmem:[#allocation2 + $0x4] sm:$0xf] %vm999_vm0, %v1033_v6  ;;  %1611 = vmatpush.bf16.msrb.mxu2 %v10802_v32  ;;  %v10870_v40 = vor.u32 %v15099_v38, %v10867_v39  ;;  %v10793_v41 = vld [vmem:[#allocation7 + $0x160] sm:$0xf]  ;;  %v15082_v42 = vld [vmem:[#allocation7 + $0x164] sm:$0xf0] }
  0x72   : > { %1276 = vmatpush.bf16.msrb.mxu1 %v10740_v55  ;;  %1049 = vst [vmem:[#allocation2 + $0x8] sm:$0x1] %v1048_v9  ;;  %1625 = vmatpush.bf16.msrb.mxu3 %v10866_v36  ;;  %v10857_v43 = vld [vmem:[#allocation7 + $0x1e0] sm:$0xf]  ;;  %v10794_v44 = vor.u32 %v15082_v42, %v10793_v41  ;;  %v15098_v45 = vld [vmem:[#allocation7 + $0x1e4] sm:$0xf0] }
  0x73   : > { %v15081_v46 = vld [vmem:[#allocation7 + $0x164] sm:$0xf]  ;;  %v10795_v47 = vld [vmem:[#allocation7 + $0x168] sm:$0xf0]  ;;  %v10858_v48 = vor.u32 %v15098_v45, %v10857_v43  ;;  %v10785_v53 = vld [vmem:[#allocation7 + $0x150] sm:$0xf] }
  0x74   : > { %v10798_v49 = vor.u32 %v15081_v46, %v10795_v47  ;;  %v15097_v50 = vld [vmem:[#allocation7 + $0x1e4] sm:$0xf]  ;;  %v10859_v51 = vld [vmem:[#allocation7 + $0x1e8] sm:$0xf0]  ;;  %v10849_v55 = vld [vmem:[#allocation7 + $0x1d0] sm:$0xf]  ;;  %v10786_v56 = vor.u32 %v15080_v54, %v10785_v53 }
  0x75   : > { %1263 = vmatpush.bf16.msrb.mxu0 %v10728_v1  ;;  %1612 = vmatpush.bf16.msrb.mxu2 %v10794_v44  ;;  %v10862_v52 = vor.u32 %v15097_v50, %v10859_v51  ;;  %v15096_v57 = vld [vmem:[#allocation7 + $0x1d4] sm:$0xf0]  ;;  %v15079_v59 = vld [vmem:[#allocation7 + $0x154] sm:$0xf]  ;;  %v10787_v60 = vld [vmem:[#allocation7 + $0x158] sm:$0xf0] }
  0x76   : > { %1277 = vmatpush.bf16.msrb.mxu1 %v10732_v2  ;;  %1626 = vmatpush.bf16.msrb.mxu3 %v10858_v48  ;;  %v10850_v61 = vor.u32 %v15096_v57, %v10849_v55  ;;  %v10790_v62 = vor.u32 %v15079_v59, %v10787_v60  ;;  %v15095_v63 = vld [vmem:[#allocation7 + $0x1d4] sm:$0xf]  ;;  %v10851_v0 = vld [vmem:[#allocation7 + $0x1d8] sm:$0xf0]  ;;  %v10777_v2 = vld [vmem:[#allocation7 + $0x140] sm:$0xf] }
  0x77   : > { %v16104_v24 = vld [vmem:[#allocation2] sm:$0xe]  ;;  %v10854_v1 = vor.u32 %v15095_v63, %v10851_v0  ;;  %v15078_v3 = vld [vmem:[#allocation7 + $0x144] sm:$0xf0]  ;;  %v15077_v7 = vld [vmem:[#allocation7 + $0x144] sm:$0xf] }
  0x78   : > { %v16100_v12 = vld [vmem:[#allocation2] sm:$0xff]   ;;  %v10778_v5 = vor.u32 %v15078_v3, %v10777_v2  ;;  %v15094_v6 = vld [vmem:[#allocation7 + $0x1c4] sm:$0xf0]  ;;  %v10779_v8 = vld [vmem:[#allocation7 + $0x148] sm:$0xf0]  ;;  %vm1337_vm3 = vcmask 1044484  }
  0x79   : > { %1264 = vmatpush.bf16.msrb.mxu0 %v10720_v10  ;;  %v1078_v13 = vshll.u32 %v16100_v12, 16  ;;  %10709 = vmatmul.msk.bf16.vlgmr.msra.gmra.mxu2 %vm1117_vm8, %v16100_v12  ;;  %v1058_v14 = vld [vmem:[#allocation2 + $0x8] sm:$0x1]  ;;  %v1076_v15 = vshrl.u32 %v16100_v12, 16  ;;  %v16103_v23 = vld [vmem:[#allocation2] sm:$0xf0]  ;;  %v10782_v10 = vor.u32 %v15077_v7, %v10779_v8 }
  0x7a   : > { %1278 = vmatpush.bf16.msrb.mxu1 %v10724_v11  ;;  %10710 = vmatmul.msk.bf16.vlgmr.msra.gmra.mxu3 %vm1117_vm8, %v16100_v12  ;;  %v1071_v16 = vunpack.c.l.b16 %v1058_v14  ;;  %v16105_v25 = vor.u32 %v16104_v24, %v16103_v23  ;;  %v10841_v4 = vld [vmem:[#allocation7 + $0x1c0] sm:$0xf]  ;;  %v15093_v11 = vld [vmem:[#allocation7 + $0x1c4] sm:$0xf]  ;;  %v10843_v12 = vld [vmem:[#allocation7 + $0x1c8] sm:$0xf0] }
  0x7b   : > { %v1080_v17 = vrot.slane %v1078_v13, 1  ;;  %1613 = vmatpush.bf16.msrb.mxu2 %v10786_v56  ;;  %1627 = vmatpush.bf16.msrb.mxu3 %v10850_v61  ;;  %v10842_v9 = vor.u32 %v15094_v6, %v10841_v4  ;;  %v10846_v13 = vor.u32 %v15093_v11, %v10843_v12  ;;  %v10769_v14 = vld [vmem:[#allocation7 + $0x130] sm:$0xf]  ;;  %v15091_v23 = vld [vmem:[#allocation7 + $0x1b4] sm:$0xf]  ;;  %s18063_s30 = sld [smem:[#allocation45_spill]] }
  0x7c   : > { %v1073_v18 = vpack.c.b16 %v1071_v16, %v1071_v16  ;;  %v1221_v26 = vrot.slane %v16105_v25, 1  ;;  %v10833_v16 = vld [vmem:[#allocation7 + $0x1b0] sm:$0xf]  ;;  %v10835_v24 = vld [vmem:[#allocation7 + $0x1b8] sm:$0xf0]  ;;  %s18064_s7 = sld [smem:[#allocation47_spill]] }
  0x7d   : > { %v1081_v19 = vor.u32 %v1080_v17, %v1076_v15  ;;  %v15076_v15 = vld [vmem:[#allocation7 + $0x134] sm:$0xf0]  ;;  %v10838_v25 = vor.u32 %v15091_v23, %v10835_v24  ;;  %v10825_v29 = vld [vmem:[#allocation7 + $0x1a0] sm:$0xf]  ;;  %v15090_v30 = vld [vmem:[#allocation7 + $0x1a4] sm:$0xf0] }
  0x7e   : > { %v1083_v20 = vshll.u32 %v1073_v18, 16  ;;  %v1222_v27 = vrot.slane %v1073_v18, 1  ;;  %v10770_v17 = vor.u32 %v15076_v15, %v10769_v14  ;;  %v15092_v18 = vld [vmem:[#allocation7 + $0x1b4] sm:$0xf0]  ;;  %v15073_v31 = vld [vmem:[#allocation7 + $0x124] sm:$0xf]  ;;  %v10826_v32 = vor.u32 %v15090_v30, %v10825_v29 }
  0x7f   : > { %1614 = vmatpush.bf16.msrb.mxu2 %v10778_v5  ;;  %1628 = vmatpush.bf16.msrb.mxu3 %v10842_v9  ;;  %v10763_v33 = vld [vmem:[#allocation7 + $0x128] sm:$0xf0]  ;;  %v15089_v34 = vld [vmem:[#allocation7 + $0x1a4] sm:$0xf]  ;;  %v10753_v38 = vld [vmem:[#allocation7 + $0x110] sm:$0xf] }
  0x80   : > { %v1085_v21 = vrot.slane %v1083_v20, 1  ;;  %v1223_v28 = vsel %vm1220_vm10, %v1221_v26, %v1222_v27  ;;  %v10771_v20 = vld [vmem:[#allocation7 + $0x138] sm:$0xf0]  ;;  %v10761_v26 = vld [vmem:[#allocation7 + $0x120] sm:$0xf]  ;;  %v10766_v36 = vor.u32 %v15073_v31, %v10763_v33  ;;  %s18065_s10 = sld [smem:[#allocation49_spill]] }
  0x81   : > { %v15074_v27 = vld [vmem:[#allocation7 + $0x124] sm:$0xf0]  ;;  %v10827_v35 = vld [vmem:[#allocation7 + $0x1a8] sm:$0xf0]  ;;  %v15072_v39 = vld [vmem:[#allocation7 + $0x114] sm:$0xf0] }
  0x82   : > { %v1086_v22 = vsel %vm1074_vm9, %v1081_v19, %v1085_v21  ;;  %v15075_v19 = vld [vmem:[#allocation7 + $0x134] sm:$0xf]  ;;  %v10834_v21 = vor.u32 %v15092_v18, %v10833_v16  ;;  %v10754_v41 = vor.u32 %v15072_v39, %v10753_v38  ;;  %v15088_v42 = vld [vmem:[#allocation7 + $0x194] sm:$0xf0]  ;;  %v10755_v44 = vld [vmem:[#allocation7 + $0x118] sm:$0xf0] }
  0x83   : > { %10683 = vmatmul.msk.bf16.vlgmr.msra.gmra.mxu0 %vm1117_vm8, %v1086_v22  ;;  %10684 = vmatmul.msk.bf16.vlgmr.msra.gmra.mxu1 %vm1117_vm8, %v1086_v22  ;;  %v10774_v22 = vor.u32 %v15075_v19, %v10771_v20  ;;  %v15071_v43 = vld [vmem:[#allocation7 + $0x114] sm:$0xf]  ;;  %v10819_v48 = vld [vmem:[#allocation7 + $0x198] sm:$0xf0]  ;;  %v10745_v50 = vld [vmem:[#allocation7 + $0x100] sm:$0xf] }
  0x84   : > { %1639 = vmatpush.bf16.msra.mxu0 %v10806_v37  ;;  %1653 = vmatpush.bf16.msra.mxu1 %v10870_v40  ;;  %v10830_v37 = vor.u32 %v15089_v34, %v10827_v35  ;;  %v10817_v40 = vld [vmem:[#allocation7 + $0x190] sm:$0xf]  ;;  %v10758_v46 = vor.u32 %v15071_v43, %v10755_v44  ;;  %v15087_v47 = vld [vmem:[#allocation7 + $0x194] sm:$0xf]  ;;  %v15070_v51 = vld [vmem:[#allocation7 + $0x104] sm:$0xf0] }
  0x85   : > { %1615 = vmatpush.bf16.msrb.mxu2 %v10770_v17  ;;  %1629 = vmatpush.bf16.msrb.mxu3 %v10834_v21  ;;  %v10818_v45 = vor.u32 %v15088_v42, %v10817_v40  ;;  %v10746_v53 = vor.u32 %v15070_v51, %v10745_v50  ;;  %v15086_v54 = vld [vmem:[#allocation7 + $0x184] sm:$0xf0]  ;;  %v15069_v55 = vld [vmem:[#allocation7 + $0x104] sm:$0xf]  ;;  %v10747_v56 = vld [vmem:[#allocation7 + $0x108] sm:$0xf0] }
  0x86   : > { %v10750_v59 = vor.u32 %v15069_v55, %v10747_v56  ;;  %v15085_v60 = vld [vmem:[#allocation7 + $0x184] sm:$0xf]  ;;  %v10811_v61 = vld [vmem:[#allocation7 + $0x188] sm:$0xf0]  ;;  %v15052_v0 = vld [vmem:[#allocation7 + $0x74] sm:$0xf0] }
  0x87   : > { %v10814_v63 = vor.u32 %v15085_v60, %v10811_v61  ;;  %v10993_v2 = vld [vmem:[#allocation7 + $0xf0] sm:$0xf]  ;;  %v15068_v3 = vld [vmem:[#allocation7 + $0xf4] sm:$0xf0]  ;;  %v15051_v5 = vld [vmem:[#allocation7 + $0x74] sm:$0xf] }
  0x88   : > { %1640 = vmatpush.bf16.msra.mxu0 %v10798_v49  ;;  %1654 = vmatpush.bf16.msra.mxu1 %v10862_v52  ;;  %v10822_v49 = vor.u32 %v15087_v47, %v10819_v48  ;;  %v10809_v52 = vld [vmem:[#allocation7 + $0x180] sm:$0xf]  ;;  %v10994_v4 = vor.u32 %v15068_v3, %v10993_v2  ;;  %v10931_v6 = vld [vmem:[#allocation7 + $0x78] sm:$0xf0]  ;;  %v15067_v8 = vld [vmem:[#allocation7 + $0xf4] sm:$0xf] }
  0x89   : > { %1630 = vmatpush.bf16.msrb.mxu3 %v10826_v32  ;;  %v10810_v57 = vor.u32 %v15086_v54, %v10809_v52  ;;  %v10934_v7 = vor.u32 %v15051_v5, %v10931_v6  ;;  %v10995_v9 = vld [vmem:[#allocation7 + $0xf8] sm:$0xf0]  ;;  %v15050_v14 = vld [vmem:[#allocation7 + $0x64] sm:$0xf0]  ;;  %v10985_v15 = vld [vmem:[#allocation7 + $0xe0] sm:$0xf] }
  0x8a   : > { %v10998_v12 = vor.u32 %v15067_v8, %v10995_v9  ;;  %v15066_v17 = vld [vmem:[#allocation7 + $0xe4] sm:$0xf0]  ;;  %v15049_v18 = vld [vmem:[#allocation7 + $0x64] sm:$0xf]  ;;  %v10923_v19 = vld [vmem:[#allocation7 + $0x68] sm:$0xf0] }
  0x8b   : > { %v10986_v20 = vor.u32 %v15066_v17, %v10985_v15  ;;  %v10926_v21 = vor.u32 %v15049_v18, %v10923_v19  ;;  %v10987_v23 = vld [vmem:[#allocation7 + $0xe8] sm:$0xf0]  ;;  %v10913_v24 = vld [vmem:[#allocation7 + $0x50] sm:$0xf]  ;;  %v15047_v30 = vld [vmem:[#allocation7 + $0x54] sm:$0xf] }
  0x8c   : > { %1641 = vmatpush.bf16.msra.mxu0 %v10790_v62  ;;  %1655 = vmatpush.bf16.msra.mxu1 %v10854_v1  ;;  %v10929_v62 = vld [vmem:[#allocation7 + $0x70] sm:$0xf]  ;;  %v10915_v32 = vld [vmem:[#allocation7 + $0x58] sm:$0xf0]  ;;  %v15063_v33 = vld [vmem:[#allocation7 + $0xd4] sm:$0xf] }
  0x8d   : > { %1631 = vmatpush.bf16.msrb.mxu3 %v10818_v45  ;;  %v10930_v1 = vor.u32 %v15052_v0, %v10929_v62  ;;  %v10918_v34 = vor.u32 %v15047_v30, %v10915_v32  ;;  %v10979_v35 = vld [vmem:[#allocation7 + $0xd8] sm:$0xf0]  ;;  %v15046_v38 = vld [vmem:[#allocation7 + $0x44] sm:$0xf0]  ;;  %v10969_v42 = vld [vmem:[#allocation7 + $0xc0] sm:$0xf] }
  0x8e   : > { %v15062_v43 = vld [vmem:[#allocation7 + $0xc4] sm:$0xf0]  ;;  %v15045_v44 = vld [vmem:[#allocation7 + $0x44] sm:$0xf]  ;;  %v17167_v45 = vld [vmem:[%s18054_s17] sm:$0x3] }
  0x8f   : > { %v10907_v47 = vld [vmem:[#allocation7 + $0x48] sm:$0xf0]  ;;  %v15061_v48 = vld [vmem:[#allocation7 + $0xc4] sm:$0xf]  ;;  %v10897_v54 = vld [vmem:[#allocation7 + $0x30] sm:$0xf] }
  0x90   : > { %1642 = vmatpush.bf16.msra.mxu0 %v10782_v10  ;;  %1656 = vmatpush.bf16.msra.mxu1 %v10846_v13  ;;  %v10921_v13 = vld [vmem:[#allocation7 + $0x60] sm:$0xf]  ;;  %v10910_v52 = vor.u32 %v15045_v44, %v10907_v47  ;;  %v15044_v55 = vld [vmem:[#allocation7 + $0x34] sm:$0xf0]  ;;  %v10961_v56 = vld [vmem:[#allocation7 + $0xb0] sm:$0xf] }
  0x91   : > { %1632 = vmatpush.bf16.msrb.mxu3 %v10810_v57  ;;  %v10922_v16 = vor.u32 %v15050_v14, %v10921_v13  ;;  %v10898_v57 = vor.u32 %v15044_v55, %v10897_v54  ;;  %v15043_v60 = vld [vmem:[#allocation7 + $0x34] sm:$0xf]  ;;  %v10899_v61 = vld [vmem:[#allocation7 + $0x38] sm:$0xf0]  ;;  %v15042_v3 = vld [vmem:[#allocation7 + $0x24] sm:$0xf0] }
  0x92   : > { %v10963_v0 = vld [vmem:[#allocation7 + $0xb8] sm:$0xf0]  ;;  %v10902_v2 = vor.u32 %v15043_v60, %v10899_v61  ;;  %v15058_v5 = vld [vmem:[#allocation7 + $0xa4] sm:$0xf0]  ;;  %v1291_v6 = vperm.slane %v17167_v45, 0  ;;  %v1292_v14 = vperm.slane %v17167_v45, 1 }
  0x93   : > { %10741 = vmatmul.msk.bf16.vlgmr.msrb.gmra.mxu0 %vm1117_vm8, %v1223_v28  ;;  %10742 = vmatmul.msk.bf16.vlgmr.msrb.gmra.mxu1 %vm1117_vm8, %v1223_v28  ;;  %v10762_v28 = vor.u32 %v15074_v27, %v10761_v26  ;;  %v15048_v26 = vld [vmem:[#allocation7 + $0x54] sm:$0xf0]  ;;  %v10977_v27 = vld [vmem:[#allocation7 + $0xd0] sm:$0xf]  ;;  %v15041_v8 = vld [vmem:[#allocation7 + $0x24] sm:$0xf] }
  0x94   : > { %1643 = vmatpush.bf16.msra.mxu0 %v10774_v22  ;;  %1657 = vmatpush.bf16.msra.mxu1 %v10838_v25  ;;  %v15065_v22 = vld [vmem:[#allocation7 + $0xe4] sm:$0xf]  ;;  %v10914_v29 = vor.u32 %v15048_v26, %v10913_v24  ;;  %v10891_v9 = vld [vmem:[#allocation7 + $0x28] sm:$0xf0]  ;;  %v10945_v26 = vld [vmem:[#allocation7 + $0x90] sm:$0xf] }
  0x95   : > { %1616 = vmatpush.bf16.msrb.mxu2 %v10762_v28  ;;  %1843 = vmatpush.bf16.msra.mxu3 %v10994_v4  ;;  %v10990_v25 = vor.u32 %v15065_v22, %v10987_v23  ;;  %v15064_v28 = vld [vmem:[#allocation7 + $0xd4] sm:$0xf0]  ;;  %v10953_v4 = vld [vmem:[#allocation7 + $0xa0] sm:$0xf]  ;;  %v10955_v17 = vld [vmem:[#allocation7 + $0xa8] sm:$0xf0] }
  0x96   : > { %v10978_v31 = vor.u32 %v15064_v28, %v10977_v27  ;;  %v15040_v22 = vld [vmem:[#allocation7 + $0x14] sm:$0xf0]  ;;  %v15039_v27 = vld [vmem:[#allocation7 + $0x14] sm:$0xf]  ;;  %v10883_v28 = vld [vmem:[#allocation7 + $0x18] sm:$0xf0] }
  0x97   : > { %v15055_v32 = vld [vmem:[#allocation7 + $0x94] sm:$0xf]  ;;  %vm1328_vm14 = vsmask.f32 7954  ;;  %v15054_v54 = vld [vmem:[#allocation7 + $0x84] sm:$0xf0] }
  0x98   : > { %1644 = vmatpush.bf16.msra.mxu0 %v10766_v36  ;;  %1658 = vmatpush.bf16.msra.mxu1 %v10830_v37  ;;  %v10982_v36 = vor.u32 %v15063_v33, %v10979_v35  ;;  %v10905_v37 = vld [vmem:[#allocation7 + $0x40] sm:$0xf]  ;;  %v10947_v33 = vld [vmem:[#allocation7 + $0x98] sm:$0xf0]  ;;  %v15037_v55 = vld [vmem:[#allocation7 + $0x4] sm:$0xf] }
  0x99   : > { %1617 = vmatpush.bf16.msrb.mxu2 %v10754_v41  ;;  %1844 = vmatpush.bf16.msra.mxu3 %v10986_v20  ;;  %v10906_v41 = vor.u32 %v15046_v38, %v10905_v37  ;;  %v10954_v20 = vor.u32 %v15058_v5, %v10953_v4  ;;  %vm17196_vm15 = vmand %vm1327_vm13, %vm1328_vm14  ;;  %v15053_v60 = vld [vmem:[#allocation7 + $0x84] sm:$0xf]  ;;  %v10939_v61 = vld [vmem:[#allocation7 + $0x88] sm:$0xf0]  ;;  %vm1338_vm4 = vsmask.f32 4352 }
  0x9a   : > { %vm17212_vm0 = vmor %vm17196_vm15, %vm17184_vm12  ;;  %s18066_s8 = sld [smem:[#allocation51_spill]]  ;;  %v13076_v5 = vld [vmem:[#allocation16 + $0x2f8] sm:$0xf0]  ;;  %vm7168_vm11 = vcmask 1042432   ;;  %vm7169_vm12 = vsmask.f32 2306 }
  0x9b   : > { %vm1339_vm7 = vmand %vm1337_vm3, %vm1338_vm4  ;;  %vm7171_vm13 = vcmask 1046532   ;;  %vm7172_vm14 = vsmask.f32 6418  ;;  %vm9596_vm3 = vcmask 1041408   ;;  %vm9608_vm4 = vsmask.f32 1282 }
  0x9c   : > { %1645 = vmatpush.bf16.msra.mxu0 %v10758_v46  ;;  %1659 = vmatpush.bf16.msra.mxu1 %v10822_v49  ;;  %v10970_v46 = vor.u32 %v15062_v43, %v10969_v42  ;;  %v10971_v49 = vld [vmem:[#allocation7 + $0xc8] sm:$0xf0]  ;;  %v10950_v43 = vor.u32 %v15055_v32, %v10947_v33  ;;  %vm17228_vm8 = vmor %vm1339_vm7, %vm1336_vm5  ;;  %v15116_v42 = vld [vmem:[#allocation7 + $0x274] sm:$0xf0]  ;;  %vm9611_vm5 = vsmask.f32 3338 }
  0x9d   : > { %1618 = vmatpush.bf16.msrb.mxu2 %v10746_v53  ;;  %1845 = vmatpush.bf16.msra.mxu3 %v10978_v31  ;;  %v10974_v53 = vor.u32 %v15061_v48, %v10971_v49  ;;  %v10873_v48 = vld [vmem:[#allocation7] sm:$0xf]  ;;  %v15038_v49 = vld [vmem:[#allocation7 + $0x4] sm:$0xf0]  ;;  %vm17694_vm15 = vmand %vm7168_vm11, %vm7169_vm12  ;;  %vm9610_vm7 = vcmask 1043458   ;;  %s18075_s3 = sld [smem:[#allocation34_spill]] }
  0x9e   : > { %s18078_s17 = sld [smem:[#allocation55_spill]] }
  0xa0   : > { %1646 = vmatpush.bf16.msra.mxu0 %v10750_v59  ;;  %1660 = vmatpush.bf16.msra.mxu1 %v10814_v63  ;;  %v15060_v59 = vld [vmem:[#allocation7 + $0xb4] sm:$0xf0]  ;;  %v15059_v63 = vld [vmem:[#allocation7 + $0xb4] sm:$0xf] }
  0xa1   : > { %1829 = vmatpush.bf16.msra.mxu2 %v10930_v1  ;;  %1846 = vmatpush.bf16.msra.mxu3 %v10970_v46  ;;  %v10962_v62 = vor.u32 %v15060_v59, %v10961_v56  ;;  %v10889_v1 = vld [vmem:[#allocation7 + $0x20] sm:$0xf]  ;;  %v10875_v56 = vld [vmem:[#allocation7 + $0x8] sm:$0xf0] }
  0xa2   : > { %v10890_v15 = vor.u32 %v15042_v3, %v10889_v1 }
  0xa4   : > { %1857 = vmatpush.bf16.msrb.mxu0 %v10934_v7  ;;  %1871 = vmatpush.bf16.msrb.mxu1 %v10998_v12  ;;  %v10966_v7 = vor.u32 %v15059_v63, %v10963_v0  ;;  %v10878_v63 = vor.u32 %v15037_v55, %v10875_v56  ;;  %v10942_v0 = vor.u32 %v15053_v60, %v10939_v61  ;;  %v15114_v60 = vld [vmem:[#allocation7 + $0x264] sm:$0xf0] }
  0xa5   : > { %1830 = vmatpush.bf16.msra.mxu2 %v10922_v16  ;;  %v15057_v16 = vld [vmem:[#allocation7 + $0xa4] sm:$0xf]  ;;  %1847 = vmatpush.bf16.msra.mxu3 %v10962_v62 }
  0xa8   : > { %1858 = vmatpush.bf16.msrb.mxu0 %v10926_v21  ;;  %1872 = vmatpush.bf16.msrb.mxu1 %v10990_v25  ;;  %v10881_v21 = vld [vmem:[#allocation7 + $0x10] sm:$0xf]  ;;  %v10894_v25 = vor.u32 %v15041_v8, %v10891_v9 }
  0xa9   : > { %1831 = vmatpush.bf16.msra.mxu2 %v10914_v29  ;;  %v10882_v31 = vor.u32 %v15040_v22, %v10881_v21  ;;  %1848 = vmatpush.bf16.msra.mxu3 %v10954_v20 }
  0xac   : > { %1859 = vmatpush.bf16.msrb.mxu0 %v10918_v34  ;;  %1873 = vmatpush.bf16.msrb.mxu1 %v10982_v36 }
  0xad   : > { %1832 = vmatpush.bf16.msra.mxu2 %v10906_v41  ;;  %v10886_v41 = vor.u32 %v15039_v27, %v10883_v28 }
  0xb0   : > { %1860 = vmatpush.bf16.msrb.mxu0 %v10910_v52  ;;  %1874 = vmatpush.bf16.msrb.mxu1 %v10974_v53  ;;  %v10874_v53 = vor.u32 %v15038_v49, %v10873_v48 }
  0xb1   : > { %1833 = vmatpush.bf16.msra.mxu2 %v10898_v57 }
  0xb4   : > { %1861 = vmatpush.bf16.msrb.mxu0 %v10902_v2  ;;  %1875 = vmatpush.bf16.msrb.mxu1 %v10966_v7 }
  0xb5   : > { %1834 = vmatpush.bf16.msra.mxu2 %v10890_v15  ;;  %v13074_v15 = vld [vmem:[#allocation16 + $0x2f0] sm:$0xf] }
  0xb8   : > { %1862 = vmatpush.bf16.msrb.mxu0 %v10894_v25 }
  0xb9   : > { %1835 = vmatpush.bf16.msra.mxu2 %v10882_v31 }
  0xbc   : > { %1863 = vmatpush.bf16.msrb.mxu0 %v10886_v41  ;;  %v11057_v41 = vld [vmem:[#allocation7 + $0x270] sm:$0xf] }
  0xbd   : > { %1836 = vmatpush.bf16.msra.mxu2 %v10874_v53  ;;  %v11123_v53 = vld [vmem:[#allocation7 + $0x2f8] sm:$0xf0] }
  0xc0   : > { %1864 = vmatpush.bf16.msrb.mxu0 %v10878_v63 }
  0xfc   : > { %v1190_v50 = vpop.f32.mrf.mxu2 }
  0xfd   : > { %v1204_v51 = vpop.f32.mrf.mxu3 }
 0x100   : > { %v17156_v10 = vpop.f32.mrf.mxu0  ;;  %v17158_v11 = vpop.f32.mrf.mxu1 }
 0x101   : > { %v1191_v12 = vadd.f32 %v1190_v50, %v17156_v10  ;;  %v1205_v13 = vadd.f32 %v1204_v51, %v17158_v11  ;;  %v15056_v10 = vld [vmem:[#allocation7 + $0x94] sm:$0xf0]  ;;  %v10958_v11 = vor.u32 %v15057_v16, %v10955_v17  ;;  %v10937_v50 = vld [vmem:[#allocation7 + $0x80] sm:$0xf] }
 0x102   : > { %v10946_v36 = vor.u32 %v15056_v10, %v10945_v26  ;;  %v10938_v62 = vor.u32 %v15054_v54, %v10937_v50  ;;  %v1341_v16 = vld [vmem:[#allocation3 + $0x10] sm:$0x11]  ;;  %v15115_v50 = vld [vmem:[#allocation7 + $0x274] sm:$0xf] }
 0x103   : > { %1876 = vmatpush.bf16.msrb.mxu1 %v10958_v11 }
 0x104   : > { %v1192_v34 = vpop.f32.mrf.mxu2  ;;  %1849 = vmatpush.bf16.msra.mxu3 %v10946_v36 }
 0x105   : > { %v1206_v35 = vpop.f32.mrf.mxu3 }
 0x107   : > { %1877 = vmatpush.bf16.msrb.mxu1 %v10950_v43  ;;  %v11121_v43 = vld [vmem:[#allocation7 + $0x2f0] sm:$0xf] }
 0x108   : > { %v17160_v39 = vpop.f32.mrf.mxu0  ;;  %v17162_v40 = vpop.f32.mrf.mxu1  ;;  %1850 = vmatpush.bf16.msra.mxu3 %v10938_v62 }
 0x109   : > { %v1193_v44 = vadd.f32 %v1192_v34, %v17160_v39  ;;  %v1207_v46 = vadd.f32 %v1206_v35, %v17162_v40  ;;  %v11058_v39 = vor.u32 %v15116_v42, %v11057_v41  ;;  %v15110_v41 = vld [vmem:[#allocation7 + $0x244] sm:$0xf0] }
 0x10b   : > { %1878 = vmatpush.bf16.msrb.mxu1 %v10942_v0 }
 0x110   : > { %v1266_v18 = vpop.f32.mrf.mxu0  ;;  %v1280_v19 = vpop.f32.mrf.mxu1 }
 0x111   : > { %v1285_v23 = vadd.f32 %v1266_v18, %v1191_v12  ;;  %v1286_v24 = vadd.f32 %v1280_v19, %v1205_v13 }
 0x113   : > { %v17175_v29 = vadd.f32 %v1291_v6, %v1285_v23  ;;  %v17179_v30 = vadd.f32 %v1292_v14, %v1286_v24 }
 0x115   : > { %v1299_v37 = vmax.f32 %v17175_v29, 0.0  ;;  %v1300_v38 = vmax.f32 %v17179_v30, 0.0  ;;  %v11675_v30 = vld [vmem:[#allocation12 + $0x38] sm:$0xf0] }
 0x117   : > { %v1303_v47 = vpack.c.bf16 %v1300_v38, %v1299_v37 }
 0x118   : > { %v1268_v51 = vpop.f32.mrf.mxu0  ;;  %v1282_v52 = vpop.f32.mrf.mxu1 }
 0x119   : > { %v1306_v57 = vshrl.u32 %v1303_v47, 16  ;;  %v1287_v40 = vadd.f32 %v1268_v51, %v1193_v44  ;;  %v1288_v59 = vadd.f32 %v1282_v52, %v1207_v46  ;;  %v1309_v2 = vshll.u32 %v1303_v47, 16  ;;  %v15132_v44 = vld [vmem:[#allocation7 + $0x2f4] sm:$0xf0]  ;;  %v11059_v51 = vld [vmem:[#allocation7 + $0x278] sm:$0xf0] }
 0x11a   : > { %v15131_v52 = vld [vmem:[#allocation7 + $0x2f4] sm:$0xf]  ;;  %v11062_v63 = vor.u32 %v15115_v50, %v11059_v51  ;;  %v11099_v50 = vld [vmem:[#allocation7 + $0x2c8] sm:$0xf0] }
 0x11b   : > { %v1308_v1 = vrot.slane %v1306_v57, 7  ;;  %v17202_v3 = vadd.f32 %v1291_v6, %v1287_v40  ;;  %v17206_v4 = vadd.f32 %v1292_v14, %v1288_v59  ;;  %v11122_v40 = vor.u32 %v15132_v44, %v11121_v43  ;;  %v11049_v59 = vld [vmem:[#allocation7 + $0x260] sm:$0xf] }
 0x11c   : > { %v11126_v0 = vor.u32 %v15131_v52, %v11123_v53  ;;  %v11097_v44 = vld [vmem:[#allocation7 + $0x2c0] sm:$0xf]  ;;  %v11025_v53 = vld [vmem:[#allocation7 + $0x230] sm:$0xf] }
 0x11d   : > { %v1311_v7 = vor.u32 %v1309_v2, %v1308_v1  ;;  %v1301_v8 = vmax.f32 %v17202_v3, 0.0  ;;  %v1302_v6 = vmax.f32 %v17206_v4, 0.0  ;;  %v1312_v17 = vrot.slane %v1308_v1, 4  ;;  %v11113_v1 = vld [vmem:[#allocation7 + $0x2e0] sm:$0xf] }
 0x11e   : > { %v15130_v2 = vld [vmem:[#allocation7 + $0x2e4] sm:$0xf0]  ;;  %v15233_v4 = vld [vmem:[#allocation12 + $0x14] sm:$0xf] }
 0x11f   : > { %v17220_v45 = vsel %vm17212_vm0, %v1311_v7, 0  ;;  %v1304_v9 = vpack.c.bf16 %v1302_v6, %v1301_v8  ;;  %v15113_v7 = vld [vmem:[#allocation7 + $0x264] sm:$0xf] }
 0x120   : > { %1333 = vst [vmem:[#allocation3] sm:$0xff] %v17220_v45  ;;  %v1415_v22 = vunpack.c.l.b16 %v17220_v45  ;;  %v1416_v24 = vunpack.c.h.b16 %v17220_v45 }
 0x121   : > { %v1314_v12 = vshrl.u32 %v1304_v9, 16  ;;  %v1317_v14 = vshll.u32 %v1304_v9, 16  ;;  %v11051_v9 = vld [vmem:[#allocation7 + $0x268] sm:$0xf0] }
 0x123   : > { %v1316_v13 = vrot.slane %v1314_v12, 7  ;;  %v15129_v12 = vld [vmem:[#allocation7 + $0x2e4] sm:$0xf] }
 0x125   : > { %v1319_v18 = vor.u32 %v1317_v14, %v1316_v13  ;;  %v1321_v19 = vrot.slane %v1316_v13, 4  ;;  %v11115_v13 = vld [vmem:[#allocation7 + $0x2e8] sm:$0xf0]  ;;  %v11050_v14 = vor.u32 %v15114_v60, %v11049_v59  ;;  %v11027_v59 = vld [vmem:[#allocation7 + $0x238] sm:$0xf0] }
 0x126   : > { %v15123_v60 = vld [vmem:[#allocation7 + $0x2b4] sm:$0xf] }
 0x127   : > { %v17234_v20 = vsel %vm17122_vm6, %v1312_v17, %v1319_v18  ;;  %v1342_v21 = vsel %vm17228_vm8, %v1321_v19, %v1341_v16  ;;  %v11114_v16 = vor.u32 %v15130_v2, %v11113_v1  ;;  %v11041_v17 = vld [vmem:[#allocation7 + $0x250] sm:$0xf]  ;;  %v15112_v18 = vld [vmem:[#allocation7 + $0x254] sm:$0xf0]  ;;  %v11054_v19 = vor.u32 %v15113_v7, %v11051_v9  ;;  %v15106_v1 = vld [vmem:[#allocation7 + $0x224] sm:$0xf0] }
 0x128   : > { %1343 = vst [vmem:[#allocation3 + $0x10] sm:$0x11] %v1342_v21  ;;  %v1417_v23 = vunpack.c.l.b16 %v17234_v20  ;;  %v1418_v25 = vunpack.c.h.b16 %v17234_v20  ;;  %v11118_v21 = vor.u32 %v15129_v12, %v11115_v13  ;;  %v11081_v9 = vld [vmem:[#allocation7 + $0x2a0] sm:$0xf]  ;;  %v15122_v12 = vld [vmem:[#allocation7 + $0x2a4] sm:$0xf0] }
 0x129   : > { %v15105_v13 = vld [vmem:[#allocation7 + $0x224] sm:$0xf]  ;;  %v11185_v20 = vld [vmem:[#allocation10 + $0x170] sm:$0xf] }
 0x12a   : > { %v17244_v26 = vpack.c.b16 %v1417_v23, %v1415_v22  ;;  %v17248_v10 = vpack.c.b16 %v1418_v25, %v1416_v24  ;;  %v11105_v22 = vld [vmem:[#allocation7 + $0x2d0] sm:$0xf]  ;;  %v15128_v24 = vld [vmem:[#allocation7 + $0x2d4] sm:$0xf0] }
 0x12c   : > { %v1428_v11 = vshll.u32 %v17244_v26, 16  ;;  %v1440_v27 = vshll.u32 %v17248_v10, 16  ;;  %v1426_v46 = vshrl.u32 %v17244_v26, 16  ;;  %v1438_v48 = vshrl.u32 %v17248_v10, 16 }
 0x12e   : > { %v1430_v34 = vrot.slane %v1428_v11, 1  ;;  %v1442_v36 = vrot.slane %v1440_v27, 1  ;;  %v15111_v11 = vld [vmem:[#allocation7 + $0x254] sm:$0xf]  ;;  %v11043_v27 = vld [vmem:[#allocation7 + $0x258] sm:$0xf0] }
 0x12f   : > { %v1378_v28 = vld [vmem:[#allocation3 + $0x10] sm:$0x11]  ;;  %v11046_v42 = vor.u32 %v15111_v11, %v11043_v27 }
 0x130   : > { %v1419_v31 = vunpack.c.l.b16 %v1378_v28  ;;  %v1420_v32 = vunpack.c.h.b16 %v1378_v28  ;;  %v1431_v54 = vor.u32 %v1430_v34, %v1426_v46  ;;  %v1443_v56 = vor.u32 %v1442_v36, %v1438_v48  ;;  %v15127_v28 = vld [vmem:[#allocation7 + $0x2d4] sm:$0xf]  ;;  %v11033_v36 = vld [vmem:[#allocation7 + $0x240] sm:$0xf]  ;;  %v15126_v46 = vld [vmem:[#allocation7 + $0x2c4] sm:$0xf0] }
 0x131   : > { %v11106_v34 = vor.u32 %v15128_v24, %v11105_v22  ;;  %v11035_v48 = vld [vmem:[#allocation7 + $0x248] sm:$0xf0]  ;;  %v11034_v51 = vor.u32 %v15110_v41, %v11033_v36  ;;  %v11098_v52 = vor.u32 %v15126_v46, %v11097_v44  ;;  %v15104_v22 = vld [vmem:[#allocation7 + $0x214] sm:$0xf0]  ;;  %v15119_v36 = vld [vmem:[#allocation7 + $0x294] sm:$0xf] }
 0x132   : > { %v17252_v33 = vpack.c.b16 %v1419_v31, %v1419_v31  ;;  %v17254_v35 = vpack.c.b16 %v1420_v32, %v1420_v32  ;;  %v11107_v31 = vld [vmem:[#allocation7 + $0x2d8] sm:$0xf0]  ;;  %v11042_v32 = vor.u32 %v15112_v18, %v11041_v17  ;;  %v11083_v17 = vld [vmem:[#allocation7 + $0x2a8] sm:$0xf0]  ;;  %v15102_v44 = vld [vmem:[#allocation7 + $0x204] sm:$0xf0] }
 0x133   : > { %v11110_v43 = vor.u32 %v15127_v28, %v11107_v31  ;;  %v1885_v24 = vld [vmem:[#allocation3] sm:$0xee]  ;;  %v15120_v31 = vld [vmem:[#allocation7 + $0x294] sm:$0xf0]  ;;  %v11075_v41 = vld [vmem:[#allocation7 + $0x298] sm:$0xf0] }
 0x134   : > { %v1433_v47 = vshll.u32 %v17252_v33, 16  ;;  %v1445_v49 = vshll.u32 %v17254_v35, 16  ;;  %v11073_v28 = vld [vmem:[#allocation7 + $0x290] sm:$0xf]  ;;  %v1921_v46 = vunpack.c.h.b16 %v1885_v24 }
 0x136   : > { %v1435_v55 = vrot.slane %v1433_v47, 1  ;;  %v1447_v57 = vrot.slane %v1445_v49, 1  ;;  %v15109_v47 = vld [vmem:[#allocation7 + $0x244] sm:$0xf] }
 0x137   : > { %v15125_v49 = vld [vmem:[#allocation7 + $0x2c4] sm:$0xf] }
 0x138   : > { %v1436_v61 = vsel %vm1074_vm9, %v1431_v54, %v1435_v55  ;;  %v1448_v62 = vsel %vm1074_vm9, %v1443_v56, %v1447_v57  ;;  %v15108_v54 = vld [vmem:[#allocation7 + $0x234] sm:$0xf0]  ;;  %v11038_v55 = vor.u32 %v15109_v47, %v11035_v48  ;;  %v11102_v56 = vor.u32 %v15125_v49, %v11099_v50  ;;  %v11089_v57 = vld [vmem:[#allocation7 + $0x2b0] sm:$0xf]  ;;  %v11065_v49 = vld [vmem:[#allocation7 + $0x280] sm:$0xf] }
 0x139   : > { %1619 = vmatmul.bf16.vlgmr.msrb.gmra.mxu2 %v1436_v61  ;;  %1633 = vmatmul.bf16.vlgmr.msrb.gmra.mxu3 %v1448_v62  ;;  %v11078_v48 = vor.u32 %v15119_v36, %v11075_v41  ;;  %v15118_v50 = vld [vmem:[#allocation7 + $0x284] sm:$0xf0]  ;;  %v11243_v36 = vld [vmem:[#allocation10 + $0x1e8] sm:$0xf0] }
 0x13a   : > { %1647 = vmatmul.bf16.vlgmr.msra.gmra.mxu0 %v1436_v61  ;;  %1661 = vmatmul.bf16.vlgmr.msra.gmra.mxu1 %v1448_v62  ;;  %v11091_v61 = vld [vmem:[#allocation7 + $0x2b8] sm:$0xf0]  ;;  %v11026_v62 = vor.u32 %v15108_v54, %v11025_v53  ;;  %v15117_v53 = vld [vmem:[#allocation7 + $0x284] sm:$0xf]  ;;  %v11067_v54 = vld [vmem:[#allocation7 + $0x288] sm:$0xf0] }
 0x13b   : > { %2092 = vmatpush.bf16.msrb.mxu2 %v11058_v39  ;;  %2106 = vmatpush.bf16.msrb.mxu3 %v11122_v40  ;;  %v15124_v39 = vld [vmem:[#allocation7 + $0x2b4] sm:$0xf0]  ;;  %v15107_v40 = vld [vmem:[#allocation7 + $0x234] sm:$0xf]  ;;  %v11094_v7 = vor.u32 %v15123_v60, %v11091_v61  ;;  %v1925_v60 = vrot.slane %v17252_v33, 1  ;;  %v1928_v61 = vrot.slane %v17254_v35, 1 }
 0x13c   : > { %2120 = vmatpush.bf16.msra.mxu0 %v11062_v63  ;;  %2134 = vmatpush.bf16.msra.mxu1 %v11126_v0  ;;  %v11090_v63 = vor.u32 %v15124_v39, %v11089_v57  ;;  %v11017_v0 = vld [vmem:[#allocation7 + $0x220] sm:$0xf]  ;;  %v11030_v2 = vor.u32 %v15107_v40, %v11027_v59  ;;  %v11066_v57 = vor.u32 %v15118_v50, %v11065_v49  ;;  %v15179_v35 = vld [vmem:[#allocation10 + $0x174] sm:$0xf]  ;;  %v11171_v50 = vld [vmem:[#allocation10 + $0x158] sm:$0xf0] }
 0x13d   : > { %v11018_v18 = vor.u32 %v15106_v1, %v11017_v0  ;;  %v1923_v39 = vpack.c.b16 %v1418_v25, %v1921_v46  ;;  %v11070_v59 = vor.u32 %v15117_v53, %v11067_v54  ;;  %v15180_v25 = vld [vmem:[#allocation10 + $0x174] sm:$0xf0]  ;;  %v11249_v1 = vld [vmem:[#allocation10 + $0x1f0] sm:$0xf]  ;;  %v15175_v46 = vld [vmem:[#allocation10 + $0x154] sm:$0xf] }
 0x13e   : > { %v11186_v33 = vor.u32 %v15180_v25, %v11185_v20  ;;  %v11235_v53 = vld [vmem:[#allocation10 + $0x1d8] sm:$0xf0]  ;;  %v11227_v20 = vld [vmem:[#allocation10 + $0x1c8] sm:$0xf0] }
 0x13f   : > { %2093 = vmatpush.bf16.msrb.mxu2 %v11050_v14  ;;  %2107 = vmatpush.bf16.msrb.mxu3 %v11114_v16  ;;  %v11019_v14 = vld [vmem:[#allocation7 + $0x228] sm:$0xf0]  ;;  %v15121_v16 = vld [vmem:[#allocation7 + $0x2a4] sm:$0xf] }
 0x140   : > { %2121 = vmatpush.bf16.msra.mxu0 %v11054_v19  ;;  %2135 = vmatpush.bf16.msra.mxu1 %v11118_v21  ;;  %v11082_v19 = vor.u32 %v15122_v12, %v11081_v9  ;;  %v11009_v21 = vld [vmem:[#allocation7 + $0x210] sm:$0xf]  ;;  %v11022_v11 = vor.u32 %v15105_v13, %v11019_v14  ;;  %v11086_v27 = vor.u32 %v15121_v16, %v11083_v17  ;;  %v15195_v13 = vld [vmem:[#allocation10 + $0x1f4] sm:$0xf]  ;;  %v11251_v14 = vld [vmem:[#allocation10 + $0x1f8] sm:$0xf0] }
 0x141   : > { %v11254_v16 = vor.u32 %v15195_v13, %v11251_v14  ;;  %v11177_v17 = vld [vmem:[#allocation10 + $0x160] sm:$0xf] }
 0x143   : > { %2094 = vmatpush.bf16.msrb.mxu2 %v11042_v32  ;;  %2108 = vmatpush.bf16.msrb.mxu3 %v11106_v34  ;;  %v15103_v32 = vld [vmem:[#allocation7 + $0x214] sm:$0xf]  ;;  %v11011_v34 = vld [vmem:[#allocation7 + $0x218] sm:$0xf0] }
 0x144   : > { %2122 = vmatpush.bf16.msra.mxu0 %v11046_v42  ;;  %2136 = vmatpush.bf16.msra.mxu1 %v11110_v43  ;;  %v11074_v42 = vor.u32 %v15120_v31, %v11073_v28  ;;  %v11001_v43 = vld [vmem:[#allocation7 + $0x200] sm:$0xf]  ;;  %v11014_v47 = vor.u32 %v15103_v32, %v11011_v34  ;;  %v11179_v28 = vld [vmem:[#allocation10 + $0x168] sm:$0xf0]  ;;  %v15193_v34 = vld [vmem:[#allocation10 + $0x1e4] sm:$0xf] }
 0x145   : > { %v11246_v41 = vor.u32 %v15193_v34, %v11243_v36  ;;  %v15186_v36 = vld [vmem:[#allocation10 + $0x1a4] sm:$0xf0] }
 0x147   : > { %2095 = vmatpush.bf16.msrb.mxu2 %v11034_v51  ;;  %2109 = vmatpush.bf16.msrb.mxu3 %v11098_v52  ;;  %v15101_v51 = vld [vmem:[#allocation7 + $0x204] sm:$0xf]  ;;  %v11003_v52 = vld [vmem:[#allocation7 + $0x208] sm:$0xf0] }
 0x148   : > { %2123 = vmatpush.bf16.msra.mxu0 %v11038_v55  ;;  %2137 = vmatpush.bf16.msra.mxu1 %v11102_v56  ;;  %v11002_v56 = vor.u32 %v15102_v44, %v11001_v43  ;;  %v11006_v40 = vor.u32 %v15101_v51, %v11003_v52  ;;  %v15192_v44 = vld [vmem:[#allocation10 + $0x1d4] sm:$0xf0]  ;;  %v15191_v51 = vld [vmem:[#allocation10 + $0x1d4] sm:$0xf]  ;;  %v11174_v52 = vor.u32 %v15175_v46, %v11171_v50 }
 0x149   : > { %1837 = vmatmul.bf16.vlgmr.msra.gmra.mxu2 %v17244_v26  ;;  %1851 = vmatmul.bf16.vlgmr.msra.gmra.mxu3 %v17248_v10  ;;  %v11238_v54 = vor.u32 %v15191_v51, %v11235_v53  ;;  %v15168_v50 = vld [vmem:[#allocation10 + $0x114] sm:$0xf0]  ;;  %v11201_v51 = vld [vmem:[#allocation10 + $0x190] sm:$0xf] }
 0x14a   : > { %1865 = vmatmul.bf16.vlgmr.msrb.gmra.mxu0 %v17244_v26  ;;  %1879 = vmatmul.bf16.vlgmr.msrb.gmra.mxu1 %v17248_v10  ;;  %v1920_v26 = vunpack.c.l.b16 %v1885_v24  ;;  %v11010_v10 = vor.u32 %v15104_v22, %v11009_v21  ;;  %v15184_v53 = vld [vmem:[#allocation10 + $0x194] sm:$0xf0] }
 0x14b   : > { %2096 = vmatpush.bf16.msrb.mxu2 %v11026_v62  ;;  %2110 = vmatpush.bf16.msrb.mxu3 %v11090_v63  ;;  %v1927_v63 = vrot.slane %v1923_v39, 1 }
 0x14c   : > { %2124 = vmatpush.bf16.msra.mxu0 %v11030_v2  ;;  %2138 = vmatpush.bf16.msra.mxu1 %v11094_v7  ;;  %v1922_v55 = vpack.c.b16 %v1417_v23, %v1920_v26  ;;  %v15196_v2 = vld [vmem:[#allocation10 + $0x1f4] sm:$0xf0]  ;;  %v11187_v7 = vld [vmem:[#allocation10 + $0x178] sm:$0xf0]  ;;  %v11169_v26 = vld [vmem:[#allocation10 + $0x150] sm:$0xf] }
 0x14d   : > { %v1929_v0 = vsel %vm1220_vm10, %v1927_v63, %v1928_v61  ;;  %v11250_v9 = vor.u32 %v15196_v2, %v11249_v1  ;;  %v11190_v12 = vor.u32 %v15179_v35, %v11187_v7  ;;  %v15173_v61 = vld [vmem:[#allocation10 + $0x144] sm:$0xf]  ;;  %v11153_v1 = vld [vmem:[#allocation10 + $0x130] sm:$0xf]  ;;  %v15188_v7 = vld [vmem:[#allocation10 + $0x1b4] sm:$0xf0] }
 0x14e   : > { %v1924_v62 = vrot.slane %v1922_v55, 1  ;;  %v11161_v55 = vld [vmem:[#allocation10 + $0x140] sm:$0xf]  ;;  %v11217_v2 = vld [vmem:[#allocation10 + $0x1b0] sm:$0xf] }
 0x14f   : > { %2097 = vmatpush.bf16.msrb.mxu2 %v11018_v18  ;;  %2111 = vmatpush.bf16.msrb.mxu3 %v11082_v19  ;;  %v15178_v18 = vld [vmem:[#allocation10 + $0x164] sm:$0xf0]  ;;  %v11241_v19 = vld [vmem:[#allocation10 + $0x1e0] sm:$0xf] }
 0x150   : > { %2125 = vmatpush.bf16.msra.mxu0 %v11022_v11  ;;  %2139 = vmatpush.bf16.msra.mxu1 %v11086_v27  ;;  %v1926_v23 = vsel %vm1220_vm10, %v1924_v62, %v1925_v60  ;;  %v11178_v24 = vor.u32 %v15178_v18, %v11177_v17  ;;  %v15194_v11 = vld [vmem:[#allocation10 + $0x1e4] sm:$0xf0]  ;;  %v15177_v27 = vld [vmem:[#allocation10 + $0x164] sm:$0xf]  ;;  %v11163_v62 = vld [vmem:[#allocation10 + $0x148] sm:$0xf0] }
 0x151   : > { %v11242_v31 = vor.u32 %v15194_v11, %v11241_v19  ;;  %v11182_v32 = vor.u32 %v15177_v27, %v11179_v28  ;;  %v15190_v60 = vld [vmem:[#allocation10 + $0x1c4] sm:$0xf0]  ;;  %v15187_v18 = vld [vmem:[#allocation10 + $0x1b4] sm:$0xf]  ;;  %v11219_v19 = vld [vmem:[#allocation10 + $0x1b8] sm:$0xf0] }
 0x152   : > { %v11145_v11 = vld [vmem:[#allocation10 + $0x120] sm:$0xf]  ;;  %v15170_v27 = vld [vmem:[#allocation10 + $0x124] sm:$0xf0] }
 0x153   : > { %2098 = vmatpush.bf16.msrb.mxu2 %v11010_v10  ;;  %2112 = vmatpush.bf16.msrb.mxu3 %v11074_v42  ;;  %v15176_v10 = vld [vmem:[#allocation10 + $0x154] sm:$0xf0]  ;;  %v11233_v42 = vld [vmem:[#allocation10 + $0x1d0] sm:$0xf]  ;;  %v11209_v28 = vld [vmem:[#allocation10 + $0x1a0] sm:$0xf]  ;;  %v11146_v34 = vor.u32 %v15170_v27, %v11145_v11 }
 0x154   : > { %2126 = vmatpush.bf16.msra.mxu0 %v11014_v47  ;;  %2140 = vmatpush.bf16.msra.mxu1 %v11078_v48  ;;  %v11170_v43 = vor.u32 %v15176_v10, %v11169_v26  ;;  %v11234_v49 = vor.u32 %v15192_v44, %v11233_v42  ;;  %v11147_v26 = vld [vmem:[#allocation10 + $0x128] sm:$0xf0]  ;;  %v11210_v10 = vor.u32 %v15186_v36, %v11209_v28  ;;  %v15148_v11 = vld [vmem:[#allocation10 + $0x74] sm:$0xf0]  ;;  %v11377_v27 = vld [vmem:[#allocation10 + $0xf0] sm:$0xf] }
 0x155   : > { %v11211_v44 = vld [vmem:[#allocation10 + $0x1a8] sm:$0xf0]  ;;  %v15164_v28 = vld [vmem:[#allocation10 + $0xf4] sm:$0xf0] }
 0x156   : > { %v11378_v36 = vor.u32 %v15164_v28, %v11377_v27  ;;  %v15159_v27 = vld [vmem:[#allocation10 + $0xd4] sm:$0xf]  ;;  %v11363_v28 = vld [vmem:[#allocation10 + $0xd8] sm:$0xf0] }
 0x157   : > { %2099 = vmatpush.bf16.msrb.mxu2 %v11002_v56  ;;  %2113 = vmatpush.bf16.msrb.mxu3 %v11066_v57  ;;  %v15174_v56 = vld [vmem:[#allocation10 + $0x144] sm:$0xf0]  ;;  %v11225_v57 = vld [vmem:[#allocation10 + $0x1c0] sm:$0xf] }
 0x158   : > { %2127 = vmatpush.bf16.msra.mxu0 %v11006_v40  ;;  %2141 = vmatpush.bf16.msra.mxu1 %v11070_v59  ;;  %v11162_v59 = vor.u32 %v15174_v56, %v11161_v55  ;;  %v11226_v63 = vor.u32 %v15190_v60, %v11225_v57  ;;  %v11139_v55 = vld [vmem:[#allocation10 + $0x118] sm:$0xf0] }
 0x15a   : > { %2100 = vmatmul.bf16.vlgmr.msrb.gmra.mxu2 %v1926_v23  ;;  %2114 = vmatmul.bf16.vlgmr.msrb.gmra.mxu3 %v1929_v0 }
 0x15b   : > { %2128 = vmatmul.bf16.vlgmr.msra.gmra.mxu0 %v1926_v23  ;;  %2142 = vmatmul.bf16.vlgmr.msra.gmra.mxu1 %v1929_v0  ;;  %v11166_v23 = vor.u32 %v15173_v61, %v11163_v62  ;;  %v15189_v0 = vld [vmem:[#allocation10 + $0x1c4] sm:$0xf]  ;;  %v15183_v61 = vld [vmem:[#allocation10 + $0x194] sm:$0xf]  ;;  %v11203_v62 = vld [vmem:[#allocation10 + $0x198] sm:$0xf0] }
 0x15c   : > { %2461 = vmatpush.bf16.msra.mxu2 %v11186_v33  ;;  %2475 = vmatpush.bf16.msra.mxu3 %v11250_v9  ;;  %v11230_v25 = vor.u32 %v15189_v0, %v11227_v20  ;;  %v15172_v33 = vld [vmem:[#allocation10 + $0x134] sm:$0xf0]  ;;  %v15171_v9 = vld [vmem:[#allocation10 + $0x134] sm:$0xf]  ;;  %v15166_v0 = vld [vmem:[#allocation10 + $0x104] sm:$0xf0] }
 0x15d   : > { %2489 = vmatpush.bf16.msrb.mxu0 %v11190_v12  ;;  %2503 = vmatpush.bf16.msrb.mxu1 %v11254_v16  ;;  %v11154_v35 = vor.u32 %v15172_v33, %v11153_v1  ;;  %v11155_v12 = vld [vmem:[#allocation10 + $0x138] sm:$0xf0]  ;;  %v11218_v16 = vor.u32 %v15188_v7, %v11217_v2  ;;  %v11193_v20 = vld [vmem:[#allocation10 + $0x180] sm:$0xf]  ;;  %v15182_v2 = vld [vmem:[#allocation10 + $0x184] sm:$0xf0] }
 0x15e   : > { %v11158_v17 = vor.u32 %v15171_v9, %v11155_v12  ;;  %v11131_v7 = vld [vmem:[#allocation10 + $0x108] sm:$0xf0]  ;;  %v11194_v9 = vor.u32 %v15182_v2, %v11193_v20  ;;  %v11297_v20 = vld [vmem:[#allocation10 + $0x50] sm:$0xf] }
 0x15f   : > { %v11361_v2 = vld [vmem:[#allocation10 + $0xd0] sm:$0xf] }
 0x160   : > { %2462 = vmatpush.bf16.msra.mxu2 %v11178_v24  ;;  %2476 = vmatpush.bf16.msra.mxu3 %v11242_v31  ;;  %v11222_v24 = vor.u32 %v15187_v18, %v11219_v19  ;;  %v11313_v18 = vld [vmem:[#allocation10 + $0x70] sm:$0xf]  ;;  %v17305_v19 = vld [vmem:[%s18063_s30] sm:$0x3] }
 0x161   : > { %2490 = vmatpush.bf16.msrb.mxu0 %v11182_v32  ;;  %2504 = vmatpush.bf16.msrb.mxu1 %v11246_v41  ;;  %v15169_v41 = vld [vmem:[#allocation10 + $0x124] sm:$0xf] }
 0x162   : > { %v11150_v42 = vor.u32 %v15169_v41, %v11147_v26  ;;  %v15147_v41 = vld [vmem:[#allocation10 + $0x74] sm:$0xf]  ;;  %v11315_v26 = vld [vmem:[#allocation10 + $0x78] sm:$0xf0] }
 0x164   : > { %2463 = vmatpush.bf16.msra.mxu2 %v11170_v43  ;;  %2477 = vmatpush.bf16.msra.mxu3 %v11234_v49  ;;  %v15185_v43 = vld [vmem:[#allocation10 + $0x1a4] sm:$0xf]  ;;  %v11137_v49 = vld [vmem:[#allocation10 + $0x110] sm:$0xf] }
 0x165   : > { %2491 = vmatpush.bf16.msrb.mxu0 %v11174_v52  ;;  %2505 = vmatpush.bf16.msrb.mxu1 %v11238_v54  ;;  %v11214_v46 = vor.u32 %v15185_v43, %v11211_v44  ;;  %v11138_v52 = vor.u32 %v15168_v50, %v11137_v49  ;;  %v15167_v54 = vld [vmem:[#allocation10 + $0x114] sm:$0xf]  ;;  %v11379_v43 = vld [vmem:[#allocation10 + $0xf8] sm:$0xf0]  ;;  %v11305_v44 = vld [vmem:[#allocation10 + $0x60] sm:$0xf] }
 0x166   : > { %v11142_v60 = vor.u32 %v15167_v54, %v11139_v55  ;;  %v11369_v54 = vld [vmem:[#allocation10 + $0xe0] sm:$0xf]  ;;  %v15162_v55 = vld [vmem:[#allocation10 + $0xe4] sm:$0xf0] }
 0x168   : > { %2464 = vmatpush.bf16.msra.mxu2 %v11162_v59  ;;  %2478 = vmatpush.bf16.msra.mxu3 %v11226_v63  ;;  %v11202_v59 = vor.u32 %v15184_v53, %v11201_v51  ;;  %v11206_v63 = vor.u32 %v15183_v61, %v11203_v62  ;;  %v11307_v61 = vld [vmem:[#allocation10 + $0x68] sm:$0xf0]  ;;  %v15161_v62 = vld [vmem:[#allocation10 + $0xe4] sm:$0xf] }
 0x169   : > { %2492 = vmatpush.bf16.msrb.mxu0 %v11166_v23  ;;  %2506 = vmatpush.bf16.msrb.mxu1 %v11230_v25  ;;  %v11129_v23 = vld [vmem:[#allocation10 + $0x100] sm:$0xf] }
 0x16a   : > { %v11130_v33 = vor.u32 %v15166_v0, %v11129_v23 }
 0x16c   : > { %2465 = vmatpush.bf16.msra.mxu2 %v11154_v35  ;;  %2479 = vmatpush.bf16.msra.mxu3 %v11218_v16  ;;  %v15165_v35 = vld [vmem:[#allocation10 + $0x104] sm:$0xf] }
 0x16d   : > { %2493 = vmatpush.bf16.msrb.mxu0 %v11158_v17  ;;  %2507 = vmatpush.bf16.msrb.mxu1 %v11222_v24  ;;  %v11134_v12 = vor.u32 %v15165_v35, %v11131_v7  ;;  %v15181_v16 = vld [vmem:[#allocation10 + $0x184] sm:$0xf]  ;;  %v11195_v17 = vld [vmem:[#allocation10 + $0x188] sm:$0xf0] }
 0x16e   : > { %v11198_v24 = vor.u32 %v15181_v16, %v11195_v17  ;;  %v15160_v16 = vld [vmem:[#allocation10 + $0xd4] sm:$0xf0]  ;;  %v15143_v17 = vld [vmem:[#allocation10 + $0x54] sm:$0xf] }
 0x170   : > { %2466 = vmatpush.bf16.msra.mxu2 %v11146_v34  ;;  %2480 = vmatpush.bf16.msra.mxu3 %v11210_v10  ;;  %v11314_v34 = vor.u32 %v15148_v11, %v11313_v18  ;;  %v15163_v10 = vld [vmem:[#allocation10 + $0xf4] sm:$0xf]  ;;  %v11299_v18 = vld [vmem:[#allocation10 + $0x58] sm:$0xf0] }
 0x171   : > { %2494 = vmatpush.bf16.msrb.mxu0 %v11150_v42  ;;  %2508 = vmatpush.bf16.msrb.mxu1 %v11214_v46  ;;  %v11318_v42 = vor.u32 %v15147_v41, %v11315_v26  ;;  %v15146_v46 = vld [vmem:[#allocation10 + $0x64] sm:$0xf0]  ;;  %v11302_v11 = vor.u32 %v15143_v17, %v11299_v18  ;;  %v11353_v26 = vld [vmem:[#allocation10 + $0xc0] sm:$0xf] }
 0x172   : > { %v11306_v53 = vor.u32 %v15146_v46, %v11305_v44  ;;  %v15157_v44 = vld [vmem:[#allocation10 + $0xc4] sm:$0xf] }
 0x174   : > { %2467 = vmatpush.bf16.msra.mxu2 %v11138_v52  ;;  %2481 = vmatpush.bf16.msra.mxu3 %v11202_v59  ;;  %v11382_v52 = vor.u32 %v15163_v10, %v11379_v43  ;;  %v15145_v59 = vld [vmem:[#allocation10 + $0x64] sm:$0xf]  ;;  %v15158_v10 = vld [vmem:[#allocation10 + $0xc4] sm:$0xf0]  ;;  %v11291_v43 = vld [vmem:[#allocation10 + $0x48] sm:$0xf0] }
 0x175   : > { %2495 = vmatpush.bf16.msrb.mxu0 %v11142_v60  ;;  %2509 = vmatpush.bf16.msrb.mxu1 %v11206_v63  ;;  %v11370_v60 = vor.u32 %v15162_v55, %v11369_v54  ;;  %v11371_v63 = vld [vmem:[#allocation10 + $0xe8] sm:$0xf0] }
 0x176   : > { %v11374_v0 = vor.u32 %v15161_v62, %v11371_v63  ;;  %v11355_v54 = vld [vmem:[#allocation10 + $0xc8] sm:$0xf0]  ;;  %v11345_v62 = vld [vmem:[#allocation10 + $0xb0] sm:$0xf] }
 0x178   : > { %2468 = vmatpush.bf16.msra.mxu2 %v11130_v33  ;;  %2482 = vmatpush.bf16.msra.mxu3 %v11194_v9  ;;  %v15144_v33 = vld [vmem:[#allocation10 + $0x54] sm:$0xf0] }
 0x179   : > { %2496 = vmatpush.bf16.msrb.mxu0 %v11134_v12  ;;  %2510 = vmatpush.bf16.msrb.mxu1 %v11198_v24  ;;  %v11298_v12 = vor.u32 %v15144_v33, %v11297_v20  ;;  %v11283_v20 = vld [vmem:[#allocation10 + $0x38] sm:$0xf0]  ;;  %v15155_v33 = vld [vmem:[#allocation10 + $0xb4] sm:$0xf] }
 0x17c   : > { %2679 = vmatpush.bf16.msrb.mxu2 %v11314_v34  ;;  %2693 = vmatpush.bf16.msrb.mxu3 %v11378_v36  ;;  %v11289_v34 = vld [vmem:[#allocation10 + $0x40] sm:$0xf] }
 0x17d   : > { %2707 = vmatpush.bf16.msra.mxu0 %v11318_v42  ;;  %2721 = vmatpush.bf16.msra.mxu1 %v11382_v52  ;;  %v15141_v42 = vld [vmem:[#allocation10 + $0x44] sm:$0xf]  ;;  %v2154_v52 = vperm.slane %v17305_v19, 0 }
 0x180   : > { %2680 = vmatpush.bf16.msrb.mxu2 %v11306_v53  ;;  %2694 = vmatpush.bf16.msrb.mxu3 %v11370_v60  ;;  %v11281_v60 = vld [vmem:[#allocation10 + $0x30] sm:$0xf] }
 0x181   : > { %2722 = vmatpush.bf16.msra.mxu1 %v11374_v0  ;;  %v15139_v0 = vld [vmem:[#allocation10 + $0x34] sm:$0xf] }
 0x182   : > { %v11286_v18 = vor.u32 %v15139_v0, %v11283_v20 }
 0x184   : > { %2681 = vmatpush.bf16.msrb.mxu2 %v11298_v12 }
 0x1b7   : > { %v17274_v21 = vpop.f32.mrf.mxu0  ;;  %v17276_v22 = vpop.f32.mrf.mxu1 }
 0x1b8   : > { %v1663_v49 = vadd.f32 %v17276_v22, %v17274_v21  ;;  %v2155_v21 = vperm.slane %v17305_v19, 1  ;;  %v11310_v22 = vor.u32 %v15145_v59, %v11307_v61  ;;  %v11294_v59 = vor.u32 %v15141_v42, %v11291_v43  ;;  %v15140_v61 = vld [vmem:[#allocation10 + $0x34] sm:$0xf0] }
 0x1ba   : > { %2708 = vmatpush.bf16.msra.mxu0 %v11310_v22  ;;  %v15156_v22 = vld [vmem:[#allocation10 + $0xb4] sm:$0xf0] }
 0x1bb   : > { %v11346_v17 = vor.u32 %v15156_v22, %v11345_v62  ;;  %v11267_v62 = vld [vmem:[#allocation10 + $0x18] sm:$0xf0] }
 0x1bc   : > { %v17278_v47 = vpop.f32.mrf.mxu2  ;;  %v17280_v48 = vpop.f32.mrf.mxu3 }
 0x1bd   : > { %v1635_v35 = vadd.f32 %v17280_v48, %v17278_v47  ;;  %v11366_v47 = vor.u32 %v15159_v27, %v11363_v28  ;;  %v15142_v48 = vld [vmem:[#allocation10 + $0x44] sm:$0xf0] }
 0x1be   : > { %v11290_v53 = vor.u32 %v15142_v48, %v11289_v34  ;;  %2709 = vmatpush.bf16.msra.mxu0 %v11302_v11  ;;  %v11337_v11 = vld [vmem:[#allocation10 + $0xa0] sm:$0xf]  ;;  %v15154_v34 = vld [vmem:[#allocation10 + $0xa4] sm:$0xf0]  ;;  %v11339_v48 = vld [vmem:[#allocation10 + $0xa8] sm:$0xf0] }
 0x1bf   : > { %v17282_v39 = vpop.f32.mrf.mxu0  ;;  %v17284_v40 = vpop.f32.mrf.mxu1  ;;  %2723 = vmatpush.bf16.msra.mxu1 %v11366_v47  ;;  %v15153_v47 = vld [vmem:[#allocation10 + $0xa4] sm:$0xf] }
 0x1c0   : > { %v1665_v46 = vadd.f32 %v17284_v40, %v17282_v39  ;;  %v11358_v40 = vor.u32 %v15157_v44, %v11355_v54  ;;  %2682 = vmatpush.bf16.msrb.mxu2 %v11290_v53  ;;  %v15136_v53 = vld [vmem:[#allocation10 + $0x14] sm:$0xf0]  ;;  %v11329_v54 = vld [vmem:[#allocation10 + $0x90] sm:$0xf] }
 0x1c2   : > { %2710 = vmatpush.bf16.msra.mxu0 %v11294_v59  ;;  %v11342_v59 = vor.u32 %v15153_v47, %v11339_v48 }
 0x1c3   : > { %2724 = vmatpush.bf16.msra.mxu1 %v11358_v40 }
 0x1c4   : > { %v17286_v13 = vpop.f32.mrf.mxu2  ;;  %v17288_v14 = vpop.f32.mrf.mxu3 }
 0x1c6   : > { %2711 = vmatpush.bf16.msra.mxu0 %v11286_v18  ;;  %v11323_v18 = vld [vmem:[#allocation10 + $0x88] sm:$0xf0] }
 0x1c7   : > { %v17290_v31 = vpop.f32.mrf.mxu0  ;;  %v17292_v32 = vpop.f32.mrf.mxu1 }
 0x1c8   : > { %v1867_v23 = vadd.f32 %v17290_v31, %v1663_v49  ;;  %v11362_v31 = vor.u32 %v15160_v16, %v11361_v2  ;;  %v11347_v2 = vld [vmem:[#allocation10 + $0xb8] sm:$0xf0] }
 0x1c9   : > { %v11350_v28 = vor.u32 %v15155_v33, %v11347_v2  ;;  %v11257_v33 = vld [vmem:[#allocation10] sm:$0xf]  ;;  %v15134_v2 = vld [vmem:[#allocation10 + $0x4] sm:$0xf0] }
 0x1ca   : > { %v1881_v36 = vadd.f32 %v17292_v32, %v1867_v23  ;;  %2695 = vmatpush.bf16.msrb.mxu3 %v11362_v31  ;;  %v15138_v31 = vld [vmem:[#allocation10 + $0x24] sm:$0xf0] }
 0x1cb   : > { %2725 = vmatpush.bf16.msra.mxu1 %v11350_v28 }
 0x1cc   : > { %v17294_v56 = vpop.f32.mrf.mxu2  ;;  %v17296_v57 = vpop.f32.mrf.mxu3 }
 0x1cd   : > { %v1839_v41 = vadd.f32 %v17294_v56, %v1635_v35  ;;  %v11354_v56 = vor.u32 %v15158_v10, %v11353_v26  ;;  %v1637_v35 = vadd.f32 %v17288_v14, %v17286_v13 }
 0x1cf   : > { %v17298_v25 = vpop.f32.mrf.mxu0  ;;  %v17300_v1 = vpop.f32.mrf.mxu1  ;;  %v1853_v63 = vadd.f32 %v17296_v57, %v1839_v41  ;;  %v11282_v57 = vor.u32 %v15140_v61, %v11281_v60  ;;  %2696 = vmatpush.bf16.msrb.mxu3 %v11354_v56  ;;  %v11275_v41 = vld [vmem:[#allocation10 + $0x28] sm:$0xf0]  ;;  %v15152_v60 = vld [vmem:[#allocation10 + $0x94] sm:$0xf0]  ;;  %v15135_v61 = vld [vmem:[#allocation10 + $0x14] sm:$0xf]  ;;  %2726 = vmatpush.bf16.msra.mxu1 %v11342_v59 }
 0x1d0   : > { %v1869_v23 = vadd.f32 %v17298_v25, %v1665_v46  ;;  %v11330_v20 = vor.u32 %v15152_v60, %v11329_v54 }
 0x1d1   : > { %2683 = vmatpush.bf16.msrb.mxu2 %v11282_v57  ;;  %v15150_v57 = vld [vmem:[#allocation10 + $0x84] sm:$0xf0] }
 0x1d2   : > { %v1883_v27 = vadd.f32 %v17300_v1, %v1869_v23  ;;  %v11338_v1 = vor.u32 %v15154_v34, %v11337_v11  ;;  %v11331_v23 = vld [vmem:[#allocation10 + $0x98] sm:$0xf0] }
 0x1d3   : > { %2697 = vmatpush.bf16.msrb.mxu3 %v11346_v17  ;;  %v15149_v17 = vld [vmem:[#allocation10 + $0x84] sm:$0xf] }
 0x1d4   : > { %v17309_v50 = vpop.f32.mrf.mxu2  ;;  %v17311_v51 = vpop.f32.mrf.mxu3  ;;  %v11326_v28 = vor.u32 %v15149_v17, %v11323_v18  ;;  %v11433_v17 = vld [vmem:[#allocation10 + $0x260] sm:$0xf]  ;;  %v15210_v18 = vld [vmem:[#allocation10 + $0x264] sm:$0xf0] }
 0x1d5   : > { %v1841_v13 = vadd.f32 %v17309_v50, %v1637_v35  ;;  %v11321_v35 = vld [vmem:[#allocation10 + $0x80] sm:$0xf] }
 0x1d7   : > { %2698 = vmatpush.bf16.msrb.mxu3 %v11338_v1 }
 0x1d8   : > { %v2129_v7 = vpop.f32.mrf.mxu0  ;;  %v2143_v9 = vpop.f32.mrf.mxu1 }
 0x1d9   : > { %v2144_v24 = vadd.f32 %v2143_v9, %v2129_v7 }
 0x1db   : > { %v2149_v49 = vadd.f32 %v2144_v24, %v1881_v36  ;;  %v11273_v24 = vld [vmem:[#allocation10 + $0x20] sm:$0xf]  ;;  %v15137_v36 = vld [vmem:[#allocation10 + $0x24] sm:$0xf]  ;;  %2699 = vmatpush.bf16.msrb.mxu3 %v11330_v20 }
 0x1dc   : > { %v11274_v43 = vor.u32 %v15138_v31, %v11273_v24  ;;  %v11278_v50 = vor.u32 %v15137_v36, %v11275_v41 }
 0x1dd   : > { %v2101_v32 = vpop.f32.mrf.mxu2  ;;  %v2115_v55 = vpop.f32.mrf.mxu3  ;;  %v2159_v7 = vadd.f32 %v2155_v21, %v2149_v49  ;;  %v11265_v49 = vld [vmem:[#allocation10 + $0x10] sm:$0xf] }
 0x1de   : > { %v2116_v39 = vadd.f32 %v2115_v55, %v2101_v32  ;;  %v1855_v32 = vadd.f32 %v17311_v51, %v1841_v13  ;;  %2684 = vmatpush.bf16.msrb.mxu2 %v11274_v43  ;;  %v11266_v0 = vor.u32 %v15136_v53, %v11265_v49  ;;  %2712 = vmatpush.bf16.msra.mxu0 %v11278_v50 }
 0x1df   : > { %v2163_v26 = vmax.f32 %v2159_v7, 0.0  ;;  %v11270_v51 = vor.u32 %v15135_v61, %v11267_v62  ;;  %v11322_v13 = vor.u32 %v15150_v57, %v11321_v35  ;;  %v15227_v35 = vld [vmem:[#allocation10 + $0x2f4] sm:$0xf] }
 0x1e0   : > { %v2148_v9 = vadd.f32 %v2116_v39, %v1853_v63  ;;  %v2131_v12 = vpop.f32.mrf.mxu0  ;;  %v2145_v16 = vpop.f32.mrf.mxu1  ;;  %v15151_v63 = vld [vmem:[#allocation10 + $0x94] sm:$0xf] }
 0x1e1   : > { %v2146_v25 = vadd.f32 %v2145_v16, %v2131_v12  ;;  %v11334_v16 = vor.u32 %v15151_v63, %v11331_v23  ;;  %2700 = vmatpush.bf16.msrb.mxu3 %v11322_v13  ;;  %v11441_v63 = vld [vmem:[#allocation10 + $0x270] sm:$0xf]  ;;  %v15212_v23 = vld [vmem:[#allocation10 + $0x274] sm:$0xf0]  ;;  %v11497_v13 = vld [vmem:[#allocation10 + $0x2e0] sm:$0xf] }
 0x1e2   : > { %v2158_v14 = vadd.f32 %v2154_v52, %v2148_v9  ;;  %2685 = vmatpush.bf16.msrb.mxu2 %v11266_v0  ;;  %2713 = vmatpush.bf16.msra.mxu0 %v11270_v51 }
 0x1e3   : > { %v2151_v42 = vadd.f32 %v2146_v25, %v1883_v27  ;;  %v15133_v25 = vld [vmem:[#allocation10 + $0x4] sm:$0xf]  ;;  %v11258_v27 = vor.u32 %v15134_v2, %v11257_v33  ;;  %2727 = vmatpush.bf16.msra.mxu1 %v11334_v16  ;;  %v15211_v33 = vld [vmem:[#allocation10 + $0x274] sm:$0xf]  ;;  %v11443_v2 = vld [vmem:[#allocation10 + $0x278] sm:$0xf0] }
 0x1e4   : > { %v2162_v10 = vmax.f32 %v2158_v14, 0.0 }
 0x1e5   : > { %v2103_v44 = vpop.f32.mrf.mxu2  ;;  %v2117_v46 = vpop.f32.mrf.mxu3  ;;  %v2161_v40 = vadd.f32 %v2155_v21, %v2151_v42  ;;  %v11259_v21 = vld [vmem:[#allocation10 + $0x8] sm:$0xf0] }
 0x1e6   : > { %v2166_v55 = vpack.c.bf16 %v2163_v26, %v2162_v10  ;;  %v2118_v56 = vadd.f32 %v2117_v46, %v2103_v44  ;;  %v11262_v14 = vor.u32 %v15133_v25, %v11259_v21  ;;  %2686 = vmatpush.bf16.msrb.mxu2 %v11258_v27  ;;  %v2191_v10 = vld [vmem:[#allocation3 + $0x10] sm:$0x11]  ;;  %v11442_v25 = vor.u32 %v15212_v23, %v11441_v63  ;;  %v15206_v63 = vld [vmem:[#allocation10 + $0x244] sm:$0xf0] }
 0x1e7   : > { %v2165_v31 = vmax.f32 %v2161_v40, 0.0  ;;  %2728 = vmatpush.bf16.msra.mxu1 %v11326_v28  ;;  %v15228_v40 = vld [vmem:[#allocation10 + $0x2f4] sm:$0xf0]  ;;  %v11435_v28 = vld [vmem:[#allocation10 + $0x268] sm:$0xf0] }
 0x1e8   : > { %v2169_v39 = vshrl.u32 %v2166_v55, 16  ;;  %v2150_v22 = vadd.f32 %v2118_v56, %v1855_v32  ;;  %v2172_v9 = vshll.u32 %v2166_v55, 16  ;;  %2714 = vmatpush.bf16.msra.mxu0 %v11262_v14  ;;  %v15226_v14 = vld [vmem:[#allocation10 + $0x2e4] sm:$0xf0] }
 0x1ea   : > { %v2171_v7 = vrot.slane %v2169_v39, 7  ;;  %v2160_v12 = vadd.f32 %v2154_v52, %v2150_v22  ;;  %v11505_v39 = vld [vmem:[#allocation10 + $0x2f0] sm:$0xf] }
 0x1eb   : > { %v11506_v21 = vor.u32 %v15228_v40, %v11505_v39  ;;  %v11481_v40 = vld [vmem:[#allocation10 + $0x2c0] sm:$0xf] }
 0x1ec   : > { %v2174_v24 = vor.u32 %v2172_v9, %v2171_v7  ;;  %v2164_v11 = vmax.f32 %v2160_v12, 0.0  ;;  %v2175_v47 = vrot.slane %v2171_v7, 4  ;;  %v11507_v7 = vld [vmem:[#allocation10 + $0x2f8] sm:$0xf0] }
 0x1ed   : > { %v11510_v27 = vor.u32 %v15227_v35, %v11507_v7  ;;  %v11409_v7 = vld [vmem:[#allocation10 + $0x230] sm:$0xf] }
 0x1ee   : > { %v17340_v19 = vsel %vm17212_vm0, %v2174_v24, %v17220_v45  ;;  %v2167_v52 = vpack.c.bf16 %v2165_v31, %v2164_v11  ;;  %v11446_v11 = vor.u32 %v15211_v33, %v11443_v2  ;;  %v11483_v33 = vld [vmem:[#allocation10 + $0x2c8] sm:$0xf0] }
 0x1ef   : > { %2189 = vst [vmem:[#allocation3] sm:$0xff] %v17340_v19  ;;  %v2265_v43 = vunpack.c.l.b16 %v17340_v19  ;;  %v2266_v46 = vunpack.c.h.b16 %v17340_v19 }
 0x1f0   : > { %v2177_v34 = vshrl.u32 %v2167_v52, 16  ;;  %v2180_v41 = vshll.u32 %v2167_v52, 16  ;;  %v15209_v52 = vld [vmem:[#allocation10 + $0x264] sm:$0xf] }
 0x1f2   : > { %v2179_v36 = vrot.slane %v2177_v34, 7  ;;  %v15225_v34 = vld [vmem:[#allocation10 + $0x2e4] sm:$0xf] }
 0x1f4   : > { %v2182_v48 = vor.u32 %v2180_v41, %v2179_v36  ;;  %v2184_v26 = vrot.slane %v2179_v36, 4  ;;  %v11499_v36 = vld [vmem:[#allocation10 + $0x2e8] sm:$0xf0]  ;;  %v11434_v41 = vor.u32 %v15210_v18, %v11433_v17  ;;  %v11411_v17 = vld [vmem:[#allocation10 + $0x238] sm:$0xf0] }
 0x1f5   : > { %v15219_v18 = vld [vmem:[#allocation10 + $0x2b4] sm:$0xf] }
 0x1f6   : > { %v17345_v45 = vsel %vm17122_vm6, %v2175_v47, %v2182_v48  ;;  %v2192_v42 = vsel %vm17228_vm8, %v2184_v26, %v2191_v10  ;;  %v11498_v47 = vor.u32 %v15226_v14, %v11497_v13  ;;  %v11425_v48 = vld [vmem:[#allocation10 + $0x250] sm:$0xf]  ;;  %v15208_v26 = vld [vmem:[#allocation10 + $0x254] sm:$0xf0]  ;;  %v11438_v10 = vor.u32 %v15209_v52, %v11435_v28  ;;  %v15202_v13 = vld [vmem:[#allocation10 + $0x224] sm:$0xf0] }
 0x1f7   : > { %2193 = vst [vmem:[#allocation3 + $0x10] sm:$0x11] %v2192_v42  ;;  %v2267_v44 = vunpack.c.l.b16 %v17345_v45  ;;  %v2268_v1 = vunpack.c.h.b16 %v17345_v45  ;;  %v11502_v42 = vor.u32 %v15225_v34, %v11499_v36  ;;  %v11465_v28 = vld [vmem:[#allocation10 + $0x2a0] sm:$0xf]  ;;  %v15218_v34 = vld [vmem:[#allocation10 + $0x2a4] sm:$0xf0] }
 0x1f8   : > { %v15201_v36 = vld [vmem:[#allocation10 + $0x224] sm:$0xf]  ;;  %v11577_v45 = vld [vmem:[#allocation12 + $0x170] sm:$0xf] }
 0x1f9   : > { %v17355_v50 = vpack.c.b16 %v2267_v44, %v2265_v43  ;;  %v17359_v49 = vpack.c.b16 %v2268_v1, %v2266_v46  ;;  %v11489_v43 = vld [vmem:[#allocation10 + $0x2d0] sm:$0xf]  ;;  %v15224_v46 = vld [vmem:[#allocation10 + $0x2d4] sm:$0xf0] }
 0x1fb   : > { %v2278_v53 = vshll.u32 %v17355_v50, 16  ;;  %v2290_v54 = vshll.u32 %v17359_v49, 16  ;;  %v2276_v22 = vshrl.u32 %v17355_v50, 16  ;;  %v2288_v20 = vshrl.u32 %v17359_v49, 16 }
 0x1fd   : > { %v2280_v60 = vrot.slane %v2278_v53, 1  ;;  %v2292_v62 = vrot.slane %v2290_v54, 1  ;;  %v15207_v53 = vld [vmem:[#allocation10 + $0x254] sm:$0xf]  ;;  %v11427_v54 = vld [vmem:[#allocation10 + $0x258] sm:$0xf0] }
 0x1fe   : > { %v2228_v32 = vld [vmem:[#allocation3 + $0x10] sm:$0x11]  ;;  %v11430_v23 = vor.u32 %v15207_v53, %v11427_v54 }
 0x1ff   : > { %v2269_v55 = vunpack.c.l.b16 %v2228_v32  ;;  %v2270_v56 = vunpack.c.h.b16 %v2228_v32  ;;  %v2281_v9 = vor.u32 %v2280_v60, %v2276_v22  ;;  %v2293_v16 = vor.u32 %v2292_v62, %v2288_v20  ;;  %v15223_v32 = vld [vmem:[#allocation10 + $0x2d4] sm:$0xf]  ;;  %v11417_v62 = vld [vmem:[#allocation10 + $0x240] sm:$0xf]  ;;  %v15222_v22 = vld [vmem:[#allocation10 + $0x2c4] sm:$0xf0] }
 0x200   : > { %v11490_v60 = vor.u32 %v15224_v46, %v11489_v43  ;;  %v11419_v20 = vld [vmem:[#allocation10 + $0x248] sm:$0xf0]  ;;  %v11418_v2 = vor.u32 %v15206_v63, %v11417_v62  ;;  %v11482_v35 = vor.u32 %v15222_v22, %v11481_v40  ;;  %v15200_v43 = vld [vmem:[#allocation10 + $0x214] sm:$0xf0]  ;;  %v15215_v62 = vld [vmem:[#allocation10 + $0x294] sm:$0xf] }
 0x201   : > { %v17363_v59 = vpack.c.b16 %v2269_v55, %v2269_v55  ;;  %v17365_v61 = vpack.c.b16 %v2270_v56, %v2270_v56  ;;  %v11491_v55 = vld [vmem:[#allocation10 + $0x2d8] sm:$0xf0]  ;;  %v11426_v56 = vor.u32 %v15208_v26, %v11425_v48  ;;  %v11467_v48 = vld [vmem:[#allocation10 + $0x2a8] sm:$0xf0]  ;;  %v15198_v40 = vld [vmem:[#allocation10 + $0x204] sm:$0xf0] }
 0x202   : > { %v11494_v39 = vor.u32 %v15223_v32, %v11491_v55  ;;  %v2735_v46 = vld [vmem:[#allocation3] sm:$0xee]  ;;  %v15216_v55 = vld [vmem:[#allocation10 + $0x294] sm:$0xf0]  ;;  %v11459_v63 = vld [vmem:[#allocation10 + $0x298] sm:$0xf0] }
 0x203   : > { %v2283_v0 = vshll.u32 %v17363_v59, 16  ;;  %v2295_v51 = vshll.u32 %v17365_v61, 16  ;;  %v11457_v32 = vld [vmem:[#allocation10 + $0x290] sm:$0xf]  ;;  %v2771_v22 = vunpack.c.h.b16 %v2735_v46 }
 0x205   : > { %v2285_v12 = vrot.slane %v2283_v0, 1  ;;  %v2297_v57 = vrot.slane %v2295_v51, 1  ;;  %v15205_v0 = vld [vmem:[#allocation10 + $0x244] sm:$0xf] }
 0x206   : > { %v15221_v51 = vld [vmem:[#allocation10 + $0x2c4] sm:$0xf] }
 0x207   : > { %v2286_v24 = vsel %vm1074_vm9, %v2281_v9, %v2285_v12  ;;  %v2298_v31 = vsel %vm1074_vm9, %v2293_v16, %v2297_v57  ;;  %v15204_v9 = vld [vmem:[#allocation10 + $0x234] sm:$0xf0]  ;;  %v11422_v12 = vor.u32 %v15205_v0, %v11419_v20  ;;  %v11486_v16 = vor.u32 %v15221_v51, %v11483_v33  ;;  %v11473_v57 = vld [vmem:[#allocation10 + $0x2b0] sm:$0xf]  ;;  %v11449_v51 = vld [vmem:[#allocation10 + $0x280] sm:$0xf] }
 0x208   : > { %2469 = vmatmul.bf16.vlgmr.msra.gmra.mxu2 %v2286_v24  ;;  %2483 = vmatmul.bf16.vlgmr.msra.gmra.mxu3 %v2298_v31  ;;  %v11462_v20 = vor.u32 %v15215_v62, %v11459_v63  ;;  %v15214_v33 = vld [vmem:[#allocation10 + $0x284] sm:$0xf0]  ;;  %vm6320_vm9 = vcmask 56320  }
 0x209   : > { %2497 = vmatmul.bf16.vlgmr.msrb.gmra.mxu0 %v2286_v24  ;;  %2511 = vmatmul.bf16.vlgmr.msrb.gmra.mxu1 %v2298_v31  ;;  %v11475_v24 = vld [vmem:[#allocation10 + $0x2b8] sm:$0xf0]  ;;  %v11410_v31 = vor.u32 %v15204_v9, %v11409_v7  ;;  %v15213_v7 = vld [vmem:[#allocation10 + $0x284] sm:$0xf]  ;;  %v11451_v9 = vld [vmem:[#allocation10 + $0x288] sm:$0xf0] }
 0x20a   : > { %2942 = vmatpush.bf16.msra.mxu2 %v11442_v25  ;;  %2956 = vmatpush.bf16.msra.mxu3 %v11506_v21  ;;  %v15220_v25 = vld [vmem:[#allocation10 + $0x2b4] sm:$0xf0]  ;;  %v15203_v21 = vld [vmem:[#allocation10 + $0x234] sm:$0xf]  ;;  %v11478_v52 = vor.u32 %v15219_v18, %v11475_v24  ;;  %v2775_v18 = vrot.slane %v17363_v59, 1  ;;  %v2778_v24 = vrot.slane %v17365_v61, 1 }
 0x20b   : > { %2970 = vmatpush.bf16.msrb.mxu0 %v11446_v11  ;;  %2984 = vmatpush.bf16.msrb.mxu1 %v11510_v27  ;;  %v11474_v11 = vor.u32 %v15220_v25, %v11473_v57  ;;  %v11401_v27 = vld [vmem:[#allocation10 + $0x220] sm:$0xf]  ;;  %v11414_v14 = vor.u32 %v15203_v21, %v11411_v17  ;;  %v11450_v57 = vor.u32 %v15214_v33, %v11449_v51  ;;  %v15293_v61 = vld [vmem:[#allocation12 + $0x1f4] sm:$0xf]  ;;  %v15292_v62 = vld [vmem:[#allocation12 + $0x1e4] sm:$0xf0] }
 0x20c   : > { %v11402_v26 = vor.u32 %v15202_v13, %v11401_v27  ;;  %v2773_v25 = vpack.c.b16 %v2268_v1, %v2771_v22  ;;  %v11454_v17 = vor.u32 %v15213_v7, %v11451_v9  ;;  %v15278_v1 = vld [vmem:[#allocation12 + $0x174] sm:$0xf0]  ;;  %v15277_v13 = vld [vmem:[#allocation12 + $0x174] sm:$0xf]  ;;  %v11563_v51 = vld [vmem:[#allocation12 + $0x158] sm:$0xf0] }
 0x20d   : > { %v11578_v59 = vor.u32 %v15278_v1, %v11577_v45  ;;  %v15274_v22 = vld [vmem:[#allocation12 + $0x154] sm:$0xf0]  ;;  %v15289_v33 = vld [vmem:[#allocation12 + $0x1d4] sm:$0xf]  ;;  %v11625_v9 = vld [vmem:[#allocation12 + $0x1d0] sm:$0xf] }
 0x20e   : > { %2943 = vmatpush.bf16.msra.mxu2 %v11434_v41  ;;  %2957 = vmatpush.bf16.msra.mxu3 %v11498_v47  ;;  %v11403_v41 = vld [vmem:[#allocation10 + $0x228] sm:$0xf0]  ;;  %v15217_v47 = vld [vmem:[#allocation10 + $0x2a4] sm:$0xf]  ;;  %v11617_v45 = vld [vmem:[#allocation12 + $0x1c0] sm:$0xf] }
 0x20f   : > { %2971 = vmatpush.bf16.msrb.mxu0 %v11438_v10  ;;  %2985 = vmatpush.bf16.msrb.mxu1 %v11502_v42  ;;  %v11466_v10 = vor.u32 %v15218_v34, %v11465_v28  ;;  %v11393_v42 = vld [vmem:[#allocation10 + $0x210] sm:$0xf]  ;;  %v11406_v53 = vor.u32 %v15201_v36, %v11403_v41  ;;  %v11470_v54 = vor.u32 %v15217_v47, %v11467_v48  ;;  %v15294_v41 = vld [vmem:[#allocation12 + $0x1f4] sm:$0xf0]  ;;  %v11569_v47 = vld [vmem:[#allocation12 + $0x160] sm:$0xf] }
 0x210   : > { %v11641_v36 = vld [vmem:[#allocation12 + $0x1f0] sm:$0xf] }
 0x211   : > { %v11642_v48 = vor.u32 %v15294_v41, %v11641_v36  ;;  %v11547_v41 = vld [vmem:[#allocation12 + $0x138] sm:$0xf0] }
 0x212   : > { %2944 = vmatpush.bf16.msra.mxu2 %v11426_v56  ;;  %2958 = vmatpush.bf16.msra.mxu3 %v11490_v60  ;;  %v15199_v56 = vld [vmem:[#allocation10 + $0x214] sm:$0xf]  ;;  %v11395_v60 = vld [vmem:[#allocation10 + $0x218] sm:$0xf0] }
 0x213   : > { %2972 = vmatpush.bf16.msrb.mxu0 %v11430_v23  ;;  %2986 = vmatpush.bf16.msrb.mxu1 %v11494_v39  ;;  %v11458_v23 = vor.u32 %v15216_v55, %v11457_v32  ;;  %v11385_v39 = vld [vmem:[#allocation10 + $0x200] sm:$0xf]  ;;  %v11398_v0 = vor.u32 %v15199_v56, %v11395_v60 }
 0x214   : > { %v11633_v32 = vld [vmem:[#allocation12 + $0x1e0] sm:$0xf] }
 0x215   : > { %v11634_v63 = vor.u32 %v15292_v62, %v11633_v32  ;;  %v11537_v32 = vld [vmem:[#allocation12 + $0x120] sm:$0xf]  ;;  %v15267_v62 = vld [vmem:[#allocation12 + $0x124] sm:$0xf] }
 0x216   : > { %2945 = vmatpush.bf16.msra.mxu2 %v11418_v2  ;;  %2959 = vmatpush.bf16.msra.mxu3 %v11482_v35  ;;  %v15197_v2 = vld [vmem:[#allocation10 + $0x204] sm:$0xf]  ;;  %v11387_v35 = vld [vmem:[#allocation10 + $0x208] sm:$0xf0] }
 0x217   : > { %2973 = vmatpush.bf16.msrb.mxu0 %v11422_v12  ;;  %2987 = vmatpush.bf16.msrb.mxu1 %v11486_v16  ;;  %v11386_v16 = vor.u32 %v15198_v40, %v11385_v39  ;;  %v11390_v21 = vor.u32 %v15197_v2, %v11387_v35  ;;  %v11561_v40 = vld [vmem:[#allocation12 + $0x150] sm:$0xf]  ;;  %v11627_v2 = vld [vmem:[#allocation12 + $0x1d8] sm:$0xf0] }
 0x218   : > { %2687 = vmatmul.bf16.vlgmr.msrb.gmra.mxu2 %v17355_v50  ;;  %2701 = vmatmul.bf16.vlgmr.msrb.gmra.mxu3 %v17359_v49  ;;  %v11630_v7 = vor.u32 %v15289_v33, %v11627_v2 }
 0x219   : > { %2715 = vmatmul.bf16.vlgmr.msra.gmra.mxu0 %v17355_v50  ;;  %2729 = vmatmul.bf16.vlgmr.msra.gmra.mxu1 %v17359_v49  ;;  %v2770_v50 = vunpack.c.l.b16 %v2735_v46  ;;  %v11394_v49 = vor.u32 %v15200_v43, %v11393_v42  ;;  %v11571_v42 = vld [vmem:[#allocation12 + $0x168] sm:$0xf0] }
 0x21a   : > { %2946 = vmatpush.bf16.msra.mxu2 %v11410_v31  ;;  %2960 = vmatpush.bf16.msra.mxu3 %v11474_v11  ;;  %v2777_v11 = vrot.slane %v2773_v25, 1 }
 0x21b   : > { %2974 = vmatpush.bf16.msrb.mxu0 %v11414_v14  ;;  %2988 = vmatpush.bf16.msrb.mxu1 %v11478_v52  ;;  %v2772_v12 = vpack.c.b16 %v2267_v44, %v2770_v50  ;;  %v11579_v14 = vld [vmem:[#allocation12 + $0x178] sm:$0xf0] }
 0x21c   : > { %v2779_v27 = vsel %vm1220_vm10, %v2777_v11, %v2778_v24  ;;  %v11643_v52 = vld [vmem:[#allocation12 + $0x1f8] sm:$0xf0]  ;;  %v11582_v28 = vor.u32 %v15277_v13, %v11579_v14  ;;  %v11555_v24 = vld [vmem:[#allocation12 + $0x148] sm:$0xf0]  ;;  %v15288_v13 = vld [vmem:[#allocation12 + $0x1c4] sm:$0xf0] }
 0x21d   : > { %v2774_v31 = vrot.slane %v2772_v12, 1  ;;  %v11646_v34 = vor.u32 %v15293_v61, %v11643_v52  ;;  %v15290_v12 = vld [vmem:[#allocation12 + $0x1d4] sm:$0xf0]  ;;  %v11618_v61 = vor.u32 %v15288_v13, %v11617_v45  ;;  %v11545_v52 = vld [vmem:[#allocation12 + $0x130] sm:$0xf] }
 0x21e   : > { %2947 = vmatpush.bf16.msra.mxu2 %v11402_v26  ;;  %2961 = vmatpush.bf16.msra.mxu3 %v11466_v10  ;;  %v15276_v26 = vld [vmem:[#allocation12 + $0x164] sm:$0xf0]  ;;  %v15275_v10 = vld [vmem:[#allocation12 + $0x164] sm:$0xf]  ;;  %v15282_v13 = vld [vmem:[#allocation12 + $0x194] sm:$0xf0] }
 0x21f   : > { %2975 = vmatpush.bf16.msrb.mxu0 %v11406_v53  ;;  %2989 = vmatpush.bf16.msrb.mxu1 %v11470_v54  ;;  %v2776_v44 = vsel %vm1220_vm10, %v2774_v31, %v2775_v18  ;;  %v11570_v43 = vor.u32 %v15276_v26, %v11569_v47  ;;  %v11574_v46 = vor.u32 %v15275_v10, %v11571_v42  ;;  %v15291_v53 = vld [vmem:[#allocation12 + $0x1e4] sm:$0xf]  ;;  %v11635_v54 = vld [vmem:[#allocation12 + $0x1e8] sm:$0xf0]  ;;  %v15285_v47 = vld [vmem:[#allocation12 + $0x1b4] sm:$0xf] }
 0x220   : > { %v11638_v60 = vor.u32 %v15291_v53, %v11635_v54  ;;  %v15271_v18 = vld [vmem:[#allocation12 + $0x144] sm:$0xf]  ;;  %v11609_v42 = vld [vmem:[#allocation12 + $0x1b0] sm:$0xf] }
 0x221   : > { %v11558_v11 = vor.u32 %v15271_v18, %v11555_v24 }
 0x222   : > { %2948 = vmatpush.bf16.msra.mxu2 %v11394_v49  ;;  %2962 = vmatpush.bf16.msra.mxu3 %v11458_v23 }
 0x223   : > { %2976 = vmatpush.bf16.msrb.mxu0 %v11398_v0  ;;  %2990 = vmatpush.bf16.msrb.mxu1 %v11462_v20  ;;  %v15273_v0 = vld [vmem:[#allocation12 + $0x154] sm:$0xf]  ;;  %v11562_v20 = vor.u32 %v15274_v22, %v11561_v40  ;;  %v11539_v40 = vld [vmem:[#allocation12 + $0x128] sm:$0xf0]  ;;  %v15283_v22 = vld [vmem:[#allocation12 + $0x1a4] sm:$0xf] }
 0x224   : > { %v11566_v35 = vor.u32 %v15273_v0, %v11563_v51  ;;  %v11603_v0 = vld [vmem:[#allocation12 + $0x1a8] sm:$0xf0]  ;;  %v11542_v33 = vor.u32 %v15267_v62, %v11539_v40 }
 0x225   : > { %v11606_v2 = vor.u32 %v15283_v22, %v11603_v0 }
 0x226   : > { %2949 = vmatpush.bf16.msra.mxu2 %v11386_v16  ;;  %2963 = vmatpush.bf16.msra.mxu3 %v11450_v57  ;;  %v11553_v16 = vld [vmem:[#allocation12 + $0x140] sm:$0xf] }
 0x227   : > { %2977 = vmatpush.bf16.msrb.mxu0 %v11390_v21  ;;  %2991 = vmatpush.bf16.msrb.mxu1 %v11454_v17  ;;  %v11626_v21 = vor.u32 %v15290_v12, %v11625_v9  ;;  %v15272_v17 = vld [vmem:[#allocation12 + $0x144] sm:$0xf0]  ;;  %v17414_v9 = vld [vmem:[%s18064_s7] sm:$0x3] }
 0x228   : > { %v11554_v31 = vor.u32 %v15272_v17, %v11553_v16  ;;  %v11529_v16 = vld [vmem:[#allocation12 + $0x110] sm:$0xf]  ;;  %v15265_v17 = vld [vmem:[#allocation12 + $0x114] sm:$0xf] }
 0x229   : > { %2950 = vmatmul.bf16.vlgmr.msra.gmra.mxu2 %v2776_v44  ;;  %2964 = vmatmul.bf16.vlgmr.msra.gmra.mxu3 %v2779_v27 }
 0x22a   : > { %2978 = vmatmul.bf16.vlgmr.msrb.gmra.mxu0 %v2776_v44  ;;  %2992 = vmatmul.bf16.vlgmr.msrb.gmra.mxu1 %v2779_v27  ;;  %v15287_v44 = vld [vmem:[#allocation12 + $0x1c4] sm:$0xf]  ;;  %v11619_v27 = vld [vmem:[#allocation12 + $0x1c8] sm:$0xf0] }
 0x22b   : > { %3299 = vmatpush.bf16.msrb.mxu2 %v11578_v59  ;;  %3327 = vmatpush.bf16.msra.mxu0 %v11582_v28  ;;  %v11622_v1 = vor.u32 %v15287_v44, %v11619_v27  ;;  %v15270_v28 = vld [vmem:[#allocation12 + $0x134] sm:$0xf0]  ;;  %v11595_v44 = vld [vmem:[#allocation12 + $0x198] sm:$0xf0] }
 0x22c   : > { %3341 = vmatpush.bf16.msra.mxu1 %v11646_v34  ;;  %3313 = vmatpush.bf16.msrb.mxu3 %v11642_v48  ;;  %v15269_v34 = vld [vmem:[#allocation12 + $0x134] sm:$0xf]  ;;  %v11546_v36 = vor.u32 %v15270_v28, %v11545_v52  ;;  %v11611_v48 = vld [vmem:[#allocation12 + $0x1b8] sm:$0xf0] }
 0x22d   : > { %v11550_v26 = vor.u32 %v15269_v34, %v11547_v41  ;;  %v11614_v10 = vor.u32 %v15285_v47, %v11611_v48  ;;  %v3005_v34 = vperm.slane %v17414_v9, 1  ;;  %v15264_v41 = vld [vmem:[#allocation12 + $0x104] sm:$0xf0]  ;;  %v15263_v47 = vld [vmem:[#allocation12 + $0x104] sm:$0xf] }
 0x22f   : > { %3300 = vmatpush.bf16.msrb.mxu2 %v11570_v43  ;;  %3328 = vmatpush.bf16.msra.mxu0 %v11574_v46  ;;  %v15286_v43 = vld [vmem:[#allocation12 + $0x1b4] sm:$0xf0] }
 0x230   : > { %3342 = vmatpush.bf16.msra.mxu1 %v11638_v60  ;;  %3314 = vmatpush.bf16.msrb.mxu3 %v11634_v63  ;;  %v11610_v54 = vor.u32 %v15286_v43, %v11609_v42  ;;  %v15268_v60 = vld [vmem:[#allocation12 + $0x124] sm:$0xf0] }
 0x231   : > { %v11538_v63 = vor.u32 %v15268_v60, %v11537_v32  ;;  %v15280_v32 = vld [vmem:[#allocation12 + $0x184] sm:$0xf0]  ;;  %v11705_v60 = vld [vmem:[#allocation12 + $0x70] sm:$0xf] }
 0x233   : > { %3301 = vmatpush.bf16.msrb.mxu2 %v11562_v20  ;;  %3329 = vmatpush.bf16.msra.mxu0 %v11566_v35  ;;  %v11601_v35 = vld [vmem:[#allocation12 + $0x1a0] sm:$0xf] }
 0x234   : > { %3343 = vmatpush.bf16.msra.mxu1 %v11630_v7  ;;  %3315 = vmatpush.bf16.msrb.mxu3 %v11626_v21  ;;  %v15284_v7 = vld [vmem:[#allocation12 + $0x1a4] sm:$0xf0]  ;;  %v15266_v21 = vld [vmem:[#allocation12 + $0x114] sm:$0xf0] }
 0x235   : > { %v11602_v12 = vor.u32 %v15284_v7, %v11601_v35  ;;  %v11530_v24 = vor.u32 %v15266_v21, %v11529_v16  ;;  %v11707_v35 = vld [vmem:[#allocation12 + $0x78] sm:$0xf0]  ;;  %v15261_v21 = vld [vmem:[#allocation12 + $0xf4] sm:$0xf] }
 0x237   : > { %3302 = vmatpush.bf16.msrb.mxu2 %v11554_v31  ;;  %3330 = vmatpush.bf16.msra.mxu0 %v11558_v11  ;;  %v11531_v31 = vld [vmem:[#allocation12 + $0x118] sm:$0xf0]  ;;  %v15281_v11 = vld [vmem:[#allocation12 + $0x194] sm:$0xf] }
 0x238   : > { %3344 = vmatpush.bf16.msra.mxu1 %v11622_v1  ;;  %3316 = vmatpush.bf16.msrb.mxu3 %v11618_v61  ;;  %v11534_v27 = vor.u32 %v15265_v17, %v11531_v31  ;;  %v11598_v45 = vor.u32 %v15281_v11, %v11595_v44  ;;  %v11593_v1 = vld [vmem:[#allocation12 + $0x190] sm:$0xf]  ;;  %v11771_v17 = vld [vmem:[#allocation12 + $0xf8] sm:$0xf0]  ;;  %v11697_v31 = vld [vmem:[#allocation12 + $0x60] sm:$0xf] }
 0x239   : > { %v15244_v11 = vld [vmem:[#allocation12 + $0x64] sm:$0xf0] }
 0x23b   : > { %3303 = vmatpush.bf16.msrb.mxu2 %v11546_v36  ;;  %3331 = vmatpush.bf16.msra.mxu0 %v11550_v26  ;;  %v3004_v36 = vperm.slane %v17414_v9, 0  ;;  %v11523_v26 = vld [vmem:[#allocation12 + $0x108] sm:$0xf0] }
 0x23c   : > { %3345 = vmatpush.bf16.msra.mxu1 %v11614_v10  ;;  %3317 = vmatpush.bf16.msrb.mxu3 %v11610_v54  ;;  %v15279_v10 = vld [vmem:[#allocation12 + $0x184] sm:$0xf]  ;;  %v11526_v42 = vor.u32 %v15263_v47, %v11523_v26  ;;  %v11585_v54 = vld [vmem:[#allocation12 + $0x180] sm:$0xf] }
 0x23d   : > { %v11586_v0 = vor.u32 %v15280_v32, %v11585_v54 }
 0x23f   : > { %3304 = vmatpush.bf16.msrb.mxu2 %v11538_v63  ;;  %3332 = vmatpush.bf16.msra.mxu0 %v11542_v33  ;;  %v15246_v33 = vld [vmem:[#allocation12 + $0x74] sm:$0xf0] }
 0x240   : > { %3346 = vmatpush.bf16.msra.mxu1 %v11606_v2  ;;  %3318 = vmatpush.bf16.msrb.mxu3 %v11602_v12  ;;  %v15245_v2 = vld [vmem:[#allocation12 + $0x74] sm:$0xf]  ;;  %v11706_v12 = vor.u32 %v15246_v33, %v11705_v60  ;;  %v11691_v60 = vld [vmem:[#allocation12 + $0x58] sm:$0xf0]  ;;  %v15258_v33 = vld [vmem:[#allocation12 + $0xd4] sm:$0xf0] }
 0x241   : > { %v11710_v16 = vor.u32 %v15245_v2, %v11707_v35  ;;  %v11681_v2 = vld [vmem:[#allocation12 + $0x40] sm:$0xf] }
 0x243   : > { %3305 = vmatpush.bf16.msrb.mxu2 %v11530_v24  ;;  %3333 = vmatpush.bf16.msra.mxu0 %v11534_v27  ;;  %v15262_v24 = vld [vmem:[#allocation12 + $0xf4] sm:$0xf0] }
 0x244   : > { %3347 = vmatpush.bf16.msra.mxu1 %v11598_v45  ;;  %v11698_v45 = vor.u32 %v15244_v11, %v11697_v31  ;;  %v11745_v11 = vld [vmem:[#allocation12 + $0xc0] sm:$0xf] }
 0x247   : > { %3334 = vmatpush.bf16.msra.mxu0 %v11526_v42  ;;  %v15241_v42 = vld [vmem:[#allocation12 + $0x54] sm:$0xf] }
 0x24b   : > { %3545 = vmatpush.bf16.msrb.mxu0 %v11710_v16  ;;  %v15240_v16 = vld [vmem:[#allocation12 + $0x44] sm:$0xf0] }
 0x286   : > { %v17385_v55 = vpop.f32.mrf.mxu0  ;;  %v17387_v56 = vpop.f32.mrf.mxu1 }
 0x287   : > { %v2513_v18 = vadd.f32 %v17387_v56, %v17385_v55  ;;  %v11594_v55 = vor.u32 %v15282_v13, %v11593_v1  ;;  %v11521_v56 = vld [vmem:[#allocation12 + $0x100] sm:$0xf]  ;;  %v15243_v1 = vld [vmem:[#allocation12 + $0x64] sm:$0xf]  ;;  %v11699_v13 = vld [vmem:[#allocation12 + $0x68] sm:$0xf0] }
 0x288   : > { %v11522_v48 = vor.u32 %v15264_v41, %v11521_v56  ;;  %v11763_v56 = vld [vmem:[#allocation12 + $0xe8] sm:$0xf0]  ;;  %v11761_v41 = vld [vmem:[#allocation12 + $0xe0] sm:$0xf] }
 0x289   : > { %3319 = vmatpush.bf16.msrb.mxu3 %v11594_v55  ;;  %v11702_v55 = vor.u32 %v15243_v1, %v11699_v13  ;;  %v11673_v1 = vld [vmem:[#allocation12 + $0x30] sm:$0xf] }
 0x28a   : > { %3306 = vmatpush.bf16.msrb.mxu2 %v11522_v48 }
 0x28b   : > { %v17389_v50 = vpop.f32.mrf.mxu2  ;;  %v17391_v49 = vpop.f32.mrf.mxu3  ;;  %3546 = vmatpush.bf16.msrb.mxu0 %v11702_v55  ;;  %v15237_v55 = vld [vmem:[#allocation12 + $0x34] sm:$0xf] }
 0x28c   : > { %v2485_v62 = vadd.f32 %v17391_v49, %v17389_v50 }
 0x28d   : > { %3320 = vmatpush.bf16.msrb.mxu3 %v11586_v0  ;;  %v11753_v0 = vld [vmem:[#allocation12 + $0xd0] sm:$0xf] }
 0x28e   : > { %v17393_v23 = vpop.f32.mrf.mxu0  ;;  %v17395_v39 = vpop.f32.mrf.mxu1  ;;  %3517 = vmatpush.bf16.msra.mxu2 %v11706_v12 }
 0x28f   : > { %v2515_v50 = vadd.f32 %v17395_v39, %v17393_v23  ;;  %v15260_v23 = vld [vmem:[#allocation12 + $0xe4] sm:$0xf0] }
 0x290   : > { %v11762_v26 = vor.u32 %v15260_v23, %v11761_v41 }
 0x292   : > { %3518 = vmatpush.bf16.msra.mxu2 %v11698_v45  ;;  %v11682_v45 = vor.u32 %v15240_v16, %v11681_v2  ;;  %v11729_v2 = vld [vmem:[#allocation12 + $0xa0] sm:$0xf]  ;;  %v15234_v16 = vld [vmem:[#allocation12 + $0x14] sm:$0xf0] }
 0x293   : > { %v17397_v57 = vpop.f32.mrf.mxu2  ;;  %v17399_v25 = vpop.f32.mrf.mxu3 }
 0x296   : > { %v2716_v59 = vpop.f32.mrf.mxu0  ;;  %v17401_v14 = vpop.f32.mrf.mxu1 }
 0x297   : > { %v2717_v61 = vadd.f32 %v2716_v59, %v2513_v18  ;;  %v11587_v59 = vld [vmem:[#allocation12 + $0x188] sm:$0xf0]  ;;  %v11769_v18 = vld [vmem:[#allocation12 + $0xf0] sm:$0xf] }
 0x298   : > { %v11590_v43 = vor.u32 %v15279_v10, %v11587_v59  ;;  %v11770_v27 = vor.u32 %v15262_v24, %v11769_v18  ;;  %v11689_v10 = vld [vmem:[#allocation12 + $0x50] sm:$0xf]  ;;  %v15242_v59 = vld [vmem:[#allocation12 + $0x54] sm:$0xf0] }
 0x299   : > { %v2731_v63 = vadd.f32 %v17401_v14, %v2717_v61  ;;  %v11774_v14 = vor.u32 %v15261_v21, %v11771_v17  ;;  %v15259_v61 = vld [vmem:[#allocation12 + $0xe4] sm:$0xf]  ;;  %v11683_v17 = vld [vmem:[#allocation12 + $0x48] sm:$0xf0] }
 0x29a   : > { %3348 = vmatpush.bf16.msra.mxu1 %v11590_v43  ;;  %3531 = vmatpush.bf16.msra.mxu3 %v11770_v27  ;;  %v11766_v48 = vor.u32 %v15259_v61, %v11763_v56  ;;  %v15239_v21 = vld [vmem:[#allocation12 + $0x44] sm:$0xf]  ;;  %v15238_v61 = vld [vmem:[#allocation12 + $0x34] sm:$0xf0] }
 0x29b   : > { %v17403_v46 = vpop.f32.mrf.mxu2  ;;  %v17405_v53 = vpop.f32.mrf.mxu3 }
 0x29c   : > { %v2689_v49 = vadd.f32 %v17403_v46, %v2485_v62  ;;  %v15257_v62 = vld [vmem:[#allocation12 + $0xd4] sm:$0xf] }
 0x29e   : > { %v17407_v20 = vpop.f32.mrf.mxu0  ;;  %v17409_v51 = vpop.f32.mrf.mxu1  ;;  %3559 = vmatpush.bf16.msrb.mxu1 %v11774_v14  ;;  %v2703_v43 = vadd.f32 %v17405_v53, %v2689_v49  ;;  %3532 = vmatpush.bf16.msra.mxu3 %v11762_v26  ;;  %v15255_v49 = vld [vmem:[#allocation12 + $0xc4] sm:$0xf]  ;;  %v11747_v14 = vld [vmem:[#allocation12 + $0xc8] sm:$0xf0] }
 0x29f   : > { %v2719_v39 = vadd.f32 %v17407_v20, %v2515_v50  ;;  %v2487_v20 = vadd.f32 %v17399_v25, %v17397_v57  ;;  %v11754_v25 = vor.u32 %v15258_v33, %v11753_v0  ;;  %v11750_v13 = vor.u32 %v15255_v49, %v11747_v14 }
 0x2a1   : > { %v2733_v18 = vadd.f32 %v17409_v51, %v2719_v39  ;;  %v11686_v51 = vor.u32 %v15239_v21, %v11683_v17  ;;  %v15253_v39 = vld [vmem:[#allocation12 + $0xb4] sm:$0xf] }
 0x2a2   : > { %3560 = vmatpush.bf16.msrb.mxu1 %v11766_v48  ;;  %3533 = vmatpush.bf16.msra.mxu3 %v11754_v25 }
 0x2a3   : > { %v17418_v52 = vpop.f32.mrf.mxu2  ;;  %v17420_v28 = vpop.f32.mrf.mxu3 }
 0x2a4   : > { %v2691_v50 = vadd.f32 %v17418_v52, %v2487_v20 }
 0x2a7   : > { %v2979_v40 = vpop.f32.mrf.mxu0  ;;  %v2993_v22 = vpop.f32.mrf.mxu1 }
 0x2a8   : > { %v2994_v7 = vadd.f32 %v2993_v22, %v2979_v40  ;;  %v11690_v40 = vor.u32 %v15242_v59, %v11689_v10  ;;  %v11694_v22 = vor.u32 %v15241_v42, %v11691_v60  ;;  %v15254_v10 = vld [vmem:[#allocation12 + $0xb4] sm:$0xf0]  ;;  %v11674_v59 = vor.u32 %v15238_v61, %v11673_v1  ;;  %v15236_v60 = vld [vmem:[#allocation12 + $0x24] sm:$0xf0]  ;;  %v15231_v1 = vld [vmem:[#allocation12 + $0x4] sm:$0xf] }
 0x2a9   : > { %v11678_v42 = vor.u32 %v15237_v55, %v11675_v30  ;;  %v15247_v61 = vld [vmem:[#allocation12 + $0x84] sm:$0xf]  ;;  %v11715_v55 = vld [vmem:[#allocation12 + $0x88] sm:$0xf0] }
 0x2aa   : > { %v2999_v44 = vadd.f32 %v2994_v7, %v2731_v63  ;;  %v11755_v63 = vld [vmem:[#allocation12 + $0xd8] sm:$0xf0]  ;;  %3519 = vmatpush.bf16.msra.mxu2 %v11690_v40  ;;  %3547 = vmatpush.bf16.msrb.mxu0 %v11694_v22  ;;  %v15251_v40 = vld [vmem:[#allocation12 + $0xa4] sm:$0xf]  ;;  %v11731_v22 = vld [vmem:[#allocation12 + $0xa8] sm:$0xf0] }
 0x2ab   : > { %v11758_v12 = vor.u32 %v15257_v62, %v11755_v63  ;;  %v15235_v62 = vld [vmem:[#allocation12 + $0x24] sm:$0xf]  ;;  %v11667_v63 = vld [vmem:[#allocation12 + $0x28] sm:$0xf0] }
 0x2ac   : > { %v2951_v46 = vpop.f32.mrf.mxu2  ;;  %v2965_v47 = vpop.f32.mrf.mxu3  ;;  %v3009_v54 = vadd.f32 %v3005_v34, %v2999_v44  ;;  %v15256_v44 = vld [vmem:[#allocation12 + $0xc4] sm:$0xf0] }
 0x2ad   : > { %v2966_v32 = vadd.f32 %v2965_v47, %v2951_v46  ;;  %3561 = vmatpush.bf16.msrb.mxu1 %v11758_v12  ;;  %v11746_v23 = vor.u32 %v15256_v44, %v11745_v11  ;;  %v11739_v46 = vld [vmem:[#allocation12 + $0xb8] sm:$0xf0]  ;;  %v11657_v12 = vld [vmem:[#allocation12 + $0x10] sm:$0xf] }
 0x2ae   : > { %v3013_v24 = vadd.f32 %v3009_v54, %v1300_v38  ;;  %v2705_v38 = vadd.f32 %v17420_v28, %v2691_v50  ;;  %3520 = vmatpush.bf16.msra.mxu2 %v11682_v45  ;;  %3548 = vmatpush.bf16.msrb.mxu0 %v11686_v51  ;;  %v11734_v50 = vor.u32 %v15251_v40, %v11731_v22  ;;  %v15232_v51 = vld [vmem:[#allocation12 + $0x4] sm:$0xf0]  ;;  %v15311_v40 = vld [vmem:[#allocation12 + $0x274] sm:$0xf]  ;;  %v11843_v22 = vld [vmem:[#allocation12 + $0x278] sm:$0xf0] }
 0x2af   : > { %v2998_v35 = vadd.f32 %v2966_v32, %v2703_v43  ;;  %v2981_v7 = vpop.f32.mrf.mxu0  ;;  %v2995_v53 = vpop.f32.mrf.mxu1  ;;  %v11665_v43 = vld [vmem:[#allocation12 + $0x20] sm:$0xf]  ;;  %v11742_v32 = vor.u32 %v15253_v39, %v11739_v46  ;;  %3534 = vmatpush.bf16.msra.mxu3 %v11746_v23  ;;  %v11658_v11 = vor.u32 %v15234_v16, %v11657_v12  ;;  %v11718_v46 = vor.u32 %v15247_v61, %v11715_v55  ;;  %v15328_v12 = vld [vmem:[#allocation12 + $0x2f4] sm:$0xf0] }
 0x2b0   : > { %v2996_v57 = vadd.f32 %v2995_v53, %v2981_v7  ;;  %v3017_v47 = vmax.f32 %v3013_v24, 0.0  ;;  %v11666_v7 = vor.u32 %v15236_v60, %v11665_v43  ;;  %v11670_v53 = vor.u32 %v15235_v62, %v11667_v63  ;;  %v11721_v24 = vld [vmem:[#allocation12 + $0x90] sm:$0xf]  ;;  %v15312_v63 = vld [vmem:[#allocation12 + $0x274] sm:$0xf0] }
 0x2b1   : > { %v3008_v31 = vadd.f32 %v3004_v36, %v2998_v35  ;;  %3562 = vmatpush.bf16.msrb.mxu1 %v11750_v13  ;;  %v15252_v35 = vld [vmem:[#allocation12 + $0xa4] sm:$0xf0]  ;;  %v11841_v62 = vld [vmem:[#allocation12 + $0x270] sm:$0xf]  ;;  %v15324_v61 = vld [vmem:[#allocation12 + $0x2d4] sm:$0xf0] }
 0x2b2   : > { %v3001_v27 = vadd.f32 %v2996_v57, %v2733_v18  ;;  %3521 = vmatpush.bf16.msra.mxu2 %v11674_v59  ;;  %3549 = vmatpush.bf16.msrb.mxu0 %v11678_v42  ;;  %v11730_v9 = vor.u32 %v15252_v35, %v11729_v2  ;;  %v11723_v57 = vld [vmem:[#allocation12 + $0x98] sm:$0xf0] }
 0x2b3   : > { %v3012_v52 = vadd.f32 %v3008_v31, %v1299_v37  ;;  %v11737_v37 = vld [vmem:[#allocation12 + $0xb0] sm:$0xf]  ;;  %v15250_v31 = vld [vmem:[#allocation12 + $0x94] sm:$0xf0] }
 0x2b4   : > { %v2953_v56 = vpop.f32.mrf.mxu2  ;;  %v2967_v41 = vpop.f32.mrf.mxu3  ;;  %v3011_v26 = vadd.f32 %v3005_v34, %v3001_v27  ;;  %v11738_v20 = vor.u32 %v15254_v10, %v11737_v37  ;;  %v11649_v27 = vld [vmem:[#allocation12] sm:$0xf]  ;;  %v11722_v13 = vor.u32 %v15250_v31, %v11721_v24  ;;  %v15326_v24 = vld [vmem:[#allocation12 + $0x2e4] sm:$0xf0] }
 0x2b5   : > { %v3016_v48 = vmax.f32 %v3012_v52, 0.0  ;;  %v2968_v29 = vadd.f32 %v2967_v41, %v2953_v56  ;;  %3563 = vmatpush.bf16.msrb.mxu1 %v11742_v32  ;;  %v11651_v52 = vld [vmem:[#allocation12 + $0x8] sm:$0xf0]  ;;  %v15248_v56 = vld [vmem:[#allocation12 + $0x84] sm:$0xf0]  ;;  %v11650_v41 = vor.u32 %v15232_v51, %v11649_v27 }
 0x2b6   : > { %v3015_v0 = vadd.f32 %v3011_v26, %v1302_v6  ;;  %v11659_v6 = vld [vmem:[#allocation12 + $0x18] sm:$0xf0]  ;;  %3535 = vmatpush.bf16.msra.mxu3 %v11738_v20  ;;  %3522 = vmatpush.bf16.msra.mxu2 %v11666_v7  ;;  %v11654_v23 = vor.u32 %v15231_v1, %v11651_v52  ;;  %v15308_v27 = vld [vmem:[#allocation12 + $0x254] sm:$0xf0]  ;;  %v15323_v1 = vld [vmem:[#allocation12 + $0x2d4] sm:$0xf] }
 0x2b7   : > { %v3020_v28 = vpack.c.bf16 %v3017_v47, %v3016_v48  ;;  %v3000_v54 = vadd.f32 %v2968_v29, %v2705_v38  ;;  %3550 = vmatpush.bf16.msrb.mxu0 %v11670_v53  ;;  %v11662_v44 = vor.u32 %v15233_v4, %v11659_v6  ;;  %v11713_v38 = vld [vmem:[#allocation12 + $0x80] sm:$0xf]  ;;  %v15310_v4 = vld [vmem:[#allocation12 + $0x264] sm:$0xf0]  ;;  %v11827_v51 = vld [vmem:[#allocation12 + $0x258] sm:$0xf0] }
 0x2b8   : > { %v3019_v49 = vmax.f32 %v3015_v0, 0.0  ;;  %v11714_v47 = vor.u32 %v15248_v56, %v11713_v38  ;;  %v3045_v37 = vld [vmem:[#allocation3 + $0x10] sm:$0x11]  ;;  %v15306_v56 = vld [vmem:[#allocation12 + $0x244] sm:$0xf0] }
 0x2b9   : > { %v3023_v34 = vshrl.u32 %v3020_v28, 16  ;;  %v3010_v33 = vadd.f32 %v3004_v36, %v3000_v54  ;;  %v3026_v17 = vshll.u32 %v3020_v28, 16  ;;  %v15249_v36 = vld [vmem:[#allocation12 + $0x94] sm:$0xf]  ;;  %3564 = vmatpush.bf16.msrb.mxu1 %v11734_v50  ;;  %v11907_v0 = vld [vmem:[#allocation12 + $0x2f8] sm:$0xf0] }
 0x2ba   : > { %v11726_v45 = vor.u32 %v15249_v36, %v11723_v57  ;;  %3536 = vmatpush.bf16.msra.mxu3 %v11730_v9  ;;  %3523 = vmatpush.bf16.msra.mxu2 %v11658_v11  ;;  %v11833_v50 = vld [vmem:[#allocation12 + $0x260] sm:$0xf]  ;;  %v15309_v36 = vld [vmem:[#allocation12 + $0x264] sm:$0xf]  ;;  %v11835_v57 = vld [vmem:[#allocation12 + $0x268] sm:$0xf0] }
 0x2bb   : > { %v3025_v21 = vrot.slane %v3023_v34, 7  ;;  %v3014_v18 = vadd.f32 %v3010_v33, %v1301_v8  ;;  %3551 = vmatpush.bf16.msrb.mxu0 %v11662_v44  ;;  %v15327_v34 = vld [vmem:[#allocation12 + $0x2f4] sm:$0xf]  ;;  %v11905_v33 = vld [vmem:[#allocation12 + $0x2f0] sm:$0xf]  ;;  %v11834_v31 = vor.u32 %v15310_v4, %v11833_v50  ;;  %v11838_v11 = vor.u32 %v15309_v36, %v11835_v57 }
 0x2bc   : > { %v11910_v6 = vor.u32 %v15327_v34, %v11907_v0  ;;  %v11906_v9 = vor.u32 %v15328_v12, %v11905_v33  ;;  %v11825_v44 = vld [vmem:[#allocation12 + $0x250] sm:$0xf]  ;;  %v11891_v52 = vld [vmem:[#allocation12 + $0x2d8] sm:$0xf0]  ;;  %v11817_v38 = vld [vmem:[#allocation12 + $0x240] sm:$0xf] }
 0x2bd   : > { %v3028_v25 = vor.u32 %v3026_v17, %v3025_v21  ;;  %v3018_v14 = vmax.f32 %v3014_v18, 0.0  ;;  %3565 = vmatpush.bf16.msrb.mxu1 %v11726_v45  ;;  %v3029_v48 = vrot.slane %v3025_v21, 4  ;;  %v11842_v17 = vor.u32 %v15312_v63, %v11841_v62  ;;  %v15307_v45 = vld [vmem:[#allocation12 + $0x254] sm:$0xf]  ;;  %v11875_v63 = vld [vmem:[#allocation12 + $0x2b8] sm:$0xf0] }
 0x2be   : > { %3537 = vmatpush.bf16.msra.mxu3 %v11722_v13  ;;  %3524 = vmatpush.bf16.msra.mxu2 %v11650_v41  ;;  %v11846_v18 = vor.u32 %v15311_v40, %v11843_v22  ;;  %v11889_v13 = vld [vmem:[#allocation12 + $0x2d0] sm:$0xf]  ;;  %v11826_v55 = vor.u32 %v15308_v27, %v11825_v44  ;;  %v11894_v41 = vor.u32 %v15323_v1, %v11891_v52  ;;  %v15319_v62 = vld [vmem:[#allocation12 + $0x2b4] sm:$0xf]  ;;  %v11801_v34 = vld [vmem:[#allocation12 + $0x220] sm:$0xf] }
 0x2bf   : > { %v3042_v3 = vsel %vm17212_vm0, %v3028_v25, %v17340_v19  ;;  %v3021_v8 = vpack.c.bf16 %v3019_v49, %v3018_v14  ;;  %3552 = vmatpush.bf16.msrb.mxu0 %v11654_v23  ;;  %v15325_v25 = vld [vmem:[#allocation12 + $0x2e4] sm:$0xf]  ;;  %v11899_v49 = vld [vmem:[#allocation12 + $0x2e8] sm:$0xf0]  ;;  %v11897_v14 = vld [vmem:[#allocation12 + $0x2e0] sm:$0xf]  ;;  %v11890_v23 = vor.u32 %v15324_v61, %v11889_v13  ;;  %v11878_v33 = vor.u32 %v15319_v62, %v11875_v63 }
 0x2c0   : > { %3043 = vst [vmem:[#allocation3] sm:$0xff] %v3042_v3  ;;  %v11902_v3 = vor.u32 %v15325_v25, %v11899_v49  ;;  %v15302_v0 = vld [vmem:[#allocation12 + $0x224] sm:$0xf0]  ;;  %v11867_v12 = vld [vmem:[#allocation12 + $0x2a8] sm:$0xf0] }
 0x2c1   : > { %v3031_v30 = vshrl.u32 %v3021_v8, 16  ;;  %v3034_v19 = vshll.u32 %v3021_v8, 16  ;;  %3566 = vmatpush.bf16.msrb.mxu1 %v11718_v46  ;;  %v11898_v8 = vor.u32 %v15326_v24, %v11897_v14  ;;  %v15321_v46 = vld [vmem:[#allocation12 + $0x2c4] sm:$0xf]  ;;  %v11802_v4 = vor.u32 %v15302_v0, %v11801_v34  ;;  %v15300_v36 = vld [vmem:[#allocation12 + $0x214] sm:$0xf0] }
 0x2c2   : > { %3538 = vmatpush.bf16.msra.mxu3 %v11714_v47  ;;  %v11883_v47 = vld [vmem:[#allocation12 + $0x2c8] sm:$0xf0]  ;;  %v15299_v49 = vld [vmem:[#allocation12 + $0x214] sm:$0xf]  ;;  %v11795_v14 = vld [vmem:[#allocation12 + $0x218] sm:$0xf0] }
 0x2c3   : > { %v3033_v39 = vrot.slane %v3031_v30, 7  ;;  %v11830_v30 = vor.u32 %v15307_v45, %v11827_v51  ;;  %v15315_v24 = vld [vmem:[#allocation12 + $0x294] sm:$0xf]  ;;  %v15316_v44 = vld [vmem:[#allocation12 + $0x294] sm:$0xf0]  ;;  %v11798_v1 = vor.u32 %v15299_v49, %v11795_v14 }
 0x2c4   : > { %v15297_v52 = vld [vmem:[#allocation12 + $0x204] sm:$0xf]  ;;  %v11787_v13 = vld [vmem:[#allocation12 + $0x208] sm:$0xf0]  ;;  %v11966_v34 = vld [vmem:[#allocation13 + $0x160] sm:$0xf] }
 0x2c5   : > { %v3036_v26 = vor.u32 %v3034_v19, %v3033_v39  ;;  %v3038_v29 = vrot.slane %v3033_v39, 4  ;;  %v15305_v39 = vld [vmem:[#allocation12 + $0x244] sm:$0xf]  ;;  %v11819_v19 = vld [vmem:[#allocation12 + $0x248] sm:$0xf0] }
 0x2c6   : > { %v15313_v61 = vld [vmem:[#allocation12 + $0x284] sm:$0xf]  ;;  %v15374_v0 = vld [vmem:[#allocation13 + $0x164] sm:$0xf0]  ;;  %v12022_v49 = vld [vmem:[#allocation13 + $0x1d0] sm:$0xf] }
 0x2c7   : > { %v3037_v10 = vsel %vm17122_vm6, %v3029_v48, %v3036_v26  ;;  %v3046_v59 = vsel %vm17228_vm8, %v3038_v29, %v3045_v37  ;;  %v11513_v42 = vld [vmem:[#allocation3] sm:$0xf]  ;;  %v15229_v28 = vld [vmem:[#allocation3 + $0x4] sm:$0xf]  ;;  %v11881_v48 = vld [vmem:[#allocation12 + $0x2c0] sm:$0xf]  ;;  %v11818_v29 = vor.u32 %v15306_v56, %v11817_v38  ;;  %v11822_v37 = vor.u32 %v15305_v39, %v11819_v19 }
 0x2c8   : > { %3044 = vst [vmem:[#allocation3 + $0x8] sm:$0xff] %v3037_v10  ;;  %v15322_v26 = vld [vmem:[#allocation12 + $0x2c4] sm:$0xf0]  ;;  %v11809_v10 = vld [vmem:[#allocation12 + $0x230] sm:$0xf]  ;;  %vm3864_vm6 = vcmask 121856  }
 0x2c9   : > { %3047 = vst [vmem:[#allocation3 + $0x10] sm:$0x11] %v3046_v59  ;;  %v15304_v59 = vld [vmem:[#allocation12 + $0x234] sm:$0xf0]  ;;  %v11851_v38 = vld [vmem:[#allocation12 + $0x288] sm:$0xf0] }
 0x2ca   : > { %v11810_v40 = vor.u32 %v15304_v59, %v11809_v10  ;;  %v11849_v56 = vld [vmem:[#allocation12 + $0x280] sm:$0xf]  ;;  %v15314_v39 = vld [vmem:[#allocation12 + $0x284] sm:$0xf0]  ;;  %v11974_v19 = vld [vmem:[#allocation13 + $0x170] sm:$0xf]  ;;  %v11790_v59 = vor.u32 %v15297_v52, %v11787_v13  ;;  %v11854_v62 = vor.u32 %v15313_v61, %v11851_v38 }
 0x2cb   : > { %v11850_v63 = vor.u32 %v15314_v39, %v11849_v56  ;;  %v15388_v14 = vld [vmem:[#allocation13 + $0x1d4] sm:$0xf0]  ;;  %v11952_v52 = vld [vmem:[#allocation13 + $0x148] sm:$0xf0]  ;;  %v12006_v56 = vld [vmem:[#allocation13 + $0x1b0] sm:$0xf] }
 0x2cc   : > { %v15368_v38 = vld [vmem:[#allocation13 + $0x134] sm:$0xf0]  ;;  %v11944_v39 = vld [vmem:[#allocation13 + $0x138] sm:$0xf0] }
 0x2cf   : > { %v15230_v43 = vld [vmem:[#allocation3 + $0x4] sm:$0xf0]  ;;  %v11515_v54 = vld [vmem:[#allocation3 + $0x8] sm:$0xf0] }
 0x2d0   : > { %v17460_v32 = vor.u32 %v15230_v43, %v11513_v42  ;;  %v17462_v60 = vor.u32 %v15229_v28, %v11515_v54  ;;  %v11886_v42 = vor.u32 %v15321_v46, %v11883_v47  ;;  %v11882_v43 = vor.u32 %v15322_v26, %v11881_v48  ;;  %v15303_v28 = vld [vmem:[#allocation12 + $0x234] sm:$0xf]  ;;  %v11811_v54 = vld [vmem:[#allocation12 + $0x238] sm:$0xf0]  ;;  %v11779_v47 = vld [vmem:[#allocation3 + $0x8] sm:$0xf0] }
 0x2d1   : > { %v11814_v22 = vor.u32 %v15303_v28, %v11811_v54  ;;  %v3575_v50 = vld [vmem:[#allocation3 + $0x10] sm:$0x11]  ;;  %v15376_v48 = vld [vmem:[#allocation13 + $0x174] sm:$0xf0]  ;;  %v12038_v26 = vld [vmem:[#allocation13 + $0x1f0] sm:$0xf] }
 0x2d2   : > { %v3126_v58 = vshll.u32 %v17460_v32, 16  ;;  %v3133_v20 = vshll.u32 %v17462_v60, 16  ;;  %v3124_v2 = vshrl.u32 %v17460_v32, 16  ;;  %v3131_v7 = vshrl.u32 %v17462_v60, 16  ;;  %v15295_v54 = vld [vmem:[#allocation3 + $0x4] sm:$0xe] }
 0x2d3   : > { %v3616_v27 = vunpack.c.l.b16 %v3575_v50  ;;  %v3617_v45 = vunpack.c.h.b16 %v3575_v50 }
 0x2d4   : > { %v3128_v35 = vrot.slane %v3126_v58, 1  ;;  %v3135_v53 = vrot.slane %v3133_v20, 1  ;;  %v11873_v58 = vld [vmem:[#allocation12 + $0x2b0] sm:$0xf]  ;;  %v15320_v20 = vld [vmem:[#allocation12 + $0x2b4] sm:$0xf0] }
 0x2d5   : > { %v3620_v46 = vpack.c.b16 %v3616_v27, %v3616_v27  ;;  %v11950_v27 = vld [vmem:[#allocation13 + $0x140] sm:$0xf] }
 0x2d6   : > { %v17468_v16 = vor.u32 %v3128_v35, %v3124_v2  ;;  %v17470_v21 = vor.u32 %v3135_v53, %v3131_v7  ;;  %v11874_v2 = vor.u32 %v15320_v20, %v11873_v58  ;;  %v15301_v35 = vld [vmem:[#allocation12 + $0x224] sm:$0xf]  ;;  %v11803_v7 = vld [vmem:[#allocation12 + $0x228] sm:$0xf0]  ;;  %v11782_v58 = vor.u32 %v15295_v54, %v11779_v47  ;;  %v11934_v47 = vld [vmem:[#allocation13 + $0x120] sm:$0xf] }
 0x2d7   : > { %v15317_v53 = vld [vmem:[#allocation12 + $0x2a4] sm:$0xf]  ;;  %v11975_v20 = vor.u32 %v15376_v48, %v11974_v19 }
 0x2d8   : > { %3307 = vmatmul.bf16.vlgmr.msrb.gmra.mxu2 %v17468_v16  ;;  %3321 = vmatmul.bf16.vlgmr.msrb.gmra.mxu3 %v17470_v21  ;;  %v11870_v57 = vor.u32 %v15317_v53, %v11867_v12  ;;  %v15373_v12 = vld [vmem:[#allocation13 + $0x164] sm:$0xf] }
 0x2d9   : > { %3335 = vmatmul.bf16.vlgmr.msra.gmra.mxu0 %v17468_v16  ;;  %3349 = vmatmul.bf16.vlgmr.msra.gmra.mxu1 %v17470_v21 }
 0x2da   : > { %3790 = vmatpush.bf16.msrb.mxu2 %v11842_v17  ;;  %3818 = vmatpush.bf16.msra.mxu0 %v11846_v18  ;;  %v11865_v17 = vld [vmem:[#allocation12 + $0x2a0] sm:$0xf]  ;;  %v15318_v18 = vld [vmem:[#allocation12 + $0x2a4] sm:$0xf0] }
 0x2db   : > { %3832 = vmatpush.bf16.msra.mxu1 %v11910_v6  ;;  %3804 = vmatpush.bf16.msrb.mxu3 %v11906_v9  ;;  %v11806_v6 = vor.u32 %v15301_v35, %v11803_v7  ;;  %v11793_v9 = vld [vmem:[#allocation12 + $0x210] sm:$0xf]  ;;  %v11866_v25 = vor.u32 %v15318_v18, %v11865_v17  ;;  %v12030_v35 = vld [vmem:[#allocation13 + $0x1e0] sm:$0xf]  ;;  %v15390_v7 = vld [vmem:[#allocation13 + $0x1e4] sm:$0xf0] }
 0x2dc   : > { %v11794_v51 = vor.u32 %v15300_v36, %v11793_v9  ;;  %v11968_v17 = vld [vmem:[#allocation13 + $0x168] sm:$0xf0]  ;;  %v3625_v18 = vrot.slane %v11782_v58, 1  ;;  %v11958_v9 = vld [vmem:[#allocation13 + $0x150] sm:$0xf] }
 0x2dd   : > { %v15380_v58 = vld [vmem:[#allocation13 + $0x194] sm:$0xf0] }
 0x2de   : > { %3791 = vmatpush.bf16.msrb.mxu2 %v11834_v31  ;;  %3819 = vmatpush.bf16.msra.mxu0 %v11838_v11  ;;  %v11859_v31 = vld [vmem:[#allocation12 + $0x298] sm:$0xf0]  ;;  %v11857_v11 = vld [vmem:[#allocation12 + $0x290] sm:$0xf] }
 0x2df   : > { %3833 = vmatpush.bf16.msra.mxu1 %v11902_v3  ;;  %3805 = vmatpush.bf16.msrb.mxu3 %v11898_v8  ;;  %v11785_v3 = vld [vmem:[#allocation12 + $0x200] sm:$0xf]  ;;  %v15298_v8 = vld [vmem:[#allocation12 + $0x204] sm:$0xf0] }
 0x2e0   : > { %v11786_v10 = vor.u32 %v15298_v8, %v11785_v3  ;;  %v15370_v8 = vld [vmem:[#allocation13 + $0x144] sm:$0xf0] }
 0x2e1   : > { %v11951_v13 = vor.u32 %v15370_v8, %v11950_v27  ;;  %v15342_v27 = vld [vmem:[#allocation13 + $0x64] sm:$0xf0] }
 0x2e2   : > { %3792 = vmatpush.bf16.msrb.mxu2 %v11826_v55  ;;  %3820 = vmatpush.bf16.msra.mxu0 %v11830_v30  ;;  %v11862_v55 = vor.u32 %v15315_v24, %v11859_v31  ;;  %v11858_v30 = vor.u32 %v15316_v44, %v11857_v11  ;;  %v15371_v24 = vld [vmem:[#allocation13 + $0x154] sm:$0xf]  ;;  %v11960_v31 = vld [vmem:[#allocation13 + $0x158] sm:$0xf0]  ;;  %v12023_v44 = vor.u32 %v15388_v14, %v12022_v49  ;;  %v15358_v8 = vld [vmem:[#allocation13 + $0xe4] sm:$0xf0] }
 0x2e3   : > { %3834 = vmatpush.bf16.msra.mxu1 %v11894_v41  ;;  %3806 = vmatpush.bf16.msrb.mxu3 %v11890_v23  ;;  %v11777_v41 = vld [vmem:[#allocation3] sm:$0xe]  ;;  %v15296_v23 = vld [vmem:[#allocation3 + $0x4] sm:$0xf0]  ;;  %v11963_v3 = vor.u32 %v15371_v24, %v11960_v31 }
 0x2e4   : > { %v11778_v28 = vor.u32 %v15296_v23, %v11777_v41  ;;  %v15384_v41 = vld [vmem:[#allocation13 + $0x1b4] sm:$0xf0]  ;;  %v15367_v23 = vld [vmem:[#allocation13 + $0x134] sm:$0xf] }
 0x2e5   : > { %v11947_v48 = vor.u32 %v15367_v23, %v11944_v39 }
 0x2e6   : > { %3793 = vmatpush.bf16.msrb.mxu2 %v11818_v29  ;;  %3821 = vmatpush.bf16.msra.mxu0 %v11822_v37  ;;  %v15392_v29 = vld [vmem:[#allocation13 + $0x1f4] sm:$0xf0]  ;;  %v3621_v37 = vpack.c.b16 %v3617_v45, %v3617_v45  ;;  %v3622_v53 = vrot.slane %v11778_v28, 1  ;;  %v12014_v45 = vld [vmem:[#allocation13 + $0x1c0] sm:$0xf] }
 0x2e7   : > { %3835 = vmatpush.bf16.msra.mxu1 %v11886_v42  ;;  %3807 = vmatpush.bf16.msrb.mxu3 %v11882_v43  ;;  %v15375_v42 = vld [vmem:[#allocation13 + $0x174] sm:$0xf]  ;;  %v11976_v43 = vld [vmem:[#allocation13 + $0x178] sm:$0xf0]  ;;  %v11926_v28 = vld [vmem:[#allocation13 + $0x110] sm:$0xf] }
 0x2e8   : > { %3525 = vmatmul.bf16.vlgmr.msra.gmra.mxu2 %v17460_v32  ;;  %3539 = vmatmul.bf16.vlgmr.msra.gmra.mxu3 %v17462_v60 }
 0x2e9   : > { %3553 = vmatmul.bf16.vlgmr.msrb.gmra.mxu0 %v17460_v32  ;;  %3567 = vmatmul.bf16.vlgmr.msrb.gmra.mxu1 %v17462_v60 }
 0x2ea   : > { %3794 = vmatpush.bf16.msrb.mxu2 %v11810_v40  ;;  %3822 = vmatpush.bf16.msra.mxu0 %v11814_v22  ;;  %v12039_v40 = vor.u32 %v15392_v29, %v12038_v26  ;;  %v3623_v22 = vrot.slane %v3620_v46, 1  ;;  %v12007_v46 = vor.u32 %v15384_v41, %v12006_v56  ;;  %v15366_v26 = vld [vmem:[#allocation13 + $0x124] sm:$0xf0]  ;;  %v11998_v29 = vld [vmem:[#allocation13 + $0x1a0] sm:$0xf] }
 0x2eb   : > { %3836 = vmatpush.bf16.msra.mxu1 %v11878_v33  ;;  %3808 = vmatpush.bf16.msrb.mxu3 %v11874_v2  ;;  %v11979_v33 = vor.u32 %v15375_v42, %v11976_v43  ;;  %v3626_v2 = vrot.slane %v3621_v37, 1  ;;  %v15382_v37 = vld [vmem:[#allocation13 + $0x1a4] sm:$0xf0]  ;;  %v11935_v42 = vor.u32 %v15366_v26, %v11934_v47  ;;  %v15339_v56 = vld [vmem:[#allocation13 + $0x54] sm:$0xf] }
 0x2ec   : > { %v17481_v50 = vsel %vm1220_vm10, %v3622_v53, %v3623_v22  ;;  %v11999_v43 = vor.u32 %v15382_v37, %v11998_v29  ;;  %v15361_v53 = vld [vmem:[#allocation13 + $0x104] sm:$0xf]  ;;  %v12088_v41 = vld [vmem:[#allocation13 + $0x58] sm:$0xf0]  ;;  %v15338_v47 = vld [vmem:[#allocation13 + $0x44] sm:$0xf0] }
 0x2ed   : > { %v17484_v36 = vsel %vm1220_vm10, %v3625_v18, %v3626_v2  ;;  %v11982_v2 = vld [vmem:[#allocation13 + $0x180] sm:$0xf]  ;;  %v15344_v18 = vld [vmem:[#allocation13 + $0x74] sm:$0xf0]  ;;  %v15354_v26 = vld [vmem:[#allocation13 + $0xc4] sm:$0xf0] }
 0x2ee   : > { %3795 = vmatpush.bf16.msrb.mxu2 %v11802_v4  ;;  %3823 = vmatpush.bf16.msra.mxu0 %v11806_v6  ;;  %v11967_v4 = vor.u32 %v15374_v0, %v11966_v34  ;;  %v12031_v6 = vor.u32 %v15390_v7, %v12030_v35  ;;  %v11918_v0 = vld [vmem:[#allocation13 + $0x100] sm:$0xf]  ;;  %v15378_v7 = vld [vmem:[#allocation13 + $0x184] sm:$0xf0]  ;;  %v15337_v29 = vld [vmem:[#allocation13 + $0x44] sm:$0xf] }
 0x2ef   : > { %3837 = vmatpush.bf16.msra.mxu1 %v11870_v57  ;;  %3809 = vmatpush.bf16.msrb.mxu3 %v11866_v25  ;;  %v11971_v57 = vor.u32 %v15373_v12, %v11968_v17  ;;  %v15372_v25 = vld [vmem:[#allocation13 + $0x154] sm:$0xf0]  ;;  %v11920_v12 = vld [vmem:[#allocation13 + $0x108] sm:$0xf0]  ;;  %v12102_v17 = vld [vmem:[#allocation13 + $0x70] sm:$0xf]  ;;  %v11983_v49 = vor.u32 %v15378_v7, %v11982_v2 }
 0x2f0   : > { %v11959_v11 = vor.u32 %v15372_v25, %v11958_v9  ;;  %v15343_v9 = vld [vmem:[#allocation13 + $0x74] sm:$0xf]  ;;  %v11923_v14 = vor.u32 %v15361_v53, %v11920_v12  ;;  %v12103_v24 = vor.u32 %v15344_v18, %v12102_v17  ;;  %v12080_v37 = vld [vmem:[#allocation13 + $0x48] sm:$0xf0]  ;;  %v15333_v2 = vld [vmem:[#allocation13 + $0x24] sm:$0xf] }
 0x2f1   : > { %v12054_v17 = vld [vmem:[#allocation13 + $0x10] sm:$0xf]  ;;  %v15332_v18 = vld [vmem:[#allocation13 + $0x14] sm:$0xf0] }
 0x2f2   : > { %3796 = vmatpush.bf16.msrb.mxu2 %v11794_v51  ;;  %3824 = vmatpush.bf16.msra.mxu0 %v11798_v1  ;;  %v15386_v51 = vld [vmem:[#allocation13 + $0x1c4] sm:$0xf0]  ;;  %v15369_v1 = vld [vmem:[#allocation13 + $0x144] sm:$0xf] }
 0x2f3   : > { %3838 = vmatpush.bf16.msra.mxu1 %v11862_v55  ;;  %3810 = vmatpush.bf16.msrb.mxu3 %v11858_v30  ;;  %v12015_v61 = vor.u32 %v15386_v51, %v12014_v45  ;;  %v11942_v55 = vld [vmem:[#allocation13 + $0x130] sm:$0xf]  ;;  %v11955_v30 = vor.u32 %v15369_v1, %v11952_v52  ;;  %v15341_v45 = vld [vmem:[#allocation13 + $0x64] sm:$0xf]  ;;  %v12096_v51 = vld [vmem:[#allocation13 + $0x68] sm:$0xf0] }
 0x2f4   : > { %v11943_v19 = vor.u32 %v15368_v38, %v11942_v55  ;;  %v15340_v55 = vld [vmem:[#allocation13 + $0x54] sm:$0xf0] }
 0x2f5   : > { %v15356_v38 = vld [vmem:[#allocation13 + $0xd4] sm:$0xf0] }
 0x2f6   : > { %3797 = vmatpush.bf16.msrb.mxu2 %v11786_v10  ;;  %3825 = vmatpush.bf16.msra.mxu0 %v11790_v59  ;;  %v15365_v10 = vld [vmem:[#allocation13 + $0x124] sm:$0xf]  ;;  %v11936_v59 = vld [vmem:[#allocation13 + $0x128] sm:$0xf0] }
 0x2f7   : > { %3839 = vmatpush.bf16.msra.mxu1 %v11854_v62  ;;  %3811 = vmatpush.bf16.msrb.mxu3 %v11850_v63  ;;  %v11939_v54 = vor.u32 %v15365_v10, %v11936_v59  ;;  %v15364_v62 = vld [vmem:[#allocation13 + $0x114] sm:$0xf0]  ;;  %v11990_v63 = vld [vmem:[#allocation13 + $0x190] sm:$0xf] }
 0x2f8   : > { %v11927_v22 = vor.u32 %v15364_v62, %v11926_v28  ;;  %v11991_v34 = vor.u32 %v15380_v58, %v11990_v63  ;;  %v12134_v28 = vld [vmem:[#allocation13 + $0xb0] sm:$0xf]  ;;  %v15335_v62 = vld [vmem:[#allocation13 + $0x34] sm:$0xf]  ;;  %v12072_v63 = vld [vmem:[#allocation13 + $0x38] sm:$0xf0] }
 0x2f9   : > { %3826 = vmatmul.bf16.vlgmr.msra.gmra.mxu0 %v17481_v50  ;;  %3798 = vmatmul.bf16.vlgmr.msrb.gmra.mxu2 %v17481_v50 }
 0x2fa   : > { %4142 = vmatpush.bf16.msrb.mxu0 %v11975_v20  ;;  %4170 = vmatpush.bf16.msra.mxu2 %v11979_v33  ;;  %v15363_v20 = vld [vmem:[#allocation13 + $0x114] sm:$0xf]  ;;  %v15362_v33 = vld [vmem:[#allocation13 + $0x104] sm:$0xf0] }
 0x2fb   : > { %4156 = vmatpush.bf16.msrb.mxu1 %v12039_v40  ;;  %3812 = vmatmul.bf16.vlgmr.msrb.gmra.mxu3 %v17484_v36  ;;  %v11928_v40 = vld [vmem:[#allocation13 + $0x118] sm:$0xf0]  ;;  %v11919_v25 = vor.u32 %v15362_v33, %v11918_v0  ;;  %v12126_v0 = vld [vmem:[#allocation13 + $0xa0] sm:$0xf]  ;;  %v15350_v33 = vld [vmem:[#allocation13 + $0xa4] sm:$0xf0] }
 0x2fc   : > { %3840 = vmatmul.bf16.vlgmr.msra.gmra.mxu1 %v17484_v36  ;;  %v11931_v35 = vor.u32 %v15363_v20, %v11928_v40  ;;  %v12075_v40 = vor.u32 %v15335_v62, %v12072_v63  ;;  %v12127_v53 = vor.u32 %v15350_v33, %v12126_v0  ;;  %v12206_v63 = vld [vmem:[#allocation13 + $0x240] sm:$0xf]  ;;  %v12208_v0 = vld [vmem:[#allocation13 + $0x248] sm:$0xf0] }
 0x2fe   : > { %4143 = vmatpush.bf16.msrb.mxu0 %v11967_v4  ;;  %4171 = vmatpush.bf16.msra.mxu2 %v11971_v57  ;;  %v12166_v4 = vld [vmem:[#allocation13 + $0xf0] sm:$0xf]  ;;  %v12104_v57 = vld [vmem:[#allocation13 + $0x78] sm:$0xf0] }
 0x2ff   : > { %4157 = vmatpush.bf16.msrb.mxu1 %v12031_v6  ;;  %v15360_v6 = vld [vmem:[#allocation13 + $0xf4] sm:$0xf0] }
 0x300   : > { %v12167_v31 = vor.u32 %v15360_v6, %v12166_v4  ;;  %v12118_v4 = vld [vmem:[#allocation13 + $0x90] sm:$0xf]  ;;  %v15348_v6 = vld [vmem:[#allocation13 + $0x94] sm:$0xf0] }
 0x302   : > { %4144 = vmatpush.bf16.msrb.mxu0 %v11959_v11  ;;  %4172 = vmatpush.bf16.msra.mxu2 %v11963_v3  ;;  %v12107_v11 = vor.u32 %v15343_v9, %v12104_v57  ;;  %v12158_v3 = vld [vmem:[#allocation13 + $0xe0] sm:$0xf]  ;;  %v15331_v9 = vld [vmem:[#allocation13 + $0x14] sm:$0xf]  ;;  %v12056_v57 = vld [vmem:[#allocation13 + $0x18] sm:$0xf0] }
 0x303   : > { %4158 = vmatpush.bf16.msrb.mxu1 %v12023_v44  ;;  %v12094_v44 = vld [vmem:[#allocation13 + $0x60] sm:$0xf]  ;;  %v12159_v52 = vor.u32 %v15358_v8, %v12158_v3  ;;  %v12048_v3 = vld [vmem:[#allocation13 + $0x8] sm:$0xf0]  ;;  %v12230_v8 = vld [vmem:[#allocation13 + $0x270] sm:$0xf] }
 0x304   : > { %v12095_v1 = vor.u32 %v15342_v27, %v12094_v44  ;;  %v15346_v44 = vld [vmem:[#allocation13 + $0x84] sm:$0xf0]  ;;  %v15329_v27 = vld [vmem:[#allocation13 + $0x4] sm:$0xf] }
 0x306   : > { %4145 = vmatpush.bf16.msrb.mxu0 %v11951_v13  ;;  %4173 = vmatpush.bf16.msra.mxu2 %v11955_v30  ;;  %v12099_v13 = vor.u32 %v15341_v45, %v12096_v51  ;;  %v12150_v30 = vld [vmem:[#allocation13 + $0xd0] sm:$0xf]  ;;  %v15408_v45 = vld [vmem:[#allocation13 + $0x274] sm:$0xf0] }
 0x307   : > { %4159 = vmatpush.bf16.msrb.mxu1 %v12015_v61  ;;  %v12086_v61 = vld [vmem:[#allocation13 + $0x50] sm:$0xf]  ;;  %v12151_v39 = vor.u32 %v15356_v38, %v12150_v30  ;;  %v12051_v30 = vor.u32 %v15329_v27, %v12048_v3  ;;  %v12231_v38 = vor.u32 %v15408_v45, %v12230_v8  ;;  %v15396_v8 = vld [vmem:[#allocation13 + $0x214] sm:$0xf0] }
 0x308   : > { %v12087_v23 = vor.u32 %v15340_v55, %v12086_v61  ;;  %v12294_v51 = vld [vmem:[#allocation13 + $0x2f0] sm:$0xf]  ;;  %v12232_v61 = vld [vmem:[#allocation13 + $0x278] sm:$0xf0] }
 0x309   : > { %v12182_v27 = vld [vmem:[#allocation13 + $0x210] sm:$0xf] }
 0x30a   : > { %4146 = vmatpush.bf16.msrb.mxu0 %v11943_v19  ;;  %4174 = vmatpush.bf16.msra.mxu2 %v11947_v48  ;;  %v12091_v19 = vor.u32 %v15339_v56, %v12088_v41  ;;  %v12142_v48 = vld [vmem:[#allocation13 + $0xc0] sm:$0xf]  ;;  %v12246_v45 = vld [vmem:[#allocation13 + $0x290] sm:$0xf] }
 0x30b   : > { %4160 = vmatpush.bf16.msrb.mxu1 %v12007_v46  ;;  %v12078_v46 = vld [vmem:[#allocation13 + $0x40] sm:$0xf]  ;;  %v12143_v59 = vor.u32 %v15354_v26, %v12142_v48  ;;  %v12224_v48 = vld [vmem:[#allocation13 + $0x268] sm:$0xf0] }
 0x30c   : > { %v12079_v10 = vor.u32 %v15338_v47, %v12078_v46  ;;  %v12222_v41 = vld [vmem:[#allocation13 + $0x260] sm:$0xf]  ;;  %v15422_v46 = vld [vmem:[#allocation13 + $0x2e4] sm:$0xf0]  ;;  %v15405_v47 = vld [vmem:[#allocation13 + $0x264] sm:$0xf] }
 0x30e   : > { %4147 = vmatpush.bf16.msrb.mxu0 %v11935_v42  ;;  %4175 = vmatpush.bf16.msra.mxu2 %v11939_v54  ;;  %v12083_v42 = vor.u32 %v15337_v29, %v12080_v37  ;;  %v15352_v54 = vld [vmem:[#allocation13 + $0xb4] sm:$0xf0]  ;;  %v12214_v37 = vld [vmem:[#allocation13 + $0x250] sm:$0xf] }
 0x30f   : > { %4161 = vmatpush.bf16.msrb.mxu1 %v11999_v43  ;;  %v12070_v43 = vld [vmem:[#allocation13 + $0x30] sm:$0xf]  ;;  %v12135_v20 = vor.u32 %v15352_v54, %v12134_v28  ;;  %v12216_v28 = vld [vmem:[#allocation13 + $0x258] sm:$0xf0] }
 0x312   : > { %4148 = vmatpush.bf16.msrb.mxu0 %v11927_v22  ;;  %4176 = vmatpush.bf16.msra.mxu2 %v11931_v35  ;;  %v12062_v22 = vld [vmem:[#allocation13 + $0x20] sm:$0xf]  ;;  %v12064_v35 = vld [vmem:[#allocation13 + $0x28] sm:$0xf0] }
 0x313   : > { %4162 = vmatpush.bf16.msrb.mxu1 %v11991_v34  ;;  %v15334_v34 = vld [vmem:[#allocation13 + $0x24] sm:$0xf0]  ;;  %v12067_v12 = vor.u32 %v15333_v2, %v12064_v35  ;;  %v12198_v35 = vld [vmem:[#allocation13 + $0x230] sm:$0xf] }
 0x314   : > { %v12063_v7 = vor.u32 %v15334_v34, %v12062_v22  ;;  %v15418_v22 = vld [vmem:[#allocation13 + $0x2c4] sm:$0xf0]  ;;  %v15401_v34 = vld [vmem:[#allocation13 + $0x244] sm:$0xf] }
 0x316   : > { %4149 = vmatpush.bf16.msrb.mxu0 %v11919_v25  ;;  %4177 = vmatpush.bf16.msra.mxu2 %v11923_v14  ;;  %v12055_v25 = vor.u32 %v15332_v18, %v12054_v17  ;;  %v12119_v14 = vor.u32 %v15348_v6, %v12118_v4  ;;  %v15399_v17 = vld [vmem:[#allocation13 + $0x234] sm:$0xf]  ;;  %v12200_v18 = vld [vmem:[#allocation13 + $0x238] sm:$0xf0] }
 0x317   : > { %4163 = vmatpush.bf16.msrb.mxu1 %v11983_v49  ;;  %v12046_v49 = vld [vmem:[#allocation13] sm:$0xf] }
 0x319   : > { %4150 = vmatmul.bf16.vlgmr.msrb.gmra.mxu0 %v17468_v16  ;;  %4178 = vmatmul.bf16.vlgmr.msra.gmra.mxu2 %v17468_v16  ;;  %v15336_v16 = vld [vmem:[#allocation13 + $0x34] sm:$0xf0] }
 0x31a   : > { %4358 = vmatpush.bf16.msra.mxu0 %v12103_v24  ;;  %4386 = vmatpush.bf16.msrb.mxu2 %v12107_v11  ;;  %v12071_v58 = vor.u32 %v15336_v16, %v12070_v43  ;;  %v12059_v24 = vor.u32 %v15331_v9, %v12056_v57  ;;  %v12110_v11 = vld [vmem:[#allocation13 + $0x80] sm:$0xf]  ;;  %v15420_v43 = vld [vmem:[#allocation13 + $0x2d4] sm:$0xf0]  ;;  %v15403_v16 = vld [vmem:[#allocation13 + $0x254] sm:$0xf]  ;;  %v12203_v57 = vor.u32 %v15399_v17, %v12200_v18 }
 0x31b   : > { %4372 = vmatpush.bf16.msra.mxu1 %v12167_v31  ;;  %v15330_v31 = vld [vmem:[#allocation13 + $0x4] sm:$0xf0]  ;;  %v12111_v55 = vor.u32 %v15346_v44, %v12110_v11  ;;  %v12190_v9 = vld [vmem:[#allocation13 + $0x220] sm:$0xf] }
 0x31c   : > { %4164 = vmatmul.bf16.vlgmr.msrb.gmra.mxu1 %v17470_v21 }
 0x31e   : > { %4359 = vmatpush.bf16.msra.mxu0 %v12095_v1  ;;  %4387 = vmatpush.bf16.msrb.mxu2 %v12099_v13  ;;  %v15424_v1 = vld [vmem:[#allocation13 + $0x2f4] sm:$0xf0]  ;;  %v15407_v13 = vld [vmem:[#allocation13 + $0x274] sm:$0xf] }
 0x31f   : > { %4373 = vmatpush.bf16.msra.mxu1 %v12159_v52  ;;  %v12047_v52 = vor.u32 %v15330_v31, %v12046_v49  ;;  %v12295_v56 = vor.u32 %v15424_v1, %v12294_v51  ;;  %v12254_v49 = vld [vmem:[#allocation13 + $0x2a0] sm:$0xf]  ;;  %v12192_v31 = vld [vmem:[#allocation13 + $0x228] sm:$0xf0]  ;;  %v15412_v51 = vld [vmem:[#allocation13 + $0x294] sm:$0xf0] }
 0x320   : > { %v15395_v1 = vld [vmem:[#allocation13 + $0x214] sm:$0xf] }
 0x322   : > { %4360 = vmatpush.bf16.msra.mxu0 %v12087_v23  ;;  %4388 = vmatpush.bf16.msrb.mxu2 %v12091_v19  ;;  %v12235_v23 = vor.u32 %v15407_v13, %v12232_v61  ;;  %v12286_v19 = vld [vmem:[#allocation13 + $0x2e0] sm:$0xf]  ;;  %v12183_v13 = vor.u32 %v15396_v8, %v12182_v27  ;;  %v12247_v61 = vor.u32 %v15412_v51, %v12246_v45 }
 0x323   : > { %4374 = vmatpush.bf16.msra.mxu1 %v12151_v39  ;;  %v15406_v39 = vld [vmem:[#allocation13 + $0x264] sm:$0xf0]  ;;  %v12287_v29 = vor.u32 %v15422_v46, %v12286_v19 }
 0x324   : > { %v12223_v26 = vor.u32 %v15406_v39, %v12222_v41  ;;  %v15410_v41 = vld [vmem:[#allocation13 + $0x284] sm:$0xf0]  ;;  %v12176_v39 = vld [vmem:[#allocation13 + $0x208] sm:$0xf0] }
 0x326   : > { %4361 = vmatpush.bf16.msra.mxu0 %v12079_v10  ;;  %4389 = vmatpush.bf16.msrb.mxu2 %v12083_v42  ;;  %v12227_v10 = vor.u32 %v15405_v47, %v12224_v48  ;;  %v12278_v42 = vld [vmem:[#allocation13 + $0x2d0] sm:$0xf] }
 0x327   : > { %4375 = vmatpush.bf16.msra.mxu1 %v12143_v59  ;;  %v15404_v59 = vld [vmem:[#allocation13 + $0x254] sm:$0xf0]  ;;  %v12279_v62 = vor.u32 %v15420_v43, %v12278_v42 }
 0x328   : > { %v12215_v54 = vor.u32 %v15404_v59, %v12214_v37 }
 0x32a   : > { %4362 = vmatpush.bf16.msra.mxu0 %v12071_v58  ;;  %4390 = vmatpush.bf16.msrb.mxu2 %v12075_v40  ;;  %v12219_v58 = vor.u32 %v15403_v16, %v12216_v28  ;;  %v12270_v40 = vld [vmem:[#allocation13 + $0x2c0] sm:$0xf] }
 0x32b   : > { %4376 = vmatpush.bf16.msra.mxu1 %v12135_v20  ;;  %v15402_v20 = vld [vmem:[#allocation13 + $0x244] sm:$0xf0]  ;;  %v12271_v2 = vor.u32 %v15418_v22, %v12270_v40 }
 0x32c   : > { %v12207_v33 = vor.u32 %v15402_v20, %v12206_v63 }
 0x32e   : > { %4363 = vmatpush.bf16.msra.mxu0 %v12063_v7  ;;  %4391 = vmatpush.bf16.msrb.mxu2 %v12067_v12  ;;  %v15400_v7 = vld [vmem:[#allocation13 + $0x234] sm:$0xf0] }
 0x32f   : > { %4377 = vmatpush.bf16.msra.mxu1 %v12127_v53  ;;  %v12262_v53 = vld [vmem:[#allocation13 + $0x2b0] sm:$0xf]  ;;  %v15416_v12 = vld [vmem:[#allocation13 + $0x2b4] sm:$0xf0]  ;;  %v12199_v4 = vor.u32 %v15400_v7, %v12198_v35 }
 0x330   : > { %v12263_v6 = vor.u32 %v15416_v12, %v12262_v53 }
 0x332   : > { %4364 = vmatpush.bf16.msra.mxu0 %v12055_v25  ;;  %4392 = vmatpush.bf16.msrb.mxu2 %v12059_v24  ;;  %v15398_v25 = vld [vmem:[#allocation13 + $0x224] sm:$0xf0]  ;;  %v15397_v24 = vld [vmem:[#allocation13 + $0x224] sm:$0xf] }
 0x333   : > { %4378 = vmatpush.bf16.msra.mxu1 %v12119_v14  ;;  %v15414_v14 = vld [vmem:[#allocation13 + $0x2a4] sm:$0xf0]  ;;  %v12191_v11 = vor.u32 %v15398_v25, %v12190_v9  ;;  %v12195_v3 = vor.u32 %v15397_v24, %v12192_v31 }
 0x334   : > { %v12255_v44 = vor.u32 %v15414_v14, %v12254_v49 }
 0x336   : > { %4365 = vmatpush.bf16.msra.mxu0 %v12047_v52  ;;  %4393 = vmatpush.bf16.msrb.mxu2 %v12051_v30  ;;  %v12184_v52 = vld [vmem:[#allocation13 + $0x218] sm:$0xf0] }
 0x337   : > { %4379 = vmatpush.bf16.msra.mxu1 %v12111_v55  ;;  %v12174_v55 = vld [vmem:[#allocation13 + $0x200] sm:$0xf]  ;;  %v12187_v30 = vor.u32 %v15395_v1, %v12184_v52  ;;  %v16694_v1 = vmov 0.0  }
 0x339   : > { %4366 = vmatmul.bf16.vlgmr.msra.gmra.mxu0 %v17460_v32  ;;  %4394 = vmatmul.bf16.vlgmr.msrb.gmra.mxu2 %v17460_v32  ;;  %v12211_v32 = vor.u32 %v15401_v34, %v12208_v0  ;;  %v3850_v0 = vlaneseq }
 0x33a   : > { %4607 = vmatpush.bf16.msrb.mxu0 %v12231_v38  ;;  %4635 = vmatpush.bf16.msra.mxu2 %v12235_v23  ;;  %v15394_v38 = vld [vmem:[#allocation13 + $0x204] sm:$0xf0]  ;;  %v15393_v23 = vld [vmem:[#allocation13 + $0x204] sm:$0xf] }
 0x33b   : > { %4621 = vmatpush.bf16.msrb.mxu1 %v12295_v56  ;;  %v12238_v56 = vld [vmem:[#allocation13 + $0x280] sm:$0xf]  ;;  %v12175_v19 = vor.u32 %v15394_v38, %v12174_v55  ;;  %v12179_v47 = vor.u32 %v15393_v23, %v12176_v39  ;;  %v3853_v53 = vand.u32 127, %v3850_v0  ;;  %v12032_v23 = vld [vmem:[#allocation13 + $0x1e8] sm:$0xf0] }
 0x33c   : > { %4380 = vmatmul.bf16.vlgmr.msra.gmra.mxu1 %v17462_v60  ;;  %v12239_v46 = vor.u32 %v15410_v41, %v12238_v56  ;;  %v15389_v41 = vld [vmem:[#allocation13 + $0x1e4] sm:$0xf] }
 0x33d   : > { %v12035_v39 = vor.u32 %v15389_v41, %v12032_v23  ;;  %v15472_v41 = vld [vmem:[#allocation15 + $0x174] sm:$0xf0] }
 0x33e   : > { %4608 = vmatpush.bf16.msrb.mxu0 %v12223_v26  ;;  %4636 = vmatpush.bf16.msra.mxu2 %v12227_v10 }
 0x33f   : > { %4622 = vmatpush.bf16.msrb.mxu1 %v12287_v29 }
 0x342   : > { %4609 = vmatpush.bf16.msrb.mxu0 %v12215_v54  ;;  %4637 = vmatpush.bf16.msra.mxu2 %v12219_v58 }
 0x343   : > { %4623 = vmatpush.bf16.msrb.mxu1 %v12279_v62 }
 0x346   : > { %4610 = vmatpush.bf16.msrb.mxu0 %v12207_v33  ;;  %4638 = vmatpush.bf16.msra.mxu2 %v12211_v32 }
 0x347   : > { %4624 = vmatpush.bf16.msrb.mxu1 %v12271_v2  ;;  %v3851_v2 = vshrl.u32 %v3850_v0, 7 }
 0x349   : > { %v3854_v12 = vmul.u32 2, %v3851_v2  ;;  %v12160_v2 = vld [vmem:[#allocation13 + $0xe8] sm:$0xf0] }
 0x34a   : > { %4611 = vmatpush.bf16.msrb.mxu0 %v12199_v4  ;;  %4639 = vmatpush.bf16.msra.mxu2 %v12203_v57 }
 0x34b   : > { %4625 = vmatpush.bf16.msrb.mxu1 %v12263_v6  ;;  %vm3855_vm2 = vcmp.eq.s32.totalorder %v3853_v53, %v3854_v12  ;;  %v15353_v12 = vld [vmem:[#allocation13 + $0xc4] sm:$0xf] }
 0x34c   : > { %v17500_v52 = vsel %vm3855_vm2, 1.0, %v16694_v1  ;;  %vm17849_vm2 = vmand %vm9610_vm7, %vm9611_vm5 }
 0x34e   : > { %4612 = vmatpush.bf16.msrb.mxu0 %v12191_v11  ;;  %4640 = vmatpush.bf16.msra.mxu2 %v12195_v3 }
 0x34f   : > { %4626 = vmatpush.bf16.msrb.mxu1 %v12255_v44 }
 0x352   : > { %4613 = vmatpush.bf16.msrb.mxu0 %v12183_v13  ;;  %4641 = vmatpush.bf16.msra.mxu2 %v12187_v30  ;;  %v15391_v13 = vld [vmem:[#allocation13 + $0x1f4] sm:$0xf] }
 0x353   : > { %4627 = vmatpush.bf16.msrb.mxu1 %v12247_v61  ;;  %v12040_v61 = vld [vmem:[#allocation13 + $0x1f8] sm:$0xf0] }
 0x354   : > { %v12043_v38 = vor.u32 %v15391_v13, %v12040_v61 }
 0x356   : > { %4614 = vmatpush.bf16.msrb.mxu0 %v12175_v19  ;;  %4642 = vmatpush.bf16.msra.mxu2 %v12179_v47  ;;  %v3336_v48 = vpop.f32.mrf.mxu0  ;;  %v3350_v26 = vpop.f32.mrf.mxu1  ;;  %v15387_v19 = vld [vmem:[#allocation13 + $0x1d4] sm:$0xf] }
 0x357   : > { %4628 = vmatpush.bf16.msrb.mxu1 %v12239_v46  ;;  %v3351_v9 = vadd.f32 %v3350_v26, %v3336_v48  ;;  %v12024_v46 = vld [vmem:[#allocation13 + $0x1d8] sm:$0xf0]  ;;  %v15385_v48 = vld [vmem:[#allocation13 + $0x1c4] sm:$0xf]  ;;  %v12016_v26 = vld [vmem:[#allocation13 + $0x1c8] sm:$0xf0] }
 0x358   : > { %v12027_v47 = vor.u32 %v15387_v19, %v12024_v46  ;;  %v12280_v46 = vld [vmem:[#allocation13 + $0x2d8] sm:$0xf0] }
 0x359   : > { %4615 = vmatmul.bf16.vlgmr.msrb.gmra.mxu0 %v17481_v50  ;;  %4643 = vmatmul.bf16.vlgmr.msra.gmra.mxu2 %v17481_v50 }
 0x35a   : > { %4629 = vmatmul.bf16.vlgmr.msrb.gmra.mxu1 %v17484_v36 }
 0x35b   : > { %v3308_v29 = vpop.f32.mrf.mxu2  ;;  %v3322_v37 = vpop.f32.mrf.mxu3 }
 0x35c   : > { %v3323_v32 = vadd.f32 %v3322_v37, %v3308_v29  ;;  %v12019_v29 = vor.u32 %v15385_v48, %v12016_v26  ;;  %v15383_v37 = vld [vmem:[#allocation13 + $0x1b4] sm:$0xf]  ;;  %v15470_v48 = vld [vmem:[#allocation15 + $0x164] sm:$0xf0] }
 0x35e   : > { %v3338_v10 = vpop.f32.mrf.mxu0  ;;  %v3352_v59 = vpop.f32.mrf.mxu1 }
 0x35f   : > { %v3353_v17 = vadd.f32 %v3352_v59, %v3338_v10  ;;  %v12008_v10 = vld [vmem:[#allocation13 + $0x1b8] sm:$0xf0] }
 0x360   : > { %v12011_v59 = vor.u32 %v15383_v37, %v12008_v10  ;;  %v15468_v37 = vld [vmem:[#allocation15 + $0x154] sm:$0xf0] }
 0x363   : > { %v3310_v42 = vpop.f32.mrf.mxu2  ;;  %v3324_v43 = vpop.f32.mrf.mxu3 }
 0x364   : > { %v3325_v35 = vadd.f32 %v3324_v43, %v3310_v42  ;;  %v15381_v42 = vld [vmem:[#allocation13 + $0x1a4] sm:$0xf]  ;;  %v12000_v43 = vld [vmem:[#allocation13 + $0x1a8] sm:$0xf0] }
 0x366   : > { %v3554_v16 = vpop.f32.mrf.mxu0  ;;  %v3568_v28 = vpop.f32.mrf.mxu1 }
 0x367   : > { %v3555_v11 = vadd.f32 %v3554_v16, %v3351_v9  ;;  %v12003_v16 = vor.u32 %v15381_v42, %v12000_v43  ;;  %v15351_v9 = vld [vmem:[#allocation13 + $0xb4] sm:$0xf]  ;;  %v15417_v43 = vld [vmem:[#allocation13 + $0x2c4] sm:$0xf] }
 0x369   : > { %v3569_v55 = vadd.f32 %v3568_v28, %v3555_v11  ;;  %v15379_v28 = vld [vmem:[#allocation13 + $0x194] sm:$0xf] }
 0x36b   : > { %v3526_v54 = vpop.f32.mrf.mxu2  ;;  %v3540_v62 = vpop.f32.mrf.mxu3 }
 0x36c   : > { %v3527_v18 = vadd.f32 %v3526_v54, %v3323_v32  ;;  %v11992_v54 = vld [vmem:[#allocation13 + $0x198] sm:$0xf0]  ;;  %v15355_v32 = vld [vmem:[#allocation13 + $0xd4] sm:$0xf] }
 0x36e   : > { %v3556_v63 = vpop.f32.mrf.mxu0  ;;  %v3570_v58 = vpop.f32.mrf.mxu1  ;;  %v3541_v44 = vadd.f32 %v3540_v62, %v3527_v18  ;;  %v11995_v62 = vor.u32 %v15379_v28, %v11992_v54 }
 0x36f   : > { %v3557_v49 = vadd.f32 %v3556_v63, %v3353_v17  ;;  %v15377_v63 = vld [vmem:[#allocation13 + $0x184] sm:$0xf]  ;;  %v12144_v17 = vld [vmem:[#allocation13 + $0xc8] sm:$0xf0] }
 0x371   : > { %v3571_v8 = vadd.f32 %v3570_v58, %v3557_v49  ;;  %v11984_v58 = vld [vmem:[#allocation13 + $0x188] sm:$0xf0]  ;;  %v15349_v49 = vld [vmem:[#allocation13 + $0xa4] sm:$0xf] }
 0x373   : > { %v3528_v20 = vpop.f32.mrf.mxu2  ;;  %v3542_v40 = vpop.f32.mrf.mxu3 }
 0x374   : > { %v3529_v7 = vadd.f32 %v3528_v20, %v3325_v35  ;;  %v15359_v20 = vld [vmem:[#allocation13 + $0xf4] sm:$0xf] }
 0x376   : > { %v3827_v22 = vpop.f32.mrf.mxu0  ;;  %v3543_v14 = vadd.f32 %v3542_v40, %v3529_v7  ;;  %v12168_v40 = vld [vmem:[#allocation13 + $0xf8] sm:$0xf0] }
 0x377   : > { %v12152_v7 = vld [vmem:[#allocation13 + $0xd8] sm:$0xf0] }
 0x378   : > { %v12155_v53 = vor.u32 %v15355_v32, %v12152_v7 }
 0x379   : > { %v3841_v34 = vpop.f32.mrf.mxu1 }
 0x37a   : > { %v3842_v45 = vadd.f32 %v3841_v34, %v3827_v22  ;;  %v11987_v22 = vor.u32 %v15377_v63, %v11984_v58  ;;  %v12171_v34 = vor.u32 %v15359_v20, %v12168_v40  ;;  %v15466_v63 = vld [vmem:[#allocation15 + $0x144] sm:$0xf0]  ;;  %v15415_v40 = vld [vmem:[#allocation13 + $0x2b4] sm:$0xf] }
 0x37c   : > { %v3799_v50 = vpop.f32.mrf.mxu2  ;;  %v3847_v56 = vadd.f32 %v3842_v45, %v3569_v55  ;;  %v15423_v45 = vld [vmem:[#allocation13 + $0x2f4] sm:$0xf] }
 0x37e   : > { %v3813_v33 = vpop.f32.mrf.mxu3  ;;  %v3829_v4 = vpop.f32.mrf.mxu0 }
 0x37f   : > { %v3814_v24 = vadd.f32 %v3813_v33, %v3799_v50  ;;  %v15357_v33 = vld [vmem:[#allocation13 + $0xe4] sm:$0xf] }
 0x380   : > { %v12163_v35 = vor.u32 %v15357_v33, %v12160_v2  ;;  %v12330_v2 = vld [vmem:[#allocation15 + $0x130] sm:$0xf] }
 0x381   : > { %v3843_v6 = vpop.f32.mrf.mxu1  ;;  %v3846_v51 = vadd.f32 %v3814_v24, %v3541_v44  ;;  %v12120_v44 = vld [vmem:[#allocation13 + $0x98] sm:$0xf0] }
 0x382   : > { %v3844_v27 = vadd.f32 %v3843_v6, %v3829_v4  ;;  %v12147_v6 = vor.u32 %v15353_v12, %v12144_v17  ;;  %v15413_v12 = vld [vmem:[#allocation13 + $0x2a4] sm:$0xf] }
 0x384   : > { %v3801_v57 = vpop.f32.mrf.mxu2  ;;  %v3849_v30 = vadd.f32 %v3844_v27, %v3571_v8  ;;  %v12112_v8 = vld [vmem:[#allocation13 + $0x88] sm:$0xf0] }
 0x386   : > { %v3815_v25 = vpop.f32.mrf.mxu3 }
 0x387   : > { %v3816_v31 = vadd.f32 %v3815_v25, %v3801_v57  ;;  %v12136_v57 = vld [vmem:[#allocation13 + $0xb8] sm:$0xf0] }
 0x388   : > { %v12139_v25 = vor.u32 %v15351_v9, %v12136_v57  ;;  %v15471_v9 = vld [vmem:[#allocation15 + $0x174] sm:$0xf]  ;;  %v12364_v57 = vld [vmem:[#allocation15 + $0x178] sm:$0xf0] }
 0x389   : > { %v3848_v3 = vadd.f32 %v3816_v31, %v3543_v14  ;;  %v12128_v14 = vld [vmem:[#allocation13 + $0xa8] sm:$0xf0] }
 0x38a   : > { %v12131_v11 = vor.u32 %v15349_v49, %v12128_v14  ;;  %v15411_v14 = vld [vmem:[#allocation13 + $0x294] sm:$0xf] }
 0x38b   : > { %11912 = vmatpush.msk.msra.mxu3 %vm1220_vm10, %v3848_v3  ;;  %v15345_v3 = vld [vmem:[#allocation13 + $0x84] sm:$0xf] }
 0x38c   : > { %v12115_v1 = vor.u32 %v15345_v3, %v12112_v8  ;;  %v15409_v8 = vld [vmem:[#allocation13 + $0x284] sm:$0xf] }
 0x38d   : > { %3890 = vmatpush.msra.mxu3 %v3846_v51  ;;  %v12296_v51 = vld [vmem:[#allocation13 + $0x2f8] sm:$0xf0] }
 0x38e   : > { %11913 = vmatmul.msk.f32.vlgmr.msra.gmra.mxu3 %vm3864_vm6, %v17500_v52  ;;  %v12299_v55 = vor.u32 %v15423_v45, %v12296_v51  ;;  %v12240_v51 = vld [vmem:[#allocation13 + $0x288] sm:$0xf0] }
 0x38f   : > { %11914 = vmatpush.msk.msrb.mxu3 %vm1220_vm10, %v3849_v30  ;;  %v15421_v30 = vld [vmem:[#allocation13 + $0x2e4] sm:$0xf] }
 0x391   : > { %3910 = vmatpush.msrb.mxu3 %v3847_v56  ;;  %v12362_v56 = vld [vmem:[#allocation15 + $0x170] sm:$0xf] }
 0x392   : > { %v12363_v19 = vor.u32 %v15472_v41, %v12362_v56  ;;  %v15465_v56 = vld [vmem:[#allocation15 + $0x144] sm:$0xf]  ;;  %v12340_v41 = vld [vmem:[#allocation15 + $0x148] sm:$0xf0] }
 0x393   : > { %4184 = vmatpush.bf16.msra.mxu3 %v12043_v38  ;;  %v12288_v38 = vld [vmem:[#allocation13 + $0x2e8] sm:$0xf0] }
 0x394   : > { %v12291_v23 = vor.u32 %v15421_v30, %v12288_v38  ;;  %4987 = vmatpush.bf16.msrb.mxu2 %v12363_v19  ;;  %v12343_v19 = vor.u32 %v15465_v56, %v12340_v41 }
 0x396   : > { %11915 = vmatmul.msk.f32.vlgmr.msrb.gmra.mxu3 %vm3864_vm6, %v17500_v52  ;;  %v17507_v0 = vpop.f32.mrf.mxu0 }
 0x397   : > { %4185 = vmatpush.bf16.msra.mxu3 %v12035_v39  ;;  %v15419_v39 = vld [vmem:[#allocation13 + $0x2d4] sm:$0xf] }
 0x398   : > { %v12283_v42 = vor.u32 %v15419_v39, %v12280_v46  ;;  %v15486_v39 = vld [vmem:[#allocation15 + $0x1e4] sm:$0xf0] }
 0x399   : > { %v17509_v50 = vpop.f32.mrf.mxu1 }
 0x39b   : > { %4186 = vmatpush.bf16.msra.mxu3 %v12027_v47  ;;  %v12354_v47 = vld [vmem:[#allocation15 + $0x160] sm:$0xf] }
 0x39c   : > { %v12355_v26 = vor.u32 %v15470_v48, %v12354_v47  ;;  %v15463_v47 = vld [vmem:[#allocation15 + $0x134] sm:$0xf]  ;;  %v12332_v48 = vld [vmem:[#allocation15 + $0x138] sm:$0xf0] }
 0x39e   : > { %v4153_v18 = vpop.f32.mrf.mxu0  ;;  %4988 = vmatpush.bf16.msrb.mxu2 %v12355_v26  ;;  %v12410_v26 = vld [vmem:[#allocation15 + $0x1d0] sm:$0xf] }
 0x39f   : > { %4187 = vmatpush.bf16.msra.mxu3 %v12019_v29  ;;  %v12346_v29 = vld [vmem:[#allocation15 + $0x150] sm:$0xf] }
 0x3a0   : > { %v12347_v28 = vor.u32 %v15468_v37, %v12346_v29  ;;  %v15484_v29 = vld [vmem:[#allocation15 + $0x1d4] sm:$0xf0]  ;;  %v12335_v37 = vor.u32 %v15463_v47, %v12332_v48  ;;  %v15435_v47 = vld [vmem:[#allocation15 + $0x54] sm:$0xf]  ;;  %v12476_v48 = vld [vmem:[#allocation15 + $0x58] sm:$0xf0] }
 0x3a1   : > { %v4167_v4 = vpop.f32.mrf.mxu1 }
 0x3a2   : > { %v4168_v54 = vadd.f32 %v4167_v4, %v4153_v18  ;;  %4989 = vmatpush.bf16.msrb.mxu2 %v12347_v28  ;;  %v15480_v28 = vld [vmem:[#allocation15 + $0x1b4] sm:$0xf0] }
 0x3a3   : > { %4188 = vmatpush.bf16.msra.mxu3 %v12011_v59 }
 0x3a7   : > { %4189 = vmatpush.bf16.msra.mxu3 %v12003_v16  ;;  %v12272_v16 = vld [vmem:[#allocation13 + $0x2c8] sm:$0xf0] }
 0x3a8   : > { %v12275_v58 = vor.u32 %v15417_v43, %v12272_v16  ;;  %v12394_v16 = vld [vmem:[#allocation15 + $0x1b0] sm:$0xf] }
 0x3ab   : > { %4190 = vmatpush.bf16.msra.mxu3 %v11995_v62  ;;  %v12338_v62 = vld [vmem:[#allocation15 + $0x140] sm:$0xf] }
 0x3af   : > { %4191 = vmatpush.bf16.msra.mxu3 %v11987_v22  ;;  %v12264_v22 = vld [vmem:[#allocation13 + $0x2b8] sm:$0xf0] }
 0x3b2   : > { %4192 = vmatmul.bf16.vlgmr.msra.gmra.mxu3 %v17470_v21  ;;  %v15347_v21 = vld [vmem:[#allocation13 + $0x94] sm:$0xf] }
 0x3b3   : > { %4400 = vmatpush.bf16.msrb.mxu3 %v12171_v34  ;;  %v12123_v27 = vor.u32 %v15347_v21, %v12120_v44  ;;  %v12339_v34 = vor.u32 %v15466_v63, %v12338_v62  ;;  %v12248_v21 = vld [vmem:[#allocation13 + $0x298] sm:$0xf0]  ;;  %v15469_v44 = vld [vmem:[#allocation15 + $0x164] sm:$0xf]  ;;  %v15462_v62 = vld [vmem:[#allocation15 + $0x124] sm:$0xf0]  ;;  %v12395_v63 = vor.u32 %v15480_v28, %v12394_v16 }
 0x3b4   : > { %v12251_v3 = vor.u32 %v15411_v14, %v12248_v21  ;;  %v12554_v21 = vld [vmem:[#allocation15 + $0xf0] sm:$0xf]  ;;  %v12530_v16 = vld [vmem:[#allocation15 + $0xc0] sm:$0xf]  ;;  %v15450_v28 = vld [vmem:[#allocation15 + $0xc4] sm:$0xf0] }
 0x3b5   : > { %4990 = vmatpush.bf16.msrb.mxu2 %v12339_v34  ;;  %v12314_v34 = vld [vmem:[#allocation15 + $0x110] sm:$0xf] }
 0x3b6   : > { %v4367_v24 = vpop.f32.mrf.mxu0 }
 0x3b7   : > { %4401 = vmatpush.bf16.msrb.mxu3 %v12163_v35  ;;  %v15464_v35 = vld [vmem:[#allocation15 + $0x134] sm:$0xf0] }
 0x3b9   : > { %v17512_v31 = vpop.f32.mrf.mxu1 }
 0x3bb   : > { %4402 = vmatpush.bf16.msrb.mxu3 %v12155_v53  ;;  %v12267_v53 = vor.u32 %v15415_v40, %v12264_v22  ;;  %v12324_v40 = vld [vmem:[#allocation15 + $0x128] sm:$0xf0] }
 0x3be   : > { %v4369_v13 = vpop.f32.mrf.mxu0 }
 0x3bf   : > { %4403 = vmatpush.bf16.msrb.mxu3 %v12147_v6  ;;  %v4370_v20 = vadd.f32 %v4369_v13, %v4168_v54  ;;  %v12256_v6 = vld [vmem:[#allocation13 + $0x2a8] sm:$0xf0]  ;;  %v12426_v13 = vld [vmem:[#allocation15 + $0x1f0] sm:$0xf]  ;;  %v12322_v54 = vld [vmem:[#allocation15 + $0x120] sm:$0xf] }
 0x3c0   : > { %v12259_v49 = vor.u32 %v15413_v12, %v12256_v6  ;;  %v12378_v12 = vld [vmem:[#allocation15 + $0x190] sm:$0xf]  ;;  %v15458_v6 = vld [vmem:[#allocation15 + $0x104] sm:$0xf0] }
 0x3c1   : > { %v4383_v61 = vpop.f32.mrf.mxu1 }
 0x3c2   : > { %v4384_v17 = vadd.f32 %v4383_v61, %v4370_v20  ;;  %v15488_v61 = vld [vmem:[#allocation15 + $0x1f4] sm:$0xf0]  ;;  %v15461_v20 = vld [vmem:[#allocation15 + $0x124] sm:$0xf] }
 0x3c3   : > { %4404 = vmatpush.bf16.msrb.mxu3 %v12139_v25  ;;  %v12427_v38 = vor.u32 %v15488_v61, %v12426_v13  ;;  %v12327_v22 = vor.u32 %v15461_v20, %v12324_v40  ;;  %v12546_v13 = vld [vmem:[#allocation15 + $0xe0] sm:$0xf]  ;;  %v12531_v20 = vor.u32 %v15450_v28, %v12530_v16 }
 0x3c7   : > { %4405 = vmatpush.bf16.msrb.mxu3 %v12131_v11 }
 0x3cb   : > { %4406 = vmatpush.bf16.msrb.mxu3 %v12123_v27  ;;  %v12356_v27 = vld [vmem:[#allocation15 + $0x168] sm:$0xf0] }
 0x3cc   : > { %v12359_v45 = vor.u32 %v15469_v44, %v12356_v27  ;;  %v15456_v27 = vld [vmem:[#allocation15 + $0xf4] sm:$0xf0] }
 0x3cf   : > { %4407 = vmatpush.bf16.msrb.mxu3 %v12115_v1  ;;  %v12348_v1 = vld [vmem:[#allocation15 + $0x158] sm:$0xf0] }
 0x3d2   : > { %4408 = vmatmul.bf16.vlgmr.msrb.gmra.mxu3 %v17462_v60  ;;  %v4166_v60 = vadd.f32 %v17509_v50, %v17507_v0  ;;  %v12331_v0 = vor.u32 %v15464_v35, %v12330_v2  ;;  %v15459_v35 = vld [vmem:[#allocation15 + $0x114] sm:$0xf] }
 0x3d3   : > { %4649 = vmatpush.bf16.msra.mxu3 %v12299_v55  ;;  %v12243_v55 = vor.u32 %v15409_v8, %v12240_v51  ;;  %v12492_v8 = vld [vmem:[#allocation15 + $0x78] sm:$0xf0] }
 0x3d4   : > { %v4368_v33 = vadd.f32 %v4367_v24, %v4166_v60  ;;  %v12367_v24 = vor.u32 %v15471_v9, %v12364_v57  ;;  %4991 = vmatpush.bf16.msrb.mxu2 %v12331_v0  ;;  %v12386_v60 = vld [vmem:[#allocation15 + $0x1a0] sm:$0xf]  ;;  %v15474_v0 = vld [vmem:[#allocation15 + $0x184] sm:$0xf0] }
 0x3d5   : > { %v12370_v9 = vld [vmem:[#allocation15 + $0x180] sm:$0xf] }
 0x3d6   : > { %v4616_v10 = vpop.f32.mrf.mxu0  ;;  %v4382_v50 = vadd.f32 %v17512_v31, %v4368_v33  ;;  %v15467_v31 = vld [vmem:[#allocation15 + $0x154] sm:$0xf]  ;;  %v15460_v33 = vld [vmem:[#allocation15 + $0x114] sm:$0xf0] }
 0x3d7   : > { %v4630_v59 = vpop.f32.mrf.mxu1  ;;  %4650 = vmatpush.bf16.msra.mxu3 %v12291_v23  ;;  %v12351_v30 = vor.u32 %v15467_v31, %v12348_v1  ;;  %v12418_v23 = vld [vmem:[#allocation15 + $0x1e0] sm:$0xf]  ;;  %v12315_v2 = vor.u32 %v15460_v33, %v12314_v34  ;;  %v15438_v1 = vld [vmem:[#allocation15 + $0x64] sm:$0xf0]  ;;  %v12522_v34 = vld [vmem:[#allocation15 + $0xb0] sm:$0xf] }
 0x3d8   : > { %v4631_v18 = vadd.f32 %v4630_v59, %v4616_v10  ;;  %v12419_v46 = vor.u32 %v15486_v39, %v12418_v23  ;;  %v12411_v10 = vor.u32 %v15484_v29, %v12410_v26  ;;  %v12402_v59 = vld [vmem:[#allocation15 + $0x1c0] sm:$0xf]  ;;  %v12474_v23 = vld [vmem:[#allocation15 + $0x50] sm:$0xf]  ;;  %v15436_v39 = vld [vmem:[#allocation15 + $0x54] sm:$0xf0] }
 0x3d9   : > { %v12482_v31 = vld [vmem:[#allocation15 + $0x60] sm:$0xf]  ;;  %v3858_v29 = vld [vmem:[%s18065_s10] sm:$0x3]  ;;  %s991_s10 = sand.u32 1, %s18075_s3  }
 0x3da   : > { %v4663_v11 = vadd.f32 %v4631_v18, %v4382_v50  ;;  %v15457_v50 = vld [vmem:[#allocation15 + $0x104] sm:$0xf]  ;;  %v12483_v61 = vor.u32 %v15438_v1, %v12482_v31  ;;  %v15448_v33 = vld [vmem:[#allocation15 + $0xb4] sm:$0xf0]  ;;  %s992_s1 = scalar_lea.vmem [#allocation25], %s991_s10  ;;  %s10451_s2 = scalar_lea.sflag [#allocation9], %s991_s10 }
 0x3db   : > { %4651 = vmatpush.bf16.msra.mxu3 %v12283_v42  ;;  %v15482_v42 = vld [vmem:[#allocation15 + $0x1c4] sm:$0xf0]  ;;  %s10461_s30 = sshll.u32 %s992_s1, 4  ;;  %s10462_s30 = int_to_ptr.vmem [resolvable:$true] %s10461_s30 }
 0x3dc   : > { %v12403_v43 = vor.u32 %v15482_v42, %v12402_v59  ;;  %v12479_v59 = vor.u32 %v15435_v47, %v12476_v48  ;;  %v12466_v42 = vld [vmem:[#allocation15 + $0x40] sm:$0xf] }
 0x3de   : > { %v4618_v32 = vpop.f32.mrf.mxu0 }
 0x3df   : > { %v4632_v7 = vpop.f32.mrf.mxu1  ;;  %4652 = vmatpush.bf16.msra.mxu3 %v12275_v58  ;;  %v12323_v58 = vor.u32 %v15462_v62, %v12322_v54  ;;  %v15433_v54 = vld [vmem:[#allocation15 + $0x44] sm:$0xf]  ;;  %v12468_v62 = vld [vmem:[#allocation15 + $0x48] sm:$0xf0] }
 0x3e0   : > { %v4633_v4 = vadd.f32 %v4632_v7, %v4618_v32  ;;  %v12316_v32 = vld [vmem:[#allocation15 + $0x118] sm:$0xf0]  ;;  %v12471_v40 = vor.u32 %v15433_v54, %v12468_v62 }
 0x3e1   : > { %4992 = vmatpush.bf16.msrb.mxu2 %v12323_v58  ;;  %v12319_v7 = vor.u32 %v15459_v35, %v12316_v32  ;;  %v3861_v58 = vperm.slane %v3858_v29, 1  ;;  %v12460_v35 = vld [vmem:[#allocation15 + $0x38] sm:$0xf0] }
 0x3e2   : > { %v4665_v25 = vadd.f32 %v4633_v4, %v4384_v17  ;;  %v15476_v17 = vld [vmem:[#allocation15 + $0x194] sm:$0xf0]  ;;  %v12306_v4 = vld [vmem:[#allocation15 + $0x100] sm:$0xf] }
 0x3e3   : > { %4653 = vmatpush.bf16.msra.mxu3 %v12267_v53  ;;  %v12379_v18 = vor.u32 %v15476_v17, %v12378_v12  ;;  %v12307_v57 = vor.u32 %v15458_v6, %v12306_v4  ;;  %v12523_v17 = vor.u32 %v15448_v33, %v12522_v34  ;;  %v12450_v4 = vld [vmem:[#allocation15 + $0x20] sm:$0xf]  ;;  %v15430_v6 = vld [vmem:[#allocation15 + $0x24] sm:$0xf0]  ;;  %v15503_v34 = vld [vmem:[#allocation15 + $0x274] sm:$0xf] }
 0x3e4   : > { %12300 = vmatpush.msk.msra.mxu0 %vm1220_vm10, %v4665_v25  ;;  %v12308_v25 = vld [vmem:[#allocation15 + $0x108] sm:$0xf0]  ;;  %v12620_v33 = vld [vmem:[#allocation15 + $0x278] sm:$0xf0] }
 0x3e5   : > { %4993 = vmatpush.bf16.msrb.mxu2 %v12315_v2  ;;  %v12311_v14 = vor.u32 %v15457_v50, %v12308_v25  ;;  %v15431_v2 = vld [vmem:[#allocation15 + $0x34] sm:$0xf]  ;;  %v12452_v50 = vld [vmem:[#allocation15 + $0x28] sm:$0xf0] }
 0x3e6   : > { %4694 = vmatpush.msra.mxu0 %v4663_v11  ;;  %v15440_v11 = vld [vmem:[#allocation15 + $0x74] sm:$0xf0] }
 0x3e7   : > { %4654 = vmatpush.bf16.msra.mxu3 %v12259_v49  ;;  %12301 = vmatmul.msk.f32.vlgmr.msra.gmra.mxu0 %vm3864_vm6, %v17500_v52  ;;  %v12371_v49 = vor.u32 %v15474_v0, %v12370_v9  ;;  %v12514_v9 = vld [vmem:[#allocation15 + $0xa0] sm:$0xf]  ;;  %v15429_v0 = vld [vmem:[#allocation15 + $0x24] sm:$0xf] }
 0x3e8   : > { %5013 = vmatpush.bf16.msrb.mxu0 %v12367_v24  ;;  %v12490_v24 = vld [vmem:[#allocation15 + $0x70] sm:$0xf] }
 0x3e9   : > { %4994 = vmatpush.bf16.msrb.mxu2 %v12307_v57  ;;  %v12491_v44 = vor.u32 %v15440_v11, %v12490_v24  ;;  %v15446_v57 = vld [vmem:[#allocation15 + $0xa4] sm:$0xf0] }
 0x3ea   : > { %v12515_v11 = vor.u32 %v15446_v57, %v12514_v9  ;;  %v12674_v9 = vld [vmem:[#allocation15 + $0x2e0] sm:$0xf] }
 0x3eb   : > { %4655 = vmatpush.bf16.msra.mxu3 %v12251_v3  ;;  %v15439_v3 = vld [vmem:[#allocation15 + $0x74] sm:$0xf] }
 0x3ec   : > { %5014 = vmatpush.bf16.msrb.mxu0 %v12359_v45  ;;  %v12555_v45 = vor.u32 %v15456_v27, %v12554_v21  ;;  %v12495_v51 = vor.u32 %v15439_v3, %v12492_v8  ;;  %v12455_v21 = vor.u32 %v15429_v0, %v12452_v50  ;;  %v15428_v27 = vld [vmem:[#allocation15 + $0x14] sm:$0xf0]  ;;  %v12506_v3 = vld [vmem:[#allocation15 + $0x90] sm:$0xf]  ;;  %v15518_v0 = vld [vmem:[#allocation15 + $0x2e4] sm:$0xf0] }
 0x3ed   : > { %5203 = vmatpush.bf16.msra.mxu2 %v12491_v44  ;;  %v12442_v44 = vld [vmem:[#allocation15 + $0x10] sm:$0xf]  ;;  %v15444_v8 = vld [vmem:[#allocation15 + $0x94] sm:$0xf0]  ;;  %v15501_v50 = vld [vmem:[#allocation15 + $0x264] sm:$0xf] }
 0x3ee   : > { %v12443_v1 = vor.u32 %v15428_v27, %v12442_v44  ;;  %v12666_v44 = vld [vmem:[#allocation15 + $0x2d0] sm:$0xf]  ;;  %v15516_v27 = vld [vmem:[#allocation15 + $0x2d4] sm:$0xf0] }
 0x3ef   : > { %4656 = vmatpush.bf16.msra.mxu3 %v12243_v55  ;;  %v15454_v55 = vld [vmem:[#allocation15 + $0xe4] sm:$0xf0] }
 0x3f0   : > { %5015 = vmatpush.bf16.msrb.mxu0 %v12351_v30  ;;  %v15437_v30 = vld [vmem:[#allocation15 + $0x64] sm:$0xf]  ;;  %v12547_v56 = vor.u32 %v15454_v55, %v12546_v13  ;;  %v12434_v13 = vld [vmem:[#allocation15] sm:$0xf] }
 0x3f1   : > { %5204 = vmatpush.bf16.msra.mxu2 %v12483_v61  ;;  %v15426_v61 = vld [vmem:[#allocation15 + $0x4] sm:$0xf0] }
 0x3f2   : > { %4657 = vmatmul.bf16.vlgmr.msra.gmra.mxu3 %v17484_v36  ;;  %v15478_v36 = vld [vmem:[#allocation15 + $0x1a4] sm:$0xf0] }
 0x3f3   : > { %5000 = vmatpush.bf16.msrb.mxu3 %v12427_v38  ;;  %v12387_v53 = vor.u32 %v15478_v36, %v12386_v60  ;;  %v12484_v38 = vld [vmem:[#allocation15 + $0x68] sm:$0xf0]  ;;  %v12458_v36 = vld [vmem:[#allocation15 + $0x30] sm:$0xf] }
 0x3f4   : > { %5016 = vmatpush.bf16.msrb.mxu0 %v12343_v19  ;;  %v12487_v41 = vor.u32 %v15437_v30, %v12484_v38  ;;  %v12538_v19 = vld [vmem:[#allocation15 + $0xd0] sm:$0xf]  ;;  %v12507_v38 = vor.u32 %v15444_v8, %v12506_v3  ;;  %v15499_v3 = vld [vmem:[#allocation15 + $0x254] sm:$0xf]  ;;  %v12604_v8 = vld [vmem:[#allocation15 + $0x258] sm:$0xf0] }
 0x3f7   : > { %5001 = vmatpush.bf16.msrb.mxu3 %v12419_v46  ;;  %v15452_v46 = vld [vmem:[#allocation15 + $0xd4] sm:$0xf0] }
 0x3f8   : > { %5017 = vmatpush.bf16.msrb.mxu0 %v12335_v37  ;;  %v12475_v37 = vor.u32 %v15436_v39, %v12474_v23  ;;  %v15442_v23 = vld [vmem:[#allocation15 + $0x84] sm:$0xf0]  ;;  %v4733_v39 = vld [vmem:[#allocation4 + $0x8] sm:$0x11] }
 0x3fa   : > { %5205 = vmatpush.bf16.msra.mxu2 %v12475_v37 }
 0x3fb   : > { %5002 = vmatpush.bf16.msrb.mxu3 %v12411_v10  ;;  %v12539_v10 = vor.u32 %v15452_v46, %v12538_v19  ;;  %v15425_v19 = vld [vmem:[#allocation15 + $0x4] sm:$0xf]  ;;  %v12436_v46 = vld [vmem:[#allocation15 + $0x8] sm:$0xf0] }
 0x3fc   : > { %5018 = vmatpush.bf16.msrb.mxu0 %v12327_v22  ;;  %v15432_v22 = vld [vmem:[#allocation15 + $0x34] sm:$0xf0] }
 0x3ff   : > { %5003 = vmatpush.bf16.msrb.mxu3 %v12403_v43  ;;  %v15434_v43 = vld [vmem:[#allocation15 + $0x44] sm:$0xf0] }
 0x400   : > { %5019 = vmatpush.bf16.msrb.mxu0 %v12319_v7  ;;  %v12467_v60 = vor.u32 %v15434_v43, %v12466_v42 }
 0x402   : > { %5206 = vmatpush.bf16.msra.mxu2 %v12467_v60  ;;  %v15504_v60 = vld [vmem:[#allocation15 + $0x274] sm:$0xf0] }
 0x403   : > { %5004 = vmatpush.bf16.msrb.mxu3 %v12395_v63  ;;  %v3860_v63 = vperm.slane %v3858_v29, 0 }
 0x404   : > { %5020 = vmatpush.bf16.msrb.mxu0 %v12311_v14  ;;  %v12451_v14 = vor.u32 %v15430_v6, %v12450_v4  ;;  %v12610_v4 = vld [vmem:[#allocation15 + $0x260] sm:$0xf]  ;;  %v15502_v6 = vld [vmem:[#allocation15 + $0x264] sm:$0xf0] }
 0x407   : > { %5005 = vmatpush.bf16.msrb.mxu3 %v12387_v53  ;;  %v12459_v53 = vor.u32 %v15432_v22, %v12458_v36  ;;  %v15520_v36 = vld [vmem:[#allocation15 + $0x2f4] sm:$0xf0] }
 0x408   : > { %5229 = vmatpush.bf16.msra.mxu0 %v12495_v51  ;;  %v12444_v51 = vld [vmem:[#allocation15 + $0x18] sm:$0xf0] }
 0x409   : > { %5207 = vmatpush.bf16.msra.mxu2 %v12459_v53 }
 0x40b   : > { %5006 = vmatpush.bf16.msrb.mxu3 %v12379_v18  ;;  %v12463_v18 = vor.u32 %v15431_v2, %v12460_v35 }
 0x40c   : > { %5230 = vmatpush.bf16.msra.mxu0 %v12487_v41  ;;  %v12498_v41 = vld [vmem:[#allocation15 + $0x80] sm:$0xf] }
 0x40d   : > { %5208 = vmatpush.bf16.msra.mxu2 %v12451_v14  ;;  %v12499_v29 = vor.u32 %v15442_v23, %v12498_v41  ;;  %v12675_v14 = vor.u32 %v15518_v0, %v12674_v9  ;;  %v12562_v9 = vld [vmem:[#allocation15 + $0x200] sm:$0xf]  ;;  %v15490_v0 = vld [vmem:[#allocation15 + $0x204] sm:$0xf0] }
 0x40f   : > { %5007 = vmatpush.bf16.msrb.mxu3 %v12371_v49 }
 0x410   : > { %5231 = vmatpush.bf16.msra.mxu0 %v12479_v59  ;;  %v12439_v59 = vor.u32 %v15425_v19, %v12436_v46  ;;  %v15496_v19 = vld [vmem:[#allocation15 + $0x234] sm:$0xf0]  ;;  %v12650_v46 = vld [vmem:[#allocation15 + $0x2b0] sm:$0xf] }
 0x411   : > { %v3892_v26 = vpop.f32.mrf.mxu3  ;;  %5209 = vmatpush.bf16.msra.mxu2 %v12443_v1  ;;  %v12594_v1 = vld [vmem:[#allocation15 + $0x240] sm:$0xf] }
 0x412   : > { %v3893_v32 = vadd.f32 %v3892_v26, %v3860_v63  ;;  %v12435_v26 = vor.u32 %v15426_v61, %v12434_v13  ;;  %v15498_v13 = vld [vmem:[#allocation15 + $0x244] sm:$0xf0]  ;;  %v12658_v61 = vld [vmem:[#allocation15 + $0x2c0] sm:$0xf] }
 0x413   : > { %5216 = vmatpush.bf16.msra.mxu3 %v12555_v45  ;;  %v15427_v45 = vld [vmem:[#allocation15 + $0x14] sm:$0xf] }
 0x414   : > { %5232 = vmatpush.bf16.msra.mxu0 %v12471_v40  ;;  %v3915_v25 = vmax.f32 %v3893_v32, 0.0  ;;  %v12682_v40 = vld [vmem:[#allocation15 + $0x2f0] sm:$0xf] }
 0x415   : > { %5210 = vmatpush.bf16.msra.mxu2 %v12435_v26  ;;  %v12588_v26 = vld [vmem:[#allocation15 + $0x238] sm:$0xf0] }
 0x417   : > { %5217 = vmatpush.bf16.msra.mxu3 %v12547_v56  ;;  %v12447_v56 = vor.u32 %v15427_v45, %v12444_v51  ;;  %v12667_v51 = vor.u32 %v15516_v27, %v12666_v44  ;;  %v12563_v27 = vor.u32 %v15490_v0, %v12562_v9  ;;  %v12556_v9 = vld [vmem:[#allocation15 + $0xf8] sm:$0xf0] }
 0x418   : > { %5233 = vmatpush.bf16.msra.mxu0 %v12463_v18  ;;  %v12623_v18 = vor.u32 %v15503_v34, %v12620_v33  ;;  %v12580_v34 = vld [vmem:[#allocation15 + $0x228] sm:$0xf0] }
 0x419   : > { %v3912_v7 = vpop.f32.mrf.mxu3 }
 0x41a   : > { %v3913_v12 = vadd.f32 %v3912_v7, %v3861_v58  ;;  %v12618_v58 = vld [vmem:[#allocation15 + $0x270] sm:$0xf] }
 0x41b   : > { %5218 = vmatpush.bf16.msra.mxu3 %v12539_v10  ;;  %v12619_v53 = vor.u32 %v15504_v60, %v12618_v58  ;;  %v15494_v58 = vld [vmem:[#allocation15 + $0x224] sm:$0xf0]  ;;  %v12642_v60 = vld [vmem:[#allocation15 + $0x2a0] sm:$0xf] }
 0x41c   : > { %v3916_v49 = vmax.f32 %v3913_v12, 0.0  ;;  %5234 = vmatpush.bf16.msra.mxu0 %v12455_v21  ;;  %v15500_v21 = vld [vmem:[#allocation15 + $0x254] sm:$0xf0] }
 0x41e   : > { %v4719_v24 = vpack.c.bf16 %v3916_v49, %v3915_v25  ;;  %v12612_v25 = vld [vmem:[#allocation15 + $0x268] sm:$0xf0]  ;;  %v12611_v49 = vor.u32 %v15502_v6, %v12610_v4 }
 0x41f   : > { %5219 = vmatpush.bf16.msra.mxu3 %v12531_v20 }
 0x420   : > { %v4721_v31 = vshrl.u32 %v4719_v24, 16  ;;  %v4724_v30 = vshll.u32 %v4719_v24, 16  ;;  %5235 = vmatpush.bf16.msra.mxu0 %v12447_v56  ;;  %v12615_v24 = vor.u32 %v15501_v50, %v12612_v25  ;;  %v12595_v56 = vor.u32 %v15498_v13, %v12594_v1  ;;  %v12626_v50 = vld [vmem:[#allocation15 + $0x280] sm:$0xf] }
 0x422   : > { %v4723_v55 = vrot.slane %v4721_v31, 7  ;;  %v12607_v31 = vor.u32 %v15499_v3, %v12604_v8 }
 0x423   : > { %5220 = vmatpush.bf16.msra.mxu3 %v12523_v17  ;;  %v12683_v17 = vor.u32 %v15520_v36, %v12682_v40  ;;  %v15510_v36 = vld [vmem:[#allocation15 + $0x2a4] sm:$0xf0] }
 0x424   : > { %v4726_v47 = vor.u32 %v4724_v30, %v4723_v55  ;;  %v4727_v48 = vrot.slane %v4723_v55, 4  ;;  %5236 = vmatpush.bf16.msra.mxu0 %v12439_v59  ;;  %v15514_v55 = vld [vmem:[#allocation15 + $0x2c4] sm:$0xf0]  ;;  %v15497_v30 = vld [vmem:[#allocation15 + $0x244] sm:$0xf] }
 0x425   : > { %v12659_v41 = vor.u32 %v15514_v55, %v12658_v61 }
 0x426   : > { %v4731_v37 = vsel %vm17212_vm0, %v4726_v47, 0  ;;  %v4734_v10 = vsel %vm17228_vm8, %v4727_v48, %v4733_v39  ;;  %v12586_v39 = vld [vmem:[#allocation15 + $0x230] sm:$0xf]  ;;  %v15512_v47 = vld [vmem:[#allocation15 + $0x2b4] sm:$0xf0] }
 0x427   : > { %5221 = vmatpush.bf16.msra.mxu3 %v12515_v11  ;;  %4732 = vst [vmem:[#allocation4] sm:$0xff] %v4731_v37  ;;  %v17531_v43 = vunpack.c.l.b16 %v4731_v37  ;;  %v17534_v28 = vunpack.c.h.b16 %v4731_v37  ;;  %v12602_v11 = vld [vmem:[#allocation15 + $0x250] sm:$0xf]  ;;  %v15495_v48 = vld [vmem:[#allocation15 + $0x234] sm:$0xf]  ;;  %v12587_v37 = vor.u32 %v15496_v19, %v12586_v39  ;;  %v12651_v59 = vor.u32 %v15512_v47, %v12650_v46 }
 0x428   : > { %4735 = vst [vmem:[#allocation4 + $0x8] sm:$0x11] %v4734_v10  ;;  %v12603_v45 = vor.u32 %v15500_v21, %v12602_v11  ;;  %v12564_v11 = vld [vmem:[#allocation15 + $0x208] sm:$0xf0] }
 0x429   : > { %v5039_v10 = vpack.c.b16 %v17531_v43, %v17531_v43  ;;  %v17552_v40 = vpack.c.b16 %v17534_v28, %v17534_v28 }
 0x42b   : > { %5222 = vmatpush.bf16.msra.mxu3 %v12507_v38  ;;  %v12596_v38 = vld [vmem:[#allocation15 + $0x248] sm:$0xf0] }
 0x42c   : > { %v12599_v23 = vor.u32 %v15497_v30, %v12596_v38 }
 0x42f   : > { %5223 = vmatpush.bf16.msra.mxu3 %v12499_v29  ;;  %v17529_v42 = vld [vmem:[#allocation4 + $0x8] sm:$0x11]  ;;  %v17546_v29 = vpop.f32.mrf.mxu2 }
 0x430   : > { %v4807_v16 = vunpack.c.l.b16 %v17529_v42  ;;  %v4808_v54 = vunpack.c.h.b16 %v17529_v42 }
 0x432   : > { %v4809_v62 = vpack.c.b16 %v4807_v16, %v17531_v43  ;;  %v4810_v63 = vpack.c.b16 %v4808_v54, %v17534_v28  ;;  %v5255_v43 = vld [vmem:[#allocation4] sm:$0xee]  ;;  %v15491_v28 = vld [vmem:[#allocation15 + $0x214] sm:$0xf] }
 0x433   : > { %v5290_v25 = vunpack.c.l.b16 %v5255_v43  ;;  %v5291_v21 = vunpack.c.h.b16 %v5255_v43  ;;  %v15479_v43 = vld [vmem:[#allocation15 + $0x1b4] sm:$0xf] }
 0x434   : > { %v4814_v20 = vshll.u32 %v4809_v62, 16  ;;  %v4821_v22 = vshll.u32 %v4810_v63, 16  ;;  %v4812_v2 = vshrl.u32 %v4809_v62, 16  ;;  %v4819_v32 = vshrl.u32 %v4810_v63, 16  ;;  %v12578_v63 = vld [vmem:[#allocation15 + $0x220] sm:$0xf] }
 0x435   : > { %v12591_v62 = vor.u32 %v15495_v48, %v12588_v26  ;;  %v12579_v33 = vor.u32 %v15494_v58, %v12578_v63  ;;  %v15487_v48 = vld [vmem:[#allocation15 + $0x1f4] sm:$0xf]  ;;  %v12428_v26 = vld [vmem:[#allocation15 + $0x1f8] sm:$0xf0]  ;;  %v15485_v63 = vld [vmem:[#allocation15 + $0x1e4] sm:$0xf] }
 0x436   : > { %v4816_v35 = vrot.slane %v4814_v20, 1  ;;  %v4823_v7 = vrot.slane %v4821_v22, 1  ;;  %v4193_v20 = vpop.f32.mrf.mxu3  ;;  %v15493_v22 = vld [vmem:[#allocation15 + $0x224] sm:$0xf]  ;;  %v12420_v58 = vld [vmem:[#allocation15 + $0x1e8] sm:$0xf0] }
 0x438   : > { %v4817_v12 = vor.u32 %v4816_v35, %v4812_v2  ;;  %v17543_v57 = vor.u32 %v4823_v7, %v4819_v32  ;;  %v12643_v2 = vor.u32 %v15510_v36, %v12642_v60  ;;  %v12583_v35 = vor.u32 %v15493_v22, %v12580_v34  ;;  %v12570_v32 = vld [vmem:[#allocation15 + $0x210] sm:$0xf]  ;;  %v15492_v7 = vld [vmem:[#allocation15 + $0x214] sm:$0xf0]  ;;  %v15483_v60 = vld [vmem:[#allocation15 + $0x1d4] sm:$0xf] }
 0x439   : > { %v15481_v22 = vld [vmem:[#allocation15 + $0x1c4] sm:$0xf]  ;;  %v12404_v34 = vld [vmem:[#allocation15 + $0x1c8] sm:$0xf0] }
 0x43a   : > { %4995 = vmatmul.bf16.vlgmr.msrb.gmra.mxu2 %v4817_v12  ;;  %5021 = vmatmul.bf16.vlgmr.msrb.gmra.mxu0 %v4817_v12  ;;  %v15508_v12 = vld [vmem:[#allocation15 + $0x294] sm:$0xf0] }
 0x43b   : > { %5008 = vmatmul.bf16.vlgmr.msrb.gmra.mxu3 %v17543_v57  ;;  %5458 = vmatpush.bf16.msrb.mxu2 %v12619_v53  ;;  %v12634_v53 = vld [vmem:[#allocation15 + $0x290] sm:$0xf] }
 0x43c   : > { %5471 = vmatpush.bf16.msrb.mxu3 %v12683_v17  ;;  %5484 = vmatpush.bf16.msrb.mxu0 %v12623_v18  ;;  %v12572_v17 = vld [vmem:[#allocation15 + $0x218] sm:$0xf0]  ;;  %v12571_v18 = vor.u32 %v15492_v7, %v12570_v32  ;;  %v12635_v4 = vor.u32 %v15508_v12, %v12634_v53  ;;  %v15477_v32 = vld [vmem:[#allocation15 + $0x1a4] sm:$0xf]  ;;  %v12388_v7 = vld [vmem:[#allocation15 + $0x1a8] sm:$0xf0] }
 0x43d   : > { %v12575_v6 = vor.u32 %v15491_v28, %v12572_v17  ;;  %v12391_v53 = vor.u32 %v15477_v32, %v12388_v7  ;;  %v15475_v12 = vld [vmem:[#allocation15 + $0x194] sm:$0xf]  ;;  %v12380_v28 = vld [vmem:[#allocation15 + $0x198] sm:$0xf0] }
 0x43e   : > { %v4195_v44 = vpop.f32.mrf.mxu3  ;;  %v12383_v17 = vor.u32 %v15475_v12, %v12380_v28  ;;  %v15507_v32 = vld [vmem:[#allocation15 + $0x294] sm:$0xf]  ;;  %v12636_v7 = vld [vmem:[#allocation15 + $0x298] sm:$0xf0]  ;;  %v15505_v12 = vld [vmem:[#allocation15 + $0x284] sm:$0xf] }
 0x43f   : > { %5459 = vmatpush.bf16.msrb.mxu2 %v12611_v49  ;;  %v4181_v49 = vpop.f32.mrf.mxu2  ;;  %v12628_v28 = vld [vmem:[#allocation15 + $0x288] sm:$0xf0] }
 0x440   : > { %5472 = vmatpush.bf16.msrb.mxu3 %v12675_v14  ;;  %5485 = vmatpush.bf16.msrb.mxu0 %v12615_v24  ;;  %v15506_v14 = vld [vmem:[#allocation15 + $0x284] sm:$0xf0]  ;;  %v15489_v24 = vld [vmem:[#allocation15 + $0x204] sm:$0xf]  ;;  %v4196_v42 = vadd.f32 %v4195_v44, %v4181_v49  ;;  %v12548_v49 = vld [vmem:[#allocation15 + $0xe8] sm:$0xf0] }
 0x441   : > { %v12627_v3 = vor.u32 %v15506_v14, %v12626_v50  ;;  %v12567_v8 = vor.u32 %v15489_v24, %v12564_v11  ;;  %v15451_v24 = vld [vmem:[#allocation15 + $0xd4] sm:$0xf]  ;;  %v12540_v11 = vld [vmem:[#allocation15 + $0xd8] sm:$0xf0]  ;;  %v15449_v44 = vld [vmem:[#allocation15 + $0xc4] sm:$0xf] }
 0x443   : > { %5460 = vmatpush.bf16.msrb.mxu2 %v12603_v45  ;;  %v5292_v45 = vpack.c.b16 %v4807_v16, %v5290_v25  ;;  %v15453_v25 = vld [vmem:[#allocation15 + $0xe4] sm:$0xf] }
 0x444   : > { %5473 = vmatpush.bf16.msrb.mxu3 %v12667_v51  ;;  %5486 = vmatpush.bf16.msrb.mxu0 %v12607_v31  ;;  %v17559_v51 = vpack.c.b16 %v4808_v54, %v5291_v21  ;;  %v4194_v54 = vadd.f32 %v4193_v20, %v17546_v29  ;;  %v12423_v29 = vor.u32 %v15485_v63, %v12420_v58  ;;  %v12412_v20 = vld [vmem:[#allocation15 + $0x1d8] sm:$0xf0] }
 0x445   : > { %v5294_v31 = vrot.slane %v5292_v45, 1  ;;  %v12415_v36 = vor.u32 %v15483_v60, %v12412_v20  ;;  %v12551_v14 = vor.u32 %v15453_v25, %v12548_v49  ;;  %v12543_v21 = vor.u32 %v15451_v24, %v12540_v11  ;;  %v12524_v45 = vld [vmem:[#allocation15 + $0xb8] sm:$0xf0]  ;;  %v15511_v20 = vld [vmem:[#allocation15 + $0x2b4] sm:$0xf] }
 0x446   : > { %v5295_v13 = vrot.slane %v17559_v51, 1  ;;  %v12746_v51 = vld [vmem:[#allocation16 + $0x170] sm:$0xf] }
 0x447   : > { %5461 = vmatpush.bf16.msrb.mxu2 %v12595_v56  ;;  %v4395_v1 = vpop.f32.mrf.mxu2 }
 0x448   : > { %5474 = vmatpush.bf16.msrb.mxu3 %v12659_v41  ;;  %5487 = vmatpush.bf16.msrb.mxu0 %v12599_v23  ;;  %v4396_v39 = vadd.f32 %v4395_v1, %v4194_v54  ;;  %v15445_v1 = vld [vmem:[#allocation15 + $0xa4] sm:$0xf]  ;;  %v12500_v54 = vld [vmem:[#allocation15 + $0x88] sm:$0xf0] }
 0x44a   : > { %5211 = vmatmul.bf16.vlgmr.msra.gmra.mxu2 %v5039_v10  ;;  %5237 = vmatmul.bf16.vlgmr.msra.gmra.mxu0 %v5039_v10 }
 0x44b   : > { %5224 = vmatmul.bf16.vlgmr.msra.gmra.mxu3 %v17552_v40  ;;  %5462 = vmatpush.bf16.msrb.mxu2 %v12587_v37 }
 0x44c   : > { %5475 = vmatpush.bf16.msrb.mxu3 %v12651_v59  ;;  %5488 = vmatpush.bf16.msrb.mxu0 %v12591_v62  ;;  %v12431_v59 = vor.u32 %v15487_v48, %v12428_v26  ;;  %v15515_v26 = vld [vmem:[#allocation15 + $0x2d4] sm:$0xf] }
 0x44f   : > { %5463 = vmatpush.bf16.msrb.mxu2 %v12579_v33  ;;  %v4397_v55 = vpop.f32.mrf.mxu2  ;;  %v12407_v33 = vor.u32 %v15481_v22, %v12404_v34  ;;  %v15509_v34 = vld [vmem:[#allocation15 + $0x2a4] sm:$0xf] }
 0x450   : > { %5476 = vmatpush.bf16.msrb.mxu3 %v12643_v2  ;;  %5489 = vmatpush.bf16.msrb.mxu0 %v12583_v35  ;;  %v4398_v56 = vadd.f32 %v4397_v55, %v4196_v42  ;;  %v12396_v2 = vld [vmem:[#allocation15 + $0x1b8] sm:$0xf0]  ;;  %v15441_v42 = vld [vmem:[#allocation15 + $0x84] sm:$0xf] }
 0x451   : > { %v12399_v35 = vor.u32 %v15479_v43, %v12396_v2 }
 0x453   : > { %5464 = vmatpush.bf16.msrb.mxu2 %v12571_v18  ;;  %v15473_v18 = vld [vmem:[#allocation15 + $0x184] sm:$0xf] }
 0x454   : > { %5477 = vmatpush.bf16.msrb.mxu3 %v12635_v4  ;;  %5490 = vmatpush.bf16.msrb.mxu0 %v12575_v6  ;;  %v12372_v4 = vld [vmem:[#allocation15 + $0x188] sm:$0xf0]  ;;  %v15455_v6 = vld [vmem:[#allocation15 + $0xf4] sm:$0xf] }
 0x455   : > { %v4409_v61 = vpop.f32.mrf.mxu3  ;;  %v12375_v0 = vor.u32 %v15473_v18, %v12372_v4  ;;  %v12559_v50 = vor.u32 %v15455_v6, %v12556_v9  ;;  %v12631_v6 = vor.u32 %v15505_v12, %v12628_v28  ;;  %v12788_v12 = vld [vmem:[#allocation16 + $0x1c8] sm:$0xf0]  ;;  %v12722_v28 = vld [vmem:[#allocation16 + $0x140] sm:$0xf] }
 0x456   : > { %v4410_v37 = vadd.f32 %v4409_v61, %v4396_v39  ;;  %v12516_v61 = vld [vmem:[#allocation15 + $0xa8] sm:$0xf0] }
 0x457   : > { %5465 = vmatpush.bf16.msrb.mxu2 %v12563_v27  ;;  %v4644_v16 = vpop.f32.mrf.mxu2  ;;  %v12532_v27 = vld [vmem:[#allocation15 + $0xc8] sm:$0xf0]  ;;  %v12519_v55 = vor.u32 %v15445_v1, %v12516_v61 }
 0x458   : > { %5478 = vmatpush.bf16.msrb.mxu3 %v12627_v3  ;;  %5491 = vmatpush.bf16.msrb.mxu0 %v12567_v8  ;;  %v12535_v3 = vor.u32 %v15449_v44, %v12532_v27  ;;  %v15447_v8 = vld [vmem:[#allocation15 + $0xb4] sm:$0xf] }
 0x459   : > { %v15567_v27 = vld [vmem:[#allocation16 + $0x174] sm:$0xf] }
 0x45a   : > { %5466 = vmatmul.bf16.vlgmr.msrb.gmra.mxu2 %v5294_v31 }
 0x45b   : > { %5479 = vmatmul.bf16.vlgmr.msrb.gmra.mxu3 %v5295_v13  ;;  %5492 = vmatmul.bf16.vlgmr.msrb.gmra.mxu0 %v5294_v31  ;;  %v12527_v31 = vor.u32 %v15447_v8, %v12524_v45  ;;  %v15583_v8 = vld [vmem:[#allocation16 + $0x1f4] sm:$0xf] }
 0x45d   : > { %v4411_v30 = vpop.f32.mrf.mxu3 }
 0x45e   : > { %v4412_v19 = vadd.f32 %v4411_v30, %v4398_v56  ;;  %v15443_v30 = vld [vmem:[#allocation15 + $0x94] sm:$0xf] }
 0x45f   : > { %v4646_v41 = vpop.f32.mrf.mxu2  ;;  %v15519_v56 = vld [vmem:[#allocation15 + $0x2f4] sm:$0xf] }
 0x475   : > { %v4658_v38 = vpop.f32.mrf.mxu3 }
 0x476   : > { %v4659_v46 = vadd.f32 %v4658_v38, %v4644_v16  ;;  %v12508_v16 = vld [vmem:[#allocation15 + $0x98] sm:$0xf0]  ;;  %v17569_v38 = vpop.f32.mrf.mxu0 }
 0x478   : > { %v4664_v62 = vadd.f32 %v4659_v46, %v4410_v37  ;;  %v12676_v46 = vld [vmem:[#allocation15 + $0x2e8] sm:$0xf0]  ;;  %v12668_v37 = vld [vmem:[#allocation15 + $0x2d8] sm:$0xf0] }
 0x47d   : > { %v4660_v23 = vpop.f32.mrf.mxu3 }
 0x47e   : > { %v4661_v47 = vadd.f32 %v4660_v23, %v4646_v41  ;;  %v12684_v41 = vld [vmem:[#allocation15 + $0x2f8] sm:$0xf0]  ;;  %v12503_v23 = vor.u32 %v15441_v42, %v12500_v54  ;;  %v12740_v54 = vld [vmem:[#allocation16 + $0x168] sm:$0xf0] }
 0x47f   : > { %v12687_v39 = vor.u32 %v15519_v56, %v12684_v41  ;;  %v15581_v56 = vld [vmem:[#allocation16 + $0x1e4] sm:$0xf]  ;;  %v12804_v41 = vld [vmem:[#allocation16 + $0x1e8] sm:$0xf0] }
 0x480   : > { %v4666_v10 = vadd.f32 %v4661_v47, %v4412_v19  ;;  %v15517_v19 = vld [vmem:[#allocation15 + $0x2e4] sm:$0xf] }
 0x481   : > { %v12679_v48 = vor.u32 %v15517_v19, %v12676_v46  ;;  %v12738_v19 = vld [vmem:[#allocation16 + $0x160] sm:$0xf]  ;;  %v15566_v46 = vld [vmem:[#allocation16 + $0x164] sm:$0xf0] }
 0x482   : > { %12302 = vmatpush.msk.msra.mxu1 %vm1220_vm10, %v4666_v10  ;;  %v12671_v10 = vor.u32 %v15515_v26, %v12668_v37  ;;  %v12739_v26 = vor.u32 %v15566_v46, %v12738_v19  ;;  %v15582_v37 = vld [vmem:[#allocation16 + $0x1e4] sm:$0xf0] }
 0x483   : > { %v15558_v19 = vld [vmem:[#allocation16 + $0x124] sm:$0xf0] }
 0x484   : > { %4714 = vmatpush.msra.mxu1 %v4664_v62  ;;  %v12660_v62 = vld [vmem:[#allocation15 + $0x2c8] sm:$0xf0] }
 0x485   : > { %12303 = vmatmul.msk.f32.vlgmr.msra.gmra.mxu1 %vm3864_vm6, %v17500_v52 }
 0x486   : > { %5026 = vmatpush.bf16.msrb.mxu1 %v12431_v59  ;;  %v15513_v59 = vld [vmem:[#allocation15 + $0x2c4] sm:$0xf] }
 0x487   : > { %v12663_v60 = vor.u32 %v15513_v59, %v12660_v62  ;;  %v12732_v59 = vld [vmem:[#allocation16 + $0x158] sm:$0xf0] }
 0x48a   : > { %5027 = vmatpush.bf16.msrb.mxu1 %v12423_v29 }
 0x48e   : > { %5028 = vmatpush.bf16.msrb.mxu1 %v12415_v36  ;;  %v12652_v36 = vld [vmem:[#allocation15 + $0x2b8] sm:$0xf0] }
 0x48f   : > { %v12655_v22 = vor.u32 %v15511_v20, %v12652_v36  ;;  %v12730_v20 = vld [vmem:[#allocation16 + $0x150] sm:$0xf] }
 0x492   : > { %5029 = vmatpush.bf16.msrb.mxu1 %v12407_v33  ;;  %v12644_v33 = vld [vmem:[#allocation15 + $0x2a8] sm:$0xf0] }
 0x496   : > { %5030 = vmatpush.bf16.msrb.mxu1 %v12399_v35  ;;  %v12647_v35 = vor.u32 %v15509_v34, %v12644_v33  ;;  %v12794_v34 = vld [vmem:[#allocation16 + $0x1d0] sm:$0xf]  ;;  %v15580_v33 = vld [vmem:[#allocation16 + $0x1d4] sm:$0xf0] }
 0x49a   : > { %5031 = vmatpush.bf16.msrb.mxu1 %v12391_v53  ;;  %v12639_v53 = vor.u32 %v15507_v32, %v12636_v7  ;;  %v12724_v32 = vld [vmem:[#allocation16 + $0x148] sm:$0xf0]  ;;  %v15577_v7 = vld [vmem:[#allocation16 + $0x1c4] sm:$0xf] }
 0x49e   : > { %5032 = vmatpush.bf16.msrb.mxu1 %v12383_v17 }
 0x4a2   : > { %5033 = vmatpush.bf16.msrb.mxu1 %v12375_v0 }
 0x4a5   : > { %5034 = vmatmul.bf16.vlgmr.msrb.gmra.mxu1 %v17543_v57  ;;  %v12511_v57 = vor.u32 %v15443_v30, %v12508_v16  ;;  %v15584_v30 = vld [vmem:[#allocation16 + $0x1f4] sm:$0xf0]  ;;  %v15565_v16 = vld [vmem:[#allocation16 + $0x164] sm:$0xf] }
 0x4a6   : > { %5242 = vmatpush.bf16.msra.mxu1 %v12559_v50 }
 0x4aa   : > { %5243 = vmatpush.bf16.msra.mxu1 %v12551_v14 }
 0x4ae   : > { %5244 = vmatpush.bf16.msra.mxu1 %v12543_v21 }
 0x4b2   : > { %5245 = vmatpush.bf16.msra.mxu1 %v12535_v3  ;;  %v12748_v3 = vld [vmem:[#allocation16 + $0x178] sm:$0xf0] }
 0x4b3   : > { %v12751_v45 = vor.u32 %v15567_v27, %v12748_v3  ;;  %v12716_v27 = vld [vmem:[#allocation16 + $0x138] sm:$0xf0]  ;;  %v15575_v3 = vld [vmem:[#allocation16 + $0x1b4] sm:$0xf] }
 0x4b5   : > { %5813 = vmatpush.bf16.msra.mxu0 %v12751_v45  ;;  %v12780_v45 = vld [vmem:[#allocation16 + $0x1b8] sm:$0xf0] }
 0x4b6   : > { %5246 = vmatpush.bf16.msra.mxu1 %v12527_v31  ;;  %v12812_v31 = vld [vmem:[#allocation16 + $0x1f8] sm:$0xf0] }
 0x4b7   : > { %v17571_v47 = vpop.f32.mrf.mxu0  ;;  %v12815_v1 = vor.u32 %v15583_v8, %v12812_v31  ;;  %v12714_v31 = vld [vmem:[#allocation16 + $0x130] sm:$0xf] }
 0x4ba   : > { %5247 = vmatpush.bf16.msra.mxu1 %v12519_v55  ;;  %v12810_v55 = vld [vmem:[#allocation16 + $0x1f0] sm:$0xf] }
 0x4bb   : > { %v12811_v42 = vor.u32 %v15584_v30, %v12810_v55  ;;  %v12783_v55 = vor.u32 %v15575_v3, %v12780_v45  ;;  %v15551_v45 = vld [vmem:[#allocation16 + $0xf4] sm:$0xf] }
 0x4bd   : > { %v17574_v63 = vpop.f32.mrf.mxu2  ;;  %5800 = vmatpush.bf16.msra.mxu3 %v12811_v42  ;;  %v15557_v42 = vld [vmem:[#allocation16 + $0x124] sm:$0xf] }
 0x4be   : > { %5248 = vmatpush.bf16.msra.mxu1 %v12511_v57  ;;  %v17576_v58 = vpop.f32.mrf.mxu3 }
 0x4bf   : > { %v5024_v29 = vpop.f32.mrf.mxu0 }
 0x4c0   : > { %v15579_v29 = vld [vmem:[#allocation16 + $0x1d4] sm:$0xf] }
 0x4c2   : > { %5249 = vmatpush.bf16.msra.mxu1 %v12503_v23  ;;  %v12743_v23 = vor.u32 %v15565_v16, %v12740_v54  ;;  %v12708_v54 = vld [vmem:[#allocation16 + $0x128] sm:$0xf0] }
 0x4c4   : > { %5814 = vmatpush.bf16.msra.mxu0 %v12743_v23  ;;  %v12772_v23 = vld [vmem:[#allocation16 + $0x1a8] sm:$0xf0] }
 0x4c5   : > { %5250 = vmatmul.bf16.vlgmr.msra.gmra.mxu1 %v17552_v40  ;;  %v4998_v43 = vpop.f32.mrf.mxu2 }
 0x4c6   : > { %5497 = vmatpush.bf16.msrb.mxu1 %v12687_v39  ;;  %v5011_v2 = vpop.f32.mrf.mxu3  ;;  %v12807_v39 = vor.u32 %v15581_v56, %v12804_v41  ;;  %v15573_v56 = vld [vmem:[#allocation16 + $0x1a4] sm:$0xf]  ;;  %v12711_v41 = vor.u32 %v15557_v42, %v12708_v54  ;;  %v12868_v54 = vld [vmem:[#allocation16 + $0x68] sm:$0xf0] }
 0x4c7   : > { %v17578_v40 = vpop.f32.mrf.mxu0  ;;  %v12775_v46 = vor.u32 %v15573_v56, %v12772_v23  ;;  %v15533_v42 = vld [vmem:[#allocation16 + $0x64] sm:$0xf] }
 0x4c8   : > { %v15549_v23 = vld [vmem:[#allocation16 + $0xe4] sm:$0xf] }
 0x4ca   : > { %5498 = vmatpush.bf16.msrb.mxu1 %v12679_v48  ;;  %v12802_v48 = vld [vmem:[#allocation16 + $0x1e0] sm:$0xf] }
 0x4cb   : > { %v12803_v62 = vor.u32 %v15582_v37, %v12802_v48  ;;  %v15574_v37 = vld [vmem:[#allocation16 + $0x1a4] sm:$0xf0] }
 0x4cd   : > { %v17580_v17 = vpop.f32.mrf.mxu2  ;;  %5801 = vmatpush.bf16.msra.mxu3 %v12803_v62  ;;  %v12700_v62 = vld [vmem:[#allocation16 + $0x118] sm:$0xf0] }
 0x4ce   : > { %5499 = vmatpush.bf16.msrb.mxu1 %v12671_v10  ;;  %v17582_v18 = vpop.f32.mrf.mxu3  ;;  %v15563_v10 = vld [vmem:[#allocation16 + $0x154] sm:$0xf] }
 0x4cf   : > { %v5240_v4 = vpop.f32.mrf.mxu0  ;;  %v12735_v36 = vor.u32 %v15563_v10, %v12732_v59  ;;  %v15555_v59 = vld [vmem:[#allocation16 + $0x114] sm:$0xf] }
 0x4d0   : > { %v15562_v4 = vld [vmem:[#allocation16 + $0x144] sm:$0xf0] }
 0x4d1   : > { %5815 = vmatpush.bf16.msra.mxu0 %v12735_v36  ;;  %v12698_v36 = vld [vmem:[#allocation16 + $0x110] sm:$0xf] }
 0x4d2   : > { %5500 = vmatpush.bf16.msrb.mxu1 %v12663_v60  ;;  %v12796_v60 = vld [vmem:[#allocation16 + $0x1d8] sm:$0xf0] }
 0x4d3   : > { %v12799_v43 = vor.u32 %v15579_v29, %v12796_v60  ;;  %v15571_v29 = vld [vmem:[#allocation16 + $0x194] sm:$0xf]  ;;  %v12703_v60 = vor.u32 %v15555_v59, %v12700_v62  ;;  %v17603_v59 = vld [vmem:[%s18066_s8] sm:$0x3]  ;;  %s18076_s8 = sld [smem:[#allocation56_spill]] }
 0x4d5   : > { %v5214_v9 = vpop.f32.mrf.mxu2 }
 0x4d6   : > { %5501 = vmatpush.bf16.msrb.mxu1 %v12655_v22  ;;  %v5227_v0 = vpop.f32.mrf.mxu3  ;;  %v15564_v22 = vld [vmem:[#allocation16 + $0x154] sm:$0xf0]  ;;  %v15578_v9 = vld [vmem:[#allocation16 + $0x1c4] sm:$0xf0] }
 0x4d7   : > { %v12731_v2 = vor.u32 %v15564_v22, %v12730_v20  ;;  %v12764_v20 = vld [vmem:[#allocation16 + $0x198] sm:$0xf0]  ;;  %v15556_v22 = vld [vmem:[#allocation16 + $0x114] sm:$0xf0] }
 0x4d8   : > { %v17586_v50 = vpop.f32.mrf.mxu0 }
 0x4d9   : > { %s18077_s26 = smov %s18076_s8  ;;  %s10459_s29 = scalar_lea.hbm %s18076_s8, %s16856_s9 }
 0x4da   : > { %5502 = vmatpush.bf16.msrb.mxu1 %v12647_v35  ;;  %v15561_v35 = vld [vmem:[#allocation16 + $0x144] sm:$0xf]  ;;  %s10463_s6 = sshll.u32 %s10459_s29, 4  ;;  %s16612_s13 = scalar_lea.hbm %s18077_s26, 2  ;;  %s10464_s6 = int_to_ptr.hbm [resolvable:$true] %s10463_s6 }
 0x4db   : > { %v12727_v0 = vor.u32 %v15561_v35, %v12724_v32  ;;  %v15572_v35 = vld [vmem:[#allocation16 + $0x194] sm:$0xf0]  ;;  %s16606_s7 = sshra.s32 %s10464_s6, 4  ;;  %s16607_s7 = int_to_ptr.hbm [resolvable:$true] %s16606_s7 }
 0x4dc   : > { %s16608_s0 = scalar_lea.hbm %s16607_s7, 1  ;;  %p16613_p3 = scmp.lt.s32.totalorder %s16607_s7, %s18077_s26 }
 0x4dd   : > { %v17588_v25 = vpop.f32.mrf.mxu2  ;;  %5816 = vmatpush.bf16.msra.mxu0 %v12727_v0  ;;  %p16609_p0 = scmp.ne.s32.totalorder %s16607_s7, %s16608_s0  ;;  %p16614_p4 = scmp.lt.s32.totalorder %s16612_s13, %s16608_s0 }
 0x4de   : > { %5503 = vmatpush.bf16.msrb.mxu1 %v12639_v53  ;;  %v17590_v49 = vpop.f32.mrf.mxu3  ;;  %v12795_v53 = vor.u32 %v15580_v33, %v12794_v34  ;;  %v12767_v33 = vor.u32 %v15571_v29, %v12764_v20  ;;  %v12860_v20 = vld [vmem:[#allocation16 + $0x58] sm:$0xf0] }
 0x4df   : > { %p16610_p1 = pnand %p16609_p0, %p16873_p5  ;;  %p16615_p7 = por %p16614_p4, %p16613_p3 }
 0x4e0   : > { %v5495_v14 = vpop.f32.mrf.mxu0  ;;  %5802 = vmatpush.bf16.msra.mxu3 %v12795_v53  ;;  %v12692_v53 = vld [vmem:[#allocation16 + $0x108] sm:$0xf0] }
 0x4e1   : > { %v12791_v14 = vor.u32 %v15577_v7, %v12788_v12  ;;  %v15553_v7 = vld [vmem:[#allocation16 + $0x104] sm:$0xf]  ;;  %p16611_p2 = pneg %p16610_p1 }
 0x4e2   : > { %5504 = vmatpush.bf16.msrb.mxu1 %v12631_v6  ;;  %v12786_v6 = vld [vmem:[#allocation16 + $0x1c0] sm:$0xf]  ;;  %v15569_v12 = vld [vmem:[#allocation16 + $0x184] sm:$0xf] }
 0x4e3   : > { %v12787_v8 = vor.u32 %v15578_v9, %v12786_v6  ;;  %v12690_v6 = vld [vmem:[#allocation16 + $0x100] sm:$0xf]  ;;  %v15554_v9 = vld [vmem:[#allocation16 + $0x104] sm:$0xf0]  ;;  %p16616_p8 = pnand %p16615_p7, %p16611_p2 }
 0x4e5   : > { %5505 = vmatmul.bf16.vlgmr.msrb.gmra.mxu1 %v5295_v13  ;;  %v5469_v24 = vpop.f32.mrf.mxu2  ;;  %v15568_v13 = vld [vmem:[#allocation16 + $0x174] sm:$0xf0]  ;;  %5803 = vmatpush.bf16.msra.mxu3 %v12787_v8  ;;  %v12876_v8 = vld [vmem:[#allocation16 + $0x78] sm:$0xf0] }
 0x4e6   : > { %v5482_v11 = vpop.f32.mrf.mxu3  ;;  %v12747_v61 = vor.u32 %v15568_v13, %v12746_v51  ;;  %5826 = vmatpush.bf16.msra.mxu1 %v12815_v1  ;;  %v12723_v24 = vor.u32 %v15562_v4, %v12722_v28  ;;  %v15560_v51 = vld [vmem:[#allocation16 + $0x134] sm:$0xf0]  ;;  %v12778_v13 = vld [vmem:[#allocation16 + $0x1b0] sm:$0xf]  ;;  %v12695_v28 = vor.u32 %v15553_v7, %v12692_v53  ;;  %v12756_v4 = vld [vmem:[#allocation16 + $0x188] sm:$0xf0]  ;;  %v5481_v53 = vadd.f32 %v17590_v49, %v17588_v25 }
 0x4e7   : > { %v15559_v11 = vld [vmem:[#allocation16 + $0x134] sm:$0xf]  ;;  %v15576_v1 = vld [vmem:[#allocation16 + $0x1b4] sm:$0xf0]  ;;  %v12715_v30 = vor.u32 %v15560_v51, %v12714_v31  ;;  %v12759_v0 = vor.u32 %v15569_v12, %v12756_v4  ;;  %v12940_v31 = vld [vmem:[#allocation16 + $0xf8] sm:$0xf0] }
 0x4e8   : > { %5787 = vmatpush.bf16.msra.mxu2 %v12747_v61  ;;  %v12719_v61 = vor.u32 %v15559_v11, %v12716_v27  ;;  %v12779_v16 = vor.u32 %v15576_v1, %v12778_v13  ;;  %v15570_v11 = vld [vmem:[#allocation16 + $0x184] sm:$0xf0]  ;;  %v15535_v27 = vld [vmem:[#allocation16 + $0x74] sm:$0xf]  ;;  %v12943_v13 = vor.u32 %v15551_v45, %v12940_v31  ;;  %v12874_v1 = vld [vmem:[#allocation16 + $0x70] sm:$0xf] }
 0x4e9   : > { %v12879_v51 = vor.u32 %v15535_v27, %v12876_v8  ;;  %v15529_v7 = vld [vmem:[#allocation16 + $0x44] sm:$0xf]  ;;  %v12852_v12 = vld [vmem:[#allocation16 + $0x48] sm:$0xf0]  ;;  %v15546_v27 = vld [vmem:[#allocation16 + $0xc4] sm:$0xf0] }
 0x4ea   : > { %5827 = vmatpush.bf16.msra.mxu1 %v12807_v39  ;;  %5817 = vmatpush.bf16.msra.mxu0 %v12719_v61  ;;  %v12706_v39 = vld [vmem:[#allocation16 + $0x120] sm:$0xf]  ;;  %v15536_v61 = vld [vmem:[#allocation16 + $0x74] sm:$0xf0]  ;;  %v12916_v4 = vld [vmem:[#allocation16 + $0xc8] sm:$0xf0]  ;;  %v12855_v49 = vor.u32 %v15529_v7, %v12852_v12 }
 0x4eb   : > { %5804 = vmatpush.bf16.msra.mxu3 %v12779_v16  ;;  %v12707_v48 = vor.u32 %v15558_v19, %v12706_v39  ;;  %v15552_v16 = vld [vmem:[#allocation16 + $0xf4] sm:$0xf0]  ;;  %v12932_v39 = vld [vmem:[#allocation16 + $0xe8] sm:$0xf0]  ;;  %v12866_v19 = vld [vmem:[#allocation16 + $0x60] sm:$0xf] }
 0x4ec   : > { %5788 = vmatpush.bf16.msra.mxu2 %v12739_v26  ;;  %v12770_v26 = vld [vmem:[#allocation16 + $0x1a0] sm:$0xf]  ;;  %v15527_v45 = vld [vmem:[#allocation16 + $0x34] sm:$0xf]  ;;  %v12826_v7 = vld [vmem:[#allocation16 + $0x10] sm:$0xf] }
 0x4ed   : > { %v12771_v10 = vor.u32 %v15574_v37, %v12770_v26  ;;  %v15534_v26 = vld [vmem:[#allocation16 + $0x64] sm:$0xf0]  ;;  %v12930_v37 = vld [vmem:[#allocation16 + $0xe0] sm:$0xf]  ;;  %v15540_v12 = vld [vmem:[#allocation16 + $0x94] sm:$0xf0] }
 0x4ee   : > { %5828 = vmatpush.bf16.msra.mxu1 %v12799_v43  ;;  %5818 = vmatpush.bf16.msra.mxu0 %v12711_v41  ;;  %v12699_v43 = vor.u32 %v15556_v22, %v12698_v36  ;;  %v12871_v41 = vor.u32 %v15533_v42, %v12868_v54  ;;  %v12867_v62 = vor.u32 %v15534_v26, %v12866_v19  ;;  %v15547_v36 = vld [vmem:[#allocation16 + $0xd4] sm:$0xf]  ;;  %v15544_v42 = vld [vmem:[#allocation16 + $0xb4] sm:$0xf0]  ;;  %v4670_v54 = vperm.slane %v17603_v59, 1 }
 0x4ef   : > { %5805 = vmatpush.bf16.msra.mxu3 %v12771_v10  ;;  %v15550_v10 = vld [vmem:[#allocation16 + $0xe4] sm:$0xf0]  ;;  %v15541_v26 = vld [vmem:[#allocation16 + $0xa4] sm:$0xf] }
 0x4f0   : > { %5789 = vmatpush.bf16.msra.mxu2 %v12731_v2  ;;  %v12762_v2 = vld [vmem:[#allocation16 + $0x190] sm:$0xf]  ;;  %v12931_v29 = vor.u32 %v15550_v10, %v12930_v37  ;;  %v12900_v37 = vld [vmem:[#allocation16 + $0xa8] sm:$0xf0] }
 0x4f1   : > { %v12763_v32 = vor.u32 %v15572_v35, %v12762_v2  ;;  %v12922_v35 = vld [vmem:[#allocation16 + $0xd0] sm:$0xf] }
 0x4f2   : > { %5829 = vmatpush.bf16.msra.mxu1 %v12791_v14  ;;  %5819 = vmatpush.bf16.msra.mxu0 %v12703_v60  ;;  %v12691_v14 = vor.u32 %v15554_v9, %v12690_v6  ;;  %v15531_v60 = vld [vmem:[#allocation16 + $0x54] sm:$0xf]  ;;  %v12850_v9 = vld [vmem:[#allocation16 + $0x40] sm:$0xf] }
 0x4f3   : > { %5806 = vmatpush.bf16.msra.mxu3 %v12763_v32  ;;  %v15548_v32 = vld [vmem:[#allocation16 + $0xd4] sm:$0xf0] }
 0x4f4   : > { %5790 = vmatpush.bf16.msra.mxu2 %v12723_v24  ;;  %v12754_v24 = vld [vmem:[#allocation16 + $0x180] sm:$0xf]  ;;  %v12923_v6 = vor.u32 %v15548_v32, %v12922_v35 }
 0x4f5   : > { %v12755_v3 = vor.u32 %v15570_v11, %v12754_v24  ;;  %v12914_v11 = vld [vmem:[#allocation16 + $0xc0] sm:$0xf] }
 0x4f6   : > { %5830 = vmatpush.bf16.msra.mxu1 %v12783_v55  ;;  %5820 = vmatpush.bf16.msra.mxu0 %v12695_v28  ;;  %v12938_v55 = vld [vmem:[#allocation16 + $0xf0] sm:$0xf]  ;;  %v15545_v28 = vld [vmem:[#allocation16 + $0xc4] sm:$0xf] }
 0x4f7   : > { %5807 = vmatpush.bf16.msra.mxu3 %v12755_v3  ;;  %v12939_v56 = vor.u32 %v15552_v16, %v12938_v55  ;;  %v12919_v8 = vor.u32 %v15545_v28, %v12916_v4  ;;  %v12842_v55 = vld [vmem:[#allocation16 + $0x30] sm:$0xf] }
 0x4f8   : > { %5791 = vmatpush.bf16.msra.mxu2 %v12715_v30  ;;  %v12875_v30 = vor.u32 %v15536_v61, %v12874_v1  ;;  %v15543_v1 = vld [vmem:[#allocation16 + $0xb4] sm:$0xf]  ;;  %v12908_v61 = vld [vmem:[#allocation16 + $0xb8] sm:$0xf0]  ;;  %v12906_v16 = vld [vmem:[#allocation16 + $0xb0] sm:$0xf] }
 0x4fa   : > { %5831 = vmatpush.bf16.msra.mxu1 %v12775_v46  ;;  %6027 = vmatpush.bf16.msrb.mxu0 %v12879_v51  ;;  %v5010_v46 = vadd.f32 %v17576_v58, %v17574_v63  ;;  %v17609_v63 = vld [vmem:[%s17986_s12] sm:$0x3]  ;;  %v12924_v58 = vld [vmem:[#allocation16 + $0xd8] sm:$0xf0] }
 0x4fb   : > { %6014 = vmatpush.bf16.msrb.mxu3 %v12939_v56  ;;  %v12927_v2 = vor.u32 %v15547_v36, %v12924_v58  ;;  %v5514_v3 = vperm.slane %v17609_v63, 0  ;;  %v12911_v56 = vor.u32 %v15543_v1, %v12908_v61  ;;  %v15542_v36 = vld [vmem:[#allocation16 + $0xa4] sm:$0xf0]  ;;  %v12903_v58 = vor.u32 %v15541_v26, %v12900_v37  ;;  %v13012_v26 = vld [vmem:[#allocation16 + $0x278] sm:$0xf0] }
 0x4fc   : > { %5792 = vmatpush.bf16.msra.mxu2 %v12707_v48  ;;  %v12935_v48 = vor.u32 %v15549_v23, %v12932_v39  ;;  %v5213_v22 = vadd.f32 %v17580_v17, %v5010_v46 }
 0x4fe   : > { %5832 = vmatpush.bf16.msra.mxu1 %v12767_v33  ;;  %v15532_v33 = vld [vmem:[#allocation16 + $0x54] sm:$0xf0]  ;;  %6028 = vmatpush.bf16.msrb.mxu0 %v12871_v41  ;;  %v5226_v24 = vadd.f32 %v17582_v18, %v5213_v22  ;;  %v12915_v18 = vor.u32 %v15546_v27, %v12914_v11  ;;  %v15525_v41 = vld [vmem:[#allocation16 + $0x24] sm:$0xf]  ;;  %v12884_v27 = vld [vmem:[#allocation16 + $0x88] sm:$0xf0] }
 0x4ff   : > { %6015 = vmatpush.bf16.msrb.mxu3 %v12931_v29  ;;  %v12834_v29 = vld [vmem:[#allocation16 + $0x20] sm:$0xf]  ;;  %v15537_v11 = vld [vmem:[#allocation16 + $0x84] sm:$0xf] }
 0x500   : > { %5793 = vmatpush.bf16.msra.mxu2 %v12699_v43  ;;  %v12863_v43 = vor.u32 %v15531_v60, %v12860_v20  ;;  %v5510_v31 = vadd.f32 %v5481_v53, %v5226_v24  ;;  %v15526_v60 = vld [vmem:[#allocation16 + $0x24] sm:$0xf0]  ;;  %v12898_v20 = vld [vmem:[#allocation16 + $0xa0] sm:$0xf]  ;;  %v15524_v53 = vld [vmem:[#allocation16 + $0x14] sm:$0xf0]  ;;  %v12887_v1 = vor.u32 %v15537_v11, %v12884_v27 }
 0x501   : > { %v12899_v32 = vor.u32 %v15542_v36, %v12898_v20  ;;  %v12820_v24 = vld [vmem:[#allocation16 + $0x8] sm:$0xf0]  ;;  %v12994_v11 = vld [vmem:[#allocation16 + $0x250] sm:$0xf]  ;;  %v15598_v27 = vld [vmem:[#allocation16 + $0x254] sm:$0xf0] }
 0x502   : > { %v17592_v21 = vpop.f32.mrf.mxu1  ;;  %5833 = vmatpush.bf16.msra.mxu1 %v12759_v0  ;;  %v15530_v0 = vld [vmem:[#allocation16 + $0x44] sm:$0xf0]  ;;  %6029 = vmatpush.bf16.msrb.mxu0 %v12863_v43  ;;  %v5518_v39 = vadd.f32 %v5514_v3, %v5510_v31  ;;  %v12828_v43 = vld [vmem:[#allocation16 + $0x18] sm:$0xf0] }
 0x503   : > { %v12851_v51 = vor.u32 %v15530_v0, %v12850_v9  ;;  %6016 = vmatpush.bf16.msrb.mxu3 %v12923_v6  ;;  %v15521_v9 = vld [vmem:[#allocation16 + $0x4] sm:$0xf]  ;;  %v15538_v31 = vld [vmem:[#allocation16 + $0x84] sm:$0xf0] }
 0x504   : > { %5794 = vmatpush.bf16.msra.mxu2 %v12691_v14  ;;  %v4669_v14 = vperm.slane %v17603_v59, 0 }
 0x506   : > { %6040 = vmatpush.bf16.msrb.mxu1 %v12943_v13  ;;  %v12844_v13 = vld [vmem:[#allocation16 + $0x38] sm:$0xf0]  ;;  %6030 = vmatpush.bf16.msrb.mxu0 %v12855_v49  ;;  %v4697_v23 = vadd.f32 %v17569_v38, %v4669_v14  ;;  %v12827_v14 = vor.u32 %v15524_v53, %v12826_v7  ;;  %v12818_v49 = vld [vmem:[#allocation16] sm:$0xf]  ;;  %v15600_v7 = vld [vmem:[#allocation16 + $0x264] sm:$0xf0] }
 0x507   : > { %6017 = vmatpush.bf16.msrb.mxu3 %v12915_v18  ;;  %v13066_v53 = vld [vmem:[#allocation16 + $0x2e0] sm:$0xf] }
 0x508   : > { %6001 = vmatpush.bf16.msrb.mxu2 %v12875_v30  ;;  %v15528_v30 = vld [vmem:[#allocation16 + $0x34] sm:$0xf0] }
 0x509   : > { %v12843_v46 = vor.u32 %v15528_v30, %v12842_v55 }
 0x50a   : > { %6041 = vmatpush.bf16.msrb.mxu1 %v12935_v48  ;;  %v12836_v48 = vld [vmem:[#allocation16 + $0x28] sm:$0xf0] }
 0x50b   : > { %v12839_v22 = vor.u32 %v15525_v41, %v12836_v48  ;;  %v15601_v48 = vld [vmem:[#allocation16 + $0x274] sm:$0xf] }
 0x50c   : > { %6002 = vmatpush.bf16.msrb.mxu2 %v12867_v62  ;;  %v12907_v62 = vor.u32 %v15544_v42, %v12906_v16 }
 0x50e   : > { %6042 = vmatpush.bf16.msrb.mxu1 %v12927_v2  ;;  %v12892_v2 = vld [vmem:[#allocation16 + $0x98] sm:$0xf0]  ;;  %6018 = vmatpush.bf16.msrb.mxu3 %v12907_v62  ;;  %v15602_v62 = vld [vmem:[#allocation16 + $0x274] sm:$0xf0] }
 0x512   : > { %6043 = vmatpush.bf16.msrb.mxu1 %v12919_v8  ;;  %6019 = vmatpush.bf16.msrb.mxu3 %v12899_v32  ;;  %v15522_v8 = vld [vmem:[#allocation16 + $0x4] sm:$0xf0]  ;;  %v13002_v32 = vld [vmem:[#allocation16 + $0x260] sm:$0xf] }
 0x513   : > { %v12819_v61 = vor.u32 %v15522_v8, %v12818_v49  ;;  %v15595_v8 = vld [vmem:[#allocation16 + $0x244] sm:$0xf] }
 0x516   : > { %6044 = vmatpush.bf16.msrb.mxu1 %v12911_v56 }
 0x51a   : > { %6045 = vmatpush.bf16.msrb.mxu1 %v12903_v58 }
 0x522   : > { %v17594_v44 = vpop.f32.mrf.mxu1 }
 0x523   : > { %v5036_v25 = vadd.f32 %v17594_v44, %v17571_v47  ;;  %v12847_v44 = vor.u32 %v15527_v45, %v12844_v13  ;;  %v12882_v45 = vld [vmem:[#allocation16 + $0x80] sm:$0xf]  ;;  %v12823_v13 = vor.u32 %v15521_v9, %v12820_v24  ;;  %v13003_v9 = vor.u32 %v15600_v7, %v13002_v32  ;;  %v13060_v24 = vld [vmem:[#allocation16 + $0x2d8] sm:$0xf0]  ;;  %v12962_v7 = vld [vmem:[#allocation16 + $0x210] sm:$0xf] }
 0x524   : > { %v12883_v55 = vor.u32 %v15538_v31, %v12882_v45  ;;  %v12988_v45 = vld [vmem:[#allocation16 + $0x248] sm:$0xf0]  ;;  %v12995_v31 = vor.u32 %v15598_v27, %v12994_v11  ;;  %v13028_v32 = vld [vmem:[#allocation16 + $0x298] sm:$0xf0]  ;;  %v15588_v11 = vld [vmem:[#allocation16 + $0x204] sm:$0xf0] }
 0x525   : > { %v5239_v47 = vadd.f32 %v17578_v40, %v5036_v25  ;;  %v5515_v40 = vperm.slane %v17609_v63, 1  ;;  %6031 = vmatpush.bf16.msrb.mxu0 %v12847_v44  ;;  %v4717_v63 = vadd.f32 %v17592_v21, %v4670_v54  ;;  %v16260_v44 = vld [vmem:[#allocation4] sm:$0xff] }
 0x529   : > { %6032 = vmatpush.bf16.msrb.mxu0 %v12839_v22 }
 0x52a   : > { %v5037_v57 = vpop.f32.mrf.mxu1 }
 0x542   : > { %v17596_v57 = vpop.f32.mrf.mxu1 }
 0x543   : > { %v5252_v10 = vadd.f32 %v17596_v57, %v5239_v47  ;;  %v15539_v57 = vld [vmem:[#allocation16 + $0x94] sm:$0xf]  ;;  %v5537_v47 = vld [vmem:[#allocation4 + $0x8] sm:$0x11] }
 0x544   : > { %v12895_v6 = vor.u32 %v15539_v57, %v12892_v2  ;;  %v13004_v57 = vld [vmem:[#allocation16 + $0x268] sm:$0xf0] }
 0x546   : > { %6046 = vmatpush.bf16.msrb.mxu1 %v12895_v6  ;;  %v12996_v6 = vld [vmem:[#allocation16 + $0x258] sm:$0xf0] }
 0x54a   : > { %v5253_v34 = vpop.f32.mrf.mxu1  ;;  %6047 = vmatpush.bf16.msrb.mxu1 %v12887_v1  ;;  %v13052_v1 = vld [vmem:[#allocation16 + $0x2c8] sm:$0xf0] }
 0x54b   : > { %v12858_v34 = vld [vmem:[#allocation16 + $0x50] sm:$0xf] }
 0x54c   : > { %v12859_v17 = vor.u32 %v15532_v33, %v12858_v34  ;;  %v15523_v34 = vld [vmem:[#allocation16 + $0x14] sm:$0xf]  ;;  %v12835_v33 = vor.u32 %v15526_v60, %v12834_v29 }
 0x54d   : > { %v12831_v4 = vor.u32 %v15523_v34, %v12828_v43  ;;  %v13015_v34 = vor.u32 %v15601_v48, %v13012_v26  ;;  %v15599_v43 = vld [vmem:[#allocation16 + $0x264] sm:$0xf]  ;;  %v15594_v48 = vld [vmem:[#allocation16 + $0x234] sm:$0xf0]  ;;  %v13042_v26 = vld [vmem:[#allocation16 + $0x2b0] sm:$0xf] }
 0x54e   : > { %6003 = vmatpush.bf16.msrb.mxu2 %v12859_v17  ;;  %v12890_v17 = vld [vmem:[#allocation16 + $0x90] sm:$0xf] }
 0x54f   : > { %v12891_v25 = vor.u32 %v15540_v12, %v12890_v17  ;;  %6033 = vmatpush.bf16.msrb.mxu0 %v12831_v4  ;;  %v15616_v17 = vld [vmem:[#allocation16 + $0x2e4] sm:$0xf0]  ;;  %v13007_v12 = vor.u32 %v15599_v43, %v13004_v57  ;;  %v15597_v4 = vld [vmem:[#allocation16 + $0x254] sm:$0xf] }
 0x550   : > { %v15589_v57 = vld [vmem:[#allocation16 + $0x214] sm:$0xf] }
 0x551   : > { %6020 = vmatpush.bf16.msrb.mxu3 %v12891_v25  ;;  %v12999_v25 = vor.u32 %v15597_v4, %v12996_v6  ;;  %v12956_v4 = vld [vmem:[#allocation16 + $0x208] sm:$0xf0]  ;;  %v15603_v6 = vld [vmem:[#allocation16 + $0x284] sm:$0xf] }
 0x552   : > { %6004 = vmatpush.bf16.msrb.mxu2 %v12851_v51 }
 0x553   : > { %6034 = vmatpush.bf16.msrb.mxu0 %v12823_v13  ;;  %v15611_v13 = vld [vmem:[#allocation16 + $0x2c4] sm:$0xf] }
 0x555   : > { %6021 = vmatpush.bf16.msrb.mxu3 %v12883_v55  ;;  %v13050_v55 = vld [vmem:[#allocation16 + $0x2c0] sm:$0xf] }
 0x556   : > { %6005 = vmatpush.bf16.msrb.mxu2 %v12843_v46 }
 0x55a   : > { %6006 = vmatpush.bf16.msrb.mxu2 %v12835_v33 }
 0x55e   : > { %6007 = vmatpush.bf16.msrb.mxu2 %v12827_v14  ;;  %v15613_v14 = vld [vmem:[#allocation16 + $0x2d4] sm:$0xf] }
 0x55f   : > { %v13063_v49 = vor.u32 %v15613_v14, %v13060_v24  ;;  %v13020_v14 = vld [vmem:[#allocation16 + $0x288] sm:$0xf0]  ;;  %v12954_v24 = vld [vmem:[#allocation16 + $0x200] sm:$0xf] }
 0x562   : > { %v5506_v19 = vpop.f32.mrf.mxu1  ;;  %6008 = vmatpush.bf16.msrb.mxu2 %v12819_v61  ;;  %v12986_v61 = vld [vmem:[#allocation16 + $0x240] sm:$0xf] }
 0x563   : > { %v5507_v59 = vadd.f32 %v5506_v19, %v17586_v50  ;;  %v5520_v50 = vadd.f32 %v5518_v39, %v4697_v23 }
 0x565   : > { %v5511_v38 = vadd.f32 %v5507_v59, %v5252_v10  ;;  %v5522_v21 = vmax.f32 %v5520_v50, 0.0  ;;  %v15617_v59 = vld [vmem:[#allocation16 + $0x2f4] sm:$0xf] }
 0x566   : > { %v13079_v33 = vor.u32 %v15617_v59, %v13076_v5  ;;  %v15591_v5 = vld [vmem:[#allocation16 + $0x224] sm:$0xf] }
 0x567   : > { %v5519_v35 = vadd.f32 %v5515_v40, %v5511_v38  ;;  %v13010_v40 = vld [vmem:[#allocation16 + $0x270] sm:$0xf]  ;;  %v15618_v38 = vld [vmem:[#allocation16 + $0x2f4] sm:$0xf0] }
 0x568   : > { %v13011_v2 = vor.u32 %v15602_v62, %v13010_v40  ;;  %v13075_v50 = vor.u32 %v15618_v38, %v13074_v15  ;;  %v12972_v40 = vld [vmem:[#allocation16 + $0x228] sm:$0xf0]  ;;  %v13034_v38 = vld [vmem:[#allocation16 + $0x2a0] sm:$0xf] }
 0x569   : > { %v5521_v28 = vadd.f32 %v5519_v35, %v4717_v63  ;;  %v15615_v63 = vld [vmem:[#allocation16 + $0x2e4] sm:$0xf]  ;;  %v13068_v35 = vld [vmem:[#allocation16 + $0x2e8] sm:$0xf0] }
 0x56a   : > { %v5508_v0 = vpop.f32.mrf.mxu1 }
 0x56b   : > { %v5523_v3 = vmax.f32 %v5521_v28, 0.0  ;;  %v13071_v28 = vor.u32 %v15615_v63, %v13068_v35  ;;  %v13067_v0 = vor.u32 %v15616_v17, %v13066_v53  ;;  %v15605_v35 = vld [vmem:[#allocation16 + $0x294] sm:$0xf]  ;;  %v15590_v53 = vld [vmem:[#allocation16 + $0x214] sm:$0xf0] }
 0x56c   : > { %v13026_v17 = vld [vmem:[#allocation16 + $0x290] sm:$0xf] }
 0x56d   : > { %v5524_v51 = vpack.c.bf16 %v5523_v3, %v5522_v21  ;;  %v13058_v21 = vld [vmem:[#allocation16 + $0x2d0] sm:$0xf]  ;;  %v15614_v3 = vld [vmem:[#allocation16 + $0x2d4] sm:$0xf0] }
 0x56f   : > { %v5526_v18 = vshrl.u32 %v5524_v51, 16  ;;  %v5529_v16 = vshll.u32 %v5524_v51, 16  ;;  %v13059_v51 = vor.u32 %v15614_v3, %v13058_v21  ;;  %v12963_v21 = vor.u32 %v15590_v53, %v12962_v7  ;;  %v15656_v7 = vld [vmem:[#allocation18 + $0x124] sm:$0xf0]  ;;  %v13166_v53 = vld [vmem:[#allocation18 + $0x1a0] sm:$0xf] }
 0x571   : > { %v5528_v30 = vrot.slane %v5526_v18, 7  ;;  %v15596_v18 = vld [vmem:[#allocation16 + $0x244] sm:$0xf0] }
 0x573   : > { %v5531_v42 = vor.u32 %v5529_v16, %v5528_v30  ;;  %v5532_v54 = vrot.slane %v5528_v30, 4  ;;  %v15612_v30 = vld [vmem:[#allocation16 + $0x2c4] sm:$0xf0]  ;;  %v12991_v16 = vor.u32 %v15595_v8, %v12988_v45  ;;  %v13142_v8 = vld [vmem:[#allocation18 + $0x170] sm:$0xf] }
 0x575   : > { %v5535_v56 = vsel %vm17212_vm0, %v5531_v42, %v16260_v44  ;;  %v5538_v41 = vsel %vm17228_vm8, %v5532_v54, %v5537_v47  ;;  %v13055_v42 = vor.u32 %v15611_v13, %v13052_v1  ;;  %v15593_v54 = vld [vmem:[#allocation16 + $0x234] sm:$0xf]  ;;  %v12980_v47 = vld [vmem:[#allocation16 + $0x238] sm:$0xf0]  ;;  %v12987_v44 = vor.u32 %v15596_v18, %v12986_v61  ;;  %v15666_v13 = vld [vmem:[#allocation18 + $0x174] sm:$0xf0] }
 0x576   : > { %5536 = vst [vmem:[#allocation4] sm:$0xff] %v5535_v56  ;;  %v5607_v23 = vunpack.c.l.b16 %v5535_v56  ;;  %v5608_v39 = vunpack.c.h.b16 %v5535_v56  ;;  %v13051_v56 = vor.u32 %v15612_v30, %v13050_v55  ;;  %v13206_v1 = vld [vmem:[#allocation18 + $0x1f0] sm:$0xf]  ;;  %v15682_v61 = vld [vmem:[#allocation18 + $0x1f4] sm:$0xf0]  ;;  %v13023_v55 = vor.u32 %v15603_v6, %v13020_v14  ;;  %vm17700_vm0 = vmand %vm7171_vm13, %vm7172_vm14 }
 0x577   : > { %5539 = vst [vmem:[#allocation4 + $0x8] sm:$0x11] %v5538_v41  ;;  %v15609_v41 = vld [vmem:[#allocation16 + $0x2b4] sm:$0xf]  ;;  %v12955_v30 = vor.u32 %v15588_v11, %v12954_v24  ;;  %v15654_v6 = vld [vmem:[#allocation18 + $0x114] sm:$0xf0]  ;;  %vm7174_vm1 = vmor %vm17700_vm0, %vm17694_vm15 }
 0x578   : > { %v17629_v19 = vpack.c.b16 %v5607_v23, %v5607_v23  ;;  %v17631_v46 = vpack.c.b16 %v5608_v39, %v5608_v39  ;;  %v13044_v23 = vld [vmem:[#allocation16 + $0x2b8] sm:$0xf0]  ;;  %v12978_v39 = vld [vmem:[#allocation16 + $0x230] sm:$0xf]  ;;  %v13086_v11 = vld [vmem:[#allocation18 + $0x100] sm:$0xf] }
 0x579   : > { %v13047_v59 = vor.u32 %v15609_v41, %v13044_v23  ;;  %v12979_v62 = vor.u32 %v15594_v48, %v12978_v39  ;;  %v15664_v41 = vld [vmem:[#allocation18 + $0x164] sm:$0xf0]  ;;  %v13198_v23 = vld [vmem:[#allocation18 + $0x1e0] sm:$0xf]  ;;  %vm17844_vm8 = vmand %vm9596_vm3, %vm9608_vm4 }
 0x57a   : > { %v5614_v37 = vshll.u32 %v17629_v19, 16  ;;  %v5621_v10 = vshll.u32 %v17631_v46, 16  ;;  %v5612_v29 = vshrl.u32 %v17629_v19, 16  ;;  %v5619_v20 = vshrl.u32 %v17631_v46, 16  ;;  %v15680_v39 = vld [vmem:[#allocation18 + $0x1e4] sm:$0xf0]  ;;  %vm9613_vm6 = vmor %vm17849_vm2, %vm17844_vm8 }
 0x57c   : > { %v5616_v60 = vrot.slane %v5614_v37, 1  ;;  %v5623_v36 = vrot.slane %v5621_v10, 1  ;;  %v15610_v37 = vld [vmem:[#allocation16 + $0x2b4] sm:$0xf0]  ;;  %v12983_v10 = vor.u32 %v15593_v54, %v12980_v47  ;;  %v13143_v47 = vor.u32 %v15666_v13, %v13142_v8  ;;  %v13334_v8 = vld [vmem:[#allocation18 + $0xf0] sm:$0xf] }
 0x57d   : > { %v13043_v15 = vor.u32 %v15610_v37, %v13042_v26  ;;  %v12946_v27 = vld [vmem:[#allocation4] sm:$0xe] }
 0x57e   : > { %v17637_v22 = vor.u32 %v5616_v60, %v5612_v29  ;;  %v17639_v58 = vor.u32 %v5623_v36, %v5619_v20  ;;  %v15607_v29 = vld [vmem:[#allocation16 + $0x2a4] sm:$0xf]  ;;  %v13036_v60 = vld [vmem:[#allocation16 + $0x2a8] sm:$0xf0]  ;;  %v12970_v20 = vld [vmem:[#allocation16 + $0x220] sm:$0xf] }
 0x57f   : > { %v15592_v36 = vld [vmem:[#allocation16 + $0x224] sm:$0xf0]  ;;  %v13039_v43 = vor.u32 %v15607_v29, %v13036_v60  ;;  %v15586_v45 = vld [vmem:[#allocation4 + $0x4] sm:$0x10]  ;;  %v13118_v60 = vld [vmem:[#allocation18 + $0x140] sm:$0xf] }
 0x580   : > { %5795 = vmatmul.bf16.vlgmr.msra.gmra.mxu2 %v17637_v22  ;;  %5808 = vmatmul.bf16.vlgmr.msra.gmra.mxu3 %v17639_v58 }
 0x581   : > { %5821 = vmatmul.bf16.vlgmr.msra.gmra.mxu0 %v17637_v22  ;;  %5834 = vmatmul.bf16.vlgmr.msra.gmra.mxu1 %v17639_v58 }
 0x582   : > { %6286 = vmatpush.bf16.msra.mxu0 %v13015_v34  ;;  %6299 = vmatpush.bf16.msra.mxu1 %v13079_v33  ;;  %v15608_v34 = vld [vmem:[#allocation16 + $0x2a4] sm:$0xf0]  ;;  %v12975_v33 = vor.u32 %v15591_v5, %v12972_v40  ;;  %v15662_v5 = vld [vmem:[#allocation18 + $0x154] sm:$0xf0]  ;;  %v13190_v40 = vld [vmem:[#allocation18 + $0x1d0] sm:$0xf] }
 0x583   : > { %6260 = vmatpush.bf16.msra.mxu2 %v13011_v2  ;;  %6273 = vmatpush.bf16.msra.mxu3 %v13075_v50  ;;  %v12964_v2 = vld [vmem:[#allocation16 + $0x218] sm:$0xf0]  ;;  %v12971_v50 = vor.u32 %v15592_v36, %v12970_v20  ;;  %v13035_v63 = vor.u32 %v15608_v34, %v13034_v38  ;;  %v15660_v20 = vld [vmem:[#allocation18 + $0x144] sm:$0xf0]  ;;  %v13182_v36 = vld [vmem:[#allocation18 + $0x1c0] sm:$0xf] }
 0x584   : > { %v15676_v38 = vld [vmem:[#allocation18 + $0x1c4] sm:$0xf0]  ;;  %v13119_v34 = vor.u32 %v15660_v20, %v13118_v60  ;;  %v15642_v60 = vld [vmem:[#allocation18 + $0xb4] sm:$0xf0] }
 0x586   : > { %6287 = vmatpush.bf16.msra.mxu0 %v13007_v12  ;;  %6300 = vmatpush.bf16.msra.mxu1 %v13071_v28  ;;  %v15606_v12 = vld [vmem:[#allocation16 + $0x294] sm:$0xf0]  ;;  %v15587_v28 = vld [vmem:[#allocation16 + $0x204] sm:$0xf] }
 0x587   : > { %6261 = vmatpush.bf16.msra.mxu2 %v13003_v9  ;;  %6274 = vmatpush.bf16.msra.mxu3 %v13067_v0  ;;  %v12967_v9 = vor.u32 %v15589_v57, %v12964_v2  ;;  %v13031_v0 = vor.u32 %v15605_v35, %v13028_v32  ;;  %v13027_v3 = vor.u32 %v15606_v12, %v13026_v17  ;;  %v15658_v57 = vld [vmem:[#allocation18 + $0x134] sm:$0xf0]  ;;  %v13174_v2 = vld [vmem:[#allocation18 + $0x1b0] sm:$0xf]  ;;  %v13102_v32 = vld [vmem:[#allocation18 + $0x120] sm:$0xf] }
 0x588   : > { %v12959_v18 = vor.u32 %v15587_v28, %v12956_v4  ;;  %v15672_v17 = vld [vmem:[#allocation18 + $0x1a4] sm:$0xf0]  ;;  %v13103_v12 = vor.u32 %v15656_v7, %v13102_v32  ;;  %v13094_v4 = vld [vmem:[#allocation18 + $0x110] sm:$0xf]  ;;  %v15638_v32 = vld [vmem:[#allocation18 + $0x94] sm:$0xf0] }
 0x589   : > { %v13167_v28 = vor.u32 %v15672_v17, %v13166_v53  ;;  %v13095_v14 = vor.u32 %v15654_v6, %v13094_v4  ;;  %v13214_v17 = vld [vmem:[#allocation18] sm:$0xf]  ;;  %v15636_v4 = vld [vmem:[#allocation18 + $0x84] sm:$0xf0]  ;;  %v13398_v6 = vld [vmem:[#allocation18 + $0x270] sm:$0xf] }
 0x58a   : > { %6288 = vmatpush.bf16.msra.mxu0 %v12999_v25  ;;  %6301 = vmatpush.bf16.msra.mxu1 %v13063_v49  ;;  %v13018_v25 = vld [vmem:[#allocation16 + $0x280] sm:$0xf]  ;;  %v15604_v49 = vld [vmem:[#allocation16 + $0x284] sm:$0xf0] }
 0x58b   : > { %6262 = vmatpush.bf16.msra.mxu2 %v12995_v31  ;;  %6275 = vmatpush.bf16.msra.mxu3 %v13059_v51  ;;  %v15585_v31 = vld [vmem:[#allocation4 + $0x4] sm:$0xe]  ;;  %v12948_v51 = vld [vmem:[#allocation4 + $0x8] sm:$0x10] }
 0x58c   : > { %v12951_v54 = vor.u32 %v15585_v31, %v12948_v51 }
 0x58e   : > { %6289 = vmatpush.bf16.msra.mxu0 %v12991_v16  ;;  %6302 = vmatpush.bf16.msra.mxu1 %v13055_v42  ;;  %v13019_v16 = vor.u32 %v15604_v49, %v13018_v25  ;;  %v12947_v42 = vor.u32 %v15586_v45, %v12946_v27  ;;  %v17651_v26 = vrot.slane %v12951_v54, 1  ;;  %v15652_v27 = vld [vmem:[#allocation18 + $0x104] sm:$0xf0]  ;;  %v13270_v25 = vld [vmem:[#allocation18 + $0x70] sm:$0xf] }
 0x58f   : > { %6263 = vmatpush.bf16.msra.mxu2 %v12987_v44  ;;  %6276 = vmatpush.bf16.msra.mxu3 %v13051_v56  ;;  %v13207_v44 = vor.u32 %v15682_v61, %v13206_v1  ;;  %v13134_v56 = vld [vmem:[#allocation18 + $0x160] sm:$0xf]  ;;  %v15634_v49 = vld [vmem:[#allocation18 + $0x74] sm:$0xf0]  ;;  %v13087_v31 = vor.u32 %v15652_v27, %v13086_v11  ;;  %v13254_v54 = vld [vmem:[#allocation18 + $0x50] sm:$0xf] }
 0x590   : > { %6009 = vmatmul.bf16.vlgmr.msrb.gmra.mxu2 %v17629_v19  ;;  %6022 = vmatmul.bf16.vlgmr.msrb.gmra.mxu3 %v17631_v46  ;;  %v17649_v48 = vrot.slane %v12947_v42, 1  ;;  %v13135_v37 = vor.u32 %v15664_v41, %v13134_v56  ;;  %v15650_v45 = vld [vmem:[#allocation18 + $0xf4] sm:$0xf0]  ;;  %v13271_v13 = vor.u32 %v15634_v49, %v13270_v25  ;;  %v13262_v61 = vld [vmem:[#allocation18 + $0x60] sm:$0xf] }
 0x591   : > { %6035 = vmatmul.bf16.vlgmr.msrb.gmra.mxu0 %v17629_v19  ;;  %6048 = vmatmul.bf16.vlgmr.msrb.gmra.mxu1 %v17631_v46  ;;  %v13335_v1 = vor.u32 %v15650_v45, %v13334_v8  ;;  %v15646_v56 = vld [vmem:[#allocation18 + $0xd4] sm:$0xf0]  ;;  %v15696_v25 = vld [vmem:[#allocation18 + $0x264] sm:$0xf0]  ;;  %v13454_v49 = vld [vmem:[#allocation18 + $0x2e0] sm:$0xf] }
 0x592   : > { %6290 = vmatpush.bf16.msra.mxu0 %v12983_v10  ;;  %6303 = vmatpush.bf16.msra.mxu1 %v13047_v59  ;;  %v13199_v10 = vor.u32 %v15680_v39, %v13198_v23  ;;  %v13126_v59 = vld [vmem:[#allocation18 + $0x150] sm:$0xf]  ;;  %v13246_v39 = vld [vmem:[#allocation18 + $0x40] sm:$0xf]  ;;  %v15712_v8 = vld [vmem:[#allocation18 + $0x2e4] sm:$0xf0] }
 0x593   : > { %6264 = vmatpush.bf16.msra.mxu2 %v12979_v62  ;;  %6277 = vmatpush.bf16.msra.mxu3 %v13043_v15  ;;  %v15678_v62 = vld [vmem:[#allocation18 + $0x1d4] sm:$0xf0]  ;;  %v13127_v15 = vor.u32 %v15662_v5, %v13126_v59  ;;  %v15644_v59 = vld [vmem:[#allocation18 + $0xc4] sm:$0xf0] }
 0x594   : > { %v13191_v29 = vor.u32 %v15678_v62, %v13190_v40  ;;  %v13238_v62 = vld [vmem:[#allocation18 + $0x30] sm:$0xf] }
 0x596   : > { %6291 = vmatpush.bf16.msra.mxu0 %v12975_v33  ;;  %6304 = vmatpush.bf16.msra.mxu1 %v13039_v43  ;;  %v13183_v33 = vor.u32 %v15676_v38, %v13182_v36  ;;  %v13110_v43 = vld [vmem:[#allocation18 + $0x130] sm:$0xf]  ;;  %v13230_v38 = vld [vmem:[#allocation18 + $0x20] sm:$0xf] }
 0x597   : > { %6265 = vmatpush.bf16.msra.mxu2 %v12971_v50  ;;  %6278 = vmatpush.bf16.msra.mxu3 %v13035_v63  ;;  %v15674_v50 = vld [vmem:[#allocation18 + $0x1b4] sm:$0xf0]  ;;  %v13111_v63 = vor.u32 %v15658_v57, %v13110_v43  ;;  %v15640_v43 = vld [vmem:[#allocation18 + $0xa4] sm:$0xf0] }
 0x598   : > { %v13175_v35 = vor.u32 %v15674_v50, %v13174_v2  ;;  %v13222_v50 = vld [vmem:[#allocation18 + $0x10] sm:$0xf] }
 0x59a   : > { %6292 = vmatpush.bf16.msra.mxu0 %v12967_v9  ;;  %6305 = vmatpush.bf16.msra.mxu1 %v13031_v0  ;;  %v13158_v9 = vld [vmem:[#allocation18 + $0x190] sm:$0xf]  ;;  %v15670_v0 = vld [vmem:[#allocation18 + $0x194] sm:$0xf0] }
 0x59b   : > { %6266 = vmatpush.bf16.msra.mxu2 %v12963_v21  ;;  %6279 = vmatpush.bf16.msra.mxu3 %v13027_v3  ;;  %v13159_v24 = vor.u32 %v15670_v0, %v13158_v9  ;;  %v13150_v21 = vld [vmem:[#allocation18 + $0x180] sm:$0xf]  ;;  %v15668_v3 = vld [vmem:[#allocation18 + $0x184] sm:$0xf0]  ;;  %v15698_v9 = vld [vmem:[#allocation18 + $0x274] sm:$0xf0] }
 0x59c   : > { %v13151_v51 = vor.u32 %v15668_v3, %v13150_v21  ;;  %v13462_v0 = vld [vmem:[#allocation18 + $0x2f0] sm:$0xf]  ;;  %v13399_v27 = vor.u32 %v15698_v9, %v13398_v6  ;;  %v13390_v3 = vld [vmem:[#allocation18 + $0x260] sm:$0xf] }
 0x59d   : > { %v13391_v45 = vor.u32 %v15696_v25, %v13390_v3 }
 0x59e   : > { %6293 = vmatpush.bf16.msra.mxu0 %v12959_v18  ;;  %6306 = vmatpush.bf16.msra.mxu1 %v13023_v55  ;;  %v15632_v18 = vld [vmem:[#allocation18 + $0x64] sm:$0xf0]  ;;  %v13326_v55 = vld [vmem:[#allocation18 + $0xe0] sm:$0xf] }
 0x59f   : > { %6267 = vmatpush.bf16.msra.mxu2 %v12955_v30  ;;  %6280 = vmatpush.bf16.msra.mxu3 %v13019_v16  ;;  %v15648_v30 = vld [vmem:[#allocation18 + $0xe4] sm:$0xf0]  ;;  %v13263_v16 = vor.u32 %v15632_v18, %v13262_v61  ;;  %v15710_v61 = vld [vmem:[#allocation18 + $0x2d4] sm:$0xf0] }
 0x5a0   : > { %v13327_v42 = vor.u32 %v15648_v30, %v13326_v55  ;;  %v13374_v30 = vld [vmem:[#allocation18 + $0x240] sm:$0xf] }
 0x5a1   : > { %6294 = vmatmul.bf16.vlgmr.msra.gmra.mxu0 %v17649_v48  ;;  %6307 = vmatmul.bf16.vlgmr.msra.gmra.mxu1 %v17651_v26 }
 0x5a2   : > { %6596 = vmatpush.bf16.msrb.mxu0 %v13143_v47  ;;  %6609 = vmatpush.bf16.msrb.mxu1 %v13207_v44  ;;  %v15630_v47 = vld [vmem:[#allocation18 + $0x54] sm:$0xf0]  ;;  %v13318_v44 = vld [vmem:[#allocation18 + $0xd0] sm:$0xf] }
 0x5a3   : > { %6268 = vmatmul.bf16.vlgmr.msra.gmra.mxu2 %v17649_v48  ;;  %6281 = vmatmul.bf16.vlgmr.msra.gmra.mxu3 %v17651_v26  ;;  %v13255_v41 = vor.u32 %v15630_v47, %v13254_v54  ;;  %v13319_v23 = vor.u32 %v15646_v56, %v13318_v44  ;;  %v15708_v54 = vld [vmem:[#allocation18 + $0x2c4] sm:$0xf0]  ;;  %v13366_v56 = vld [vmem:[#allocation18 + $0x230] sm:$0xf] }
 0x5a6   : > { %6597 = vmatpush.bf16.msrb.mxu0 %v13135_v37  ;;  %6610 = vmatpush.bf16.msrb.mxu1 %v13199_v10  ;;  %v15628_v37 = vld [vmem:[#allocation18 + $0x44] sm:$0xf0]  ;;  %v13310_v10 = vld [vmem:[#allocation18 + $0xc0] sm:$0xf] }
 0x5a7   : > { %v13247_v5 = vor.u32 %v15628_v37, %v13246_v39  ;;  %v13311_v40 = vor.u32 %v15644_v59, %v13310_v10  ;;  %v15706_v39 = vld [vmem:[#allocation18 + $0x2b4] sm:$0xf0]  ;;  %v13358_v59 = vld [vmem:[#allocation18 + $0x220] sm:$0xf] }
 0x5aa   : > { %6598 = vmatpush.bf16.msrb.mxu0 %v13127_v15  ;;  %6611 = vmatpush.bf16.msrb.mxu1 %v13191_v29  ;;  %v15626_v15 = vld [vmem:[#allocation18 + $0x34] sm:$0xf0]  ;;  %v13302_v29 = vld [vmem:[#allocation18 + $0xb0] sm:$0xf] }
 0x5ab   : > { %v13239_v20 = vor.u32 %v15626_v15, %v13238_v62  ;;  %v13303_v36 = vor.u32 %v15642_v60, %v13302_v29  ;;  %v15704_v62 = vld [vmem:[#allocation18 + $0x2a4] sm:$0xf0]  ;;  %v13350_v60 = vld [vmem:[#allocation18 + $0x210] sm:$0xf] }
 0x5ae   : > { %6599 = vmatpush.bf16.msrb.mxu0 %v13119_v34  ;;  %6612 = vmatpush.bf16.msrb.mxu1 %v13183_v33  ;;  %v15624_v34 = vld [vmem:[#allocation18 + $0x24] sm:$0xf0]  ;;  %v13294_v33 = vld [vmem:[#allocation18 + $0xa0] sm:$0xf] }
 0x5af   : > { %v13231_v57 = vor.u32 %v15624_v34, %v13230_v38  ;;  %v13295_v2 = vor.u32 %v15640_v43, %v13294_v33  ;;  %v15702_v38 = vld [vmem:[#allocation18 + $0x294] sm:$0xf0]  ;;  %v13342_v43 = vld [vmem:[#allocation18 + $0x200] sm:$0xf] }
 0x5b2   : > { %6600 = vmatpush.bf16.msrb.mxu0 %v13111_v63  ;;  %6613 = vmatpush.bf16.msrb.mxu1 %v13175_v35  ;;  %v15622_v63 = vld [vmem:[#allocation18 + $0x14] sm:$0xf0]  ;;  %v13286_v35 = vld [vmem:[#allocation18 + $0x90] sm:$0xf] }
 0x5b3   : > { %v13223_v7 = vor.u32 %v15622_v63, %v13222_v50  ;;  %v13287_v53 = vor.u32 %v15638_v32, %v13286_v35  ;;  %v15700_v50 = vld [vmem:[#allocation18 + $0x284] sm:$0xf0] }
 0x5b6   : > { %6601 = vmatpush.bf16.msrb.mxu0 %v13103_v12  ;;  %6614 = vmatpush.bf16.msrb.mxu1 %v13167_v28  ;;  %v15620_v12 = vld [vmem:[#allocation18 + $0x4] sm:$0xf0]  ;;  %v13278_v28 = vld [vmem:[#allocation18 + $0x80] sm:$0xf] }
 0x5b7   : > { %v13279_v11 = vor.u32 %v15636_v4, %v13278_v28 }
 0x5ba   : > { %6602 = vmatpush.bf16.msrb.mxu0 %v13095_v14  ;;  %6615 = vmatpush.bf16.msrb.mxu1 %v13159_v24  ;;  %v15714_v14 = vld [vmem:[#allocation18 + $0x2f4] sm:$0xf0]  ;;  %v13215_v24 = vor.u32 %v15620_v12, %v13214_v17 }
 0x5bb   : > { %v13463_v21 = vor.u32 %v15714_v14, %v13462_v0 }
 0x5be   : > { %6603 = vmatpush.bf16.msrb.mxu0 %v13087_v31  ;;  %6616 = vmatpush.bf16.msrb.mxu1 %v13151_v51  ;;  %v13455_v31 = vor.u32 %v15712_v8, %v13454_v49  ;;  %v13382_v51 = vld [vmem:[#allocation18 + $0x250] sm:$0xf]  ;;  %v15681_v8 = vld [vmem:[#allocation18 + $0x1f4] sm:$0xf] }
 0x5c1   : > { %6604 = vmatmul.bf16.vlgmr.msrb.gmra.mxu0 %v17637_v22  ;;  %6617 = vmatmul.bf16.vlgmr.msrb.gmra.mxu1 %v17639_v58 }
 0x5c2   : > { %6808 = vmatpush.bf16.msra.mxu0 %v13271_v13  ;;  %6821 = vmatpush.bf16.msra.mxu1 %v13335_v1  ;;  %v15694_v13 = vld [vmem:[#allocation18 + $0x254] sm:$0xf0]  ;;  %v13446_v1 = vld [vmem:[#allocation18 + $0x2d0] sm:$0xf] }
 0x5c3   : > { %v13383_v18 = vor.u32 %v15694_v13, %v13382_v51  ;;  %v13447_v55 = vor.u32 %v15710_v61, %v13446_v1 }
 0x5c6   : > { %6809 = vmatpush.bf16.msra.mxu0 %v13263_v16  ;;  %6822 = vmatpush.bf16.msra.mxu1 %v13327_v42  ;;  %v15692_v16 = vld [vmem:[#allocation18 + $0x244] sm:$0xf0]  ;;  %v13438_v42 = vld [vmem:[#allocation18 + $0x2c0] sm:$0xf] }
 0x5c7   : > { %v13375_v47 = vor.u32 %v15692_v16, %v13374_v30  ;;  %v13439_v44 = vor.u32 %v15708_v54, %v13438_v42  ;;  %v15679_v30 = vld [vmem:[#allocation18 + $0x1e4] sm:$0xf]  ;;  %v13200_v16 = vld [vmem:[#allocation18 + $0x1e8] sm:$0xf0] }
 0x5c8   : > { %v13203_v54 = vor.u32 %v15679_v30, %v13200_v16  ;;  %v13328_v30 = vld [vmem:[#allocation18 + $0xe8] sm:$0xf0] }
 0x5ca   : > { %6810 = vmatpush.bf16.msra.mxu0 %v13255_v41  ;;  %6823 = vmatpush.bf16.msra.mxu1 %v13319_v23  ;;  %v15690_v41 = vld [vmem:[#allocation18 + $0x234] sm:$0xf0]  ;;  %v13430_v23 = vld [vmem:[#allocation18 + $0x2b0] sm:$0xf] }
 0x5cb   : > { %v13367_v37 = vor.u32 %v15690_v41, %v13366_v56  ;;  %v13431_v10 = vor.u32 %v15706_v39, %v13430_v23  ;;  %v13144_v41 = vld [vmem:[#allocation18 + $0x178] sm:$0xf0]  ;;  %v15677_v23 = vld [vmem:[#allocation18 + $0x1d4] sm:$0xf] }
 0x5cc   : > { %v13192_v39 = vld [vmem:[#allocation18 + $0x1d8] sm:$0xf0] }
 0x5ce   : > { %6811 = vmatpush.bf16.msra.mxu0 %v13247_v5  ;;  %6824 = vmatpush.bf16.msra.mxu1 %v13311_v40  ;;  %v15688_v5 = vld [vmem:[#allocation18 + $0x224] sm:$0xf0]  ;;  %v13422_v40 = vld [vmem:[#allocation18 + $0x2a0] sm:$0xf] }
 0x5cf   : > { %v13359_v15 = vor.u32 %v15688_v5, %v13358_v59  ;;  %v13423_v29 = vor.u32 %v15704_v62, %v13422_v40 }
 0x5d2   : > { %6812 = vmatpush.bf16.msra.mxu0 %v13239_v20  ;;  %6825 = vmatpush.bf16.msra.mxu1 %v13303_v36  ;;  %v15686_v20 = vld [vmem:[#allocation18 + $0x214] sm:$0xf0]  ;;  %v13414_v36 = vld [vmem:[#allocation18 + $0x290] sm:$0xf] }
 0x5d3   : > { %v13351_v34 = vor.u32 %v15686_v20, %v13350_v60  ;;  %v13415_v33 = vor.u32 %v15702_v38, %v13414_v36  ;;  %v13136_v60 = vld [vmem:[#allocation18 + $0x168] sm:$0xf0]  ;;  %v15675_v20 = vld [vmem:[#allocation18 + $0x1c4] sm:$0xf] }
 0x5d4   : > { %v13184_v36 = vld [vmem:[#allocation18 + $0x1c8] sm:$0xf0] }
 0x5d6   : > { %6813 = vmatpush.bf16.msra.mxu0 %v13231_v57  ;;  %6826 = vmatpush.bf16.msra.mxu1 %v13295_v2  ;;  %v15684_v57 = vld [vmem:[#allocation18 + $0x204] sm:$0xf0]  ;;  %v13406_v2 = vld [vmem:[#allocation18 + $0x280] sm:$0xf] }
 0x5d7   : > { %v13343_v63 = vor.u32 %v15684_v57, %v13342_v43  ;;  %v13407_v35 = vor.u32 %v15700_v50, %v13406_v2  ;;  %v13128_v2 = vld [vmem:[#allocation18 + $0x158] sm:$0xf0]  ;;  %v15673_v50 = vld [vmem:[#allocation18 + $0x1b4] sm:$0xf] }
 0x5da   : > { %6814 = vmatpush.bf16.msra.mxu0 %v13223_v7  ;;  %6827 = vmatpush.bf16.msra.mxu1 %v13287_v53 }
 0x5de   : > { %6815 = vmatpush.bf16.msra.mxu0 %v13215_v24  ;;  %6828 = vmatpush.bf16.msra.mxu1 %v13279_v11 }
 0x5e1   : > { %6816 = vmatmul.bf16.vlgmr.msra.gmra.mxu0 %v17629_v19  ;;  %6829 = vmatmul.bf16.vlgmr.msra.gmra.mxu1 %v17631_v46 }
 0x5e2   : > { %7053 = vmatpush.bf16.msrb.mxu0 %v13399_v27  ;;  %7066 = vmatpush.bf16.msrb.mxu1 %v13463_v21 }
 0x5e6   : > { %7054 = vmatpush.bf16.msrb.mxu0 %v13391_v45  ;;  %7067 = vmatpush.bf16.msrb.mxu1 %v13455_v31  ;;  %v13208_v45 = vld [vmem:[#allocation18 + $0x1f8] sm:$0xf0] }
 0x5ea   : > { %7055 = vmatpush.bf16.msrb.mxu0 %v13383_v18  ;;  %7068 = vmatpush.bf16.msrb.mxu1 %v13447_v55  ;;  %v13211_v18 = vor.u32 %v15681_v8, %v13208_v45  ;;  %v13336_v8 = vld [vmem:[#allocation18 + $0xf8] sm:$0xf0] }
 0x5ee   : > { %7056 = vmatpush.bf16.msrb.mxu0 %v13375_v47  ;;  %7069 = vmatpush.bf16.msrb.mxu1 %v13439_v44  ;;  %v15665_v47 = vld [vmem:[#allocation18 + $0x174] sm:$0xf] }
 0x5ef   : > { %v13147_v62 = vor.u32 %v15665_v47, %v13144_v41  ;;  %v13088_v47 = vld [vmem:[#allocation18 + $0x108] sm:$0xf0]  ;;  %v15645_v41 = vld [vmem:[#allocation18 + $0xd4] sm:$0xf] }
 0x5f2   : > { %7057 = vmatpush.bf16.msrb.mxu0 %v13367_v37  ;;  %7070 = vmatpush.bf16.msrb.mxu1 %v13431_v10 }
 0x5f6   : > { %7058 = vmatpush.bf16.msrb.mxu0 %v13359_v15  ;;  %7071 = vmatpush.bf16.msrb.mxu1 %v13423_v29  ;;  %v13195_v15 = vor.u32 %v15677_v23, %v13192_v39  ;;  %v15663_v29 = vld [vmem:[#allocation18 + $0x164] sm:$0xf]  ;;  %v13320_v23 = vld [vmem:[#allocation18 + $0xd8] sm:$0xf0] }
 0x5f7   : > { %v13139_v38 = vor.u32 %v15663_v29, %v13136_v60  ;;  %v13312_v29 = vld [vmem:[#allocation18 + $0xc8] sm:$0xf0] }
 0x5fa   : > { %7059 = vmatpush.bf16.msrb.mxu0 %v13351_v34  ;;  %7072 = vmatpush.bf16.msrb.mxu1 %v13415_v33  ;;  %v13187_v34 = vor.u32 %v15675_v20, %v13184_v36  ;;  %v15661_v33 = vld [vmem:[#allocation18 + $0x154] sm:$0xf] }
 0x5fb   : > { %v15629_v36 = vld [vmem:[#allocation18 + $0x54] sm:$0xf] }
 0x5fe   : > { %7060 = vmatpush.bf16.msrb.mxu0 %v13343_v63  ;;  %7073 = vmatpush.bf16.msrb.mxu1 %v13407_v35  ;;  %v5822_v32 = vpop.f32.mrf.mxu0  ;;  %v5835_v7 = vpop.f32.mrf.mxu1  ;;  %v13176_v63 = vld [vmem:[#allocation18 + $0x1b8] sm:$0xf0]  ;;  %v13131_v35 = vor.u32 %v15661_v33, %v13128_v2  ;;  %v13248_v2 = vld [vmem:[#allocation18 + $0x48] sm:$0xf0] }
 0x5ff   : > { %v5836_v21 = vadd.f32 %v5835_v7, %v5822_v32  ;;  %v13179_v32 = vor.u32 %v15673_v50, %v13176_v63  ;;  %v15659_v7 = vld [vmem:[#allocation18 + $0x144] sm:$0xf]  ;;  %v13296_v63 = vld [vmem:[#allocation18 + $0xa8] sm:$0xf0] }
 0x600   : > { %v15639_v50 = vld [vmem:[#allocation18 + $0xa4] sm:$0xf] }
 0x601   : > { %7061 = vmatmul.bf16.vlgmr.msrb.gmra.mxu0 %v17649_v48  ;;  %7074 = vmatmul.bf16.vlgmr.msrb.gmra.mxu1 %v17651_v26 }
 0x603   : > { %v5796_v53 = vpop.f32.mrf.mxu2  ;;  %v5809_v17 = vpop.f32.mrf.mxu3 }
 0x604   : > { %v5810_v61 = vadd.f32 %v5809_v17, %v5796_v53  ;;  %v13120_v53 = vld [vmem:[#allocation18 + $0x148] sm:$0xf0]  ;;  %v15671_v17 = vld [vmem:[#allocation18 + $0x1a4] sm:$0xf] }
 0x606   : > { %v5824_v12 = vpop.f32.mrf.mxu0  ;;  %v5837_v28 = vpop.f32.mrf.mxu1 }
 0x607   : > { %v13168_v12 = vld [vmem:[#allocation18 + $0x1a8] sm:$0xf0]  ;;  %v13123_v28 = vor.u32 %v15659_v7, %v13120_v53  ;;  %v15625_v7 = vld [vmem:[#allocation18 + $0x34] sm:$0xf]  ;;  %v13240_v53 = vld [vmem:[#allocation18 + $0x38] sm:$0xf0] }
 0x60b   : > { %v5798_v4 = vpop.f32.mrf.mxu2  ;;  %v5811_v6 = vpop.f32.mrf.mxu3 }
 0x60c   : > { %v13171_v4 = vor.u32 %v15671_v17, %v13168_v12  ;;  %v15657_v6 = vld [vmem:[#allocation18 + $0x134] sm:$0xf]  ;;  %v13288_v12 = vld [vmem:[#allocation18 + $0x98] sm:$0xf0] }
 0x60d   : > { %v15637_v17 = vld [vmem:[#allocation18 + $0x94] sm:$0xf] }
 0x60e   : > { %v6036_v9 = vpop.f32.mrf.mxu0  ;;  %v6049_v0 = vpop.f32.mrf.mxu1 }
 0x60f   : > { %v6037_v3 = vadd.f32 %v6036_v9, %v5836_v21  ;;  %v13112_v9 = vld [vmem:[#allocation18 + $0x138] sm:$0xf0]  ;;  %v13104_v21 = vld [vmem:[#allocation18 + $0x128] sm:$0xf0] }
 0x611   : > { %v6050_v13 = vadd.f32 %v6049_v0, %v6037_v3  ;;  %v15669_v0 = vld [vmem:[#allocation18 + $0x194] sm:$0xf]  ;;  %v15667_v3 = vld [vmem:[#allocation18 + $0x184] sm:$0xf] }
 0x613   : > { %v6010_v14 = vpop.f32.mrf.mxu2  ;;  %v6023_v24 = vpop.f32.mrf.mxu3 }
 0x614   : > { %v6011_v42 = vadd.f32 %v6010_v14, %v5810_v61  ;;  %v13160_v14 = vld [vmem:[#allocation18 + $0x198] sm:$0xf0]  ;;  %v15653_v61 = vld [vmem:[#allocation18 + $0x114] sm:$0xf] }
 0x616   : > { %v6038_v11 = vpop.f32.mrf.mxu0  ;;  %v6051_v27 = vpop.f32.mrf.mxu1  ;;  %v6024_v37 = vadd.f32 %v6023_v24, %v6011_v42  ;;  %v13115_v24 = vor.u32 %v15657_v6, %v13112_v9  ;;  %v13232_v6 = vld [vmem:[#allocation18 + $0x28] sm:$0xf0]  ;;  %v15635_v9 = vld [vmem:[#allocation18 + $0x84] sm:$0xf] }
 0x617   : > { %v13163_v11 = vor.u32 %v15669_v0, %v13160_v14  ;;  %v15655_v27 = vld [vmem:[#allocation18 + $0x124] sm:$0xf]  ;;  %v13280_v0 = vld [vmem:[#allocation18 + $0x88] sm:$0xf0]  ;;  %v15713_v14 = vld [vmem:[#allocation18 + $0x2f4] sm:$0xf] }
 0x61b   : > { %v6012_v25 = vpop.f32.mrf.mxu2  ;;  %v6025_v49 = vpop.f32.mrf.mxu3 }
 0x61c   : > { %v13152_v25 = vld [vmem:[#allocation18 + $0x188] sm:$0xf0]  ;;  %v15649_v49 = vld [vmem:[#allocation18 + $0xf4] sm:$0xf] }
 0x61e   : > { %v6295_v31 = vpop.f32.mrf.mxu0  ;;  %v6308_v51 = vpop.f32.mrf.mxu1 }
 0x61f   : > { %v6309_v1 = vadd.f32 %v6308_v51, %v6295_v31  ;;  %v13107_v51 = vor.u32 %v15655_v27, %v13104_v21 }
 0x621   : > { %v6313_v55 = vadd.f32 %v6309_v1, %v6050_v13  ;;  %v13155_v13 = vor.u32 %v15667_v3, %v13152_v25  ;;  %v13339_v1 = vor.u32 %v15649_v49, %v13336_v8  ;;  %v13283_v3 = vor.u32 %v15635_v9, %v13280_v0  ;;  %v15621_v49 = vld [vmem:[#allocation18 + $0x14] sm:$0xf]  ;;  %v13224_v8 = vld [vmem:[#allocation18 + $0x18] sm:$0xf0] }
 0x622   : > { %v13532_v9 = vld [vmem:[#allocation19 + $0x178] sm:$0xf0] }
 0x623   : > { %13082 = vmatpush.msk.msrb.mxu3 %vm1220_vm10, %v6313_v55  ;;  %v15647_v55 = vld [vmem:[#allocation18 + $0xe4] sm:$0xf] }
 0x624   : > { %13083 = vmatmul.msk.f32.vlgmr.msrb.gmra.mxu3 %vm6320_vm9, %v17500_v52  ;;  %v13331_v42 = vor.u32 %v15647_v55, %v13328_v30  ;;  %v13216_v55 = vld [vmem:[#allocation18 + $0x8] sm:$0xf0]  ;;  %v15697_v30 = vld [vmem:[#allocation18 + $0x274] sm:$0xf] }
 0x625   : > { %6635 = vmatpush.bf16.msra.mxu3 %v13211_v18  ;;  %v13096_v18 = vld [vmem:[#allocation18 + $0x118] sm:$0xf0] }
 0x626   : > { %v6269_v44 = vpop.f32.mrf.mxu2  ;;  %v6282_v56 = vpop.f32.mrf.mxu3  ;;  %v13099_v16 = vor.u32 %v15653_v61, %v13096_v18  ;;  %v15619_v18 = vld [vmem:[#allocation18 + $0x4] sm:$0xf] }
 0x627   : > { %v6283_v10 = vadd.f32 %v6282_v56, %v6269_v44  ;;  %v6297_v59 = vpop.f32.mrf.mxu0  ;;  %v6310_v5 = vpop.f32.mrf.mxu1  ;;  %v15633_v44 = vld [vmem:[#allocation18 + $0x74] sm:$0xf]  ;;  %v13272_v56 = vld [vmem:[#allocation18 + $0x78] sm:$0xf0] }
 0x628   : > { %v13275_v59 = vor.u32 %v15633_v44, %v13272_v56  ;;  %v13323_v5 = vor.u32 %v15645_v41, %v13320_v23  ;;  %v13219_v56 = vor.u32 %v15619_v18, %v13216_v55  ;;  %v15683_v55 = vld [vmem:[#allocation18 + $0x204] sm:$0xf] }
 0x629   : > { %v6312_v40 = vadd.f32 %v6283_v10, %v6024_v37  ;;  %6636 = vmatpush.bf16.msra.mxu3 %v13203_v54  ;;  %v15651_v54 = vld [vmem:[#allocation18 + $0x104] sm:$0xf] }
 0x62a   : > { %v13091_v10 = vor.u32 %v15651_v54, %v13088_v47  ;;  %v13448_v54 = vld [vmem:[#allocation18 + $0x2d8] sm:$0xf0] }
 0x62b   : > { %13080 = vmatpush.msk.msrb.mxu2 %vm1220_vm10, %v6312_v40  ;;  %v15631_v40 = vld [vmem:[#allocation18 + $0x64] sm:$0xf] }
 0x62c   : > { %13081 = vmatmul.msk.f32.vlgmr.msrb.gmra.mxu2 %vm6320_vm9, %v17500_v52 }
 0x62d   : > { %6622 = vmatpush.bf16.msra.mxu2 %v13147_v62  ;;  %6637 = vmatpush.bf16.msra.mxu3 %v13195_v15  ;;  %v13264_v62 = vld [vmem:[#allocation18 + $0x68] sm:$0xf0]  ;;  %v15643_v15 = vld [vmem:[#allocation18 + $0xc4] sm:$0xf] }
 0x62e   : > { %v6271_v43 = vpop.f32.mrf.mxu2  ;;  %v6284_v57 = vpop.f32.mrf.mxu3  ;;  %v13267_v60 = vor.u32 %v15631_v40, %v13264_v62  ;;  %v13315_v20 = vor.u32 %v15643_v15, %v13312_v29  ;;  %v15693_v62 = vld [vmem:[#allocation18 + $0x254] sm:$0xf]  ;;  %v13384_v15 = vld [vmem:[#allocation18 + $0x258] sm:$0xf0] }
 0x62f   : > { %v15627_v57 = vld [vmem:[#allocation18 + $0x44] sm:$0xf]  ;;  %v15705_v29 = vld [vmem:[#allocation18 + $0x2b4] sm:$0xf] }
 0x631   : > { %6623 = vmatpush.bf16.msra.mxu2 %v13139_v38  ;;  %6638 = vmatpush.bf16.msra.mxu3 %v13187_v34  ;;  %v13256_v38 = vld [vmem:[#allocation18 + $0x58] sm:$0xf0]  ;;  %v15641_v34 = vld [vmem:[#allocation18 + $0xb4] sm:$0xf] }
 0x632   : > { %v13259_v33 = vor.u32 %v15629_v36, %v13256_v38  ;;  %v15691_v36 = vld [vmem:[#allocation18 + $0x244] sm:$0xf]  ;;  %v13376_v38 = vld [vmem:[#allocation18 + $0x248] sm:$0xf0] }
 0x635   : > { %6624 = vmatpush.bf16.msra.mxu2 %v13131_v35  ;;  %6639 = vmatpush.bf16.msra.mxu3 %v13179_v32  ;;  %v13251_v35 = vor.u32 %v15627_v57, %v13248_v2  ;;  %v13299_v32 = vor.u32 %v15639_v50, %v13296_v63  ;;  %v15689_v57 = vld [vmem:[#allocation18 + $0x234] sm:$0xf]  ;;  %v13368_v2 = vld [vmem:[#allocation18 + $0x238] sm:$0xf0] }
 0x636   : > { %v15701_v50 = vld [vmem:[#allocation18 + $0x294] sm:$0xf]  ;;  %v13416_v63 = vld [vmem:[#allocation18 + $0x298] sm:$0xf0] }
 0x639   : > { %6625 = vmatpush.bf16.msra.mxu2 %v13123_v28  ;;  %6640 = vmatpush.bf16.msra.mxu3 %v13171_v4  ;;  %v13243_v28 = vor.u32 %v15625_v7, %v13240_v53  ;;  %v15623_v4 = vld [vmem:[#allocation18 + $0x24] sm:$0xf] }
 0x63a   : > { %v13235_v21 = vor.u32 %v15623_v4, %v13232_v6  ;;  %v15687_v7 = vld [vmem:[#allocation18 + $0x224] sm:$0xf]  ;;  %v15778_v4 = vld [vmem:[#allocation19 + $0x1f4] sm:$0xf0]  ;;  %v15761_v6 = vld [vmem:[#allocation19 + $0x174] sm:$0xf] }
 0x63d   : > { %6626 = vmatpush.bf16.msra.mxu2 %v13115_v24  ;;  %6641 = vmatpush.bf16.msra.mxu3 %v13163_v11  ;;  %v13464_v24 = vld [vmem:[#allocation18 + $0x2f8] sm:$0xf0] }
 0x63e   : > { %v17669_v45 = vpop.f32.mrf.mxu0  ;;  %v17671_v31 = vpop.f32.mrf.mxu1  ;;  %v13467_v25 = vor.u32 %v15713_v14, %v13464_v24 }
 0x641   : > { %6627 = vmatpush.bf16.msra.mxu2 %v13107_v51  ;;  %6642 = vmatpush.bf16.msra.mxu3 %v13155_v13  ;;  %v15711_v51 = vld [vmem:[#allocation18 + $0x2e4] sm:$0xf]  ;;  %v13456_v13 = vld [vmem:[#allocation18 + $0x2e8] sm:$0xf0] }
 0x642   : > { %v13459_v61 = vor.u32 %v15711_v51, %v13456_v13  ;;  %v15776_v51 = vld [vmem:[#allocation19 + $0x1e4] sm:$0xf0] }
 0x644   : > { %6643 = vmatmul.bf16.vlgmr.msra.gmra.mxu3 %v17639_v58  ;;  %v13304_v58 = vld [vmem:[#allocation18 + $0xb8] sm:$0xf0] }
 0x645   : > { %6847 = vmatpush.bf16.msrb.mxu3 %v13339_v1  ;;  %6628 = vmatpush.bf16.msra.mxu2 %v13099_v16  ;;  %v13307_v43 = vor.u32 %v15641_v34, %v13304_v58  ;;  %v13227_v1 = vor.u32 %v15621_v49, %v13224_v8  ;;  %v13400_v16 = vld [vmem:[#allocation18 + $0x278] sm:$0xf0]  ;;  %v15703_v34 = vld [vmem:[#allocation18 + $0x2a4] sm:$0xf]  ;;  %v13424_v58 = vld [vmem:[#allocation18 + $0x2a8] sm:$0xf0] }
 0x646   : > { %v6607_v39 = vpop.f32.mrf.mxu0  ;;  %v6620_v37 = vpop.f32.mrf.mxu1  ;;  %v13403_v41 = vor.u32 %v15697_v30, %v13400_v16  ;;  %v13586_v8 = vld [vmem:[#allocation19 + $0x1e0] sm:$0xf]  ;;  %v13344_v30 = vld [vmem:[#allocation18 + $0x208] sm:$0xf0]  ;;  %v13530_v16 = vld [vmem:[#allocation19 + $0x170] sm:$0xf] }
 0x647   : > { %v15695_v39 = vld [vmem:[#allocation18 + $0x264] sm:$0xf]  ;;  %v13392_v37 = vld [vmem:[#allocation18 + $0x268] sm:$0xf0] }
 0x649   : > { %6848 = vmatpush.bf16.msrb.mxu3 %v13331_v42  ;;  %6629 = vmatpush.bf16.msra.mxu2 %v13091_v10  ;;  %v15709_v42 = vld [vmem:[#allocation18 + $0x2d4] sm:$0xf]  ;;  %v15707_v10 = vld [vmem:[#allocation18 + $0x2c4] sm:$0xf] }
 0x64a   : > { %v13451_v23 = vor.u32 %v15709_v42, %v13448_v54  ;;  %v15762_v42 = vld [vmem:[#allocation19 + $0x174] sm:$0xf0] }
 0x64c   : > { %6630 = vmatmul.bf16.vlgmr.msra.gmra.mxu2 %v17637_v22  ;;  %v13291_v22 = vor.u32 %v15637_v17, %v13288_v12  ;;  %v13360_v17 = vld [vmem:[#allocation18 + $0x228] sm:$0xf0]  ;;  %v15699_v12 = vld [vmem:[#allocation18 + $0x284] sm:$0xf] }
 0x64d   : > { %6834 = vmatpush.bf16.msrb.mxu2 %v13275_v59  ;;  %6849 = vmatpush.bf16.msrb.mxu3 %v13323_v5  ;;  %v13440_v59 = vld [vmem:[#allocation18 + $0x2c8] sm:$0xf0]  ;;  %v13395_v5 = vor.u32 %v15695_v39, %v13392_v37  ;;  %v13363_v24 = vor.u32 %v15687_v7, %v13360_v17  ;;  %v13347_v37 = vor.u32 %v15683_v55, %v13344_v30  ;;  %v15768_v7 = vld [vmem:[#allocation19 + $0x1a4] sm:$0xf0]  ;;  %v15747_v55 = vld [vmem:[#allocation19 + $0x104] sm:$0xf] }
 0x64e   : > { %v13443_v40 = vor.u32 %v15707_v10, %v13440_v59  ;;  %v13531_v10 = vor.u32 %v15762_v42, %v13530_v16  ;;  %v13522_v59 = vld [vmem:[#allocation19 + $0x160] sm:$0xf]  ;;  %v13492_v17 = vld [vmem:[#allocation19 + $0x128] sm:$0xf0]  ;;  %v15730_v42 = vld [vmem:[#allocation19 + $0x74] sm:$0xf0] }
 0x64f   : > { %v13476_v16 = vld [vmem:[#allocation19 + $0x108] sm:$0xf0] }
 0x651   : > { %6835 = vmatpush.bf16.msrb.mxu2 %v13267_v60  ;;  %6850 = vmatpush.bf16.msrb.mxu3 %v13315_v20  ;;  %v13387_v60 = vor.u32 %v15693_v62, %v13384_v15  ;;  %v13570_v15 = vld [vmem:[#allocation19 + $0x1c0] sm:$0xf] }
 0x655   : > { %6836 = vmatpush.bf16.msrb.mxu2 %v13259_v33  ;;  %6851 = vmatpush.bf16.msrb.mxu3 %v13307_v43  ;;  %v13379_v33 = vor.u32 %v15691_v36, %v13376_v38  ;;  %v13427_v43 = vor.u32 %v15703_v34, %v13424_v58  ;;  %v15758_v38 = vld [vmem:[#allocation19 + $0x154] sm:$0xf0]  ;;  %v13562_v58 = vld [vmem:[#allocation19 + $0x1b0] sm:$0xf] }
 0x659   : > { %6837 = vmatpush.bf16.msrb.mxu2 %v13251_v35  ;;  %6852 = vmatpush.bf16.msrb.mxu3 %v13299_v32  ;;  %v6619_v35 = vadd.f32 %v17671_v31, %v17669_v45  ;;  %v13419_v32 = vor.u32 %v15701_v50, %v13416_v63  ;;  %v13506_v50 = vld [vmem:[#allocation19 + $0x140] sm:$0xf] }
 0x65d   : > { %6838 = vmatpush.bf16.msrb.mxu2 %v13243_v28  ;;  %6853 = vmatpush.bf16.msrb.mxu3 %v13291_v22  ;;  %v13408_v28 = vld [vmem:[#allocation18 + $0x288] sm:$0xf0]  ;;  %v13594_v22 = vld [vmem:[#allocation19 + $0x1f0] sm:$0xf] }
 0x65e   : > { %v17675_v11 = vpop.f32.mrf.mxu0  ;;  %v17677_v27 = vpop.f32.mrf.mxu1  ;;  %v13411_v45 = vor.u32 %v15699_v12, %v13408_v28  ;;  %v13595_v49 = vor.u32 %v15778_v4, %v13594_v22  ;;  %v13498_v28 = vld [vmem:[#allocation19 + $0x130] sm:$0xf] }
 0x65f   : > { %v6818_v53 = vadd.f32 %v17675_v11, %v6619_v35  ;;  %v13535_v11 = vor.u32 %v15761_v6, %v13532_v9  ;;  %v15756_v35 = vld [vmem:[#allocation19 + $0x144] sm:$0xf0]  ;;  %v13546_v6 = vld [vmem:[#allocation19 + $0x190] sm:$0xf]  ;;  %v15766_v9 = vld [vmem:[#allocation19 + $0x194] sm:$0xf0] }
 0x660   : > { %v13507_v12 = vor.u32 %v15756_v35, %v13506_v50  ;;  %v15724_v50 = vld [vmem:[#allocation19 + $0x44] sm:$0xf0] }
 0x661   : > { %6839 = vmatpush.bf16.msrb.mxu2 %v13235_v21  ;;  %6854 = vmatpush.bf16.msrb.mxu3 %v13283_v3  ;;  %v6831_v31 = vadd.f32 %v17677_v27, %v6818_v53  ;;  %v15685_v3 = vld [vmem:[#allocation18 + $0x214] sm:$0xf]  ;;  %v13587_v27 = vor.u32 %v15776_v51, %v13586_v8  ;;  %v15751_v53 = vld [vmem:[#allocation19 + $0x124] sm:$0xf]  ;;  %v13474_v51 = vld [vmem:[#allocation19 + $0x100] sm:$0xf] }
 0x662   : > { %v13495_v4 = vor.u32 %v15751_v53, %v13492_v17  ;;  %v15723_v53 = vld [vmem:[#allocation19 + $0x44] sm:$0xf]  ;;  %v13636_v17 = vld [vmem:[#allocation19 + $0x48] sm:$0xf0] }
 0x664   : > { %6855 = vmatmul.bf16.vlgmr.msrb.gmra.mxu3 %v17631_v46  ;;  %v13432_v46 = vld [vmem:[#allocation18 + $0x2b8] sm:$0xf0] }
 0x665   : > { %7092 = vmatpush.bf16.msra.mxu3 %v13467_v25  ;;  %6840 = vmatpush.bf16.msrb.mxu2 %v13227_v1  ;;  %v13435_v20 = vor.u32 %v15705_v29, %v13432_v46  ;;  %v13352_v25 = vld [vmem:[#allocation18 + $0x218] sm:$0xf0]  ;;  %v15759_v1 = vld [vmem:[#allocation19 + $0x164] sm:$0xf]  ;;  %v15772_v29 = vld [vmem:[#allocation19 + $0x1c4] sm:$0xf0] }
 0x666   : > { %v6819_v47 = vpop.f32.mrf.mxu0  ;;  %v6832_v44 = vpop.f32.mrf.mxu1  ;;  %v13355_v18 = vor.u32 %v15685_v3, %v13352_v25  ;;  %v15755_v46 = vld [vmem:[#allocation19 + $0x144] sm:$0xf]  ;;  %v13571_v36 = vor.u32 %v15772_v29, %v13570_v15 }
 0x667   : > { %v13578_v47 = vld [vmem:[#allocation19 + $0x1d0] sm:$0xf]  ;;  %v15774_v44 = vld [vmem:[#allocation19 + $0x1d4] sm:$0xf0]  ;;  %v15727_v15 = vld [vmem:[#allocation19 + $0x64] sm:$0xf] }
 0x669   : > { %7093 = vmatpush.bf16.msra.mxu3 %v13459_v61  ;;  %6841 = vmatpush.bf16.msrb.mxu2 %v13219_v56  ;;  %v13524_v61 = vld [vmem:[#allocation19 + $0x168] sm:$0xf0]  ;;  %v15757_v56 = vld [vmem:[#allocation19 + $0x154] sm:$0xf] }
 0x66a   : > { %v13527_v54 = vor.u32 %v15759_v1, %v13524_v61  ;;  %v13538_v61 = vld [vmem:[#allocation19 + $0x180] sm:$0xf] }
 0x66c   : > { %6842 = vmatmul.bf16.vlgmr.msrb.gmra.mxu2 %v17629_v19  ;;  %v13371_v19 = vor.u32 %v15689_v57, %v13368_v2  ;;  %v13500_v57 = vld [vmem:[#allocation19 + $0x138] sm:$0xf0] }
 0x66d   : > { %7079 = vmatpush.bf16.msra.mxu2 %v13403_v41  ;;  %7094 = vmatpush.bf16.msra.mxu3 %v13451_v23  ;;  %v13516_v41 = vld [vmem:[#allocation19 + $0x158] sm:$0xf0] }
 0x66e   : > { %v13519_v62 = vor.u32 %v15757_v56, %v13516_v41  ;;  %v15746_v56 = vld [vmem:[#allocation19 + $0xf4] sm:$0xf0]  ;;  %v15729_v41 = vld [vmem:[#allocation19 + $0x74] sm:$0xf] }
 0x671   : > { %7080 = vmatpush.bf16.msra.mxu2 %v13395_v5  ;;  %7095 = vmatpush.bf16.msra.mxu3 %v13443_v40  ;;  %v13579_v5 = vor.u32 %v15774_v44, %v13578_v47  ;;  %v15760_v40 = vld [vmem:[#allocation19 + $0x164] sm:$0xf0]  ;;  %v13722_v44 = vld [vmem:[#allocation19 + $0xf0] sm:$0xf] }
 0x675   : > { %7081 = vmatpush.bf16.msra.mxu2 %v13387_v60  ;;  %7096 = vmatpush.bf16.msra.mxu3 %v13435_v20  ;;  %v13523_v60 = vor.u32 %v15760_v40, %v13522_v59  ;;  %v13514_v20 = vld [vmem:[#allocation19 + $0x150] sm:$0xf]  ;;  %v13714_v40 = vld [vmem:[#allocation19 + $0xe0] sm:$0xf] }
 0x676   : > { %v13515_v2 = vor.u32 %v15758_v38, %v13514_v20  ;;  %v15742_v38 = vld [vmem:[#allocation19 + $0xd4] sm:$0xf0] }
 0x679   : > { %7082 = vmatpush.bf16.msra.mxu2 %v13379_v33  ;;  %7097 = vmatpush.bf16.msra.mxu3 %v13427_v43  ;;  %v15770_v33 = vld [vmem:[#allocation19 + $0x1b4] sm:$0xf0]  ;;  %v15753_v43 = vld [vmem:[#allocation19 + $0x134] sm:$0xf] }
 0x67a   : > { %v13563_v63 = vor.u32 %v15770_v33, %v13562_v58  ;;  %v15725_v58 = vld [vmem:[#allocation19 + $0x54] sm:$0xf]  ;;  %v13644_v33 = vld [vmem:[#allocation19 + $0x58] sm:$0xf0] }
 0x67b   : > { %v13647_v35 = vor.u32 %v15725_v58, %v13644_v33 }
 0x67d   : > { %7083 = vmatpush.bf16.msra.mxu2 %v13371_v19  ;;  %7098 = vmatpush.bf16.msra.mxu3 %v13419_v32  ;;  %v13503_v19 = vor.u32 %v15753_v43, %v13500_v57  ;;  %v13554_v32 = vld [vmem:[#allocation19 + $0x1a0] sm:$0xf] }
 0x67e   : > { %v7062_v0 = vpop.f32.mrf.mxu0  ;;  %v7075_v14 = vpop.f32.mrf.mxu1  ;;  %v13555_v22 = vor.u32 %v15768_v7, %v13554_v32  ;;  %v15740_v32 = vld [vmem:[#allocation19 + $0xc4] sm:$0xf0] }
 0x67f   : > { %v7076_v21 = vadd.f32 %v7075_v14, %v7062_v0  ;;  %v15749_v0 = vld [vmem:[#allocation19 + $0x114] sm:$0xf]  ;;  %v13484_v14 = vld [vmem:[#allocation19 + $0x118] sm:$0xf0] }
 0x680   : > { %v13487_v3 = vor.u32 %v15749_v0, %v13484_v14  ;;  %v13690_v0 = vld [vmem:[#allocation19 + $0xb0] sm:$0xf]  ;;  %v15738_v14 = vld [vmem:[#allocation19 + $0xb4] sm:$0xf0] }
 0x681   : > { %v7105_v13 = vadd.f32 %v7076_v21, %v6831_v31  ;;  %7084 = vmatpush.bf16.msra.mxu2 %v13363_v24  ;;  %7099 = vmatpush.bf16.msra.mxu3 %v13411_v45  ;;  %v13547_v45 = vor.u32 %v15766_v9, %v13546_v6  ;;  %v13490_v31 = vld [vmem:[#allocation19 + $0x120] sm:$0xf]  ;;  %v15752_v21 = vld [vmem:[#allocation19 + $0x124] sm:$0xf0]  ;;  %v13639_v9 = vor.u32 %v15723_v53, %v13636_v17  ;;  %v15794_v53 = vld [vmem:[#allocation19 + $0x274] sm:$0xf0] }
 0x682   : > { %v13491_v25 = vor.u32 %v15752_v21, %v13490_v31 }
 0x683   : > { %13468 = vmatpush.msk.msra.mxu0 %vm1220_vm10, %v7105_v13  ;;  %v15748_v13 = vld [vmem:[#allocation19 + $0x104] sm:$0xf0] }
 0x684   : > { %7100 = vmatmul.bf16.vlgmr.msra.gmra.mxu3 %v17651_v26  ;;  %13469 = vmatmul.msk.f32.vlgmr.msra.gmra.mxu0 %vm6320_vm9, %v17500_v52  ;;  %v13508_v26 = vld [vmem:[#allocation19 + $0x148] sm:$0xf0]  ;;  %v13475_v1 = vor.u32 %v15748_v13, %v13474_v51  ;;  %v13682_v13 = vld [vmem:[#allocation19 + $0xa0] sm:$0xf] }
 0x685   : > { %7439 = vmatpush.bf16.msrb.mxu3 %v13595_v49  ;;  %7452 = vmatpush.bf16.msrb.mxu0 %v13535_v11  ;;  %v13511_v34 = vor.u32 %v15755_v46, %v13508_v26  ;;  %v13482_v49 = vld [vmem:[#allocation19 + $0x110] sm:$0xf]  ;;  %v15750_v11 = vld [vmem:[#allocation19 + $0x114] sm:$0xf0]  ;;  %v13652_v46 = vld [vmem:[#allocation19 + $0x68] sm:$0xf0] }
 0x686   : > { %v7064_v23 = vpop.f32.mrf.mxu0  ;;  %v7077_v39 = vpop.f32.mrf.mxu1  ;;  %7085 = vmatpush.bf16.msra.mxu2 %v13355_v18  ;;  %v13483_v8 = vor.u32 %v15750_v11, %v13482_v49  ;;  %v15764_v18 = vld [vmem:[#allocation19 + $0x184] sm:$0xf0]  ;;  %v13642_v26 = vld [vmem:[#allocation19 + $0x50] sm:$0xf]  ;;  %v13655_v20 = vor.u32 %v15727_v15, %v13652_v46  ;;  %v13602_v15 = vld [vmem:[#allocation19] sm:$0xf] }
 0x687   : > { %v13539_v30 = vor.u32 %v15764_v18, %v13538_v61  ;;  %v13723_v23 = vor.u32 %v15746_v56, %v13722_v44  ;;  %v13660_v39 = vld [vmem:[#allocation19 + $0x78] sm:$0xf0]  ;;  %v15720_v49 = vld [vmem:[#allocation19 + $0x24] sm:$0xf0]  ;;  %v15719_v61 = vld [vmem:[#allocation19 + $0x24] sm:$0xf] }
 0x688   : > { %v13663_v59 = vor.u32 %v15729_v41, %v13660_v39  ;;  %v13620_v18 = vld [vmem:[#allocation19 + $0x28] sm:$0xf0]  ;;  %v13674_v44 = vld [vmem:[#allocation19 + $0x90] sm:$0xf]  ;;  %v15734_v56 = vld [vmem:[#allocation19 + $0x94] sm:$0xf0] }
 0x689   : > { %7440 = vmatpush.bf16.msrb.mxu3 %v13587_v27  ;;  %7453 = vmatpush.bf16.msrb.mxu0 %v13527_v54  ;;  %v13658_v27 = vld [vmem:[#allocation19 + $0x70] sm:$0xf]  ;;  %v13479_v54 = vor.u32 %v15747_v55, %v13476_v16  ;;  %v13612_v39 = vld [vmem:[#allocation19 + $0x18] sm:$0xf0] }
 0x68a   : > { %7086 = vmatpush.bf16.msra.mxu2 %v13347_v37  ;;  %v13659_v47 = vor.u32 %v15730_v42, %v13658_v27  ;;  %v13650_v37 = vld [vmem:[#allocation19 + $0x60] sm:$0xf]  ;;  %v13610_v27 = vld [vmem:[#allocation19 + $0x10] sm:$0xf]  ;;  %v15718_v42 = vld [vmem:[#allocation19 + $0x14] sm:$0xf0] }
 0x68d   : > { %7441 = vmatpush.bf16.msrb.mxu3 %v13579_v5  ;;  %7454 = vmatpush.bf16.msrb.mxu0 %v13519_v62  ;;  %v15744_v62 = vld [vmem:[#allocation19 + $0xe4] sm:$0xf0] }
 0x68e   : > { %7426 = vmatpush.bf16.msrb.mxu2 %v13531_v10  ;;  %v15728_v10 = vld [vmem:[#allocation19 + $0x64] sm:$0xf0]  ;;  %v13715_v29 = vor.u32 %v15744_v62, %v13714_v40  ;;  %v7175_v40 = vld [vmem:[#allocation5] sm:$0x77]  ;;  %v13675_v62 = vor.u32 %v15734_v56, %v13674_v44  ;;  %v13772_v44 = vld [vmem:[#allocation19 + $0x258] sm:$0xf0] }
 0x68f   : > { %7087 = vmatmul.bf16.vlgmr.msra.gmra.mxu2 %v17649_v48  ;;  %v15754_v48 = vld [vmem:[#allocation19 + $0x134] sm:$0xf0]  ;;  %v13651_v5 = vor.u32 %v15728_v10, %v13650_v37 }
 0x690   : > { %v13499_v24 = vor.u32 %v15754_v48, %v13498_v28  ;;  %v15722_v48 = vld [vmem:[#allocation19 + $0x34] sm:$0xf0] }
 0x691   : > { %7442 = vmatpush.bf16.msrb.mxu3 %v13571_v36  ;;  %7455 = vmatpush.bf16.msrb.mxu0 %v13511_v34  ;;  %v13706_v36 = vld [vmem:[#allocation19 + $0xd0] sm:$0xf]  ;;  %v6314_v34 = vld [vmem:[%s17988_s14] sm:$0x3] }
 0x692   : > { %7427 = vmatpush.bf16.msrb.mxu2 %v13523_v60  ;;  %v15726_v60 = vld [vmem:[#allocation19 + $0x54] sm:$0xf0]  ;;  %v13707_v57 = vor.u32 %v15742_v38, %v13706_v36  ;;  %v15715_v36 = vld [vmem:[#allocation19 + $0x4] sm:$0xf]  ;;  %v13604_v38 = vld [vmem:[#allocation19 + $0x8] sm:$0xf0] }
 0x693   : > { %v13643_v43 = vor.u32 %v15726_v60, %v13642_v26  ;;  %v13666_v60 = vld [vmem:[#allocation19 + $0x80] sm:$0xf] }
 0x695   : > { %7443 = vmatpush.bf16.msrb.mxu3 %v13563_v63  ;;  %7456 = vmatpush.bf16.msrb.mxu0 %v13503_v19  ;;  %v6317_v63 = vperm.slane %v6314_v34, 1  ;;  %v13698_v19 = vld [vmem:[#allocation19 + $0xc0] sm:$0xf] }
 0x696   : > { %7428 = vmatpush.bf16.msrb.mxu2 %v13515_v2  ;;  %v13634_v2 = vld [vmem:[#allocation19 + $0x40] sm:$0xf]  ;;  %v13699_v28 = vor.u32 %v15740_v32, %v13698_v19 }
 0x699   : > { %7444 = vmatpush.bf16.msrb.mxu3 %v13555_v22  ;;  %7457 = vmatpush.bf16.msrb.mxu0 %v13495_v4  ;;  %v13626_v22 = vld [vmem:[#allocation19 + $0x30] sm:$0xf]  ;;  %v6316_v4 = vperm.slane %v6314_v34, 0 }
 0x69a   : > { %7429 = vmatpush.bf16.msrb.mxu2 %v13507_v12  ;;  %v13635_v12 = vor.u32 %v15724_v50, %v13634_v2  ;;  %v13627_v31 = vor.u32 %v15722_v48, %v13626_v22  ;;  %v13850_v48 = vld [vmem:[#allocation19 + $0x2f0] sm:$0xf] }
 0x69d   : > { %7445 = vmatpush.bf16.msrb.mxu3 %v13547_v45  ;;  %7458 = vmatpush.bf16.msrb.mxu0 %v13487_v3  ;;  %v13628_v45 = vld [vmem:[#allocation19 + $0x38] sm:$0xf0]  ;;  %v13691_v3 = vor.u32 %v15738_v14, %v13690_v0 }
 0x69e   : > { %7430 = vmatpush.bf16.msrb.mxu2 %v13499_v24  ;;  %v15721_v24 = vld [vmem:[#allocation19 + $0x34] sm:$0xf] }
 0x69f   : > { %v13631_v51 = vor.u32 %v15721_v24, %v13628_v45 }
 0x6a1   : > { %7446 = vmatpush.bf16.msrb.mxu3 %v13539_v30  ;;  %7459 = vmatpush.bf16.msrb.mxu0 %v13479_v54 }
 0x6a2   : > { %7431 = vmatpush.bf16.msrb.mxu2 %v13491_v25  ;;  %v13618_v25 = vld [vmem:[#allocation19 + $0x20] sm:$0xf] }
 0x6a3   : > { %v13619_v30 = vor.u32 %v15720_v49, %v13618_v25  ;;  %v13778_v25 = vld [vmem:[#allocation19 + $0x260] sm:$0xf]  ;;  %v15792_v49 = vld [vmem:[#allocation19 + $0x264] sm:$0xf0] }
 0x6a5   : > { %7658 = vmatpush.bf16.msra.mxu3 %v13723_v23  ;;  %7671 = vmatpush.bf16.msra.mxu0 %v13663_v59  ;;  %v15717_v23 = vld [vmem:[#allocation19 + $0x14] sm:$0xf] }
 0x6a6   : > { %7432 = vmatpush.bf16.msrb.mxu2 %v13483_v8  ;;  %v13615_v26 = vor.u32 %v15717_v23, %v13612_v39 }
 0x6a7   : > { %v6366_v7 = vpop.f32.mrf.mxu3 }
 0x6a8   : > { %v6367_v6 = vadd.f32 %v6366_v7, %v6317_v63  ;;  %v13786_v7 = vld [vmem:[#allocation19 + $0x270] sm:$0xf] }
 0x6a9   : > { %7659 = vmatpush.bf16.msra.mxu3 %v13715_v29  ;;  %7672 = vmatpush.bf16.msra.mxu0 %v13655_v20  ;;  %v15716_v29 = vld [vmem:[#allocation19 + $0x4] sm:$0xf0]  ;;  %v13787_v24 = vor.u32 %v15794_v53, %v13786_v7  ;;  %v13746_v53 = vld [vmem:[#allocation19 + $0x220] sm:$0xf] }
 0x6aa   : > { %7433 = vmatpush.bf16.msrb.mxu2 %v13475_v1  ;;  %v6370_v8 = vmax.f32 %v6367_v6, 0.0  ;;  %v15736_v1 = vld [vmem:[#allocation19 + $0xa4] sm:$0xf0]  ;;  %v13603_v58 = vor.u32 %v15716_v29, %v13602_v15  ;;  %v15793_v6 = vld [vmem:[#allocation19 + $0x274] sm:$0xf] }
 0x6ab   : > { %v13683_v16 = vor.u32 %v15736_v1, %v13682_v13  ;;  %v15732_v20 = vld [vmem:[#allocation19 + $0x84] sm:$0xf0]  ;;  %v13780_v13 = vld [vmem:[#allocation19 + $0x268] sm:$0xf0]  ;;  %v15787_v15 = vld [vmem:[#allocation19 + $0x244] sm:$0xf] }
 0x6ac   : > { %v13667_v33 = vor.u32 %v15732_v20, %v13666_v60  ;;  %v13764_v29 = vld [vmem:[#allocation19 + $0x248] sm:$0xf0] }
 0x6ad   : > { %7660 = vmatpush.bf16.msra.mxu3 %v13707_v57  ;;  %7673 = vmatpush.bf16.msra.mxu0 %v13647_v35  ;;  %v13607_v57 = vor.u32 %v15715_v36, %v13604_v38  ;;  %v13767_v38 = vor.u32 %v15787_v15, %v13764_v29 }
 0x6ae   : > { %7645 = vmatpush.bf16.msra.mxu2 %v13659_v47  ;;  %v13623_v47 = vor.u32 %v15719_v61, %v13620_v18  ;;  %v13779_v18 = vor.u32 %v15792_v49, %v13778_v25 }
 0x6af   : > { %v6346_v21 = vpop.f32.mrf.mxu2 }
 0x6b0   : > { %v6347_v11 = vadd.f32 %v6346_v21, %v6316_v4  ;;  %v15810_v4 = vld [vmem:[#allocation19 + $0x2f4] sm:$0xf0] }
 0x6b1   : > { %7661 = vmatpush.bf16.msra.mxu3 %v13699_v28  ;;  %7674 = vmatpush.bf16.msra.mxu0 %v13639_v9  ;;  %v13788_v9 = vld [vmem:[#allocation19 + $0x278] sm:$0xf0]  ;;  %v13851_v21 = vor.u32 %v15810_v4, %v13850_v48  ;;  %v13748_v48 = vld [vmem:[#allocation19 + $0x228] sm:$0xf0] }
 0x6b2   : > { %7646 = vmatpush.bf16.msra.mxu2 %v13651_v5  ;;  %v6369_v55 = vmax.f32 %v6347_v11, 0.0  ;;  %v13611_v5 = vor.u32 %v15718_v42, %v13610_v27  ;;  %v13842_v11 = vld [vmem:[#allocation19 + $0x2e0] sm:$0xf]  ;;  %v15790_v27 = vld [vmem:[#allocation19 + $0x254] sm:$0xf0] }
 0x6b3   : > { %v13834_v42 = vld [vmem:[#allocation19 + $0x2d0] sm:$0xf] }
 0x6b4   : > { %v7159_v54 = vpack.c.bf16 %v6370_v8, %v6369_v55  ;;  %v15808_v8 = vld [vmem:[#allocation19 + $0x2e4] sm:$0xf0] }
 0x6b5   : > { %7662 = vmatpush.bf16.msra.mxu3 %v13691_v3  ;;  %7675 = vmatpush.bf16.msra.mxu0 %v13631_v51  ;;  %v13791_v3 = vor.u32 %v15793_v6, %v13788_v9  ;;  %v15791_v51 = vld [vmem:[#allocation19 + $0x264] sm:$0xf]  ;;  %v13843_v55 = vor.u32 %v15808_v8, %v13842_v11  ;;  %v13738_v6 = vld [vmem:[#allocation19 + $0x210] sm:$0xf] }
 0x6b6   : > { %7647 = vmatpush.bf16.msra.mxu2 %v13643_v43  ;;  %v7161_v37 = vshrl.u32 %v7159_v54, 16  ;;  %v7164_v10 = vshll.u32 %v7159_v54, 16  ;;  %v15806_v54 = vld [vmem:[#allocation19 + $0x2d4] sm:$0xf0] }
 0x6b7   : > { %v13835_v39 = vor.u32 %v15806_v54, %v13834_v42 }
 0x6b8   : > { %v7163_v46 = vrot.slane %v7161_v37, 7 }
 0x6b9   : > { %7663 = vmatpush.bf16.msra.mxu3 %v13683_v16  ;;  %7676 = vmatpush.bf16.msra.mxu0 %v13623_v47  ;;  %v13770_v16 = vld [vmem:[#allocation19 + $0x250] sm:$0xf]  ;;  %v15789_v47 = vld [vmem:[#allocation19 + $0x254] sm:$0xf] }
 0x6ba   : > { %7648 = vmatpush.bf16.msra.mxu2 %v13635_v12  ;;  %v7166_v34 = vor.u32 %v7164_v10, %v7163_v46  ;;  %v13771_v56 = vor.u32 %v15790_v27, %v13770_v16  ;;  %v13775_v37 = vor.u32 %v15789_v47, %v13772_v44  ;;  %v13762_v10 = vld [vmem:[#allocation19 + $0x240] sm:$0xf]  ;;  %v15779_v16 = vld [vmem:[#allocation19 + $0x204] sm:$0xf]  ;;  %v13732_v27 = vld [vmem:[#allocation19 + $0x208] sm:$0xf0] }
 0x6bb   : > { %v13735_v44 = vor.u32 %v15779_v16, %v13732_v27  ;;  %v13692_v16 = vld [vmem:[#allocation19 + $0xb8] sm:$0xf0] }
 0x6bc   : > { %v7176_v43 = vsel %vm7174_vm1, %v7166_v34, %v7175_v40  ;;  %v13826_v40 = vld [vmem:[#allocation19 + $0x2c0] sm:$0xf]  ;;  %v13754_v34 = vld [vmem:[#allocation19 + $0x230] sm:$0xf] }
 0x6bd   : > { %7664 = vmatpush.bf16.msra.mxu3 %v13675_v62  ;;  %7677 = vmatpush.bf16.msra.mxu0 %v13615_v26  ;;  %7177 = vst [vmem:[#allocation5] sm:$0x77] %v7176_v43  ;;  %v15804_v62 = vld [vmem:[#allocation19 + $0x2c4] sm:$0xf0]  ;;  %v15802_v43 = vld [vmem:[#allocation19 + $0x2b4] sm:$0xf0] }
 0x6be   : > { %7649 = vmatpush.bf16.msra.mxu2 %v13627_v31  ;;  %v13827_v36 = vor.u32 %v15804_v62, %v13826_v40 }
 0x6c1   : > { %7665 = vmatpush.bf16.msra.mxu3 %v13667_v33  ;;  %7678 = vmatpush.bf16.msra.mxu0 %v13607_v57  ;;  %v13818_v33 = vld [vmem:[#allocation19 + $0x2b0] sm:$0xf]  ;;  %v15785_v57 = vld [vmem:[#allocation19 + $0x234] sm:$0xf] }
 0x6c2   : > { %7650 = vmatpush.bf16.msra.mxu2 %v13619_v30  ;;  %v13783_v30 = vor.u32 %v15791_v51, %v13780_v13  ;;  %v13730_v13 = vld [vmem:[#allocation19 + $0x200] sm:$0xf] }
 0x6c4   : > { %v7211_v2 = vld [vmem:[#allocation5] sm:$0x77] }
 0x6c5   : > { %v7246_v50 = vunpack.c.l.b16 %v7211_v2  ;;  %v7247_v63 = vunpack.c.h.b16 %v7211_v2  ;;  %v7178_v23 = vld [vmem:[#allocation5] sm:$0x33]  ;;  %v13756_v2 = vld [vmem:[#allocation19 + $0x238] sm:$0xf0] }
 0x6c6   : > { %7651 = vmatpush.bf16.msra.mxu2 %v13611_v5  ;;  %v15788_v5 = vld [vmem:[#allocation19 + $0x244] sm:$0xf0]  ;;  %v7479_v26 = vunpack.c.l.b16 %v7178_v23  ;;  %v7480_v60 = vunpack.c.h.b16 %v7178_v23  ;;  %v13759_v7 = vor.u32 %v15785_v57, %v13756_v2  ;;  %v7697_v25 = vld [vmem:[#allocation5] sm:$0x66] }
 0x6c7   : > { %v17713_v35 = vpop.f32.mrf.mxu3  ;;  %v7248_v19 = vpack.c.b16 %v7246_v50, %v7246_v50  ;;  %v7249_v32 = vpack.c.b16 %v7247_v63, %v7247_v63  ;;  %v13763_v20 = vor.u32 %v15788_v5, %v13762_v10  ;;  %v7733_v42 = vunpack.c.h.b16 %v7697_v25  ;;  %v15773_v2 = vld [vmem:[#allocation19 + $0x1d4] sm:$0xf] }
 0x6c8   : > { %v7481_v50 = vpack.c.b16 %v7479_v26, %v7479_v26  ;;  %v17720_v63 = vpack.c.b16 %v7480_v60, %v7480_v60  ;;  %v13596_v26 = vld [vmem:[#allocation19 + $0x1f8] sm:$0xf0] }
 0x6c9   : > { %v7251_v17 = vshrl.u32 %v7248_v19, 16  ;;  %v7253_v12 = vshll.u32 %v7248_v19, 16  ;;  %v7258_v28 = vshrl.u32 %v7249_v32, 16  ;;  %v7260_v22 = vshll.u32 %v7249_v32, 16 }
 0x6ca   : > { %7652 = vmatpush.bf16.msra.mxu2 %v13603_v58  ;;  %v15786_v58 = vld [vmem:[#allocation19 + $0x234] sm:$0xf0]  ;;  %v13819_v32 = vor.u32 %v15802_v43, %v13818_v33  ;;  %v17723_v23 = vpack.c.b16 %v7733_v42, %v7733_v42  ;;  %v15775_v33 = vld [vmem:[#allocation19 + $0x1e4] sm:$0xf]  ;;  %v13588_v43 = vld [vmem:[#allocation19 + $0x1e8] sm:$0xf0] }
 0x6cb   : > { %v7255_v0 = vrot.slane %v7253_v12, 1  ;;  %v7262_v14 = vrot.slane %v7260_v22, 1  ;;  %v13755_v19 = vor.u32 %v15786_v58, %v13754_v34  ;;  %v13810_v12 = vld [vmem:[#allocation19 + $0x2a0] sm:$0xf]  ;;  %v15783_v22 = vld [vmem:[#allocation19 + $0x224] sm:$0xf]  ;;  %v13591_v57 = vor.u32 %v15775_v33, %v13588_v43 }
 0x6cc   : > { %v7737_v5 = vrot.slane %v17723_v23, 1  ;;  %v15735_v42 = vld [vmem:[#allocation19 + $0xa4] sm:$0xf]  ;;  %v13828_v33 = vld [vmem:[#allocation19 + $0x2c8] sm:$0xf0] }
 0x6cd   : > { %v7256_v45 = vor.u32 %v7255_v0, %v7251_v17  ;;  %v17715_v31 = vor.u32 %v7262_v14, %v7258_v28  ;;  %v15784_v17 = vld [vmem:[#allocation19 + $0x224] sm:$0xf0]  ;;  %v13751_v0 = vor.u32 %v15783_v22, %v13748_v48  ;;  %v15782_v14 = vld [vmem:[#allocation19 + $0x214] sm:$0xf0]  ;;  %v13556_v22 = vld [vmem:[#allocation19 + $0x1a8] sm:$0xf0] }
 0x6ce   : > { %v15800_v28 = vld [vmem:[#allocation19 + $0x2a4] sm:$0xf0]  ;;  %v13747_v4 = vor.u32 %v15784_v17, %v13746_v53  ;;  %v13739_v11 = vor.u32 %v15782_v14, %v13738_v6  ;;  %v15769_v53 = vld [vmem:[#allocation19 + $0x1b4] sm:$0xf]  ;;  %v13564_v17 = vld [vmem:[#allocation19 + $0x1b8] sm:$0xf0] }
 0x6cf   : > { %v17717_v1 = vpop.f32.mrf.mxu2  ;;  %7434 = vmatmul.bf16.vlgmr.msrb.gmra.mxu2 %v7256_v45  ;;  %7447 = vmatmul.bf16.vlgmr.msrb.gmra.mxu3 %v17715_v31  ;;  %v6646_v61 = vpop.f32.mrf.mxu3  ;;  %v13811_v9 = vor.u32 %v15800_v28, %v13810_v12  ;;  %v13567_v12 = vor.u32 %v15769_v53, %v13564_v17  ;;  %v15767_v28 = vld [vmem:[#allocation19 + $0x1a4] sm:$0xf]  ;;  %v13548_v6 = vld [vmem:[#allocation19 + $0x198] sm:$0xf0]  ;;  %v13540_v14 = vld [vmem:[#allocation19 + $0x188] sm:$0xf0] }
 0x6d0   : > { %7460 = vmatmul.bf16.vlgmr.msrb.gmra.mxu0 %v7256_v45  ;;  %7900 = vmatpush.bf16.msrb.mxu2 %v13787_v24  ;;  %v13802_v24 = vld [vmem:[#allocation19 + $0x290] sm:$0xf]  ;;  %v15798_v45 = vld [vmem:[#allocation19 + $0x294] sm:$0xf0]  ;;  %v15780_v61 = vld [vmem:[#allocation19 + $0x204] sm:$0xf0]  ;;  %v6645_v15 = vadd.f32 %v17713_v35, %v17717_v1  ;;  %v13559_v48 = vor.u32 %v15767_v28, %v13556_v22 }
 0x6d1   : > { %7913 = vmatpush.bf16.msrb.mxu3 %v13851_v21  ;;  %7926 = vmatpush.bf16.msrb.mxu0 %v13791_v3  ;;  %v15781_v21 = vld [vmem:[#allocation19 + $0x214] sm:$0xf]  ;;  %v13740_v3 = vld [vmem:[#allocation19 + $0x218] sm:$0xf0]  ;;  %v13803_v8 = vor.u32 %v15798_v45, %v13802_v24  ;;  %v13731_v54 = vor.u32 %v15780_v61, %v13730_v13  ;;  %v15739_v61 = vld [vmem:[#allocation19 + $0xc4] sm:$0xf] }
 0x6d2   : > { %v13743_v51 = vor.u32 %v15781_v21, %v13740_v3  ;;  %v15745_v24 = vld [vmem:[#allocation19 + $0xf4] sm:$0xf]  ;;  %v13724_v45 = vld [vmem:[#allocation19 + $0xf8] sm:$0xf0] }
 0x6d3   : > { %v13727_v3 = vor.u32 %v15745_v24, %v13724_v45  ;;  %v13804_v28 = vld [vmem:[#allocation19 + $0x298] sm:$0xf0] }
 0x6d4   : > { %7901 = vmatpush.bf16.msrb.mxu2 %v13779_v18  ;;  %v13794_v18 = vld [vmem:[#allocation19 + $0x280] sm:$0xf] }
 0x6d5   : > { %7914 = vmatpush.bf16.msrb.mxu3 %v13843_v55  ;;  %7927 = vmatpush.bf16.msrb.mxu0 %v13783_v30  ;;  %v7732_v55 = vunpack.c.l.b16 %v7697_v25  ;;  %v15796_v30 = vld [vmem:[#allocation19 + $0x284] sm:$0xf0]  ;;  %v15743_v25 = vld [vmem:[#allocation19 + $0xe4] sm:$0xf] }
 0x6d6   : > { %v13795_v47 = vor.u32 %v15796_v30, %v13794_v18  ;;  %v13700_v18 = vld [vmem:[#allocation19 + $0xc8] sm:$0xf0]  ;;  %v15737_v30 = vld [vmem:[#allocation19 + $0xb4] sm:$0xf] }
 0x6d7   : > { %v6633_v46 = vpop.f32.mrf.mxu2  ;;  %v13695_v27 = vor.u32 %v15737_v30, %v13692_v16 }
 0x6d8   : > { %7902 = vmatpush.bf16.msrb.mxu2 %v13771_v56  ;;  %v7734_v56 = vpack.c.b16 %v7732_v55, %v7732_v55  ;;  %v15777_v46 = vld [vmem:[#allocation19 + $0x1f4] sm:$0xf]  ;;  %v13703_v55 = vor.u32 %v15739_v61, %v13700_v18 }
 0x6d9   : > { %7915 = vmatpush.bf16.msrb.mxu3 %v13835_v39  ;;  %7928 = vmatpush.bf16.msrb.mxu0 %v13775_v37  ;;  %v13599_v34 = vor.u32 %v15777_v46, %v13596_v26  ;;  %v15807_v46 = vld [vmem:[#allocation19 + $0x2e4] sm:$0xf]  ;;  %v13844_v26 = vld [vmem:[#allocation19 + $0x2e8] sm:$0xf0] }
 0x6da   : > { %v7736_v10 = vrot.slane %v7734_v56, 1  ;;  %v13676_v56 = vld [vmem:[#allocation19 + $0x98] sm:$0xf0] }
 0x6dc   : > { %7903 = vmatpush.bf16.msrb.mxu2 %v13763_v20 }
 0x6dd   : > { %7916 = vmatpush.bf16.msrb.mxu3 %v13827_v36  ;;  %7929 = vmatpush.bf16.msrb.mxu0 %v13767_v38 }
 0x6df   : > { %7653 = vmatmul.bf16.vlgmr.msra.gmra.mxu2 %v7481_v50  ;;  %7666 = vmatmul.bf16.vlgmr.msra.gmra.mxu3 %v17720_v63 }
 0x6e0   : > { %7679 = vmatmul.bf16.vlgmr.msra.gmra.mxu0 %v7481_v50  ;;  %7904 = vmatpush.bf16.msrb.mxu2 %v13755_v19  ;;  %v13580_v50 = vld [vmem:[#allocation19 + $0x1d8] sm:$0xf0]  ;;  %v15771_v19 = vld [vmem:[#allocation19 + $0x1c4] sm:$0xf] }
 0x6e1   : > { %7917 = vmatpush.bf16.msrb.mxu3 %v13819_v32  ;;  %7930 = vmatpush.bf16.msrb.mxu0 %v13759_v7  ;;  %v13583_v1 = vor.u32 %v15773_v2, %v13580_v50  ;;  %v13572_v32 = vld [vmem:[#allocation19 + $0x1c8] sm:$0xf0]  ;;  %v15801_v50 = vld [vmem:[#allocation19 + $0x2b4] sm:$0xf] }
 0x6e2   : > { %v13575_v7 = vor.u32 %v15771_v19, %v13572_v32  ;;  %v15799_v32 = vld [vmem:[#allocation19 + $0x2a4] sm:$0xf] }
 0x6e4   : > { %7905 = vmatpush.bf16.msrb.mxu2 %v13747_v4  ;;  %v15765_v4 = vld [vmem:[#allocation19 + $0x194] sm:$0xf] }
 0x6e5   : > { %7918 = vmatpush.bf16.msrb.mxu3 %v13811_v9  ;;  %7931 = vmatpush.bf16.msrb.mxu0 %v13751_v0  ;;  %v13551_v9 = vor.u32 %v15765_v4, %v13548_v6  ;;  %v15763_v0 = vld [vmem:[#allocation19 + $0x184] sm:$0xf]  ;;  %v13796_v6 = vld [vmem:[#allocation19 + $0x288] sm:$0xf0] }
 0x6e6   : > { %v13543_v21 = vor.u32 %v15763_v0, %v13540_v14  ;;  %v15795_v4 = vld [vmem:[#allocation19 + $0x284] sm:$0xf] }
 0x6e7   : > { %v6856_v49 = vpop.f32.mrf.mxu3  ;;  %v13799_v0 = vor.u32 %v15795_v4, %v13796_v6  ;;  %v15854_v4 = vld [vmem:[#allocation21 + $0x154] sm:$0xf0]  ;;  %v13962_v6 = vld [vmem:[#allocation21 + $0x1d0] sm:$0xf] }
 0x6e8   : > { %7906 = vmatpush.bf16.msrb.mxu2 %v13739_v11 }
 0x6e9   : > { %7919 = vmatpush.bf16.msrb.mxu3 %v13803_v8  ;;  %7932 = vmatpush.bf16.msrb.mxu0 %v13743_v51  ;;  %v15741_v8 = vld [vmem:[#allocation19 + $0xd4] sm:$0xf]  ;;  %v13708_v51 = vld [vmem:[#allocation19 + $0xd8] sm:$0xf0] }
 0x6ea   : > { %v13711_v13 = vor.u32 %v15741_v8, %v13708_v51  ;;  %v17746_v8 = vld [vmem:[%s17990_s16] sm:$0x3] }
 0x6eb   : > { %v17751_v51 = vld [vmem:[%s17992_s18] sm:$0x3] }
 0x6ec   : > { %7907 = vmatpush.bf16.msrb.mxu2 %v13731_v54  ;;  %v13684_v54 = vld [vmem:[#allocation19 + $0xa8] sm:$0xf0] }
 0x6ed   : > { %7920 = vmatpush.bf16.msrb.mxu3 %v13795_v47  ;;  %7933 = vmatpush.bf16.msrb.mxu0 %v13735_v44  ;;  %v13687_v47 = vor.u32 %v15735_v42, %v13684_v54  ;;  %v15733_v44 = vld [vmem:[#allocation19 + $0x94] sm:$0xf] }
 0x6ef   : > { %v6843_v39 = vpop.f32.mrf.mxu2  ;;  %v6858_v37 = vpop.f32.mrf.mxu3  ;;  %7908 = vmatmul.bf16.vlgmr.msrb.gmra.mxu2 %v7736_v10 }
 0x6f0   : > { %7921 = vmatmul.bf16.vlgmr.msrb.gmra.mxu3 %v7737_v5  ;;  %7934 = vmatmul.bf16.vlgmr.msrb.gmra.mxu0 %v7736_v10  ;;  %v6844_v29 = vadd.f32 %v6843_v39, %v6645_v15  ;;  %v13679_v39 = vor.u32 %v15733_v44, %v13676_v56  ;;  %v15731_v37 = vld [vmem:[#allocation19 + $0x84] sm:$0xf]  ;;  %v15809_v10 = vld [vmem:[#allocation19 + $0x2f4] sm:$0xf] }
 0x6f2   : > { %v6857_v36 = vadd.f32 %v6856_v49, %v6844_v29  ;;  %v13716_v49 = vld [vmem:[#allocation19 + $0xe8] sm:$0xf0] }
 0x6f3   : > { %v13719_v11 = vor.u32 %v15743_v25, %v13716_v49 }
 0x6f7   : > { %v6845_v40 = vpop.f32.mrf.mxu2 }
 0x6f8   : > { %v13852_v40 = vld [vmem:[#allocation19 + $0x2f8] sm:$0xf0] }
 0x6f9   : > { %v13855_v29 = vor.u32 %v15809_v10, %v13852_v40  ;;  %v13980_v40 = vld [vmem:[#allocation21 + $0x1f8] sm:$0xf0] }
 0x707   : > { %v7101_v62 = vpop.f32.mrf.mxu3 }
 0x70f   : > { %v7103_v20 = vpop.f32.mrf.mxu3 }
 0x710   : > { %v15805_v20 = vld [vmem:[#allocation19 + $0x2d4] sm:$0xf] }
 0x712   : > { %v7088_v60 = vpop.f32.mrf.mxu2 }
 0x713   : > { %v7102_v38 = vadd.f32 %v7101_v62, %v7088_v60  ;;  %v7136_v62 = vpop.f32.mrf.mxu0  ;;  %v13847_v60 = vor.u32 %v15807_v46, %v13844_v26 }
 0x715   : > { %v7106_v58 = vadd.f32 %v7102_v38, %v6857_v36  ;;  %v13836_v36 = vld [vmem:[#allocation19 + $0x2d8] sm:$0xf0] }
 0x717   : > { %13470 = vmatpush.msk.msra.mxu1 %vm1220_vm10, %v7106_v58  ;;  %v15803_v58 = vld [vmem:[#allocation19 + $0x2c4] sm:$0xf]  ;;  %vm8753_vm10 = vcmask 23552  }
 0x718   : > { %13471 = vmatmul.msk.f32.vlgmr.msra.gmra.mxu1 %vm6320_vm9, %v17500_v52  ;;  %v13831_v43 = vor.u32 %v15803_v58, %v13828_v33  ;;  %v13908_v58 = vld [vmem:[#allocation21 + $0x168] sm:$0xf0]  ;;  %v15871_v33 = vld [vmem:[#allocation21 + $0x1e4] sm:$0xf]  ;;  %vm10448_vm9 = vcmask 73728  }
 0x719   : > { %7465 = vmatpush.bf16.msrb.mxu1 %v13599_v34  ;;  %v13839_v34 = vor.u32 %v15805_v20, %v13836_v36  ;;  %v15855_v20 = vld [vmem:[#allocation21 + $0x164] sm:$0xf] }
 0x71a   : > { %v7090_v35 = vpop.f32.mrf.mxu2 }
 0x71b   : > { %v13820_v35 = vld [vmem:[#allocation19 + $0x2b8] sm:$0xf0] }
 0x71c   : > { %v13823_v19 = vor.u32 %v15801_v50, %v13820_v35  ;;  %v13906_v50 = vld [vmem:[#allocation21 + $0x160] sm:$0xf]  ;;  %v15856_v35 = vld [vmem:[#allocation21 + $0x164] sm:$0xf0] }
 0x71d   : > { %7466 = vmatpush.bf16.msrb.mxu1 %v13591_v57 }
 0x721   : > { %7467 = vmatpush.bf16.msrb.mxu1 %v13583_v1 }
 0x725   : > { %7468 = vmatpush.bf16.msrb.mxu1 %v13575_v7  ;;  %v13812_v7 = vld [vmem:[#allocation19 + $0x2a8] sm:$0xf0] }
 0x726   : > { %v13815_v53 = vor.u32 %v15799_v32, %v13812_v7  ;;  %v15872_v32 = vld [vmem:[#allocation21 + $0x1e4] sm:$0xf0]  ;;  %v15853_v7 = vld [vmem:[#allocation21 + $0x154] sm:$0xf] }
 0x729   : > { %7469 = vmatpush.bf16.msrb.mxu1 %v13567_v12  ;;  %v15797_v12 = vld [vmem:[#allocation19 + $0x294] sm:$0xf] }
 0x72d   : > { %7470 = vmatpush.bf16.msrb.mxu1 %v13559_v48  ;;  %v13807_v48 = vor.u32 %v15797_v12, %v13804_v28  ;;  %v13964_v12 = vld [vmem:[#allocation21 + $0x1d8] sm:$0xf0]  ;;  %v13898_v28 = vld [vmem:[#allocation21 + $0x150] sm:$0xf] }
 0x731   : > { %7471 = vmatpush.bf16.msrb.mxu1 %v13551_v9 }
 0x735   : > { %7472 = vmatpush.bf16.msrb.mxu1 %v13543_v21 }
 0x738   : > { %7473 = vmatmul.bf16.vlgmr.msrb.gmra.mxu1 %v17715_v31  ;;  %v13668_v31 = vld [vmem:[#allocation19 + $0x88] sm:$0xf0] }
 0x739   : > { %7684 = vmatpush.bf16.msra.mxu1 %v13727_v3  ;;  %v13671_v15 = vor.u32 %v15731_v37, %v13668_v31  ;;  %v13916_v37 = vld [vmem:[#allocation21 + $0x178] sm:$0xf0]  ;;  %v15873_v31 = vld [vmem:[#allocation21 + $0x1f4] sm:$0xf] }
 0x73a   : > { %v13983_v46 = vor.u32 %v15873_v31, %v13980_v40  ;;  %v13946_v31 = vld [vmem:[#allocation21 + $0x1b0] sm:$0xf] }
 0x73d   : > { %7685 = vmatpush.bf16.msra.mxu1 %v13719_v11 }
 0x741   : > { %7686 = vmatpush.bf16.msra.mxu1 %v13711_v13  ;;  %v7109_v13 = vperm.slane %v17746_v8, 0 }
 0x743   : > { %v7137_v30 = vadd.f32 %v7136_v62, %v7109_v13  ;;  %v13978_v62 = vld [vmem:[#allocation21 + $0x1f0] sm:$0xf]  ;;  %v15852_v13 = vld [vmem:[#allocation21 + $0x144] sm:$0xf0] }
 0x745   : > { %7687 = vmatpush.bf16.msra.mxu1 %v13703_v55 }
 0x749   : > { %7688 = vmatpush.bf16.msra.mxu1 %v13695_v27 }
 0x74d   : > { %7689 = vmatpush.bf16.msra.mxu1 %v13687_v47  ;;  %v17735_v38 = vpop.f32.mrf.mxu0 }
 0x751   : > { %7690 = vmatpush.bf16.msra.mxu1 %v13679_v39  ;;  %v15857_v39 = vld [vmem:[#allocation21 + $0x174] sm:$0xf] }
 0x752   : > { %v7435_v57 = vpop.f32.mrf.mxu2  ;;  %v7448_v2 = vpop.f32.mrf.mxu3  ;;  %v13919_v10 = vor.u32 %v15857_v39, %v13916_v37  ;;  %v13882_v39 = vld [vmem:[#allocation21 + $0x130] sm:$0xf]  ;;  %v15850_v37 = vld [vmem:[#allocation21 + $0x134] sm:$0xf0] }
 0x753   : > { %v7449_v9 = vadd.f32 %v7448_v2, %v7435_v57  ;;  %v13911_v57 = vor.u32 %v15855_v20, %v13908_v58  ;;  %v15863_v20 = vld [vmem:[#allocation21 + $0x1a4] sm:$0xf]  ;;  %v13940_v58 = vld [vmem:[#allocation21 + $0x1a8] sm:$0xf0] }
 0x754   : > { %8250 = vmatpush.bf16.msra.mxu0 %v13919_v10  ;;  %v15866_v10 = vld [vmem:[#allocation21 + $0x1b4] sm:$0xf0] }
 0x755   : > { %7691 = vmatpush.bf16.msra.mxu1 %v13671_v15  ;;  %v7463_v1 = vpop.f32.mrf.mxu0  ;;  %v13914_v15 = vld [vmem:[#allocation21 + $0x170] sm:$0xf] }
 0x756   : > { %v13970_v1 = vld [vmem:[#allocation21 + $0x1e0] sm:$0xf] }
 0x758   : > { %7692 = vmatmul.bf16.vlgmr.msra.gmra.mxu1 %v17720_v63  ;;  %8251 = vmatpush.bf16.msra.mxu0 %v13911_v57  ;;  %v13943_v57 = vor.u32 %v15863_v20, %v13940_v58  ;;  %v14034_v20 = vld [vmem:[#allocation21 + $0x60] sm:$0xf] }
 0x759   : > { %7939 = vmatpush.bf16.msrb.mxu1 %v13855_v29  ;;  %v15858_v29 = vld [vmem:[#allocation21 + $0x174] sm:$0xf0]  ;;  %v14098_v58 = vld [vmem:[#allocation21 + $0xe0] sm:$0xf] }
 0x75a   : > { %v7437_v63 = vpop.f32.mrf.mxu2  ;;  %v7450_v17 = vpop.f32.mrf.mxu3  ;;  %v13915_v26 = vor.u32 %v15858_v29, %v13914_v15  ;;  %v13883_v29 = vor.u32 %v15850_v37, %v13882_v39  ;;  %v15826_v39 = vld [vmem:[#allocation21 + $0x74] sm:$0xf0]  ;;  %v14106_v37 = vld [vmem:[#allocation21 + $0xf0] sm:$0xf] }
 0x75b   : > { %v13971_v63 = vor.u32 %v15872_v32, %v13970_v1  ;;  %v15869_v17 = vld [vmem:[#allocation21 + $0x1d4] sm:$0xf]  ;;  %v13868_v32 = vld [vmem:[#allocation21 + $0x118] sm:$0xf0] }
 0x75c   : > { %8224 = vmatpush.bf16.msra.mxu2 %v13915_v26 }
 0x75d   : > { %7940 = vmatpush.bf16.msrb.mxu1 %v13847_v60  ;;  %v17737_v22 = vpop.f32.mrf.mxu0  ;;  %v15874_v60 = vld [vmem:[#allocation21 + $0x1f4] sm:$0xf0] }
 0x761   : > { %7941 = vmatpush.bf16.msrb.mxu1 %v13839_v34  ;;  %v13979_v34 = vor.u32 %v15874_v60, %v13978_v62  ;;  %v15847_v62 = vld [vmem:[#allocation21 + $0x124] sm:$0xf]  ;;  %v13876_v60 = vld [vmem:[#allocation21 + $0x128] sm:$0xf0] }
 0x762   : > { %v7654_v14 = vpop.f32.mrf.mxu2  ;;  %v7667_v24 = vpop.f32.mrf.mxu3 }
 0x763   : > { %v7655_v45 = vadd.f32 %v7654_v14, %v7449_v9  ;;  %8237 = vmatpush.bf16.msra.mxu3 %v13979_v34  ;;  %v15870_v9 = vld [vmem:[#allocation21 + $0x1d4] sm:$0xf0]  ;;  %v13899_v14 = vor.u32 %v15854_v4, %v13898_v28  ;;  %v13879_v34 = vor.u32 %v15847_v62, %v13876_v60  ;;  %v13930_v4 = vld [vmem:[#allocation21 + $0x190] sm:$0xf]  ;;  %v15839_v62 = vld [vmem:[#allocation21 + $0xe4] sm:$0xf] }
 0x764   : > { %v14100_v60 = vld [vmem:[#allocation21 + $0xe8] sm:$0xf0] }
 0x765   : > { %7942 = vmatpush.bf16.msrb.mxu1 %v13831_v43  ;;  %v7668_v21 = vadd.f32 %v7667_v24, %v7655_v45  ;;  %v7682_v3 = vpop.f32.mrf.mxu0  ;;  %v13972_v43 = vld [vmem:[#allocation21 + $0x1e8] sm:$0xf0]  ;;  %v15851_v24 = vld [vmem:[#allocation21 + $0x144] sm:$0xf] }
 0x766   : > { %v13975_v2 = vor.u32 %v15871_v33, %v13972_v43  ;;  %v13892_v45 = vld [vmem:[#allocation21 + $0x148] sm:$0xf0]  ;;  %v13963_v3 = vor.u32 %v15870_v9, %v13962_v6  ;;  %v13874_v33 = vld [vmem:[#allocation21 + $0x120] sm:$0xf]  ;;  %v15848_v43 = vld [vmem:[#allocation21 + $0x124] sm:$0xf0] }
 0x767   : > { %8238 = vmatpush.bf16.msra.mxu3 %v13971_v63  ;;  %v13932_v63 = vld [vmem:[#allocation21 + $0x198] sm:$0xf0]  ;;  %v15862_v6 = vld [vmem:[#allocation21 + $0x194] sm:$0xf0] }
 0x768   : > { %v13931_v9 = vor.u32 %v15862_v6, %v13930_v4  ;;  %v14020_v4 = vld [vmem:[#allocation21 + $0x48] sm:$0xf0]  ;;  %v15835_v6 = vld [vmem:[#allocation21 + $0xc4] sm:$0xf] }
 0x769   : > { %7943 = vmatpush.bf16.msrb.mxu1 %v13823_v19  ;;  %v13907_v19 = vor.u32 %v15856_v35, %v13906_v50  ;;  %v13938_v50 = vld [vmem:[#allocation21 + $0x1a0] sm:$0xf]  ;;  %v15864_v35 = vld [vmem:[#allocation21 + $0x1a4] sm:$0xf0] }
 0x76a   : > { %v7656_v25 = vpop.f32.mrf.mxu2  ;;  %v7669_v49 = vpop.f32.mrf.mxu3  ;;  %v13939_v1 = vor.u32 %v15864_v35, %v13938_v50  ;;  %v14028_v50 = vld [vmem:[#allocation21 + $0x58] sm:$0xf0]  ;;  %v15837_v35 = vld [vmem:[#allocation21 + $0xd4] sm:$0xf] }
 0x76b   : > { %8225 = vmatpush.bf16.msra.mxu2 %v13907_v19  ;;  %v13956_v25 = vld [vmem:[#allocation21 + $0x1c8] sm:$0xf0]  ;;  %v13890_v49 = vld [vmem:[#allocation21 + $0x140] sm:$0xf]  ;;  %8239 = vmatpush.bf16.msra.mxu3 %v13963_v3  ;;  %v15845_v19 = vld [vmem:[#allocation21 + $0x114] sm:$0xf] }
 0x76c   : > { %v13858_v3 = vld [vmem:[#allocation21 + $0x100] sm:$0xf] }
 0x76d   : > { %7944 = vmatpush.bf16.msrb.mxu1 %v13815_v53  ;;  %v17741_v11 = vpop.f32.mrf.mxu0  ;;  %v13900_v53 = vld [vmem:[#allocation21 + $0x158] sm:$0xf0] }
 0x76f   : > { %8226 = vmatpush.bf16.msra.mxu2 %v13899_v14  ;;  %v13860_v14 = vld [vmem:[#allocation21 + $0x108] sm:$0xf0] }
 0x771   : > { %7945 = vmatpush.bf16.msrb.mxu1 %v13807_v48  ;;  %v13903_v48 = vor.u32 %v15853_v7, %v13900_v53  ;;  %v15861_v7 = vld [vmem:[#allocation21 + $0x194] sm:$0xf]  ;;  %v13871_v53 = vor.u32 %v15845_v19, %v13868_v32  ;;  %v14092_v19 = vld [vmem:[#allocation21 + $0xd8] sm:$0xf0]  ;;  %v14026_v32 = vld [vmem:[#allocation21 + $0x50] sm:$0xf] }
 0x772   : > { %v7909_v61 = vpop.f32.mrf.mxu2  ;;  %v13935_v28 = vor.u32 %v15861_v7, %v13932_v63  ;;  %v15822_v7 = vld [vmem:[#allocation21 + $0x54] sm:$0xf0]  ;;  %v14095_v63 = vor.u32 %v15837_v35, %v14092_v19  ;;  %v14060_v19 = vld [vmem:[#allocation21 + $0x98] sm:$0xf0] }
 0x773   : > { %v7922_v18 = vpop.f32.mrf.mxu3  ;;  %8252 = vmatpush.bf16.msra.mxu0 %v13903_v48 }
 0x774   : > { %v7923_v23 = vadd.f32 %v7922_v18, %v7909_v61  ;;  %v13954_v61 = vld [vmem:[#allocation21 + $0x1c0] sm:$0xf]  ;;  %v15868_v18 = vld [vmem:[#allocation21 + $0x1c4] sm:$0xf0] }
 0x775   : > { %7946 = vmatpush.bf16.msrb.mxu1 %v13799_v0  ;;  %v7937_v55 = vpop.f32.mrf.mxu0  ;;  %v13967_v0 = vor.u32 %v15869_v17, %v13964_v12  ;;  %v13866_v17 = vld [vmem:[#allocation21 + $0x110] sm:$0xf]  ;;  %v15846_v12 = vld [vmem:[#allocation21 + $0x114] sm:$0xf0] }
 0x776   : > { %v7952_v16 = vadd.f32 %v7923_v23, %v7668_v21  ;;  %v15867_v21 = vld [vmem:[#allocation21 + $0x1c4] sm:$0xf]  ;;  %v13895_v23 = vor.u32 %v15851_v24, %v13892_v45  ;;  %v13891_v55 = vor.u32 %v15852_v13, %v13890_v49  ;;  %v13867_v48 = vor.u32 %v15846_v12, %v13866_v17  ;;  %v14090_v17 = vld [vmem:[#allocation21 + $0xd0] sm:$0xf]  ;;  %v15838_v12 = vld [vmem:[#allocation21 + $0xd4] sm:$0xf0] }
 0x777   : > { %v15859_v24 = vld [vmem:[#allocation21 + $0x184] sm:$0xf] }
 0x778   : > { %7947 = vmatmul.bf16.vlgmr.msrb.gmra.mxu1 %v7737_v5  ;;  %v7956_v5 = vperm.slane %v17751_v51, 0  ;;  %8253 = vmatpush.bf16.msra.mxu0 %v13895_v23  ;;  %v15825_v23 = vld [vmem:[#allocation21 + $0x74] sm:$0xf] }
 0x779   : > { %8263 = vmatpush.bf16.msra.mxu1 %v13983_v46  ;;  %8227 = vmatpush.bf16.msra.mxu2 %v13891_v55  ;;  %v13947_v46 = vor.u32 %v15866_v10, %v13946_v31  ;;  %v14044_v55 = vld [vmem:[#allocation21 + $0x78] sm:$0xf0]  ;;  %v15842_v10 = vld [vmem:[#allocation21 + $0xf4] sm:$0xf0] }
 0x77a   : > { %v7960_v27 = vadd.f32 %v7956_v5, %v7952_v16  ;;  %v7911_v54 = vpop.f32.mrf.mxu2  ;;  %v13959_v5 = vor.u32 %v15867_v21, %v13956_v25  ;;  %v13884_v16 = vld [vmem:[#allocation21 + $0x138] sm:$0xf0]  ;;  %v13924_v21 = vld [vmem:[#allocation21 + $0x188] sm:$0xf0]  ;;  %v15844_v25 = vld [vmem:[#allocation21 + $0x104] sm:$0xf0] }
 0x77b   : > { %v7924_v47 = vpop.f32.mrf.mxu3  ;;  %v13955_v54 = vor.u32 %v15868_v18, %v13954_v61  ;;  %v13927_v49 = vor.u32 %v15859_v24, %v13924_v21  ;;  %v13859_v13 = vor.u32 %v15844_v25, %v13858_v3  ;;  %v13922_v61 = vld [vmem:[#allocation21 + $0x180] sm:$0xf]  ;;  %v15860_v18 = vld [vmem:[#allocation21 + $0x184] sm:$0xf0]  ;;  %v7110_v21 = vperm.slane %v17746_v8, 1 }
 0x77c   : > { %v17755_v42 = vadd.f32 %v7960_v27, %v7137_v30  ;;  %v15849_v30 = vld [vmem:[#allocation21 + $0x134] sm:$0xf]  ;;  %v13948_v47 = vld [vmem:[#allocation21 + $0x1b8] sm:$0xf0]  ;;  %v15820_v24 = vld [vmem:[#allocation21 + $0x44] sm:$0xf0] }
 0x77d   : > { %8264 = vmatpush.bf16.msra.mxu1 %v13975_v2  ;;  %v15865_v27 = vld [vmem:[#allocation21 + $0x1b4] sm:$0xf]  ;;  %v13887_v40 = vor.u32 %v15849_v30, %v13884_v16  ;;  %8240 = vmatpush.bf16.msra.mxu3 %v13955_v54  ;;  %v13875_v2 = vor.u32 %v15848_v43, %v13874_v33  ;;  %v14108_v16 = vld [vmem:[#allocation21 + $0xf8] sm:$0xf0]  ;;  %v15840_v33 = vld [vmem:[#allocation21 + $0xe4] sm:$0xf0] }
 0x77e   : > { %v13951_v15 = vor.u32 %v15865_v27, %v13948_v47  ;;  %8228 = vmatpush.bf16.msra.mxu2 %v13883_v29  ;;  %v15841_v30 = vld [vmem:[#allocation21 + $0xf4] sm:$0xf]  ;;  %v14047_v27 = vor.u32 %v15825_v23, %v14044_v55  ;;  %v14042_v47 = vld [vmem:[#allocation21 + $0x70] sm:$0xf]  ;;  %v14107_v29 = vor.u32 %v15842_v10, %v14106_v37  ;;  %v7957_v25 = vperm.slane %v17751_v51, 1 }
 0x77f   : > { %8254 = vmatpush.bf16.msra.mxu0 %v13887_v40  ;;  %v14111_v54 = vor.u32 %v15841_v30, %v14108_v16  ;;  %v14043_v31 = vor.u32 %v15826_v39, %v14042_v47  ;;  %v15823_v40 = vld [vmem:[#allocation21 + $0x64] sm:$0xf]  ;;  %v14012_v55 = vld [vmem:[#allocation21 + $0x38] sm:$0xf0]  ;;  %v14010_v8 = vld [vmem:[#allocation21 + $0x30] sm:$0xf] }
 0x780   : > { %v14076_v30 = vld [vmem:[#allocation21 + $0xb8] sm:$0xf0]  ;;  %v14074_v51 = vld [vmem:[#allocation21 + $0xb0] sm:$0xf]  ;;  %v15834_v47 = vld [vmem:[#allocation21 + $0xb4] sm:$0xf0] }
 0x781   : > { %8265 = vmatpush.bf16.msra.mxu1 %v13967_v0  ;;  %8241 = vmatpush.bf16.msra.mxu3 %v13947_v46  ;;  %v15843_v0 = vld [vmem:[#allocation21 + $0x104] sm:$0xf] }
 0x782   : > { %8229 = vmatpush.bf16.msra.mxu2 %v13875_v2  ;;  %v13863_v45 = vor.u32 %v15843_v0, %v13860_v14  ;;  %v15821_v2 = vld [vmem:[#allocation21 + $0x54] sm:$0xf]  ;;  %v14091_v0 = vor.u32 %v15838_v12, %v14090_v17  ;;  %v14018_v14 = vld [vmem:[#allocation21 + $0x40] sm:$0xf]  ;;  %v14058_v17 = vld [vmem:[#allocation21 + $0x90] sm:$0xf] }
 0x783   : > { %8255 = vmatpush.bf16.msra.mxu0 %v13879_v34  ;;  %v15824_v34 = vld [vmem:[#allocation21 + $0x64] sm:$0xf0]  ;;  %v15830_v12 = vld [vmem:[#allocation21 + $0x94] sm:$0xf0] }
 0x784   : > { %v14035_v43 = vor.u32 %v15824_v34, %v14034_v20  ;;  %v15832_v34 = vld [vmem:[#allocation21 + $0xa4] sm:$0xf0] }
 0x785   : > { %8266 = vmatpush.bf16.msra.mxu1 %v13959_v5  ;;  %8242 = vmatpush.bf16.msra.mxu3 %v13939_v1  ;;  %v13923_v5 = vor.u32 %v15860_v18, %v13922_v61  ;;  %v15817_v61 = vld [vmem:[#allocation21 + $0x34] sm:$0xf] }
 0x786   : > { %8230 = vmatpush.bf16.msra.mxu2 %v13867_v48  ;;  %v14027_v48 = vor.u32 %v15822_v7, %v14026_v32  ;;  %v14015_v39 = vor.u32 %v15817_v61, %v14012_v55  ;;  %v13994_v7 = vld [vmem:[#allocation21 + $0x10] sm:$0xf] }
 0x787   : > { %8256 = vmatpush.bf16.msra.mxu0 %v13871_v53  ;;  %v14031_v53 = vor.u32 %v15821_v2, %v14028_v50  ;;  %v7964_v2 = vmax.f32 %v17755_v42, 0.0 }
 0x789   : > { %8267 = vmatpush.bf16.msra.mxu1 %v13951_v15  ;;  %8243 = vmatpush.bf16.msra.mxu3 %v13931_v9  ;;  %v14036_v15 = vld [vmem:[#allocation21 + $0x68] sm:$0xf0] }
 0x78a   : > { %8231 = vmatpush.bf16.msra.mxu2 %v13859_v13  ;;  %v14039_v46 = vor.u32 %v15823_v40, %v14036_v15  ;;  %v14084_v9 = vld [vmem:[#allocation21 + $0xc8] sm:$0xf0]  ;;  %v15831_v15 = vld [vmem:[#allocation21 + $0xa4] sm:$0xf] }
 0x78b   : > { %8257 = vmatpush.bf16.msra.mxu0 %v13863_v45  ;;  %v15836_v45 = vld [vmem:[#allocation21 + $0xc4] sm:$0xf0]  ;;  %v14087_v13 = vor.u32 %v15835_v6, %v14084_v9  ;;  %v14004_v40 = vld [vmem:[#allocation21 + $0x28] sm:$0xf0] }
 0x78c   : > { %v13988_v6 = vld [vmem:[#allocation21 + $0x8] sm:$0xf0] }
 0x78d   : > { %8268 = vmatpush.bf16.msra.mxu1 %v13943_v57  ;;  %8244 = vmatpush.bf16.msra.mxu3 %v13923_v5  ;;  %v14099_v57 = vor.u32 %v15840_v33, %v14098_v58  ;;  %v14019_v5 = vor.u32 %v15820_v24, %v14018_v14  ;;  %v14052_v14 = vld [vmem:[#allocation21 + $0x88] sm:$0xf0]  ;;  %v14059_v24 = vor.u32 %v15830_v12, %v14058_v17  ;;  %v15901_v17 = vld [vmem:[#allocation21 + $0x2d4] sm:$0xf]  ;;  %v14220_v12 = vld [vmem:[#allocation21 + $0x2d8] sm:$0xf0] }
 0x78e   : > { %8438 = vmatpush.bf16.msrb.mxu2 %v14043_v31  ;;  %v15815_v31 = vld [vmem:[#allocation21 + $0x24] sm:$0xf] }
 0x78f   : > { %8464 = vmatpush.bf16.msrb.mxu0 %v14047_v27  ;;  %v15818_v27 = vld [vmem:[#allocation21 + $0x34] sm:$0xf0]  ;;  %v14007_v33 = vor.u32 %v15815_v31, %v14004_v40 }
 0x790   : > { %v14011_v10 = vor.u32 %v15818_v27, %v14010_v8  ;;  %v15890_v31 = vld [vmem:[#allocation21 + $0x274] sm:$0xf0] }
 0x791   : > { %8269 = vmatpush.bf16.msra.mxu1 %v13935_v28  ;;  %8451 = vmatpush.bf16.msrb.mxu3 %v14107_v29  ;;  %v15819_v28 = vld [vmem:[#allocation21 + $0x44] sm:$0xf]  ;;  %v14068_v29 = vld [vmem:[#allocation21 + $0xa8] sm:$0xf0] }
 0x792   : > { %8439 = vmatpush.bf16.msrb.mxu2 %v14035_v43  ;;  %v14071_v43 = vor.u32 %v15831_v15, %v14068_v29  ;;  %v15906_v29 = vld [vmem:[#allocation21 + $0x2f4] sm:$0xf0] }
 0x793   : > { %8465 = vmatpush.bf16.msrb.mxu0 %v14039_v46  ;;  %v14075_v46 = vor.u32 %v15834_v47, %v14074_v51  ;;  %v14172_v51 = vld [vmem:[#allocation21 + $0x278] sm:$0xf0]  ;;  %v15905_v47 = vld [vmem:[#allocation21 + $0x2f4] sm:$0xf] }
 0x795   : > { %v17757_v44 = vpop.f32.mrf.mxu1  ;;  %8270 = vmatpush.bf16.msra.mxu1 %v13927_v49  ;;  %8452 = vmatpush.bf16.msrb.mxu3 %v14099_v57  ;;  %v14023_v49 = vor.u32 %v15819_v28, %v14020_v4  ;;  %v15813_v57 = vld [vmem:[#allocation21 + $0x14] sm:$0xf]  ;;  %v15811_v4 = vld [vmem:[#allocation21 + $0x4] sm:$0xf] }
 0x796   : > { %8440 = vmatpush.bf16.msrb.mxu2 %v14027_v48 }
 0x797   : > { %8466 = vmatpush.bf16.msrb.mxu0 %v14031_v53  ;;  %v15814_v53 = vld [vmem:[#allocation21 + $0x14] sm:$0xf0] }
 0x798   : > { %v13995_v42 = vor.u32 %v15814_v53, %v13994_v7  ;;  %v14156_v7 = vld [vmem:[#allocation21 + $0x258] sm:$0xf0] }
 0x799   : > { %8477 = vmatpush.bf16.msrb.mxu1 %v14111_v54  ;;  %8453 = vmatpush.bf16.msrb.mxu3 %v14091_v0  ;;  %v15827_v0 = vld [vmem:[#allocation21 + $0x84] sm:$0xf] }
 0x79a   : > { %8441 = vmatpush.bf16.msrb.mxu2 %v14019_v5  ;;  %v16261_v5 = vld [vmem:[#allocation5] sm:$0x77] }
 0x79b   : > { %8467 = vmatpush.bf16.msrb.mxu0 %v14023_v49  ;;  %v13991_v49 = vor.u32 %v15811_v4, %v13988_v6  ;;  %v14218_v4 = vld [vmem:[#allocation21 + $0x2d0] sm:$0xf]  ;;  %v15902_v6 = vld [vmem:[#allocation21 + $0x2d4] sm:$0xf0] }
 0x79e   : > { %8442 = vmatpush.bf16.msrb.mxu2 %v14011_v10 }
 0x79f   : > { %8468 = vmatpush.bf16.msrb.mxu0 %v14015_v39  ;;  %v14236_v39 = vld [vmem:[#allocation21 + $0x2f8] sm:$0xf0] }
 0x7a3   : > { %8469 = vmatpush.bf16.msrb.mxu0 %v14007_v33 }
 0x7b5   : > { %v17759_v56 = vpop.f32.mrf.mxu1 }
 0x7b6   : > { %v7475_v1 = vadd.f32 %v17759_v56, %v17735_v38  ;;  %v14082_v56 = vld [vmem:[#allocation21 + $0xc0] sm:$0xf] }
 0x7b7   : > { %v14083_v16 = vor.u32 %v15836_v45, %v14082_v56  ;;  %v15812_v56 = vld [vmem:[#allocation21 + $0x4] sm:$0xf0] }
 0x7b8   : > { %v7681_v38 = vadd.f32 %v17737_v22, %v7475_v1  ;;  %v15833_v22 = vld [vmem:[#allocation21 + $0xb4] sm:$0xf] }
 0x7b9   : > { %v14079_v37 = vor.u32 %v15833_v22, %v14076_v30  ;;  %8454 = vmatpush.bf16.msrb.mxu3 %v14083_v16  ;;  %v15829_v1 = vld [vmem:[#allocation21 + $0x94] sm:$0xf] }
 0x7ba   : > { %v14063_v48 = vor.u32 %v15829_v1, %v14060_v19 }
 0x7bd   : > { %v7476_v36 = vpop.f32.mrf.mxu1  ;;  %8455 = vmatpush.bf16.msrb.mxu3 %v14075_v46 }
 0x7d5   : > { %v17761_v26 = vpop.f32.mrf.mxu1 }
 0x7d6   : > { %v7694_v18 = vadd.f32 %v17761_v26, %v7681_v38  ;;  %v7157_v26 = vadd.f32 %v17757_v44, %v7110_v21  ;;  %v13996_v44 = vld [vmem:[#allocation21 + $0x18] sm:$0xf0]  ;;  %v13986_v38 = vld [vmem:[#allocation21] sm:$0xf] }
 0x7d7   : > { %v13999_v28 = vor.u32 %v15813_v57, %v13996_v44  ;;  %v14228_v57 = vld [vmem:[#allocation21 + $0x2e8] sm:$0xf0]  ;;  %v14162_v44 = vld [vmem:[#allocation21 + $0x260] sm:$0xf] }
 0x7d9   : > { %8470 = vmatpush.bf16.msrb.mxu0 %v13999_v28  ;;  %v14154_v28 = vld [vmem:[#allocation21 + $0x250] sm:$0xf] }
 0x7dd   : > { %v7695_v36 = vpop.f32.mrf.mxu1  ;;  %8471 = vmatpush.bf16.msrb.mxu0 %v13991_v49  ;;  %v15900_v49 = vld [vmem:[#allocation21 + $0x2c4] sm:$0xf0] }
 0x7de   : > { %v14103_v36 = vor.u32 %v15839_v62, %v14100_v60  ;;  %v14002_v62 = vld [vmem:[#allocation21 + $0x20] sm:$0xf]  ;;  %v15816_v60 = vld [vmem:[#allocation21 + $0x24] sm:$0xf0] }
 0x7df   : > { %v14003_v35 = vor.u32 %v15816_v60, %v14002_v62 }
 0x7e0   : > { %8478 = vmatpush.bf16.msrb.mxu1 %v14103_v36  ;;  %v14066_v36 = vld [vmem:[#allocation21 + $0xa0] sm:$0xf] }
 0x7e1   : > { %v14067_v32 = vor.u32 %v15832_v34, %v14066_v36  ;;  %8443 = vmatpush.bf16.msrb.mxu2 %v14003_v35  ;;  %v15887_v36 = vld [vmem:[#allocation21 + $0x264] sm:$0xf]  ;;  %v14164_v34 = vld [vmem:[#allocation21 + $0x268] sm:$0xf0]  ;;  %v15904_v35 = vld [vmem:[#allocation21 + $0x2e4] sm:$0xf0] }
 0x7e2   : > { %v14167_v1 = vor.u32 %v15887_v36, %v14164_v34  ;;  %v15877_v34 = vld [vmem:[#allocation21 + $0x214] sm:$0xf] }
 0x7e3   : > { %8456 = vmatpush.bf16.msrb.mxu3 %v14067_v32  ;;  %v15885_v32 = vld [vmem:[#allocation21 + $0x254] sm:$0xf] }
 0x7e4   : > { %8479 = vmatpush.bf16.msrb.mxu1 %v14095_v63 }
 0x7e5   : > { %8444 = vmatpush.bf16.msrb.mxu2 %v13995_v42  ;;  %v14223_v42 = vor.u32 %v15901_v17, %v14220_v12  ;;  %v15891_v17 = vld [vmem:[#allocation21 + $0x284] sm:$0xf] }
 0x7e7   : > { %8457 = vmatpush.bf16.msrb.mxu3 %v14059_v24 }
 0x7e8   : > { %8480 = vmatpush.bf16.msrb.mxu1 %v14087_v13  ;;  %v14055_v13 = vor.u32 %v15827_v0, %v14052_v14  ;;  %v15883_v0 = vld [vmem:[#allocation21 + $0x244] sm:$0xf]  ;;  %v14148_v14 = vld [vmem:[#allocation21 + $0x248] sm:$0xf0] }
 0x7ec   : > { %8481 = vmatpush.bf16.msrb.mxu1 %v14079_v37  ;;  %v14170_v37 = vld [vmem:[#allocation21 + $0x270] sm:$0xf] }
 0x7f0   : > { %8482 = vmatpush.bf16.msrb.mxu1 %v14071_v43  ;;  %v15903_v43 = vld [vmem:[#allocation21 + $0x2e4] sm:$0xf] }
 0x7f1   : > { %v14231_v19 = vor.u32 %v15903_v43, %v14228_v57 }
 0x7f4   : > { %8483 = vmatpush.bf16.msrb.mxu1 %v14063_v48  ;;  %v15886_v48 = vld [vmem:[#allocation21 + $0x254] sm:$0xf0] }
 0x7f5   : > { %v7948_v3 = vpop.f32.mrf.mxu1  ;;  %v14155_v24 = vor.u32 %v15886_v48, %v14154_v28 }
 0x7f6   : > { %v7949_v23 = vadd.f32 %v7948_v3, %v17741_v11  ;;  %v14050_v3 = vld [vmem:[#allocation21 + $0x80] sm:$0xf] }
 0x7f8   : > { %v7953_v54 = vadd.f32 %v7949_v23, %v7694_v18  ;;  %v13987_v18 = vor.u32 %v15812_v56, %v13986_v38  ;;  %8484 = vmatpush.bf16.msrb.mxu1 %v14055_v13  ;;  %v14219_v38 = vor.u32 %v15902_v6, %v14218_v4  ;;  %v15899_v56 = vld [vmem:[#allocation21 + $0x2c4] sm:$0xf]  ;;  %v14151_v13 = vor.u32 %v15883_v0, %v14148_v14  ;;  %v14180_v4 = vld [vmem:[#allocation21 + $0x288] sm:$0xf0]  ;;  %v14114_v6 = vld [vmem:[#allocation21 + $0x200] sm:$0xf] }
 0x7f9   : > { %v14178_v0 = vld [vmem:[#allocation21 + $0x280] sm:$0xf]  ;;  %v15892_v14 = vld [vmem:[#allocation21 + $0x284] sm:$0xf0] }
 0x7fa   : > { %v7961_v11 = vadd.f32 %v7957_v25, %v7953_v54  ;;  %v15828_v25 = vld [vmem:[#allocation21 + $0x84] sm:$0xf0]  ;;  %8445 = vmatpush.bf16.msrb.mxu2 %v13987_v18  ;;  %v15889_v54 = vld [vmem:[#allocation21 + $0x274] sm:$0xf] }
 0x7fb   : > { %v14051_v23 = vor.u32 %v15828_v25, %v14050_v3  ;;  %v14175_v60 = vor.u32 %v15889_v54, %v14172_v51  ;;  %v15884_v3 = vld [vmem:[#allocation21 + $0x244] sm:$0xf0]  ;;  %v14210_v25 = vld [vmem:[#allocation21 + $0x2c0] sm:$0xf]  ;;  %v15881_v18 = vld [vmem:[#allocation21 + $0x234] sm:$0xf] }
 0x7fc   : > { %v7963_v20 = vadd.f32 %v7961_v11, %v7157_v26  ;;  %v14234_v26 = vld [vmem:[#allocation21 + $0x2f0] sm:$0xf]  ;;  %v15882_v54 = vld [vmem:[#allocation21 + $0x234] sm:$0xf0] }
 0x7fd   : > { %v7950_v58 = vpop.f32.mrf.mxu1  ;;  %8458 = vmatpush.bf16.msrb.mxu3 %v14051_v23  ;;  %v14235_v33 = vor.u32 %v15906_v29, %v14234_v26  ;;  %v14140_v23 = vld [vmem:[#allocation21 + $0x238] sm:$0xf0]  ;;  %v14202_v51 = vld [vmem:[#allocation21 + $0x2b0] sm:$0xf]  ;;  %v14194_v29 = vld [vmem:[#allocation21 + $0x2a0] sm:$0xf] }
 0x7fe   : > { %v7965_v50 = vmax.f32 %v7963_v20, 0.0  ;;  %v14239_v20 = vor.u32 %v15905_v47, %v14236_v39  ;;  %v14171_v58 = vor.u32 %v15890_v31, %v14170_v37  ;;  %v15879_v39 = vld [vmem:[#allocation21 + $0x224] sm:$0xf]  ;;  %v14132_v37 = vld [vmem:[#allocation21 + $0x228] sm:$0xf0] }
 0x800   : > { %v7966_v63 = vpack.c.bf16 %v7965_v50, %v7964_v2  ;;  %v15888_v2 = vld [vmem:[#allocation21 + $0x264] sm:$0xf0]  ;;  %v14226_v50 = vld [vmem:[#allocation21 + $0x2e0] sm:$0xf] }
 0x801   : > { %v14163_v53 = vor.u32 %v15888_v2, %v14162_v44  ;;  %v15893_v44 = vld [vmem:[#allocation21 + $0x294] sm:$0xf]  ;;  %v14188_v2 = vld [vmem:[#allocation21 + $0x298] sm:$0xf0] }
 0x802   : > { %v7968_v9 = vshrl.u32 %v7966_v63, 16  ;;  %v7971_v21 = vshll.u32 %v7966_v63, 16  ;;  %v14227_v63 = vor.u32 %v15904_v35, %v14226_v50  ;;  %v14122_v50 = vld [vmem:[#allocation21 + $0x210] sm:$0xf]  ;;  %v15878_v35 = vld [vmem:[#allocation21 + $0x214] sm:$0xf0] }
 0x803   : > { %v14123_v28 = vor.u32 %v15878_v35, %v14122_v50  ;;  %v15960_v50 = vld [vmem:[#allocation22 + $0x1a4] sm:$0xf0] }
 0x804   : > { %v7970_v45 = vrot.slane %v7968_v9, 7  ;;  %v14159_v9 = vor.u32 %v15885_v32, %v14156_v7  ;;  %v14191_v7 = vor.u32 %v15893_v44, %v14188_v2  ;;  %v15944_v44 = vld [vmem:[#allocation22 + $0x124] sm:$0xf0]  ;;  %v14326_v2 = vld [vmem:[#allocation22 + $0x1a0] sm:$0xf] }
 0x806   : > { %v7973_v61 = vor.u32 %v7971_v21, %v7970_v45  ;;  %v14212_v45 = vld [vmem:[#allocation21 + $0x2c8] sm:$0xf0]  ;;  %v14146_v21 = vld [vmem:[#allocation21 + $0x240] sm:$0xf] }
 0x808   : > { %v7975_v55 = vsel %vm7174_vm1, %v7973_v61, %v16261_v5  ;;  %v14215_v61 = vor.u32 %v15899_v56, %v14212_v45  ;;  %v14147_v5 = vor.u32 %v15884_v3, %v14146_v21  ;;  %v14366_v56 = vld [vmem:[#allocation22 + $0x1f0] sm:$0xf]  ;;  %v15970_v45 = vld [vmem:[#allocation22 + $0x1f4] sm:$0xf0]  ;;  %v14183_v3 = vor.u32 %v15891_v17, %v14180_v4  ;;  %v15956_v4 = vld [vmem:[#allocation22 + $0x184] sm:$0xf0] }
 0x809   : > { %7976 = vst [vmem:[#allocation5] sm:$0x77] %v7975_v55  ;;  %v14211_v55 = vor.u32 %v15900_v49, %v14210_v25 }
 0x810   : > { %v7977_v22 = vld [vmem:[#allocation5] sm:$0x33] }
 0x811   : > { %v8044_v30 = vunpack.c.l.b16 %v7977_v22  ;;  %v8045_v16 = vunpack.c.h.b16 %v7977_v22  ;;  %v15897_v22 = vld [vmem:[#allocation21 + $0x2b4] sm:$0xf] }
 0x813   : > { %v17777_v8 = vpack.c.b16 %v8044_v30, %v8044_v30  ;;  %v17779_v27 = vpack.c.b16 %v8045_v16, %v8045_v16  ;;  %v14204_v30 = vld [vmem:[#allocation21 + $0x2b8] sm:$0xf0]  ;;  %v14138_v16 = vld [vmem:[#allocation21 + $0x230] sm:$0xf] }
 0x814   : > { %v14207_v47 = vor.u32 %v15897_v22, %v14204_v30  ;;  %v14139_v31 = vor.u32 %v15882_v54, %v14138_v16  ;;  %v14358_v22 = vld [vmem:[#allocation22 + $0x1e0] sm:$0xf]  ;;  %v15968_v30 = vld [vmem:[#allocation22 + $0x1e4] sm:$0xf0] }
 0x815   : > { %v8051_v59 = vshll.u32 %v17777_v8, 16  ;;  %v8058_v41 = vshll.u32 %v17779_v27, 16  ;;  %v8049_v11 = vshrl.u32 %v17777_v8, 16  ;;  %v8056_v40 = vshrl.u32 %v17779_v27, 16 }
 0x817   : > { %v8053_v10 = vrot.slane %v8051_v59, 1  ;;  %v8060_v15 = vrot.slane %v8058_v41, 1  ;;  %v15898_v59 = vld [vmem:[#allocation21 + $0x2b4] sm:$0xf0]  ;;  %v14143_v41 = vor.u32 %v15881_v18, %v14140_v23  ;;  %v14367_v23 = vor.u32 %v15970_v45, %v14366_v56  ;;  %v14422_v45 = vld [vmem:[#allocation22 + $0x60] sm:$0xf] }
 0x818   : > { %v14203_v26 = vor.u32 %v15898_v59, %v14202_v51  ;;  %v14359_v59 = vor.u32 %v15968_v30, %v14358_v22  ;;  %v14406_v30 = vld [vmem:[#allocation22 + $0x40] sm:$0xf] }
 0x819   : > { %v17785_v46 = vor.u32 %v8053_v10, %v8049_v11  ;;  %v17787_v62 = vor.u32 %v8060_v15, %v8056_v40  ;;  %v15895_v11 = vld [vmem:[#allocation21 + $0x2a4] sm:$0xf]  ;;  %v14196_v10 = vld [vmem:[#allocation21 + $0x2a8] sm:$0xf0]  ;;  %v14130_v40 = vld [vmem:[#allocation21 + $0x220] sm:$0xf] }
 0x81a   : > { %v15880_v15 = vld [vmem:[#allocation21 + $0x224] sm:$0xf0]  ;;  %v14199_v36 = vor.u32 %v15895_v11, %v14196_v10  ;;  %v14278_v11 = vld [vmem:[#allocation22 + $0x140] sm:$0xf] }
 0x81b   : > { %8232 = vmatmul.bf16.vlgmr.msra.gmra.mxu2 %v17785_v46  ;;  %8245 = vmatmul.bf16.vlgmr.msra.gmra.mxu3 %v17787_v62  ;;  %v14131_v43 = vor.u32 %v15880_v15, %v14130_v40  ;;  %v15948_v10 = vld [vmem:[#allocation22 + $0x144] sm:$0xf0]  ;;  %v14342_v40 = vld [vmem:[#allocation22 + $0x1c0] sm:$0xf] }
 0x81c   : > { %8258 = vmatmul.bf16.vlgmr.msra.gmra.mxu0 %v17785_v46  ;;  %8271 = vmatmul.bf16.vlgmr.msra.gmra.mxu1 %v17787_v62  ;;  %v15964_v15 = vld [vmem:[#allocation22 + $0x1c4] sm:$0xf0] }
 0x81d   : > { %8719 = vmatpush.bf16.msra.mxu0 %v14175_v60  ;;  %8732 = vmatpush.bf16.msra.mxu1 %v14239_v20  ;;  %v15896_v60 = vld [vmem:[#allocation21 + $0x2a4] sm:$0xf0]  ;;  %v14135_v20 = vor.u32 %v15879_v39, %v14132_v37  ;;  %v14350_v39 = vld [vmem:[#allocation22 + $0x1d0] sm:$0xf]  ;;  %v15966_v37 = vld [vmem:[#allocation22 + $0x1d4] sm:$0xf0] }
 0x81e   : > { %8693 = vmatpush.bf16.msra.mxu2 %v14171_v58  ;;  %8706 = vmatpush.bf16.msra.mxu3 %v14235_v33  ;;  %v14124_v58 = vld [vmem:[#allocation21 + $0x218] sm:$0xf0]  ;;  %v8490_v33 = vld [vmem:[#allocation5] sm:$0x66]  ;;  %v14195_v57 = vor.u32 %v15896_v60, %v14194_v29  ;;  %v14279_v29 = vor.u32 %v15948_v10, %v14278_v11  ;;  %v14343_v60 = vor.u32 %v15964_v15, %v14342_v40  ;;  %v14390_v15 = vld [vmem:[#allocation22 + $0x20] sm:$0xf] }
 0x81f   : > { %v14127_v32 = vor.u32 %v15877_v34, %v14124_v58  ;;  %v8525_v12 = vunpack.c.l.b16 %v8490_v33  ;;  %v14334_v34 = vld [vmem:[#allocation22 + $0x1b0] sm:$0xf]  ;;  %v15962_v58 = vld [vmem:[#allocation22 + $0x1b4] sm:$0xf0] }
 0x820   : > { %v15930_v11 = vld [vmem:[#allocation22 + $0xb4] sm:$0xf0] }
 0x821   : > { %8720 = vmatpush.bf16.msra.mxu0 %v14167_v1  ;;  %8733 = vmatpush.bf16.msra.mxu1 %v14231_v19  ;;  %v14186_v1 = vld [vmem:[#allocation21 + $0x290] sm:$0xf]  ;;  %v15894_v19 = vld [vmem:[#allocation21 + $0x294] sm:$0xf0]  ;;  %v8527_v25 = vpack.c.b16 %v8525_v12, %v8525_v12  ;;  %v14246_v12 = vld [vmem:[#allocation22 + $0x100] sm:$0xf] }
 0x822   : > { %8694 = vmatpush.bf16.msra.mxu2 %v14163_v53  ;;  %8707 = vmatpush.bf16.msra.mxu3 %v14227_v63  ;;  %v15875_v53 = vld [vmem:[#allocation21 + $0x204] sm:$0xf]  ;;  %v14116_v63 = vld [vmem:[#allocation21 + $0x208] sm:$0xf0]  ;;  %v14187_v48 = vor.u32 %v15894_v19, %v14186_v1  ;;  %v14327_v1 = vor.u32 %v15960_v50, %v14326_v2  ;;  %v14254_v19 = vld [vmem:[#allocation22 + $0x110] sm:$0xf] }
 0x823   : > { %v14119_v21 = vor.u32 %v15875_v53, %v14116_v63  ;;  %v17797_v16 = vrot.slane %v8527_v25, 1  ;;  %v15958_v53 = vld [vmem:[#allocation22 + $0x194] sm:$0xf0]  ;;  %v15936_v25 = vld [vmem:[#allocation22 + $0xe4] sm:$0xf0] }
 0x824   : > { %v14374_v50 = vld [vmem:[#allocation22] sm:$0xf] }
 0x825   : > { %8721 = vmatpush.bf16.msra.mxu0 %v14159_v9  ;;  %8734 = vmatpush.bf16.msra.mxu1 %v14223_v42  ;;  %v15876_v9 = vld [vmem:[#allocation21 + $0x204] sm:$0xf0]  ;;  %v8526_v42 = vunpack.c.h.b16 %v8490_v33 }
 0x826   : > { %8695 = vmatpush.bf16.msra.mxu2 %v14155_v24  ;;  %8708 = vmatpush.bf16.msra.mxu3 %v14219_v38  ;;  %v14302_v24 = vld [vmem:[#allocation22 + $0x170] sm:$0xf]  ;;  %v15954_v38 = vld [vmem:[#allocation22 + $0x174] sm:$0xf0]  ;;  %v14115_v49 = vor.u32 %v15876_v9, %v14114_v6 }
 0x827   : > { %v14303_v18 = vor.u32 %v15954_v38, %v14302_v24  ;;  %v14430_v6 = vld [vmem:[#allocation22 + $0x70] sm:$0xf]  ;;  %v15922_v9 = vld [vmem:[#allocation22 + $0x74] sm:$0xf0] }
 0x828   : > { %v14431_v38 = vor.u32 %v15922_v9, %v14430_v6  ;;  %v15984_v6 = vld [vmem:[#allocation22 + $0x264] sm:$0xf0]  ;;  %v14614_v9 = vld [vmem:[#allocation22 + $0x2e0] sm:$0xf] }
 0x829   : > { %8722 = vmatpush.bf16.msra.mxu0 %v14151_v13  ;;  %8735 = vmatpush.bf16.msra.mxu1 %v14215_v61  ;;  %v14179_v13 = vor.u32 %v15892_v14, %v14178_v0  ;;  %v8528_v61 = vpack.c.b16 %v8526_v42, %v8526_v42  ;;  %v14494_v42 = vld [vmem:[#allocation22 + $0xf0] sm:$0xf]  ;;  %v15938_v0 = vld [vmem:[#allocation22 + $0xf4] sm:$0xf0] }
 0x82a   : > { %8696 = vmatpush.bf16.msra.mxu2 %v14147_v5  ;;  %8709 = vmatpush.bf16.msra.mxu3 %v14211_v55  ;;  %v14294_v5 = vld [vmem:[#allocation22 + $0x160] sm:$0xf]  ;;  %v15952_v55 = vld [vmem:[#allocation22 + $0x164] sm:$0xf0]  ;;  %v14495_v56 = vor.u32 %v15938_v0, %v14494_v42 }
 0x82b   : > { %8446 = vmatmul.bf16.vlgmr.msrb.gmra.mxu2 %v17777_v8  ;;  %8459 = vmatmul.bf16.vlgmr.msrb.gmra.mxu3 %v17779_v27  ;;  %v17799_v54 = vrot.slane %v8528_v61, 1  ;;  %v14295_v51 = vor.u32 %v15952_v55, %v14294_v5  ;;  %v14414_v61 = vld [vmem:[#allocation22 + $0x50] sm:$0xf]  ;;  %v15934_v5 = vld [vmem:[#allocation22 + $0xd4] sm:$0xf0] }
 0x82c   : > { %8472 = vmatmul.bf16.vlgmr.msrb.gmra.mxu0 %v17777_v8  ;;  %8485 = vmatmul.bf16.vlgmr.msrb.gmra.mxu1 %v17779_v27  ;;  %v16000_v42 = vld [vmem:[#allocation22 + $0x2e4] sm:$0xf0] }
 0x82d   : > { %8723 = vmatpush.bf16.msra.mxu0 %v14143_v41  ;;  %8736 = vmatpush.bf16.msra.mxu1 %v14207_v47  ;;  %v14286_v41 = vld [vmem:[#allocation22 + $0x150] sm:$0xf]  ;;  %v15950_v47 = vld [vmem:[#allocation22 + $0x154] sm:$0xf0] }
 0x82e   : > { %8697 = vmatpush.bf16.msra.mxu2 %v14139_v31  ;;  %8710 = vmatpush.bf16.msra.mxu3 %v14203_v26  ;;  %v14287_v31 = vor.u32 %v15950_v47, %v14286_v41  ;;  %v14351_v26 = vor.u32 %v15966_v37, %v14350_v39  ;;  %v15932_v41 = vld [vmem:[#allocation22 + $0xc4] sm:$0xf0]  ;;  %v14398_v37 = vld [vmem:[#allocation22 + $0x30] sm:$0xf] }
 0x831   : > { %8724 = vmatpush.bf16.msra.mxu0 %v14135_v20  ;;  %8737 = vmatpush.bf16.msra.mxu1 %v14199_v36  ;;  %v14270_v20 = vld [vmem:[#allocation22 + $0x130] sm:$0xf]  ;;  %v15946_v36 = vld [vmem:[#allocation22 + $0x134] sm:$0xf0] }
 0x832   : > { %8698 = vmatpush.bf16.msra.mxu2 %v14131_v43  ;;  %8711 = vmatpush.bf16.msra.mxu3 %v14195_v57  ;;  %v14271_v33 = vor.u32 %v15946_v36, %v14270_v20  ;;  %v14335_v43 = vor.u32 %v15962_v58, %v14334_v34  ;;  %v14262_v57 = vld [vmem:[#allocation22 + $0x120] sm:$0xf]  ;;  %v15928_v20 = vld [vmem:[#allocation22 + $0xa4] sm:$0xf0]  ;;  %v14382_v58 = vld [vmem:[#allocation22 + $0x10] sm:$0xf] }
 0x833   : > { %v14263_v35 = vor.u32 %v15944_v44, %v14262_v57  ;;  %v15926_v57 = vld [vmem:[#allocation22 + $0x94] sm:$0xf0] }
 0x835   : > { %8725 = vmatpush.bf16.msra.mxu0 %v14127_v32  ;;  %8738 = vmatpush.bf16.msra.mxu1 %v14191_v7  ;;  %v15942_v32 = vld [vmem:[#allocation22 + $0x114] sm:$0xf0]  ;;  %v14318_v7 = vld [vmem:[#allocation22 + $0x190] sm:$0xf] }
 0x836   : > { %8699 = vmatpush.bf16.msra.mxu2 %v14123_v28  ;;  %8712 = vmatpush.bf16.msra.mxu3 %v14187_v48  ;;  %v14255_v63 = vor.u32 %v15942_v32, %v14254_v19  ;;  %v14319_v17 = vor.u32 %v15958_v53, %v14318_v7  ;;  %v15940_v28 = vld [vmem:[#allocation22 + $0x104] sm:$0xf0]  ;;  %v14310_v48 = vld [vmem:[#allocation22 + $0x180] sm:$0xf]  ;;  %v14558_v32 = vld [vmem:[#allocation22 + $0x270] sm:$0xf] }
 0x837   : > { %v14247_v14 = vor.u32 %v15940_v28, %v14246_v12  ;;  %v14311_v24 = vor.u32 %v15956_v4, %v14310_v48  ;;  %v15924_v19 = vld [vmem:[#allocation22 + $0x84] sm:$0xf0]  ;;  %v15986_v7 = vld [vmem:[#allocation22 + $0x274] sm:$0xf0]  ;;  %v14622_v53 = vld [vmem:[#allocation22 + $0x2f0] sm:$0xf] }
 0x838   : > { %v14559_v28 = vor.u32 %v15986_v7, %v14558_v32  ;;  %v14550_v4 = vld [vmem:[#allocation22 + $0x260] sm:$0xf] }
 0x839   : > { %8726 = vmatpush.bf16.msra.mxu0 %v14119_v21  ;;  %8739 = vmatpush.bf16.msra.mxu1 %v14183_v3  ;;  %v15920_v21 = vld [vmem:[#allocation22 + $0x64] sm:$0xf0]  ;;  %v14486_v3 = vld [vmem:[#allocation22 + $0xe0] sm:$0xf]  ;;  %v14551_v0 = vor.u32 %v15984_v6, %v14550_v4 }
 0x83a   : > { %8700 = vmatpush.bf16.msra.mxu2 %v14115_v49  ;;  %8713 = vmatpush.bf16.msra.mxu3 %v14179_v13  ;;  %v14423_v49 = vor.u32 %v15920_v21, %v14422_v45  ;;  %v14487_v13 = vor.u32 %v15936_v25, %v14486_v3  ;;  %v15998_v45 = vld [vmem:[#allocation22 + $0x2d4] sm:$0xf0]  ;;  %v14534_v25 = vld [vmem:[#allocation22 + $0x240] sm:$0xf] }
 0x83c   : > { %8727 = vmatmul.bf16.vlgmr.msra.gmra.mxu0 %v17797_v16  ;;  %8740 = vmatmul.bf16.vlgmr.msra.gmra.mxu1 %v17799_v54 }
 0x83d   : > { %9030 = vmatpush.bf16.msrb.mxu0 %v14303_v18  ;;  %9043 = vmatpush.bf16.msrb.mxu1 %v14367_v23  ;;  %v15918_v18 = vld [vmem:[#allocation22 + $0x54] sm:$0xf0]  ;;  %v14478_v23 = vld [vmem:[#allocation22 + $0xd0] sm:$0xf] }
 0x83e   : > { %8701 = vmatmul.bf16.vlgmr.msra.gmra.mxu2 %v17797_v16  ;;  %8714 = vmatmul.bf16.vlgmr.msra.gmra.mxu3 %v17799_v54  ;;  %v14415_v55 = vor.u32 %v15918_v18, %v14414_v61  ;;  %v14479_v22 = vor.u32 %v15934_v5, %v14478_v23  ;;  %v15996_v61 = vld [vmem:[#allocation22 + $0x2c4] sm:$0xf0]  ;;  %v14526_v5 = vld [vmem:[#allocation22 + $0x230] sm:$0xf] }
 0x841   : > { %9031 = vmatpush.bf16.msrb.mxu0 %v14295_v51  ;;  %9044 = vmatpush.bf16.msrb.mxu1 %v14359_v59  ;;  %v15916_v51 = vld [vmem:[#allocation22 + $0x44] sm:$0xf0]  ;;  %v14470_v59 = vld [vmem:[#allocation22 + $0xc0] sm:$0xf] }
 0x842   : > { %v14407_v47 = vor.u32 %v15916_v51, %v14406_v30  ;;  %v14471_v39 = vor.u32 %v15932_v41, %v14470_v59  ;;  %v15994_v30 = vld [vmem:[#allocation22 + $0x2b4] sm:$0xf0]  ;;  %v14518_v41 = vld [vmem:[#allocation22 + $0x220] sm:$0xf] }
 0x845   : > { %9032 = vmatpush.bf16.msrb.mxu0 %v14287_v31  ;;  %9045 = vmatpush.bf16.msrb.mxu1 %v14351_v26  ;;  %v15914_v31 = vld [vmem:[#allocation22 + $0x34] sm:$0xf0]  ;;  %v14462_v26 = vld [vmem:[#allocation22 + $0xb0] sm:$0xf] }
 0x846   : > { %v14399_v10 = vor.u32 %v15914_v31, %v14398_v37  ;;  %v14463_v40 = vor.u32 %v15930_v11, %v14462_v26  ;;  %v15992_v37 = vld [vmem:[#allocation22 + $0x2a4] sm:$0xf0]  ;;  %v14510_v11 = vld [vmem:[#allocation22 + $0x210] sm:$0xf] }
 0x849   : > { %9033 = vmatpush.bf16.msrb.mxu0 %v14279_v29  ;;  %9046 = vmatpush.bf16.msrb.mxu1 %v14343_v60  ;;  %v15912_v29 = vld [vmem:[#allocation22 + $0x24] sm:$0xf0]  ;;  %v14454_v60 = vld [vmem:[#allocation22 + $0xa0] sm:$0xf] }
 0x84a   : > { %v14391_v36 = vor.u32 %v15912_v29, %v14390_v15  ;;  %v14455_v34 = vor.u32 %v15928_v20, %v14454_v60  ;;  %v15990_v15 = vld [vmem:[#allocation22 + $0x294] sm:$0xf0]  ;;  %v14502_v20 = vld [vmem:[#allocation22 + $0x200] sm:$0xf] }
 0x84d   : > { %9034 = vmatpush.bf16.msrb.mxu0 %v14271_v33  ;;  %9047 = vmatpush.bf16.msrb.mxu1 %v14335_v43  ;;  %v15910_v33 = vld [vmem:[#allocation22 + $0x14] sm:$0xf0]  ;;  %v14446_v43 = vld [vmem:[#allocation22 + $0x90] sm:$0xf] }
 0x84e   : > { %v14383_v44 = vor.u32 %v15910_v33, %v14382_v58  ;;  %v14447_v2 = vor.u32 %v15926_v57, %v14446_v43  ;;  %v15988_v58 = vld [vmem:[#allocation22 + $0x284] sm:$0xf0] }
 0x851   : > { %9035 = vmatpush.bf16.msrb.mxu0 %v14263_v35  ;;  %9048 = vmatpush.bf16.msrb.mxu1 %v14327_v1  ;;  %v15908_v35 = vld [vmem:[#allocation22 + $0x4] sm:$0xf0]  ;;  %v14438_v1 = vld [vmem:[#allocation22 + $0x80] sm:$0xf] }
 0x852   : > { %v14439_v12 = vor.u32 %v15924_v19, %v14438_v1 }
 0x855   : > { %9036 = vmatpush.bf16.msrb.mxu0 %v14255_v63  ;;  %9049 = vmatpush.bf16.msrb.mxu1 %v14319_v17  ;;  %v16002_v63 = vld [vmem:[#allocation22 + $0x2f4] sm:$0xf0]  ;;  %v14375_v17 = vor.u32 %v15908_v35, %v14374_v50 }
 0x856   : > { %v14623_v48 = vor.u32 %v16002_v63, %v14622_v53 }
 0x859   : > { %9037 = vmatpush.bf16.msrb.mxu0 %v14247_v14  ;;  %9050 = vmatpush.bf16.msrb.mxu1 %v14311_v24  ;;  %v14615_v14 = vor.u32 %v16000_v42, %v14614_v9  ;;  %v14542_v24 = vld [vmem:[#allocation22 + $0x250] sm:$0xf]  ;;  %v15969_v42 = vld [vmem:[#allocation22 + $0x1f4] sm:$0xf] }
 0x85c   : > { %9038 = vmatmul.bf16.vlgmr.msrb.gmra.mxu0 %v17785_v46  ;;  %9051 = vmatmul.bf16.vlgmr.msrb.gmra.mxu1 %v17787_v62 }
 0x85d   : > { %9242 = vmatpush.bf16.msra.mxu0 %v14431_v38  ;;  %9255 = vmatpush.bf16.msra.mxu1 %v14495_v56  ;;  %v15982_v38 = vld [vmem:[#allocation22 + $0x254] sm:$0xf0]  ;;  %v14606_v56 = vld [vmem:[#allocation22 + $0x2d0] sm:$0xf] }
 0x85e   : > { %v14543_v21 = vor.u32 %v15982_v38, %v14542_v24  ;;  %v14607_v3 = vor.u32 %v15998_v45, %v14606_v56 }
 0x861   : > { %9243 = vmatpush.bf16.msra.mxu0 %v14423_v49  ;;  %9256 = vmatpush.bf16.msra.mxu1 %v14487_v13  ;;  %v15980_v49 = vld [vmem:[#allocation22 + $0x244] sm:$0xf0]  ;;  %v14598_v13 = vld [vmem:[#allocation22 + $0x2c0] sm:$0xf] }
 0x862   : > { %v14535_v18 = vor.u32 %v15980_v49, %v14534_v25  ;;  %v14599_v23 = vor.u32 %v15996_v61, %v14598_v13  ;;  %v15967_v25 = vld [vmem:[#allocation22 + $0x1e4] sm:$0xf]  ;;  %v14360_v49 = vld [vmem:[#allocation22 + $0x1e8] sm:$0xf0] }
 0x863   : > { %v14363_v61 = vor.u32 %v15967_v25, %v14360_v49  ;;  %v14488_v25 = vld [vmem:[#allocation22 + $0xe8] sm:$0xf0] }
 0x865   : > { %9244 = vmatpush.bf16.msra.mxu0 %v14415_v55  ;;  %9257 = vmatpush.bf16.msra.mxu1 %v14479_v22  ;;  %v15978_v55 = vld [vmem:[#allocation22 + $0x234] sm:$0xf0]  ;;  %v14590_v22 = vld [vmem:[#allocation22 + $0x2b0] sm:$0xf] }
 0x866   : > { %v14527_v51 = vor.u32 %v15978_v55, %v14526_v5  ;;  %v14591_v59 = vor.u32 %v15994_v30, %v14590_v22  ;;  %v14304_v55 = vld [vmem:[#allocation22 + $0x178] sm:$0xf0]  ;;  %v15965_v22 = vld [vmem:[#allocation22 + $0x1d4] sm:$0xf] }
 0x867   : > { %v14352_v30 = vld [vmem:[#allocation22 + $0x1d8] sm:$0xf0] }
 0x869   : > { %9245 = vmatpush.bf16.msra.mxu0 %v14407_v47  ;;  %9258 = vmatpush.bf16.msra.mxu1 %v14471_v39  ;;  %v15976_v47 = vld [vmem:[#allocation22 + $0x224] sm:$0xf0]  ;;  %v14582_v39 = vld [vmem:[#allocation22 + $0x2a0] sm:$0xf] }
 0x86a   : > { %v14519_v31 = vor.u32 %v15976_v47, %v14518_v41  ;;  %v14583_v26 = vor.u32 %v15992_v37, %v14582_v39 }
 0x86d   : > { %9246 = vmatpush.bf16.msra.mxu0 %v14399_v10  ;;  %9259 = vmatpush.bf16.msra.mxu1 %v14463_v40  ;;  %v15974_v10 = vld [vmem:[#allocation22 + $0x214] sm:$0xf0]  ;;  %v14574_v40 = vld [vmem:[#allocation22 + $0x290] sm:$0xf] }
 0x86e   : > { %v14511_v29 = vor.u32 %v15974_v10, %v14510_v11  ;;  %v14575_v60 = vor.u32 %v15990_v15, %v14574_v40  ;;  %v14296_v11 = vld [vmem:[#allocation22 + $0x168] sm:$0xf0]  ;;  %v15963_v10 = vld [vmem:[#allocation22 + $0x1c4] sm:$0xf] }
 0x86f   : > { %v14344_v40 = vld [vmem:[#allocation22 + $0x1c8] sm:$0xf0] }
 0x871   : > { %9247 = vmatpush.bf16.msra.mxu0 %v14391_v36  ;;  %9260 = vmatpush.bf16.msra.mxu1 %v14455_v34  ;;  %v15972_v36 = vld [vmem:[#allocation22 + $0x204] sm:$0xf0]  ;;  %v14566_v34 = vld [vmem:[#allocation22 + $0x280] sm:$0xf] }
 0x872   : > { %v14503_v33 = vor.u32 %v15972_v36, %v14502_v20  ;;  %v14567_v43 = vor.u32 %v15988_v58, %v14566_v34  ;;  %v14288_v34 = vld [vmem:[#allocation22 + $0x158] sm:$0xf0]  ;;  %v15961_v58 = vld [vmem:[#allocation22 + $0x1b4] sm:$0xf] }
 0x875   : > { %9248 = vmatpush.bf16.msra.mxu0 %v14383_v44  ;;  %9261 = vmatpush.bf16.msra.mxu1 %v14447_v2 }
 0x879   : > { %9249 = vmatpush.bf16.msra.mxu0 %v14375_v17  ;;  %9262 = vmatpush.bf16.msra.mxu1 %v14439_v12 }
 0x87c   : > { %9250 = vmatmul.bf16.vlgmr.msra.gmra.mxu0 %v17777_v8  ;;  %9263 = vmatmul.bf16.vlgmr.msra.gmra.mxu1 %v17779_v27 }
 0x87d   : > { %9487 = vmatpush.bf16.msrb.mxu0 %v14559_v28  ;;  %9500 = vmatpush.bf16.msrb.mxu1 %v14623_v48 }
 0x881   : > { %9488 = vmatpush.bf16.msrb.mxu0 %v14551_v0  ;;  %9501 = vmatpush.bf16.msrb.mxu1 %v14615_v14  ;;  %v14368_v0 = vld [vmem:[#allocation22 + $0x1f8] sm:$0xf0] }
 0x885   : > { %9489 = vmatpush.bf16.msrb.mxu0 %v14543_v21  ;;  %9502 = vmatpush.bf16.msrb.mxu1 %v14607_v3  ;;  %v14371_v21 = vor.u32 %v15969_v42, %v14368_v0  ;;  %v14496_v42 = vld [vmem:[#allocation22 + $0xf8] sm:$0xf0] }
 0x889   : > { %9490 = vmatpush.bf16.msrb.mxu0 %v14535_v18  ;;  %9503 = vmatpush.bf16.msrb.mxu1 %v14599_v23  ;;  %v15953_v18 = vld [vmem:[#allocation22 + $0x174] sm:$0xf] }
 0x88a   : > { %v14307_v37 = vor.u32 %v15953_v18, %v14304_v55  ;;  %v14248_v18 = vld [vmem:[#allocation22 + $0x108] sm:$0xf0]  ;;  %v15933_v55 = vld [vmem:[#allocation22 + $0xd4] sm:$0xf] }
 0x88d   : > { %9491 = vmatpush.bf16.msrb.mxu0 %v14527_v51  ;;  %9504 = vmatpush.bf16.msrb.mxu1 %v14591_v59 }
 0x891   : > { %9492 = vmatpush.bf16.msrb.mxu0 %v14519_v31  ;;  %9505 = vmatpush.bf16.msrb.mxu1 %v14583_v26  ;;  %v14355_v31 = vor.u32 %v15965_v22, %v14352_v30  ;;  %v15951_v26 = vld [vmem:[#allocation22 + $0x164] sm:$0xf]  ;;  %v14480_v22 = vld [vmem:[#allocation22 + $0xd8] sm:$0xf0] }
 0x892   : > { %v14299_v15 = vor.u32 %v15951_v26, %v14296_v11  ;;  %v14472_v26 = vld [vmem:[#allocation22 + $0xc8] sm:$0xf0] }
 0x895   : > { %9493 = vmatpush.bf16.msrb.mxu0 %v14511_v29  ;;  %9506 = vmatpush.bf16.msrb.mxu1 %v14575_v60  ;;  %v14347_v29 = vor.u32 %v15963_v10, %v14344_v40  ;;  %v15949_v60 = vld [vmem:[#allocation22 + $0x154] sm:$0xf] }
 0x896   : > { %v15917_v40 = vld [vmem:[#allocation22 + $0x54] sm:$0xf] }
 0x899   : > { %9494 = vmatpush.bf16.msrb.mxu0 %v14503_v33  ;;  %9507 = vmatpush.bf16.msrb.mxu1 %v14567_v43  ;;  %v8259_v57 = vpop.f32.mrf.mxu0  ;;  %v8272_v44 = vpop.f32.mrf.mxu1  ;;  %v14336_v33 = vld [vmem:[#allocation22 + $0x1b8] sm:$0xf0]  ;;  %v14291_v43 = vor.u32 %v15949_v60, %v14288_v34  ;;  %v14408_v34 = vld [vmem:[#allocation22 + $0x48] sm:$0xf0] }
 0x89a   : > { %v8273_v48 = vadd.f32 %v8272_v44, %v8259_v57  ;;  %v14339_v57 = vor.u32 %v15961_v58, %v14336_v33  ;;  %v15947_v44 = vld [vmem:[#allocation22 + $0x144] sm:$0xf]  ;;  %v14456_v33 = vld [vmem:[#allocation22 + $0xa8] sm:$0xf0] }
 0x89b   : > { %v15927_v58 = vld [vmem:[#allocation22 + $0xa4] sm:$0xf] }
 0x89c   : > { %9495 = vmatmul.bf16.vlgmr.msrb.gmra.mxu0 %v17797_v16  ;;  %9508 = vmatmul.bf16.vlgmr.msrb.gmra.mxu1 %v17799_v54 }
 0x89e   : > { %v8233_v2 = vpop.f32.mrf.mxu2  ;;  %v8246_v50 = vpop.f32.mrf.mxu3 }
 0x89f   : > { %v8247_v45 = vadd.f32 %v8246_v50, %v8233_v2  ;;  %v14280_v2 = vld [vmem:[#allocation22 + $0x148] sm:$0xf0]  ;;  %v15959_v50 = vld [vmem:[#allocation22 + $0x1a4] sm:$0xf] }
 0x8a1   : > { %v8261_v35 = vpop.f32.mrf.mxu0  ;;  %v8274_v1 = vpop.f32.mrf.mxu1 }
 0x8a2   : > { %v14328_v35 = vld [vmem:[#allocation22 + $0x1a8] sm:$0xf0]  ;;  %v14283_v1 = vor.u32 %v15947_v44, %v14280_v2  ;;  %v15913_v44 = vld [vmem:[#allocation22 + $0x34] sm:$0xf]  ;;  %v14400_v2 = vld [vmem:[#allocation22 + $0x38] sm:$0xf0] }
 0x8a6   : > { %v8235_v19 = vpop.f32.mrf.mxu2  ;;  %v8248_v32 = vpop.f32.mrf.mxu3 }
 0x8a7   : > { %v14331_v19 = vor.u32 %v15959_v50, %v14328_v35  ;;  %v15945_v32 = vld [vmem:[#allocation22 + $0x134] sm:$0xf]  ;;  %v14448_v35 = vld [vmem:[#allocation22 + $0x98] sm:$0xf0] }
 0x8a8   : > { %v15925_v50 = vld [vmem:[#allocation22 + $0x94] sm:$0xf] }
 0x8a9   : > { %v8473_v7 = vpop.f32.mrf.mxu0  ;;  %v8486_v53 = vpop.f32.mrf.mxu1 }
 0x8aa   : > { %v8474_v4 = vadd.f32 %v8473_v7, %v8273_v48  ;;  %v14272_v7 = vld [vmem:[#allocation22 + $0x138] sm:$0xf0]  ;;  %v14264_v48 = vld [vmem:[#allocation22 + $0x128] sm:$0xf0] }
 0x8ac   : > { %v8487_v38 = vadd.f32 %v8486_v53, %v8474_v4  ;;  %v15957_v53 = vld [vmem:[#allocation22 + $0x194] sm:$0xf]  ;;  %v15955_v4 = vld [vmem:[#allocation22 + $0x184] sm:$0xf] }
 0x8ae   : > { %v8447_v63 = vpop.f32.mrf.mxu2  ;;  %v8460_v17 = vpop.f32.mrf.mxu3 }
 0x8af   : > { %v8448_v13 = vadd.f32 %v8447_v63, %v8247_v45  ;;  %v14320_v63 = vld [vmem:[#allocation22 + $0x198] sm:$0xf0]  ;;  %v15941_v45 = vld [vmem:[#allocation22 + $0x114] sm:$0xf] }
 0x8b1   : > { %v8475_v12 = vpop.f32.mrf.mxu0  ;;  %v8488_v28 = vpop.f32.mrf.mxu1  ;;  %v8461_v51 = vadd.f32 %v8460_v17, %v8448_v13  ;;  %v14275_v17 = vor.u32 %v15945_v32, %v14272_v7  ;;  %v14392_v32 = vld [vmem:[#allocation22 + $0x28] sm:$0xf0]  ;;  %v15923_v7 = vld [vmem:[#allocation22 + $0x84] sm:$0xf] }
 0x8b2   : > { %v14323_v12 = vor.u32 %v15957_v53, %v14320_v63  ;;  %v15943_v28 = vld [vmem:[#allocation22 + $0x124] sm:$0xf]  ;;  %v14440_v53 = vld [vmem:[#allocation22 + $0x88] sm:$0xf0]  ;;  %v16001_v63 = vld [vmem:[#allocation22 + $0x2f4] sm:$0xf] }
 0x8b6   : > { %v8449_v6 = vpop.f32.mrf.mxu2  ;;  %v8462_v9 = vpop.f32.mrf.mxu3 }
 0x8b7   : > { %v14312_v6 = vld [vmem:[#allocation22 + $0x188] sm:$0xf0]  ;;  %v15937_v9 = vld [vmem:[#allocation22 + $0xf4] sm:$0xf] }
 0x8b9   : > { %v8728_v14 = vpop.f32.mrf.mxu0  ;;  %v8741_v24 = vpop.f32.mrf.mxu1 }
 0x8ba   : > { %v8742_v56 = vadd.f32 %v8741_v24, %v8728_v14  ;;  %v14267_v24 = vor.u32 %v15943_v28, %v14264_v48 }
 0x8bc   : > { %v8746_v3 = vadd.f32 %v8742_v56, %v8487_v38  ;;  %v14315_v38 = vor.u32 %v15955_v4, %v14312_v6  ;;  %v14499_v56 = vor.u32 %v15937_v9, %v14496_v42  ;;  %v14443_v4 = vor.u32 %v15923_v7, %v14440_v53  ;;  %v15909_v9 = vld [vmem:[#allocation22 + $0x14] sm:$0xf]  ;;  %v14384_v42 = vld [vmem:[#allocation22 + $0x18] sm:$0xf0] }
 0x8bd   : > { %v14692_v7 = vld [vmem:[#allocation24 + $0x178] sm:$0xf0] }
 0x8be   : > { %14242 = vmatpush.msk.msrb.mxu3 %vm7168_vm11, %v8746_v3  ;;  %v15935_v3 = vld [vmem:[#allocation22 + $0xe4] sm:$0xf] }
 0x8bf   : > { %14243 = vmatmul.msk.f32.vlgmr.msrb.gmra.mxu3 %vm8753_vm10, %v17500_v52  ;;  %v14491_v13 = vor.u32 %v15935_v3, %v14488_v25  ;;  %v14376_v3 = vld [vmem:[#allocation22 + $0x8] sm:$0xf0]  ;;  %v15985_v25 = vld [vmem:[#allocation22 + $0x274] sm:$0xf] }
 0x8c0   : > { %9069 = vmatpush.bf16.msra.mxu3 %v14371_v21  ;;  %v14256_v21 = vld [vmem:[#allocation22 + $0x118] sm:$0xf0] }
 0x8c1   : > { %v8702_v23 = vpop.f32.mrf.mxu2  ;;  %v8715_v5 = vpop.f32.mrf.mxu3  ;;  %v14259_v49 = vor.u32 %v15941_v45, %v14256_v21  ;;  %v15907_v21 = vld [vmem:[#allocation22 + $0x4] sm:$0xf] }
 0x8c2   : > { %v8716_v59 = vadd.f32 %v8715_v5, %v8702_v23  ;;  %v8730_v41 = vpop.f32.mrf.mxu0  ;;  %v8743_v47 = vpop.f32.mrf.mxu1  ;;  %v15921_v23 = vld [vmem:[#allocation22 + $0x74] sm:$0xf]  ;;  %v14432_v5 = vld [vmem:[#allocation22 + $0x78] sm:$0xf0] }
 0x8c3   : > { %v14435_v41 = vor.u32 %v15921_v23, %v14432_v5  ;;  %v14483_v47 = vor.u32 %v15933_v55, %v14480_v22  ;;  %v14379_v5 = vor.u32 %v15907_v21, %v14376_v3  ;;  %v15971_v3 = vld [vmem:[#allocation22 + $0x204] sm:$0xf] }
 0x8c4   : > { %v8745_v39 = vadd.f32 %v8716_v59, %v8461_v51  ;;  %9070 = vmatpush.bf16.msra.mxu3 %v14363_v61  ;;  %v15939_v61 = vld [vmem:[#allocation22 + $0x104] sm:$0xf] }
 0x8c5   : > { %v14251_v59 = vor.u32 %v15939_v61, %v14248_v18  ;;  %v14608_v61 = vld [vmem:[#allocation22 + $0x2d8] sm:$0xf0] }
 0x8c6   : > { %14240 = vmatpush.msk.msrb.mxu2 %vm7168_vm11, %v8745_v39  ;;  %v15919_v39 = vld [vmem:[#allocation22 + $0x64] sm:$0xf] }
 0x8c7   : > { %14241 = vmatmul.msk.f32.vlgmr.msrb.gmra.mxu2 %vm8753_vm10, %v17500_v52 }
 0x8c8   : > { %9056 = vmatpush.bf16.msra.mxu2 %v14307_v37  ;;  %9071 = vmatpush.bf16.msra.mxu3 %v14355_v31  ;;  %v14424_v37 = vld [vmem:[#allocation22 + $0x68] sm:$0xf0]  ;;  %v15931_v31 = vld [vmem:[#allocation22 + $0xc4] sm:$0xf] }
 0x8c9   : > { %v8704_v20 = vpop.f32.mrf.mxu2  ;;  %v8717_v36 = vpop.f32.mrf.mxu3  ;;  %v14427_v11 = vor.u32 %v15919_v39, %v14424_v37  ;;  %v14475_v10 = vor.u32 %v15931_v31, %v14472_v26  ;;  %v15981_v37 = vld [vmem:[#allocation22 + $0x254] sm:$0xf]  ;;  %v14544_v31 = vld [vmem:[#allocation22 + $0x258] sm:$0xf0] }
 0x8ca   : > { %v15915_v36 = vld [vmem:[#allocation22 + $0x44] sm:$0xf]  ;;  %v15993_v26 = vld [vmem:[#allocation22 + $0x2b4] sm:$0xf] }
 0x8cc   : > { %9057 = vmatpush.bf16.msra.mxu2 %v14299_v15  ;;  %9072 = vmatpush.bf16.msra.mxu3 %v14347_v29  ;;  %v14416_v15 = vld [vmem:[#allocation22 + $0x58] sm:$0xf0]  ;;  %v15929_v29 = vld [vmem:[#allocation22 + $0xb4] sm:$0xf] }
 0x8cd   : > { %v14419_v60 = vor.u32 %v15917_v40, %v14416_v15  ;;  %v15979_v40 = vld [vmem:[#allocation22 + $0x244] sm:$0xf]  ;;  %v14536_v15 = vld [vmem:[#allocation22 + $0x248] sm:$0xf0] }
 0x8d0   : > { %9058 = vmatpush.bf16.msra.mxu2 %v14291_v43  ;;  %9073 = vmatpush.bf16.msra.mxu3 %v14339_v57  ;;  %v14411_v43 = vor.u32 %v15915_v36, %v14408_v34  ;;  %v14459_v57 = vor.u32 %v15927_v58, %v14456_v33  ;;  %v15977_v36 = vld [vmem:[#allocation22 + $0x234] sm:$0xf]  ;;  %v14528_v34 = vld [vmem:[#allocation22 + $0x238] sm:$0xf0] }
 0x8d1   : > { %v15989_v58 = vld [vmem:[#allocation22 + $0x294] sm:$0xf]  ;;  %v14576_v33 = vld [vmem:[#allocation22 + $0x298] sm:$0xf0] }
 0x8d4   : > { %9059 = vmatpush.bf16.msra.mxu2 %v14283_v1  ;;  %9074 = vmatpush.bf16.msra.mxu3 %v14331_v19  ;;  %v14403_v1 = vor.u32 %v15913_v44, %v14400_v2  ;;  %v15911_v19 = vld [vmem:[#allocation22 + $0x24] sm:$0xf] }
 0x8d5   : > { %v14395_v48 = vor.u32 %v15911_v19, %v14392_v32  ;;  %v15975_v44 = vld [vmem:[#allocation22 + $0x224] sm:$0xf]  ;;  %v16066_v19 = vld [vmem:[#allocation24 + $0x1f4] sm:$0xf0]  ;;  %v16049_v32 = vld [vmem:[#allocation24 + $0x174] sm:$0xf] }
 0x8d8   : > { %9060 = vmatpush.bf16.msra.mxu2 %v14275_v17  ;;  %9075 = vmatpush.bf16.msra.mxu3 %v14323_v12  ;;  %v14624_v17 = vld [vmem:[#allocation22 + $0x2f8] sm:$0xf0] }
 0x8d9   : > { %v17817_v0 = vpop.f32.mrf.mxu0  ;;  %v17819_v14 = vpop.f32.mrf.mxu1  ;;  %v14627_v6 = vor.u32 %v16001_v63, %v14624_v17 }
 0x8dc   : > { %9061 = vmatpush.bf16.msra.mxu2 %v14267_v24  ;;  %9076 = vmatpush.bf16.msra.mxu3 %v14315_v38  ;;  %v15999_v24 = vld [vmem:[#allocation22 + $0x2e4] sm:$0xf]  ;;  %v14616_v38 = vld [vmem:[#allocation22 + $0x2e8] sm:$0xf0] }
 0x8dd   : > { %v14619_v45 = vor.u32 %v15999_v24, %v14616_v38  ;;  %v16064_v24 = vld [vmem:[#allocation24 + $0x1e4] sm:$0xf0] }
 0x8df   : > { %9077 = vmatmul.bf16.vlgmr.msra.gmra.mxu3 %v17787_v62  ;;  %v14464_v62 = vld [vmem:[#allocation22 + $0xb8] sm:$0xf0] }
 0x8e0   : > { %9281 = vmatpush.bf16.msrb.mxu3 %v14499_v56  ;;  %9062 = vmatpush.bf16.msra.mxu2 %v14259_v49  ;;  %v14467_v20 = vor.u32 %v15929_v29, %v14464_v62  ;;  %v14387_v56 = vor.u32 %v15909_v9, %v14384_v42  ;;  %v14560_v49 = vld [vmem:[#allocation22 + $0x278] sm:$0xf0]  ;;  %v15991_v29 = vld [vmem:[#allocation22 + $0x2a4] sm:$0xf]  ;;  %v14584_v62 = vld [vmem:[#allocation22 + $0x2a8] sm:$0xf0] }
 0x8e1   : > { %v9041_v30 = vpop.f32.mrf.mxu0  ;;  %v9054_v51 = vpop.f32.mrf.mxu1  ;;  %v14563_v55 = vor.u32 %v15985_v25, %v14560_v49  ;;  %v14746_v42 = vld [vmem:[#allocation24 + $0x1e0] sm:$0xf]  ;;  %v14504_v25 = vld [vmem:[#allocation22 + $0x208] sm:$0xf0]  ;;  %v14690_v49 = vld [vmem:[#allocation24 + $0x170] sm:$0xf] }
 0x8e2   : > { %v15983_v30 = vld [vmem:[#allocation22 + $0x264] sm:$0xf]  ;;  %v14552_v51 = vld [vmem:[#allocation22 + $0x268] sm:$0xf0] }
 0x8e4   : > { %9282 = vmatpush.bf16.msrb.mxu3 %v14491_v13  ;;  %9063 = vmatpush.bf16.msra.mxu2 %v14251_v59  ;;  %v15997_v13 = vld [vmem:[#allocation22 + $0x2d4] sm:$0xf]  ;;  %v15995_v59 = vld [vmem:[#allocation22 + $0x2c4] sm:$0xf] }
 0x8e5   : > { %v14611_v22 = vor.u32 %v15997_v13, %v14608_v61  ;;  %v16050_v13 = vld [vmem:[#allocation24 + $0x174] sm:$0xf0] }
 0x8e7   : > { %9064 = vmatmul.bf16.vlgmr.msra.gmra.mxu2 %v17785_v46  ;;  %v14451_v46 = vor.u32 %v15925_v50, %v14448_v35  ;;  %v14520_v50 = vld [vmem:[#allocation22 + $0x228] sm:$0xf0]  ;;  %v15987_v35 = vld [vmem:[#allocation22 + $0x284] sm:$0xf] }
 0x8e8   : > { %9268 = vmatpush.bf16.msrb.mxu2 %v14435_v41  ;;  %9283 = vmatpush.bf16.msrb.mxu3 %v14483_v47  ;;  %v14600_v41 = vld [vmem:[#allocation22 + $0x2c8] sm:$0xf0]  ;;  %v14555_v47 = vor.u32 %v15983_v30, %v14552_v51  ;;  %v14523_v17 = vor.u32 %v15975_v44, %v14520_v50  ;;  %v14507_v51 = vor.u32 %v15971_v3, %v14504_v25  ;;  %v14658_v44 = vld [vmem:[#allocation24 + $0x130] sm:$0xf]  ;;  %v16035_v3 = vld [vmem:[#allocation24 + $0x104] sm:$0xf] }
 0x8e9   : > { %v14603_v39 = vor.u32 %v15995_v59, %v14600_v41  ;;  %v14691_v59 = vor.u32 %v16050_v13, %v14690_v49  ;;  %v14682_v41 = vld [vmem:[#allocation24 + $0x160] sm:$0xf]  ;;  %v8747_v25 = vld [vmem:[%s17994_s20] sm:$0x3]  ;;  %v14818_v13 = vld [vmem:[#allocation24 + $0x70] sm:$0xf] }
 0x8ec   : > { %9269 = vmatpush.bf16.msrb.mxu2 %v14427_v11  ;;  %9284 = vmatpush.bf16.msrb.mxu3 %v14475_v10  ;;  %v14547_v11 = vor.u32 %v15981_v37, %v14544_v31  ;;  %v14730_v31 = vld [vmem:[#allocation24 + $0x1c0] sm:$0xf] }
 0x8f0   : > { %9270 = vmatpush.bf16.msrb.mxu2 %v14419_v60  ;;  %9285 = vmatpush.bf16.msrb.mxu3 %v14467_v20  ;;  %v14539_v60 = vor.u32 %v15979_v40, %v14536_v15  ;;  %v14587_v20 = vor.u32 %v15991_v29, %v14584_v62  ;;  %v16046_v15 = vld [vmem:[#allocation24 + $0x154] sm:$0xf0]  ;;  %v14722_v62 = vld [vmem:[#allocation24 + $0x1b0] sm:$0xf] }
 0x8f4   : > { %9271 = vmatpush.bf16.msrb.mxu2 %v14411_v43  ;;  %9286 = vmatpush.bf16.msrb.mxu3 %v14459_v57  ;;  %v9053_v43 = vadd.f32 %v17819_v14, %v17817_v0  ;;  %v14579_v57 = vor.u32 %v15989_v58, %v14576_v33  ;;  %v14666_v33 = vld [vmem:[#allocation24 + $0x140] sm:$0xf] }
 0x8f8   : > { %9272 = vmatpush.bf16.msrb.mxu2 %v14403_v1  ;;  %9287 = vmatpush.bf16.msrb.mxu3 %v14451_v46  ;;  %v14568_v1 = vld [vmem:[#allocation22 + $0x288] sm:$0xf0]  ;;  %v14754_v46 = vld [vmem:[#allocation24 + $0x1f0] sm:$0xf] }
 0x8f9   : > { %v17823_v12 = vpop.f32.mrf.mxu0  ;;  %v17825_v28 = vpop.f32.mrf.mxu1  ;;  %v14571_v0 = vor.u32 %v15987_v35, %v14568_v1  ;;  %v14755_v9 = vor.u32 %v16066_v19, %v14754_v46  ;;  %v16040_v35 = vld [vmem:[#allocation24 + $0x124] sm:$0xf0]  ;;  %v14714_v1 = vld [vmem:[#allocation24 + $0x1a0] sm:$0xf] }
 0x8fa   : > { %v9252_v2 = vadd.f32 %v17823_v12, %v9053_v43  ;;  %v14695_v12 = vor.u32 %v16049_v32, %v14692_v7  ;;  %v16044_v43 = vld [vmem:[#allocation24 + $0x144] sm:$0xf0]  ;;  %v16039_v32 = vld [vmem:[#allocation24 + $0x124] sm:$0xf]  ;;  %v14652_v7 = vld [vmem:[#allocation24 + $0x128] sm:$0xf0] }
 0x8fb   : > { %v16056_v19 = vld [vmem:[#allocation24 + $0x1a4] sm:$0xf0] }
 0x8fc   : > { %9273 = vmatpush.bf16.msrb.mxu2 %v14395_v48  ;;  %9288 = vmatpush.bf16.msrb.mxu3 %v14443_v4  ;;  %v9265_v14 = vadd.f32 %v17825_v28, %v9252_v2  ;;  %v15973_v4 = vld [vmem:[#allocation22 + $0x214] sm:$0xf]  ;;  %v14747_v28 = vor.u32 %v16064_v24, %v14746_v42  ;;  %v16042_v2 = vld [vmem:[#allocation24 + $0x134] sm:$0xf0]  ;;  %v14634_v42 = vld [vmem:[#allocation24 + $0x100] sm:$0xf] }
 0x8fd   : > { %v14659_v50 = vor.u32 %v16042_v2, %v14658_v44  ;;  %v16036_v24 = vld [vmem:[#allocation24 + $0x104] sm:$0xf0]  ;;  %v14858_v2 = vld [vmem:[#allocation24 + $0xc0] sm:$0xf] }
 0x8ff   : > { %9289 = vmatmul.bf16.vlgmr.msrb.gmra.mxu3 %v17779_v27  ;;  %v14592_v27 = vld [vmem:[#allocation22 + $0x2b8] sm:$0xf0] }
 0x900   : > { %9526 = vmatpush.bf16.msra.mxu3 %v14627_v6  ;;  %9274 = vmatpush.bf16.msrb.mxu2 %v14387_v56  ;;  %v14595_v10 = vor.u32 %v15993_v26, %v14592_v27  ;;  %v14512_v6 = vld [vmem:[#allocation22 + $0x218] sm:$0xf0]  ;;  %v16047_v56 = vld [vmem:[#allocation24 + $0x164] sm:$0xf]  ;;  %v16060_v26 = vld [vmem:[#allocation24 + $0x1c4] sm:$0xf0] }
 0x901   : > { %v9253_v18 = vpop.f32.mrf.mxu0  ;;  %v9266_v23 = vpop.f32.mrf.mxu1  ;;  %v14515_v21 = vor.u32 %v15973_v4, %v14512_v6  ;;  %v16043_v27 = vld [vmem:[#allocation24 + $0x144] sm:$0xf]  ;;  %v14731_v40 = vor.u32 %v16060_v26, %v14730_v31  ;;  %v16054_v4 = vld [vmem:[#allocation24 + $0x194] sm:$0xf0]  ;;  %v16037_v6 = vld [vmem:[#allocation24 + $0x114] sm:$0xf] }
 0x902   : > { %v14738_v18 = vld [vmem:[#allocation24 + $0x1d0] sm:$0xf]  ;;  %v16062_v23 = vld [vmem:[#allocation24 + $0x1d4] sm:$0xf0]  ;;  %v16015_v31 = vld [vmem:[#allocation24 + $0x64] sm:$0xf] }
 0x904   : > { %9527 = vmatpush.bf16.msra.mxu3 %v14619_v45  ;;  %9275 = vmatpush.bf16.msrb.mxu2 %v14379_v5  ;;  %v14684_v45 = vld [vmem:[#allocation24 + $0x168] sm:$0xf0]  ;;  %v16045_v5 = vld [vmem:[#allocation24 + $0x154] sm:$0xf] }
 0x905   : > { %v14687_v61 = vor.u32 %v16047_v56, %v14684_v45  ;;  %v14635_v56 = vor.u32 %v16036_v24, %v14634_v42  ;;  %v14698_v45 = vld [vmem:[#allocation24 + $0x180] sm:$0xf] }
 0x906   : > { %v14778_v24 = vld [vmem:[#allocation24 + $0x20] sm:$0xf] }
 0x907   : > { %9276 = vmatmul.bf16.vlgmr.msrb.gmra.mxu2 %v17777_v8  ;;  %v14531_v8 = vor.u32 %v15977_v36, %v14528_v34  ;;  %v14660_v36 = vld [vmem:[#allocation24 + $0x138] sm:$0xf0] }
 0x908   : > { %9513 = vmatpush.bf16.msra.mxu2 %v14563_v55  ;;  %9528 = vmatpush.bf16.msra.mxu3 %v14611_v22  ;;  %v14676_v55 = vld [vmem:[#allocation24 + $0x158] sm:$0xf0] }
 0x909   : > { %v14679_v37 = vor.u32 %v16045_v5, %v14676_v55  ;;  %v14882_v5 = vld [vmem:[#allocation24 + $0xf0] sm:$0xf]  ;;  %v16034_v55 = vld [vmem:[#allocation24 + $0xf4] sm:$0xf0] }
 0x90c   : > { %9514 = vmatpush.bf16.msra.mxu2 %v14555_v47  ;;  %9529 = vmatpush.bf16.msra.mxu3 %v14603_v39  ;;  %v14739_v47 = vor.u32 %v16062_v23, %v14738_v18  ;;  %v16048_v39 = vld [vmem:[#allocation24 + $0x164] sm:$0xf0] }
 0x910   : > { %9515 = vmatpush.bf16.msra.mxu2 %v14547_v11  ;;  %9530 = vmatpush.bf16.msra.mxu3 %v14595_v10  ;;  %v14683_v11 = vor.u32 %v16048_v39, %v14682_v41  ;;  %v14674_v10 = vld [vmem:[#allocation24 + $0x150] sm:$0xf]  ;;  %v16016_v41 = vld [vmem:[#allocation24 + $0x64] sm:$0xf0]  ;;  %v14874_v39 = vld [vmem:[#allocation24 + $0xe0] sm:$0xf] }
 0x911   : > { %v14675_v34 = vor.u32 %v16046_v15, %v14674_v10  ;;  %v14802_v10 = vld [vmem:[#allocation24 + $0x50] sm:$0xf] }
 0x914   : > { %9516 = vmatpush.bf16.msra.mxu2 %v14539_v60  ;;  %9531 = vmatpush.bf16.msra.mxu3 %v14587_v20  ;;  %v16058_v60 = vld [vmem:[#allocation24 + $0x1b4] sm:$0xf0]  ;;  %v16041_v20 = vld [vmem:[#allocation24 + $0x134] sm:$0xf] }
 0x915   : > { %v14723_v58 = vor.u32 %v16058_v60, %v14722_v62  ;;  %v14866_v62 = vld [vmem:[#allocation24 + $0xd0] sm:$0xf]  ;;  %v16030_v60 = vld [vmem:[#allocation24 + $0xd4] sm:$0xf0] }
 0x918   : > { %9517 = vmatpush.bf16.msra.mxu2 %v14531_v8  ;;  %9532 = vmatpush.bf16.msra.mxu3 %v14579_v57  ;;  %v14663_v8 = vor.u32 %v16041_v20, %v14660_v36  ;;  %v14667_v57 = vor.u32 %v16044_v43, %v14666_v33  ;;  %v16013_v20 = vld [vmem:[#allocation24 + $0x54] sm:$0xf]  ;;  %v14804_v36 = vld [vmem:[#allocation24 + $0x58] sm:$0xf0]  ;;  %v14867_v43 = vor.u32 %v16030_v60, %v14866_v62  ;;  %v16003_v62 = vld [vmem:[#allocation24 + $0x4] sm:$0xf] }
 0x919   : > { %v9496_v53 = vpop.f32.mrf.mxu0  ;;  %v9509_v63 = vpop.f32.mrf.mxu1  ;;  %v14807_v44 = vor.u32 %v16013_v20, %v14804_v36  ;;  %v14764_v60 = vld [vmem:[#allocation24 + $0x8] sm:$0xf0] }
 0x91a   : > { %v9510_v48 = vadd.f32 %v9509_v63, %v9496_v53  ;;  %v14715_v53 = vor.u32 %v16056_v19, %v14714_v1  ;;  %v14655_v63 = vor.u32 %v16039_v32, %v14652_v7 }
 0x91c   : > { %v9539_v38 = vadd.f32 %v9510_v48, %v9265_v14  ;;  %9518 = vmatpush.bf16.msra.mxu2 %v14523_v17  ;;  %9533 = vmatpush.bf16.msra.mxu3 %v14571_v0  ;;  %v14642_v17 = vld [vmem:[#allocation24 + $0x110] sm:$0xf]  ;;  %v16038_v0 = vld [vmem:[#allocation24 + $0x114] sm:$0xf0] }
 0x91d   : > { %v14706_v14 = vld [vmem:[#allocation24 + $0x190] sm:$0xf]  ;;  %v14643_v48 = vor.u32 %v16038_v0, %v14642_v17 }
 0x91e   : > { %14628 = vmatpush.msk.msra.mxu0 %vm7168_vm11, %v9539_v38  ;;  %v14850_v0 = vld [vmem:[#allocation24 + $0xb0] sm:$0xf] }
 0x91f   : > { %9534 = vmatmul.bf16.vlgmr.msra.gmra.mxu3 %v17799_v54  ;;  %14629 = vmatmul.msk.f32.vlgmr.msra.gmra.mxu0 %vm8753_vm10, %v17500_v52  ;;  %v14668_v54 = vld [vmem:[#allocation24 + $0x148] sm:$0xf0] }
 0x920   : > { %9875 = vmatpush.bf16.msrb.mxu3 %v14755_v9  ;;  %9888 = vmatpush.bf16.msrb.mxu0 %v14695_v12  ;;  %v14671_v29 = vor.u32 %v16043_v27, %v14668_v54  ;;  %v14707_v9 = vor.u32 %v16054_v4, %v14706_v14  ;;  %v14644_v12 = vld [vmem:[#allocation24 + $0x118] sm:$0xf0]  ;;  %v14812_v27 = vld [vmem:[#allocation24 + $0x68] sm:$0xf0]  ;;  %v8750_v54 = vperm.slane %v8747_v25, 1 }
 0x921   : > { %v9498_v22 = vpop.f32.mrf.mxu0  ;;  %v9511_v30 = vpop.f32.mrf.mxu1  ;;  %9519 = vmatpush.bf16.msra.mxu2 %v14515_v21  ;;  %v14647_v38 = vor.u32 %v16037_v6, %v14644_v12  ;;  %v16052_v21 = vld [vmem:[#allocation24 + $0x184] sm:$0xf0]  ;;  %v16026_v14 = vld [vmem:[#allocation24 + $0xb4] sm:$0xf0]  ;;  %v16009_v4 = vld [vmem:[#allocation24 + $0x34] sm:$0xf] }
 0x922   : > { %v14699_v49 = vor.u32 %v16052_v21, %v14698_v45  ;;  %v16017_v22 = vld [vmem:[#allocation24 + $0x74] sm:$0xf]  ;;  %v14883_v30 = vor.u32 %v16034_v55, %v14882_v5  ;;  %v14788_v6 = vld [vmem:[#allocation24 + $0x38] sm:$0xf0]  ;;  %v14851_v42 = vor.u32 %v16026_v14, %v14850_v0  ;;  %v14842_v45 = vld [vmem:[#allocation24 + $0xa0] sm:$0xf] }
 0x923   : > { %v16024_v21 = vld [vmem:[#allocation24 + $0xa4] sm:$0xf0]  ;;  %v16006_v5 = vld [vmem:[#allocation24 + $0x14] sm:$0xf0] }
 0x924   : > { %9876 = vmatpush.bf16.msrb.mxu3 %v14747_v28  ;;  %9889 = vmatpush.bf16.msrb.mxu0 %v14687_v61  ;;  %v14636_v28 = vld [vmem:[#allocation24 + $0x108] sm:$0xf0]  ;;  %v16018_v61 = vld [vmem:[#allocation24 + $0x74] sm:$0xf0] }
 0x925   : > { %9520 = vmatpush.bf16.msra.mxu2 %v14507_v51  ;;  %v14639_v18 = vor.u32 %v16035_v3, %v14636_v28  ;;  %v14819_v23 = vor.u32 %v16018_v61, %v14818_v13  ;;  %v14820_v51 = vld [vmem:[#allocation24 + $0x78] sm:$0xf0] }
 0x928   : > { %9877 = vmatpush.bf16.msrb.mxu3 %v14739_v47  ;;  %9890 = vmatpush.bf16.msrb.mxu0 %v14679_v37  ;;  %v14823_v47 = vor.u32 %v16017_v22, %v14820_v51  ;;  %v16032_v37 = vld [vmem:[#allocation24 + $0xe4] sm:$0xf0] }
 0x929   : > { %9862 = vmatpush.bf16.msrb.mxu2 %v14691_v59  ;;  %v14810_v59 = vld [vmem:[#allocation24 + $0x60] sm:$0xf] }
 0x92a   : > { %9521 = vmatmul.bf16.vlgmr.msra.gmra.mxu2 %v17797_v16  ;;  %v14650_v16 = vld [vmem:[#allocation24 + $0x120] sm:$0xf]  ;;  %v14811_v26 = vor.u32 %v16016_v41, %v14810_v59  ;;  %v14834_v59 = vld [vmem:[#allocation24 + $0x90] sm:$0xf]  ;;  %v16022_v41 = vld [vmem:[#allocation24 + $0x94] sm:$0xf0] }
 0x92b   : > { %v14651_v46 = vor.u32 %v16040_v35, %v14650_v16  ;;  %v16011_v16 = vld [vmem:[#allocation24 + $0x44] sm:$0xf]  ;;  %v14796_v35 = vld [vmem:[#allocation24 + $0x48] sm:$0xf0] }
 0x92c   : > { %9878 = vmatpush.bf16.msrb.mxu3 %v14731_v40  ;;  %9891 = vmatpush.bf16.msrb.mxu0 %v14671_v29  ;;  %v16014_v40 = vld [vmem:[#allocation24 + $0x54] sm:$0xf0]  ;;  %v14815_v29 = vor.u32 %v16015_v31, %v14812_v27  ;;  %v14799_v17 = vor.u32 %v16011_v16, %v14796_v35  ;;  %v9614_v31 = vld [vmem:[#allocation6] sm:$0xf]  ;;  %v14835_v27 = vor.u32 %v16022_v41, %v14834_v59 }
 0x92d   : > { %9863 = vmatpush.bf16.msrb.mxu2 %v14683_v11  ;;  %v14875_v11 = vor.u32 %v16032_v37, %v14874_v39  ;;  %v14772_v39 = vld [vmem:[#allocation24 + $0x18] sm:$0xf0] }
 0x930   : > { %9879 = vmatpush.bf16.msrb.mxu3 %v14723_v58  ;;  %9892 = vmatpush.bf16.msrb.mxu0 %v14663_v8  ;;  %v8749_v58 = vperm.slane %v8747_v25, 0  ;;  %v14794_v8 = vld [vmem:[#allocation24 + $0x40] sm:$0xf]  ;;  %v16007_v25 = vld [vmem:[#allocation24 + $0x24] sm:$0xf] }
 0x931   : > { %9864 = vmatpush.bf16.msrb.mxu2 %v14675_v34  ;;  %v14803_v34 = vor.u32 %v16014_v40, %v14802_v10 }
 0x934   : > { %9880 = vmatpush.bf16.msrb.mxu3 %v14715_v53  ;;  %9893 = vmatpush.bf16.msrb.mxu0 %v14655_v63  ;;  %v14786_v53 = vld [vmem:[#allocation24 + $0x30] sm:$0xf]  ;;  %v16010_v63 = vld [vmem:[#allocation24 + $0x34] sm:$0xf0] }
 0x935   : > { %9865 = vmatpush.bf16.msrb.mxu2 %v14667_v57  ;;  %v16012_v57 = vld [vmem:[#allocation24 + $0x44] sm:$0xf0] }
 0x938   : > { %9881 = vmatpush.bf16.msrb.mxu3 %v14707_v9  ;;  %9894 = vmatpush.bf16.msrb.mxu0 %v14647_v38  ;;  %v14787_v9 = vor.u32 %v16010_v63, %v14786_v53  ;;  %v16008_v38 = vld [vmem:[#allocation24 + $0x24] sm:$0xf0]  ;;  %v16081_v63 = vld [vmem:[#allocation24 + $0x274] sm:$0xf] }
 0x939   : > { %9866 = vmatpush.bf16.msrb.mxu2 %v14659_v50  ;;  %v16028_v50 = vld [vmem:[#allocation24 + $0xc4] sm:$0xf0]  ;;  %v14779_v28 = vor.u32 %v16008_v38, %v14778_v24  ;;  %v15002_v24 = vld [vmem:[#allocation24 + $0x2e0] sm:$0xf] }
 0x93a   : > { %v14859_v7 = vor.u32 %v16028_v50, %v14858_v2  ;;  %v16096_v38 = vld [vmem:[#allocation24 + $0x2e4] sm:$0xf0] }
 0x93c   : > { %9882 = vmatpush.bf16.msrb.mxu3 %v14699_v49  ;;  %9895 = vmatpush.bf16.msrb.mxu0 %v14639_v18  ;;  %v14780_v49 = vld [vmem:[#allocation24 + $0x28] sm:$0xf0]  ;;  %v14843_v18 = vor.u32 %v16024_v21, %v14842_v45  ;;  %v16079_v45 = vld [vmem:[#allocation24 + $0x264] sm:$0xf] }
 0x93d   : > { %9867 = vmatpush.bf16.msrb.mxu2 %v14651_v46  ;;  %v14795_v46 = vor.u32 %v16012_v57, %v14794_v8  ;;  %v14783_v51 = vor.u32 %v16007_v25, %v14780_v49  ;;  %v14946_v57 = vld [vmem:[#allocation24 + $0x270] sm:$0xf]  ;;  %v14940_v21 = vld [vmem:[#allocation24 + $0x268] sm:$0xf0] }
 0x93e   : > { %v14930_v25 = vld [vmem:[#allocation24 + $0x250] sm:$0xf] }
 0x940   : > { %10093 = vmatpush.bf16.msra.mxu3 %v14883_v30  ;;  %10106 = vmatpush.bf16.msra.mxu0 %v14823_v47  ;;  %v16005_v47 = vld [vmem:[#allocation24 + $0x14] sm:$0xf] }
 0x941   : > { %9868 = vmatpush.bf16.msrb.mxu2 %v14643_v48  ;;  %v14775_v40 = vor.u32 %v16005_v47, %v14772_v39  ;;  %v16077_v30 = vld [vmem:[#allocation24 + $0x254] sm:$0xf]  ;;  %v14922_v39 = vld [vmem:[#allocation24 + $0x240] sm:$0xf] }
 0x942   : > { %v8800_v15 = vpop.f32.mrf.mxu3 }
 0x943   : > { %v8801_v33 = vadd.f32 %v8800_v15, %v8750_v54  ;;  %v14762_v54 = vld [vmem:[#allocation24] sm:$0xf] }
 0x944   : > { %10094 = vmatpush.bf16.msra.mxu3 %v14875_v11  ;;  %10107 = vmatpush.bf16.msra.mxu0 %v14815_v29  ;;  %v16004_v11 = vld [vmem:[#allocation24 + $0x4] sm:$0xf0]  ;;  %v14826_v15 = vld [vmem:[#allocation24 + $0x80] sm:$0xf] }
 0x945   : > { %9869 = vmatpush.bf16.msrb.mxu2 %v14635_v56  ;;  %v8804_v32 = vmax.f32 %v8801_v33, 0.0  ;;  %v14791_v56 = vor.u32 %v16009_v4, %v14788_v6  ;;  %v16020_v29 = vld [vmem:[#allocation24 + $0x84] sm:$0xf0]  ;;  %v14763_v36 = vor.u32 %v16004_v11, %v14762_v54  ;;  %v14938_v4 = vld [vmem:[#allocation24 + $0x260] sm:$0xf] }
 0x946   : > { %v14924_v54 = vld [vmem:[#allocation24 + $0x248] sm:$0xf0] }
 0x948   : > { %10095 = vmatpush.bf16.msra.mxu3 %v14867_v43  ;;  %10108 = vmatpush.bf16.msra.mxu0 %v14807_v44  ;;  %v16082_v44 = vld [vmem:[#allocation24 + $0x274] sm:$0xf0] }
 0x949   : > { %10080 = vmatpush.bf16.msra.mxu2 %v14819_v23  ;;  %v14770_v23 = vld [vmem:[#allocation24 + $0x10] sm:$0xf] }
 0x94a   : > { %v8780_v1 = vpop.f32.mrf.mxu2 }
 0x94b   : > { %v8781_v19 = vadd.f32 %v8780_v1, %v8749_v58  ;;  %v14767_v58 = vor.u32 %v16003_v62, %v14764_v60  ;;  %v15010_v1 = vld [vmem:[#allocation24 + $0x2f0] sm:$0xf]  ;;  %v16090_v60 = vld [vmem:[#allocation24 + $0x2b4] sm:$0xf0] }
 0x94c   : > { %10096 = vmatpush.bf16.msra.mxu3 %v14859_v7  ;;  %10109 = vmatpush.bf16.msra.mxu0 %v14799_v17  ;;  %v14948_v17 = vld [vmem:[#allocation24 + $0x278] sm:$0xf0]  ;;  %v14978_v62 = vld [vmem:[#allocation24 + $0x2b0] sm:$0xf] }
 0x94d   : > { %10081 = vmatpush.bf16.msra.mxu2 %v14811_v26  ;;  %v8803_v48 = vmax.f32 %v8781_v19, 0.0  ;;  %v14771_v26 = vor.u32 %v16006_v5, %v14770_v23  ;;  %v14943_v23 = vor.u32 %v16079_v45, %v14940_v21  ;;  %v16078_v5 = vld [vmem:[#allocation24 + $0x254] sm:$0xf0]  ;;  %v16084_v45 = vld [vmem:[#allocation24 + $0x284] sm:$0xf0] }
 0x94e   : > { %v14931_v59 = vor.u32 %v16078_v5, %v14930_v25  ;;  %v16067_v21 = vld [vmem:[#allocation24 + $0x204] sm:$0xf] }
 0x94f   : > { %v9593_v12 = vpack.c.bf16 %v8804_v32, %v8803_v48  ;;  %v16098_v32 = vld [vmem:[#allocation24 + $0x2f4] sm:$0xf0]  ;;  %v14947_v48 = vor.u32 %v16082_v44, %v14946_v57  ;;  %v14906_v57 = vld [vmem:[#allocation24 + $0x220] sm:$0xf]  ;;  %v16072_v44 = vld [vmem:[#allocation24 + $0x224] sm:$0xf0] }
 0x950   : > { %10097 = vmatpush.bf16.msra.mxu3 %v14851_v42  ;;  %10110 = vmatpush.bf16.msra.mxu0 %v14791_v56  ;;  %v16080_v42 = vld [vmem:[#allocation24 + $0x264] sm:$0xf0] }
 0x951   : > { %10082 = vmatpush.bf16.msra.mxu2 %v14803_v34  ;;  %v9595_v3 = vrot.slane %v9593_v12, 2  ;;  %v14827_v34 = vor.u32 %v16020_v29, %v14826_v15  ;;  %v14914_v15 = vld [vmem:[#allocation24 + $0x230] sm:$0xf]  ;;  %v16074_v29 = vld [vmem:[#allocation24 + $0x234] sm:$0xf0] }
 0x953   : > { %v9599_v13 = vsel %vm9596_vm3, %v9593_v12, %v9595_v3  ;;  %v14951_v12 = vor.u32 %v16081_v63, %v14948_v17  ;;  %v14962_v63 = vld [vmem:[#allocation24 + $0x290] sm:$0xf]  ;;  %v16086_v17 = vld [vmem:[#allocation24 + $0x294] sm:$0xf0] }
 0x954   : > { %v9600_v55 = vshrl.u32 %v9599_v13, 16  ;;  %v9603_v22 = vshll.u32 %v9599_v13, 16  ;;  %10098 = vmatpush.bf16.msra.mxu3 %v14843_v18  ;;  %10111 = vmatpush.bf16.msra.mxu0 %v14783_v51  ;;  %v15003_v18 = vor.u32 %v16096_v38, %v15002_v24  ;;  %v14932_v51 = vld [vmem:[#allocation24 + $0x258] sm:$0xf0]  ;;  %v16068_v24 = vld [vmem:[#allocation24 + $0x204] sm:$0xf0] }
 0x955   : > { %10083 = vmatpush.bf16.msra.mxu2 %v14795_v46  ;;  %v14935_v47 = vor.u32 %v16077_v30, %v14932_v51  ;;  %v14954_v38 = vld [vmem:[#allocation24 + $0x280] sm:$0xf] }
 0x956   : > { %v9602_v37 = vrot.slane %v9600_v55, 7  ;;  %v14994_v55 = vld [vmem:[#allocation24 + $0x2d0] sm:$0xf] }
 0x958   : > { %v9605_v10 = vor.u32 %v9603_v22, %v9602_v37  ;;  %10099 = vmatpush.bf16.msra.mxu3 %v14835_v27  ;;  %10112 = vmatpush.bf16.msra.mxu0 %v14775_v40  ;;  %v16094_v22 = vld [vmem:[#allocation24 + $0x2d4] sm:$0xf0]  ;;  %v16076_v37 = vld [vmem:[#allocation24 + $0x244] sm:$0xf0]  ;;  %v16075_v27 = vld [vmem:[#allocation24 + $0x244] sm:$0xf] }
 0x959   : > { %10084 = vmatpush.bf16.msra.mxu2 %v14787_v9  ;;  %v15011_v9 = vor.u32 %v16098_v32, %v15010_v1  ;;  %v14995_v41 = vor.u32 %v16094_v22, %v14994_v55  ;;  %v14923_v11 = vor.u32 %v16076_v37, %v14922_v39  ;;  %v14927_v40 = vor.u32 %v16075_v27, %v14924_v54  ;;  %v14908_v1 = vld [vmem:[#allocation24 + $0x228] sm:$0xf0]  ;;  %v16063_v54 = vld [vmem:[#allocation24 + $0x1e4] sm:$0xf] }
 0x95a   : > { %v9615_v20 = vsel %vm9613_vm6, %v9605_v10, %v9614_v31  ;;  %v14986_v31 = vld [vmem:[#allocation24 + $0x2c0] sm:$0xf] }
 0x95b   : > { %9616 = vst [vmem:[#allocation6] sm:$0xf] %v9615_v20  ;;  %v16073_v20 = vld [vmem:[#allocation24 + $0x234] sm:$0xf] }
 0x95c   : > { %10100 = vmatpush.bf16.msra.mxu3 %v14827_v34  ;;  %10113 = vmatpush.bf16.msra.mxu0 %v14767_v58  ;;  %v14915_v34 = vor.u32 %v16074_v29, %v14914_v15  ;;  %v14740_v15 = vld [vmem:[#allocation24 + $0x1d8] sm:$0xf0]  ;;  %v16059_v29 = vld [vmem:[#allocation24 + $0x1c4] sm:$0xf] }
 0x95d   : > { %10085 = vmatpush.bf16.msra.mxu2 %v14779_v28  ;;  %v14939_v28 = vor.u32 %v16080_v42, %v14938_v4  ;;  %v14890_v42 = vld [vmem:[#allocation24 + $0x200] sm:$0xf] }
 0x95e   : > { %v14891_v25 = vor.u32 %v16068_v24, %v14890_v42  ;;  %v16023_v42 = vld [vmem:[#allocation24 + $0xa4] sm:$0xf]  ;;  %v14844_v24 = vld [vmem:[#allocation24 + $0xa8] sm:$0xf0] }
 0x961   : > { %10086 = vmatpush.bf16.msra.mxu2 %v14771_v26  ;;  %v16092_v26 = vld [vmem:[#allocation24 + $0x2c4] sm:$0xf0] }
 0x962   : > { %v17857_v33 = vpop.f32.mrf.mxu3  ;;  %v9650_v43 = vld [vmem:[#allocation6] sm:$0xf]  ;;  %v14987_v10 = vor.u32 %v16092_v26, %v14986_v31 }
 0x963   : > { %9685 = vst [vmem:[#allocation1] ss:$4 sm:$0xff] %v9650_v43  ;;  %v9617_v8 = vld [vmem:[#allocation6] sm:$0x5]  ;;  %v10132_v3 = vld [vmem:[#allocation6] sm:$0xa]  ;;  %v14979_v43 = vor.u32 %v16090_v60, %v14978_v62 }
 0x964   : > { %v14732_v62 = vld [vmem:[#allocation24 + $0x1c8] sm:$0xf0] }
 0x965   : > { %10087 = vmatpush.bf16.msra.mxu2 %v14763_v36  ;;  %v14916_v36 = vld [vmem:[#allocation24 + $0x238] sm:$0xf0]  ;;  %v14735_v60 = vor.u32 %v16059_v29, %v14732_v62  ;;  %v16085_v29 = vld [vmem:[#allocation24 + $0x294] sm:$0xf] }
 0x96a   : > { %v17859_v2 = vpop.f32.mrf.mxu2  ;;  %v9080_v50 = vpop.f32.mrf.mxu3  ;;  %v9686_v16 = vld.sshfl [vmem:[#allocation1] sm:$0xff pattern:$0x73625140]  ;;  %v9687_v35 = vld.sshfl [vmem:[#allocation1 + $0x8] sm:$0xff pattern:$0x73625140] }
 0x96b   : > { %v9688_v46 = vshrl.u32 %v9686_v16, 16  ;;  %v9690_v19 = vshll.u32 %v9686_v16, 16  ;;  %9915 = vst [vmem:[#allocation1] ss:$4 sm:$0xff] %v9617_v8  ;;  %v9694_v7 = vshrl.u32 %v9687_v35, 16  ;;  %v9696_v53 = vshll.u32 %v9687_v35, 16 }
 0x96c   : > { %v14919_v8 = vor.u32 %v16073_v20, %v14916_v36  ;;  %v14970_v50 = vld [vmem:[#allocation24 + $0x2a0] sm:$0xf]  ;;  %v16088_v16 = vld [vmem:[#allocation24 + $0x2a4] sm:$0xf0]  ;;  %v16071_v35 = vld [vmem:[#allocation24 + $0x224] sm:$0xf]  ;;  %v9079_v30 = vadd.f32 %v17857_v33, %v17859_v2 }
 0x96d   : > { %v9692_v0 = vrot.slane %v9690_v19, 1  ;;  %v9698_v14 = vrot.slane %v9696_v53, 1  ;;  %v14971_v19 = vor.u32 %v16088_v16, %v14970_v50  ;;  %v14911_v32 = vor.u32 %v16071_v35, %v14908_v1  ;;  %v16070_v53 = vld [vmem:[#allocation24 + $0x214] sm:$0xf0]  ;;  %v16057_v20 = vld [vmem:[#allocation24 + $0x1b4] sm:$0xf] }
 0x96e   : > { %v14724_v36 = vld [vmem:[#allocation24 + $0x1b8] sm:$0xf0]  ;;  %v14700_v16 = vld [vmem:[#allocation24 + $0x188] sm:$0xf0]  ;;  %v16033_v35 = vld [vmem:[#allocation24 + $0xf4] sm:$0xf] }
 0x96f   : > { %v9693_v6 = vor.u32 %v9692_v0, %v9688_v46  ;;  %v17861_v56 = vor.u32 %v9698_v14, %v9694_v7  ;;  %v14907_v46 = vor.u32 %v16072_v44, %v14906_v57  ;;  %v14898_v7 = vld [vmem:[#allocation24 + $0x210] sm:$0xf]  ;;  %v16069_v0 = vld [vmem:[#allocation24 + $0x214] sm:$0xf]  ;;  %v14900_v14 = vld [vmem:[#allocation24 + $0x218] sm:$0xf0] }
 0x970   : > { %v16053_v57 = vld [vmem:[#allocation24 + $0x194] sm:$0xf]  ;;  %v14708_v44 = vld [vmem:[#allocation24 + $0x198] sm:$0xf0] }
 0x971   : > { %9870 = vmatmul.bf16.vlgmr.msrb.gmra.mxu2 %v9693_v6  ;;  %9896 = vmatmul.bf16.vlgmr.msrb.gmra.mxu0 %v9693_v6  ;;  %v14711_v50 = vor.u32 %v16053_v57, %v14708_v44  ;;  %v14884_v1 = vld [vmem:[#allocation24 + $0xf8] sm:$0xf0] }
 0x972   : > { %v9067_v49 = vpop.f32.mrf.mxu2  ;;  %9883 = vmatmul.bf16.vlgmr.msrb.gmra.mxu3 %v17861_v56  ;;  %10336 = vmatpush.bf16.msrb.mxu2 %v14947_v48  ;;  %v9916_v13 = vld.sshfl [vmem:[#allocation1] sm:$0xff pattern:$0x73625140]  ;;  %v17864_v61 = vld.sshfl [vmem:[#allocation1 + $0x8] sm:$0xff pattern:$0x73625140]  ;;  %v14899_v48 = vor.u32 %v16070_v53, %v14898_v7 }
 0x973   : > { %10349 = vmatpush.bf16.msrb.mxu3 %v15011_v9  ;;  %10362 = vmatpush.bf16.msrb.mxu0 %v14951_v12  ;;  %10167 = vst [vmem:[#allocation1] ss:$4 sm:$0xff] %v10132_v3  ;;  %v14963_v9 = vor.u32 %v16086_v17, %v14962_v63  ;;  %v14903_v12 = vor.u32 %v16069_v0, %v14900_v14  ;;  %v14892_v3 = vld [vmem:[#allocation24 + $0x208] sm:$0xf0]  ;;  %v16029_v63 = vld [vmem:[#allocation24 + $0xd4] sm:$0xf] }
 0x974   : > { %v14955_v49 = vor.u32 %v16084_v45, %v14954_v38  ;;  %v14876_v7 = vld [vmem:[#allocation24 + $0xe8] sm:$0xf0]  ;;  %v14868_v17 = vld [vmem:[#allocation24 + $0xd8] sm:$0xf0]  ;;  %v16027_v14 = vld [vmem:[#allocation24 + $0xc4] sm:$0xf]  ;;  %v14847_v38 = vor.u32 %v16023_v42, %v14844_v24 }
 0x975   : > { %v14871_v0 = vor.u32 %v16029_v63, %v14868_v17  ;;  %v16021_v45 = vld [vmem:[#allocation24 + $0x94] sm:$0xf] }
 0x976   : > { %10337 = vmatpush.bf16.msrb.mxu2 %v14939_v28  ;;  %v14895_v28 = vor.u32 %v16067_v21, %v14892_v3  ;;  %v14836_v21 = vld [vmem:[#allocation24 + $0x98] sm:$0xf0] }
 0x977   : > { %10350 = vmatpush.bf16.msrb.mxu3 %v15003_v18  ;;  %10363 = vmatpush.bf16.msrb.mxu0 %v14943_v23  ;;  %v14839_v3 = vor.u32 %v16021_v45, %v14836_v21  ;;  %v10425_v45 = vld [vmem:[%s17999_s25 + $0x70] sm:$0xff] }
 0x97a   : > { %10338 = vmatpush.bf16.msrb.mxu2 %v14931_v59  ;;  %v17867_v18 = vld.sshfl [vmem:[#allocation1 + $0x8] sm:$0xff pattern:$0x73625140]  ;;  %v16065_v59 = vld [vmem:[#allocation24 + $0x1f4] sm:$0xf] }
 0x97b   : > { %10351 = vmatpush.bf16.msrb.mxu3 %v14995_v41  ;;  %10364 = vmatpush.bf16.msrb.mxu0 %v14935_v47  ;;  %v10173_v55 = vrot.slane %v17867_v18, 1  ;;  %v14756_v41 = vld [vmem:[#allocation24 + $0x1f8] sm:$0xf0] }
 0x97c   : > { %v14759_v26 = vor.u32 %v16065_v59, %v14756_v41  ;;  %v16093_v59 = vld [vmem:[#allocation24 + $0x2d4] sm:$0xf]  ;;  %v14996_v41 = vld [vmem:[#allocation24 + $0x2d8] sm:$0xf0] }
 0x97e   : > { %10339 = vmatpush.bf16.msrb.mxu2 %v14923_v11  ;;  %v14748_v11 = vld [vmem:[#allocation24 + $0x1e8] sm:$0xf0] }
 0x97f   : > { %10352 = vmatpush.bf16.msrb.mxu3 %v14987_v10  ;;  %10365 = vmatpush.bf16.msrb.mxu0 %v14927_v40  ;;  %v14751_v10 = vor.u32 %v16063_v54, %v14748_v11  ;;  %v16061_v40 = vld [vmem:[#allocation24 + $0x1d4] sm:$0xf] }
 0x980   : > { %v14743_v2 = vor.u32 %v16061_v40, %v14740_v15  ;;  %v14972_v40 = vld [vmem:[#allocation24 + $0x2a8] sm:$0xf0] }
 0x981   : > { %10088 = vmatmul.bf16.vlgmr.msra.gmra.mxu2 %v9916_v13  ;;  %10114 = vmatmul.bf16.vlgmr.msra.gmra.mxu0 %v9916_v13  ;;  %v10168_v13 = vld.sshfl [vmem:[#allocation1] sm:$0xff pattern:$0x73625140] }
 0x982   : > { %v9290_v58 = vpop.f32.mrf.mxu3  ;;  %10101 = vmatmul.bf16.vlgmr.msra.gmra.mxu3 %v17864_v61  ;;  %10340 = vmatpush.bf16.msrb.mxu2 %v14915_v34  ;;  %v10172_v5 = vrot.slane %v10168_v13, 1  ;;  %v14727_v34 = vor.u32 %v16057_v20, %v14724_v36  ;;  %v16083_v36 = vld [vmem:[#allocation24 + $0x284] sm:$0xf] }
 0x983   : > { %10353 = vmatpush.bf16.msrb.mxu3 %v14979_v43  ;;  %10366 = vmatpush.bf16.msrb.mxu0 %v14919_v8  ;;  %v14716_v43 = vld [vmem:[#allocation24 + $0x1a8] sm:$0xf0] }
 0x986   : > { %10341 = vmatpush.bf16.msrb.mxu2 %v14907_v46 }
 0x987   : > { %10354 = vmatpush.bf16.msrb.mxu3 %v14971_v19  ;;  %10367 = vmatpush.bf16.msrb.mxu0 %v14911_v32  ;;  %v14887_v19 = vor.u32 %v16033_v35, %v14884_v1  ;;  %v16031_v32 = vld [vmem:[#allocation24 + $0xe4] sm:$0xf] }
 0x988   : > { %v14879_v53 = vor.u32 %v16031_v32, %v14876_v7  ;;  %v9541_v32 = vld [vmem:[%s17996_s22] sm:$0x3] }
 0x989   : > { %v10390_v7 = vld [vmem:[%s17998_s24] sm:$0x3] }
 0x98a   : > { %v9277_v4 = vpop.f32.mrf.mxu2  ;;  %v9292_v6 = vpop.f32.mrf.mxu3  ;;  %10342 = vmatpush.bf16.msrb.mxu2 %v14899_v48  ;;  %v14860_v48 = vld [vmem:[#allocation24 + $0xc8] sm:$0xf0]  ;;  %v10392_v17 = vperm.slane %v10390_v7, 0 }
 0x98b   : > { %10355 = vmatpush.bf16.msrb.mxu3 %v14963_v9  ;;  %10368 = vmatpush.bf16.msrb.mxu0 %v14903_v12  ;;  %v9278_v51 = vadd.f32 %v9277_v4, %v9079_v30  ;;  %v14863_v4 = vor.u32 %v16027_v14, %v14860_v48  ;;  %v16025_v6 = vld [vmem:[#allocation24 + $0xb4] sm:$0xf]  ;;  %v14852_v9 = vld [vmem:[#allocation24 + $0xb8] sm:$0xf0] }
 0x98c   : > { %v14855_v12 = vor.u32 %v16025_v6, %v14852_v9 }
 0x98d   : > { %v9291_v37 = vadd.f32 %v9290_v58, %v9278_v51  ;;  %v16055_v58 = vld [vmem:[#allocation24 + $0x1a4] sm:$0xf] }
 0x98e   : > { %10343 = vmatpush.bf16.msrb.mxu2 %v14891_v25  ;;  %v14719_v8 = vor.u32 %v16055_v58, %v14716_v43  ;;  %v16019_v25 = vld [vmem:[#allocation24 + $0x84] sm:$0xf] }
 0x98f   : > { %10356 = vmatpush.bf16.msrb.mxu3 %v14955_v49  ;;  %10369 = vmatpush.bf16.msrb.mxu0 %v14895_v28  ;;  %v16097_v49 = vld [vmem:[#allocation24 + $0x2f4] sm:$0xf]  ;;  %v15012_v28 = vld [vmem:[#allocation24 + $0x2f8] sm:$0xf0] }
 0x991   : > { %10344 = vmatmul.bf16.vlgmr.msrb.gmra.mxu2 %v10172_v5 }
 0x992   : > { %v9279_v23 = vpop.f32.mrf.mxu2  ;;  %10357 = vmatmul.bf16.vlgmr.msrb.gmra.mxu3 %v10173_v55  ;;  %10370 = vmatmul.bf16.vlgmr.msrb.gmra.mxu0 %v10172_v5  ;;  %v16095_v5 = vld [vmem:[#allocation24 + $0x2e4] sm:$0xf] }
 0x993   : > { %v15015_v23 = vor.u32 %v16097_v49, %v15012_v28  ;;  %v10423_v49 = vld [vmem:[%s17999_s25 + $0x60] sm:$0xff]  ;;  %v10422_v28 = vld [vmem:[%s17999_s25 + $0x58] sm:$0xff] }
 0x99c   : > { %v9570_v30 = vpop.f32.mrf.mxu0 }
 0x9a2   : > { %v9535_v22 = vpop.f32.mrf.mxu3 }
 0x9aa   : > { %v9537_v39 = vpop.f32.mrf.mxu3 }
 0x9ab   : > { %v16091_v39 = vld [vmem:[#allocation24 + $0x2c4] sm:$0xf] }
 0x9ad   : > { %v9522_v47 = vpop.f32.mrf.mxu2 }
 0x9ae   : > { %v9536_v31 = vadd.f32 %v9535_v22, %v9522_v47  ;;  %v15004_v22 = vld [vmem:[#allocation24 + $0x2e8] sm:$0xf0]  ;;  %v14999_v47 = vor.u32 %v16093_v59, %v14996_v41  ;;  %v10415_v59 = vld [vmem:[%s17999_s25 + $0x20] sm:$0xff] }
 0x9af   : > { %v15007_v51 = vor.u32 %v16095_v5, %v15004_v22  ;;  %v10419_v5 = vld [vmem:[%s17999_s25 + $0x40] sm:$0xff]  ;;  %v10418_v22 = vld [vmem:[%s17999_s25 + $0x38] sm:$0xff] }
 0x9b0   : > { %v9540_v27 = vadd.f32 %v9536_v31, %v9291_v37  ;;  %v14988_v37 = vld [vmem:[#allocation24 + $0x2c8] sm:$0xf0] }
 0x9b1   : > { %v14991_v31 = vor.u32 %v16091_v39, %v14988_v37  ;;  %v10413_v39 = vld [vmem:[%s17999_s25 + $0x10] sm:$0xff] }
 0x9b2   : > { %14630 = vmatpush.msk.msra.mxu1 %vm7168_vm11, %v9540_v27  ;;  %v14980_v27 = vld [vmem:[#allocation24 + $0x2b8] sm:$0xf0] }
 0x9b3   : > { %14631 = vmatmul.msk.f32.vlgmr.msra.gmra.mxu1 %vm8753_vm10, %v17500_v52  ;;  %v16051_v52 = vld [vmem:[#allocation24 + $0x184] sm:$0xf] }
 0x9b4   : > { %9901 = vmatpush.bf16.msrb.mxu1 %v14759_v26  ;;  %v14703_v46 = vor.u32 %v16051_v52, %v14700_v16  ;;  %v16089_v26 = vld [vmem:[#allocation24 + $0x2b4] sm:$0xf] }
 0x9b5   : > { %v9524_v33 = vpop.f32.mrf.mxu2  ;;  %v14983_v11 = vor.u32 %v16089_v26, %v14980_v27  ;;  %v10412_v26 = vld [vmem:[%s17999_s25 + $0x8] sm:$0xff]  ;;  %v9544_v27 = vperm.slane %v9541_v32, 1 }
 0x9b8   : > { %9902 = vmatpush.bf16.msrb.mxu1 %v14751_v10  ;;  %v16087_v10 = vld [vmem:[#allocation24 + $0x2a4] sm:$0xf] }
 0x9b9   : > { %v14975_v33 = vor.u32 %v16087_v10, %v14972_v40  ;;  %v10393_v10 = vperm.slane %v10390_v7, 1  ;;  %v10411_v40 = vld [vmem:[%s17999_s25] sm:$0xff] }
 0x9bc   : > { %9903 = vmatpush.bf16.msrb.mxu1 %v14743_v2 }
 0x9c0   : > { %9904 = vmatpush.bf16.msrb.mxu1 %v14735_v60 }
 0x9c4   : > { %9905 = vmatpush.bf16.msrb.mxu1 %v14727_v34  ;;  %v14956_v34 = vld [vmem:[#allocation24 + $0x288] sm:$0xf0] }
 0x9c5   : > { %v14959_v43 = vor.u32 %v16083_v36, %v14956_v34 }
 0x9c8   : > { %9906 = vmatpush.bf16.msrb.mxu1 %v14719_v8 }
 0x9cc   : > { %9907 = vmatpush.bf16.msrb.mxu1 %v14711_v50 }
 0x9d0   : > { %9908 = vmatpush.bf16.msrb.mxu1 %v14703_v46 }
 0x9d3   : > { %9909 = vmatmul.bf16.vlgmr.msrb.gmra.mxu1 %v17861_v56  ;;  %v14828_v56 = vld [vmem:[#allocation24 + $0x88] sm:$0xf0] }
 0x9d4   : > { %10119 = vmatpush.bf16.msra.mxu1 %v14887_v19  ;;  %v14831_v13 = vor.u32 %v16019_v25, %v14828_v56  ;;  %v10424_v25 = vld [vmem:[%s17999_s25 + $0x68] sm:$0xff] }
 0x9d8   : > { %10120 = vmatpush.bf16.msra.mxu1 %v14879_v53  ;;  %v9543_v53 = vperm.slane %v9541_v32, 0 }
 0x9da   : > { %v9571_v14 = vadd.f32 %v9570_v30, %v9543_v53  ;;  %v10417_v30 = vld [vmem:[%s17999_s25 + $0x30] sm:$0xff] }
 0x9dc   : > { %10121 = vmatpush.bf16.msra.mxu1 %v14871_v0 }
 0x9e0   : > { %10122 = vmatpush.bf16.msra.mxu1 %v14863_v4 }
 0x9e4   : > { %10123 = vmatpush.bf16.msra.mxu1 %v14855_v12 }
 0x9e8   : > { %10124 = vmatpush.bf16.msra.mxu1 %v14847_v38  ;;  %v10426_v38 = vld [vmem:[%s17999_s25 + $0x78] sm:$0xff] }
 0x9e9   : > { %10428 = vmatpush.msra.mxu2 %v10426_v38 }
 0x9eb   : > { %10429 = vmatpush.msra.mxu2 %v10425_v45 }
 0x9ec   : > { %10125 = vmatpush.bf16.msra.mxu1 %v14839_v3 }
 0x9ed   : > { %10430 = vmatpush.msra.mxu2 %v10424_v25 }
 0x9ee   : > { %v17879_v54 = vpop.f32.mrf.mxu0 }
 0x9ef   : > { %10431 = vmatpush.msra.mxu2 %v10423_v49 }
 0x9f0   : > { %10126 = vmatpush.bf16.msra.mxu1 %v14831_v13  ;;  %v10421_v13 = vld [vmem:[%s17999_s25 + $0x50] sm:$0xff] }
 0x9f1   : > { %10432 = vmatpush.msra.mxu2 %v10422_v28 }
 0x9f3   : > { %10127 = vmatmul.bf16.vlgmr.msra.gmra.mxu1 %v17864_v61  ;;  %v14964_v61 = vld [vmem:[#allocation24 + $0x298] sm:$0xf0]  ;;  %10433 = vmatpush.msra.mxu2 %v10421_v13 }
 0x9f4   : > { %10375 = vmatpush.bf16.msrb.mxu1 %v15015_v23  ;;  %v9871_v15 = vpop.f32.mrf.mxu2  ;;  %v14967_v20 = vor.u32 %v16085_v29, %v14964_v61  ;;  %v10420_v23 = vld [vmem:[%s17999_s25 + $0x48] sm:$0xff] }
 0x9f5   : > { %v9884_v2 = vpop.f32.mrf.mxu3  ;;  %10434 = vmatpush.msra.mxu2 %v10420_v23 }
 0x9f6   : > { %v9885_v62 = vadd.f32 %v9884_v2, %v9871_v15  ;;  %v9899_v60 = vpop.f32.mrf.mxu0 }
 0x9f7   : > { %10435 = vmatpush.msra.mxu2 %v10419_v5 }
 0x9f8   : > { %10376 = vmatpush.bf16.msrb.mxu1 %v15007_v51  ;;  %v10416_v51 = vld [vmem:[%s17999_s25 + $0x28] sm:$0xff] }
 0x9f9   : > { %10436 = vmatpush.msra.mxu2 %v10418_v22 }
 0x9fb   : > { %10437 = vmatpush.msra.mxu2 %v10417_v30 }
 0x9fc   : > { %10377 = vmatpush.bf16.msrb.mxu1 %v14999_v47  ;;  %v9873_v58 = vpop.f32.mrf.mxu2  ;;  %v10414_v47 = vld [vmem:[%s17999_s25 + $0x18] sm:$0xff] }
 0x9fd   : > { %v9886_v8 = vpop.f32.mrf.mxu3  ;;  %10438 = vmatpush.msra.mxu2 %v10416_v51 }
 0x9fe   : > { %v10115_v57 = vpop.f32.mrf.mxu0 }
 0x9ff   : > { %10439 = vmatpush.msra.mxu2 %v10415_v59 }
 0xa00   : > { %10378 = vmatpush.bf16.msrb.mxu1 %v14991_v31 }
 0xa01   : > { %10440 = vmatpush.msra.mxu2 %v10414_v47 }
 0xa03   : > { %10441 = vmatpush.msra.mxu2 %v10413_v39 }
 0xa04   : > { %10379 = vmatpush.bf16.msrb.mxu1 %v14983_v11  ;;  %v10089_v44 = vpop.f32.mrf.mxu2 }
 0xa05   : > { %v10090_v50 = vadd.f32 %v10089_v44, %v9885_v62  ;;  %v10102_v52 = vpop.f32.mrf.mxu3  ;;  %10442 = vmatpush.msra.mxu2 %v10412_v26 }
 0xa06   : > { %v10117_v16 = vpop.f32.mrf.mxu0 }
 0xa07   : > { %v10103_v35 = vadd.f32 %v10102_v52, %v10090_v50  ;;  %10443 = vmatpush.msra.mxu2 %v10411_v40  ;;  %v10427_v52 = vld [vmem:[%s18078_s17] sm:$0x1] }
 0xa08   : > { %10380 = vmatpush.bf16.msrb.mxu1 %v14975_v33 }
 0xa0c   : > { %10381 = vmatpush.bf16.msrb.mxu1 %v14967_v20  ;;  %v10091_v1 = vpop.f32.mrf.mxu2 }
 0xa0d   : > { %v10104_v46 = vpop.f32.mrf.mxu3 }
 0xa0f   : > { %v10371_v19 = vpop.f32.mrf.mxu0 }
 0xa10   : > { %10382 = vmatpush.bf16.msrb.mxu1 %v14959_v43 }
 0xa13   : > { %10383 = vmatmul.bf16.vlgmr.msrb.gmra.mxu1 %v10173_v55 }
 0xa14   : > { %v10345_v63 = vpop.f32.mrf.mxu2 }
 0xa15   : > { %v10358_v18 = vpop.f32.mrf.mxu3 }
 0xa16   : > { %v10359_v55 = vadd.f32 %v10358_v18, %v10345_v63 }
 0xa17   : > { %v10373_v0 = vpop.f32.mrf.mxu0 }
 0xa18   : > { %v10388_v48 = vadd.f32 %v10359_v55, %v10103_v35 }
 0xa1a   : > { %v10396_v4 = vadd.f32 %v10392_v17, %v10388_v48 }
 0xa1c   : > { %v10398_v6 = vadd.f32 %v10396_v4, %v9571_v14  ;;  %v10347_v9 = vpop.f32.mrf.mxu2 }
 0xa1d   : > { %v10360_v12 = vpop.f32.mrf.mxu3 }
 0xa1e   : > { %v10400_v62 = vmax.f32 %v10398_v6, 0.0 }
 0xa30   : > { %v9590_v42 = vpop.f32.mrf.mxu1 }
 0xa31   : > { %v9591_v33 = vadd.f32 %v9590_v42, %v9544_v27 }
 0xa50   : > { %v9910_v24 = vpop.f32.mrf.mxu1 }
 0xa51   : > { %v9911_v41 = vadd.f32 %v9910_v24, %v17879_v54 }
 0xa53   : > { %v10116_v37 = vadd.f32 %v10115_v57, %v9911_v41 }
 0xa58   : > { %v9912_v21 = vpop.f32.mrf.mxu1 }
 0xa70   : > { %v10128_v3 = vpop.f32.mrf.mxu1 }
 0xa71   : > { %v10129_v11 = vadd.f32 %v10128_v3, %v10116_v37 }
 0xa78   : > { %v10130_v56 = vpop.f32.mrf.mxu1 }
 0xa90   : > { %v10384_v31 = vpop.f32.mrf.mxu1 }
 0xa91   : > { %v10385_v54 = vadd.f32 %v10384_v31, %v10371_v19 }
 0xa93   : > { %v10389_v15 = vadd.f32 %v10385_v54, %v10129_v11 }
 0xa95   : > { %v10397_v2 = vadd.f32 %v10393_v10, %v10389_v15 }
 0xa97   : > { %v10399_v29 = vadd.f32 %v10397_v2, %v9591_v33 }
 0xa98   : > { %v10386_v61 = vpop.f32.mrf.mxu1 }
 0xa99   : > { %v10401_v60 = vmax.f32 %v10399_v29, 0.0 }
 0xa9b   : > { %v10402_v20 = vadd.f32 %v10401_v60, %v10400_v62 }
 0xa9d   : > { %v10403_v36 = vsel %vm9596_vm3, %v10402_v20, 0.0 }
 0xa9e   : > { %v10404_v34 = vrot.slane %v10403_v36, 4 }
 0xaa0   : > { %v10405_v58 = vadd.f32 %v10404_v34, %v10403_v36 }
 0xaa2   : > { %v10406_v43 = vrot.slane %v10405_v58, 2 }
 0xaa4   : > { %v10407_v8 = vadd.f32 %v10406_v43, %v10405_v58 }
 0xaa6   : > { %v10408_v57 = vrot.slane %v10407_v8, 1 }
 0xaa8   : > { %v10409_v44 = vadd.f32 %v10408_v57, %v10407_v8 }
 0xaaa   : > { %v10410_v50 = vmul.f32 0.25, %v10409_v44 }
 0xaac   : > { %10444 = vmatmul.f32.vlgmr.msra.gmra.mxu2 %v10410_v50 }
 0xb2f   : > { %v10445_v16 = vpop.f32.mrf.mxu2 }
 0xb30   : > { %v10446_v35 = vadd.f32 %v10445_v16, %v10427_v52 }
 0xb32   : > { %10449 = vst.msk [vmem:[%s992_s1] sm:$0x1] %vm10448_vm9, %v10446_v35 }
 0xb33   : > { %16619 = shalt.err (!%p16616_p8)
}
 0xb34   : > { %16150 = dma.vmem_to_hbm [thread:$0]  (%p16873_p5), %s10462_s30, 16, %s10464_s6, %s10451_s2  }
 0xb35 PF: > { %s18080_s10 = sld [smem:[#allocation36_spill]] }
 0xb36   : > { %s18081_s29 = sld [smem:[#allocation33_spill]] }
 0xb3b   : > { %p16212_p9 = scmp.ge.s32.totalorder %s18080_s10, 2 }
 0xb3c   : > { %s10475_s28 = sand.u32 1, %s18081_s29  }
 0xb3d   : > { %p16187_p10 = pnand %p16212_p9, %p16877_p6  ;;  %s10476_s17 = scalar_lea.sflag [#allocation9], %s10475_s28 }
 0xb3f   : > { %p16188_p11 = pneg %p16187_p10 }
 0xb41   : > { %16661 = dma.done.wait (%p16188_p11), %s10476_s17, 16  }
 0xb42   : > { %16663 = vsyncadd (%p16188_p11), %s10476_s17, 4294967280  ;;  %s18083_s30 = sld [smem:[#allocation37_spill]] }
 0xb43   : > { %s18084_s7 = sld [smem:[#allocation34_spill]] }
 0xb44   : > { %s18085_s4 = sld [smem:[#allocation35_spill]] }
 0xb45   : > { %s18086_s8 = sld [smem:[#allocation38_spill]] }
 0xb48   : > { %p43_p12 = scmp.ge.s32.totalorder %s18083_s30, 4  }
 0xb4a   :  { %45 = sbr.rel (!%p43_p12) target bundleno = 26 (0x1a), region = 232 }
 0xb4f   :  { %10481 = vsyncpa [#allocation8], 1 }
 0xb50   :  { %10483 = vsyncpa [#allocation8 + $0x1], 1 }
 0xb51   :  { %10484 = vsyncpa [#allocation11], 1 }
 0xb52   :  { %10485 = vsyncpa [#allocation14], 1 }
 0xb53   :  { %10486 = vsyncpa [#allocation17], 1 }
 0xb54   :  { %10487 = vsyncpa [#allocation20], 1 }
 0xb55   :  { %10488 = vsyncpa [#allocation23], 1 }
 0xb56   :  { %10489 = vsyncpa [#allocation9], 1 }
 0xb57   :  { %10491 = vsyncpa [#allocation9 + $0x1], 1 }

</bundles_post_ra>
